<compile_context>
chip_gen: v5e
topology: v5e:2x2
jax: 0.10.0
libtpu: 0.0.40
codegen_flags: <defaults>
</compile_context>

<pallas_src>
import jax
import jax.numpy as jnp
from jax.experimental import pallas as pl
from jax.experimental.pallas import tpu as pltpu

# ----------------------------- config (defaults from the module) ------------
VOCAB_SIZE = 32
EMB = 16            # embedding_size
HID = 50            # hidden_size   (encoder LSTM, per direction)
DEC_L = 32          # decider_lstm_size
LIN = 32            # decider_linear_size
TENC = 8            # time_encoding_size
MAX_ACTIONS = 10    # config['max_actions']
SEQ = 8             # number of tokens in state['model']


# ----------------------------- Pallas kernel --------------------------------
def policy_kernel(emb_ref,
                  wf_ih_ref, wf_hh_ref, bf_ref,          # encoder fwd LSTM (gate-split)
                  wb_ih_ref, wb_hh_ref, bb_ref,          # encoder bwd LSTM (gate-split)
                  wd_f_ref, wd_b_ref, wd_hh_ref, bd_ref,  # decider LSTM (gate-split)
                  time_ref,                              # time encoding [1, TENC]
                  wl1_h_ref, wl1_t_ref, bl1_ref,         # linear 1 (split input)
                  wl2_ref, bl2_ref,                      # linear 2
                  out_ref,
                  enc_f_ref, enc_b_ref):                 # VMEM scratch [S, H] each
    E = emb_ref[...].astype(jnp.float32)                  # [S, EMB]
    S = E.shape[0]
    H = wf_hh_ref.shape[1]
    L = wd_hh_ref.shape[1]

    def dot(a, b):
        return jnp.dot(a, b, preferred_element_type=jnp.float32)

    # ---- hoisted encoder input projections (bias folded in), gate order i,f,g,o
    xf = [dot(E, wf_ih_ref[g]) + bf_ref[g] for g in range(4)]   # each [S, H]
    xb = [dot(E, wb_ih_ref[g]) + bb_ref[g] for g in range(4)]   # each [S, H]

    wf_hh = [wf_hh_ref[g] for g in range(4)]
    wb_hh = [wb_hh_ref[g] for g in range(4)]

    # ---- interleaved fwd/bwd encoder recurrences (independent chains) ----
    hf = jnp.zeros((1, H), jnp.float32)
    cf = jnp.zeros((1, H), jnp.float32)
    hb = jnp.zeros((1, H), jnp.float32)
    cb = jnp.zeros((1, H), jnp.float32)

    for t in range(S):
        tb = S - 1 - t
        # forward-direction gate pre-activations (only h @ W_hh on the chain)
        f_i = xf[0][t:t + 1, :] + dot(hf, wf_hh[0])
        f_f = xf[1][t:t + 1, :] + dot(hf, wf_hh[1])
        f_g = xf[2][t:t + 1, :] + dot(hf, wf_hh[2])
        f_o = xf[3][t:t + 1, :] + dot(hf, wf_hh[3])
        # backward-direction gate pre-activations (independent of fwd)
        b_i = xb[0][tb:tb + 1, :] + dot(hb, wb_hh[0])
        b_f = xb[1][tb:tb + 1, :] + dot(hb, wb_hh[1])
        b_g = xb[2][tb:tb + 1, :] + dot(hb, wb_hh[2])
        b_o = xb[3][tb:tb + 1, :] + dot(hb, wb_hh[3])

        cf = jax.nn.sigmoid(f_f) * cf + jax.nn.sigmoid(f_i) * jnp.tanh(f_g)
        hf = jax.nn.sigmoid(f_o) * jnp.tanh(cf)
        cb = jax.nn.sigmoid(b_f) * cb + jax.nn.sigmoid(b_i) * jnp.tanh(b_g)
        hb = jax.nn.sigmoid(b_o) * jnp.tanh(cb)

        enc_f_ref[t:t + 1, :] = hf
        enc_b_ref[tb:tb + 1, :] = hb

    # ---- decider LSTM over [h_fwd | h_bwd] encodings ----
    # Input projections hoisted as batched [S, H] x [H, L] matmuls; lane concat
    # avoided by splitting the input weight matrix into fwd/bwd halves.
    Hf = enc_f_ref[...]                                    # [S, H]
    Hb = enc_b_ref[...]                                    # [S, H]
    xd = [dot(Hf, wd_f_ref[g]) + dot(Hb, wd_b_ref[g]) + bd_ref[g]
          for g in range(4)]                               # each [S, L]
    wd_hh = [wd_hh_ref[g] for g in range(4)]

    hd = jnp.zeros((1, L), jnp.float32)
    cd = jnp.zeros((1, L), jnp.float32)
    for t in range(S):
        d_i = xd[0][t:t + 1, :] + dot(hd, wd_hh[0])
        d_f = xd[1][t:t + 1, :] + dot(hd, wd_hh[1])
        d_g = xd[2][t:t + 1, :] + dot(hd, wd_hh[2])
        d_o = xd[3][t:t + 1, :] + dot(hd, wd_hh[3])
        cd = jax.nn.sigmoid(d_f) * cd + jax.nn.sigmoid(d_i) * jnp.tanh(d_g)
        hd = jax.nn.sigmoid(d_o) * jnp.tanh(cd)

    # ---- head: [hd | time_enc] -> Linear -> ReLU -> Linear -> Softmax(dim=1)
    z = dot(hd, wl1_h_ref[...]) + dot(time_ref[...], wl1_t_ref[...]) + bl1_ref[...]
    z = jnp.maximum(z, 0.0)
    logits = dot(z, wl2_ref[...]) + bl2_ref[...]
    m = jnp.max(logits, axis=1, keepdims=True)
    e = jnp.exp(logits - m)
    out_ref[...] = e / jnp.sum(e, axis=1, keepdims=True)
    # TODO(synk): training-mode `softmax(probabilities / temperature)` branch
    # is not applied (module runs in eval mode / temperature == 1).


# ----------------------------- wrapper ---------------------------------------
def policy_forward(params, token_ids, timeleft, totaltime):
    # glue: vocabulary lookup (Vocabulary.id + nn.Embedding gather)
    emb = params["embedding"][token_ids]                       # [S, EMB] f32

    # glue: timeencoding.encode_time(timeleft, totaltime, TENC)
    # TODO(synk): original encode_time is external; thermometer encoding of
    # the remaining-time fraction is used as the deterministic stand-in.
    frac = jnp.asarray(timeleft, jnp.float32) / jnp.asarray(totaltime, jnp.float32)
    idx = jnp.arange(TENC, dtype=jnp.float32)
    time_enc = jnp.clip(frac * TENC - idx, 0.0, 1.0).reshape(1, TENC)

    inputs = (
        emb,
        params["wf_ih"], params["wf_hh"], params["bf"],
        params["wb_ih"], params["wb_hh"], params["bb"],
        params["wd_f"], params["wd_b"], params["wd_hh"], params["bd"],
        time_enc,
        params["wl1_h"], params["wl1_t"], params["bl1"],
        params["wl2"], params["bl2"],
    )

    # Single invocation, no grid: total resident data is ~200 KB, far below
    # VMEM on v5e/v6e/v7x, so every operand lives whole in VMEM.
    return pl.pallas_call(
        policy_kernel,
        out_shape=jax.ShapeDtypeStruct((1, MAX_ACTIONS), jnp.float32),
        scratch_shapes=[
            pltpu.VMEM((SEQ, HID), jnp.float32),   # fwd encoder outputs
            pltpu.VMEM((SEQ, HID), jnp.float32),   # bwd encoder outputs
        ],
    )(*inputs)


# ----------------------------- deterministic params --------------------------
def init_params(key):
    ks = jax.random.split(key, 16)
    s = 0.1

    def rnd(k, shape):
        return s * jax.random.normal(k, shape, jnp.float32)

    # Gate-split layout: leading axis of size 4 is the (i, f, g, o) gate index
    # (matches PyTorch nn.LSTM gate order; checkpoint import would slice the
    # PyTorch [4H, in] matrices per gate and transpose).
    return {
        "embedding": rnd(ks[0], (VOCAB_SIZE, EMB)),
        # encoder bidirectional LSTM (per-direction hidden = HID)
        "wf_ih": rnd(ks[1], (4, EMB, HID)),
        "wf_hh": rnd(ks[2], (4, HID, HID)),
        "bf": rnd(ks[3], (4, 1, HID)),
        "wb_ih": rnd(ks[4], (4, EMB, HID)),
        "wb_hh": rnd(ks[5], (4, HID, HID)),
        "bb": rnd(ks[6], (4, 1, HID)),
        # decider LSTM: input = 2*HID (fwd|bwd split), hidden = DEC_L
        "wd_f": rnd(ks[7], (4, HID, DEC_L)),
        "wd_b": rnd(ks[8], (4, HID, DEC_L)),
        "wd_hh": rnd(ks[9], (4, DEC_L, DEC_L)),
        "bd": rnd(ks[10], (4, 1, DEC_L)),
        # linear head: input = DEC_L + TENC (split), out = LIN, then actions
        "wl1_h": rnd(ks[11], (DEC_L, LIN)),
        "wl1_t": rnd(ks[12], (TENC, LIN)),
        "bl1": rnd(ks[13], (1, LIN)),
        "wl2": rnd(ks[14], (LIN, MAX_ACTIONS)),
        "bl2": rnd(ks[15], (1, MAX_ACTIONS)),
    }


# ----------------------------- main -------------------------------------------
if __name__ == "__main__":
    key = jax.random.PRNGKey(0)
    pkey, tkey = jax.random.split(key)
    params = init_params(pkey)

    # state['model'] -> token ids, state['timeleft'] / state['totaltime']
    token_ids = jax.random.randint(tkey, (SEQ,), 0, VOCAB_SIZE, jnp.int32)
    timeleft, totaltime = 37.5, 100.0

    probs = policy_forward(params, token_ids, timeleft, totaltime)
    probs = jax.block_until_ready(probs)

    assert probs.shape == (1, MAX_ACTIONS)
    assert bool(jnp.all(jnp.isfinite(probs)))
    assert abs(float(jnp.sum(probs)) - 1.0) < 1e-4
    print("KERNEL_OK")
</pallas_src>

<mosaic_0001>
module attributes {stable_mosaic.version = 11 : i64} {
  func.func @policy_kernel(%arg0: memref<8x16xf32, #tpu.memory_space<vmem>>, %arg1: memref<4x16x50xf32, #tpu.memory_space<vmem>>, %arg2: memref<4x50x50xf32, #tpu.memory_space<vmem>>, %arg3: memref<4x1x50xf32, #tpu.memory_space<vmem>>, %arg4: memref<4x16x50xf32, #tpu.memory_space<vmem>>, %arg5: memref<4x50x50xf32, #tpu.memory_space<vmem>>, %arg6: memref<4x1x50xf32, #tpu.memory_space<vmem>>, %arg7: memref<4x50x32xf32, #tpu.memory_space<vmem>>, %arg8: memref<4x50x32xf32, #tpu.memory_space<vmem>>, %arg9: memref<4x32x32xf32, #tpu.memory_space<vmem>>, %arg10: memref<4x1x32xf32, #tpu.memory_space<vmem>>, %arg11: memref<1x8xf32, #tpu.memory_space<vmem>>, %arg12: memref<32x32xf32, #tpu.memory_space<vmem>>, %arg13: memref<8x32xf32, #tpu.memory_space<vmem>>, %arg14: memref<1x32xf32, #tpu.memory_space<vmem>>, %arg15: memref<32x10xf32, #tpu.memory_space<vmem>>, %arg16: memref<1x10xf32, #tpu.memory_space<vmem>>, %arg17: memref<1x10xf32, #tpu.memory_space<vmem>>, %arg18: memref<8x50xf32, #tpu.memory_space<vmem>>, %arg19: memref<8x50xf32, #tpu.memory_space<vmem>>) attributes {dimension_semantics = [], scalar_prefetch = 0 : i64, scratch_operands = 2 : i64, tpu.core_type = #tpu.core_type<tc>} {
    %c0 = arith.constant 0 : index
    %c0_0 = arith.constant 0 : index
    %0 = vector.load %arg0[%c0, %c0_0] : memref<8x16xf32, #tpu.memory_space<vmem>>, vector<8x16xf32>
    %c0_1 = arith.constant 0 : index
    %c0_2 = arith.constant 0 : index
    %c0_3 = arith.constant 0 : index
    %1 = vector.load %arg1[%c0_1, %c0_2, %c0_3] : memref<4x16x50xf32, #tpu.memory_space<vmem>>, vector<1x16x50xf32>
    %2 = vector.shape_cast %1 : vector<1x16x50xf32> to vector<16x50xf32>
    %cst = arith.constant dense<0.000000e+00> : vector<8x50xf32>
    %3 = tpu.matmul %0, %2, %cst {dimension_numbers = #tpu.dot_dimension_numbers<[1], [0], [0], [1], [0, 0, 1, 1], [], []>} : vector<8x16xf32>, vector<16x50xf32>, vector<8x50xf32> -> vector<8x50xf32>
    %c0_4 = arith.constant 0 : index
    %c0_5 = arith.constant 0 : index
    %c0_6 = arith.constant 0 : index
    %4 = vector.load %arg3[%c0_4, %c0_5, %c0_6] : memref<4x1x50xf32, #tpu.memory_space<vmem>>, vector<1x1x50xf32>
    %5 = vector.shape_cast %4 : vector<1x1x50xf32> to vector<1x50xf32>
    %6 = vector.broadcast %5 : vector<1x50xf32> to vector<8x50xf32>
    %7 = arith.addf %3, %6 : vector<8x50xf32>
    %c1 = arith.constant 1 : index
    %c0_7 = arith.constant 0 : index
    %c0_8 = arith.constant 0 : index
    %8 = vector.load %arg1[%c1, %c0_7, %c0_8] : memref<4x16x50xf32, #tpu.memory_space<vmem>>, vector<1x16x50xf32>
    %9 = vector.shape_cast %8 : vector<1x16x50xf32> to vector<16x50xf32>
    %cst_9 = arith.constant dense<0.000000e+00> : vector<8x50xf32>
    %10 = tpu.matmul %0, %9, %cst_9 {dimension_numbers = #tpu.dot_dimension_numbers<[1], [0], [0], [1], [0, 0, 1, 1], [], []>} : vector<8x16xf32>, vector<16x50xf32>, vector<8x50xf32> -> vector<8x50xf32>
    %c1_10 = arith.constant 1 : index
    %c0_11 = arith.constant 0 : index
    %c0_12 = arith.constant 0 : index
    %11 = vector.load %arg3[%c1_10, %c0_11, %c0_12] : memref<4x1x50xf32, #tpu.memory_space<vmem>>, vector<1x1x50xf32>
    %12 = vector.shape_cast %11 : vector<1x1x50xf32> to vector<1x50xf32>
    %13 = vector.broadcast %12 : vector<1x50xf32> to vector<8x50xf32>
    %14 = arith.addf %10, %13 : vector<8x50xf32>
    %c2 = arith.constant 2 : index
    %c0_13 = arith.constant 0 : index
    %c0_14 = arith.constant 0 : index
    %15 = vector.load %arg1[%c2, %c0_13, %c0_14] : memref<4x16x50xf32, #tpu.memory_space<vmem>>, vector<1x16x50xf32>
    %16 = vector.shape_cast %15 : vector<1x16x50xf32> to vector<16x50xf32>
    %cst_15 = arith.constant dense<0.000000e+00> : vector<8x50xf32>
    %17 = tpu.matmul %0, %16, %cst_15 {dimension_numbers = #tpu.dot_dimension_numbers<[1], [0], [0], [1], [0, 0, 1, 1], [], []>} : vector<8x16xf32>, vector<16x50xf32>, vector<8x50xf32> -> vector<8x50xf32>
    %c2_16 = arith.constant 2 : index
    %c0_17 = arith.constant 0 : index
    %c0_18 = arith.constant 0 : index
    %18 = vector.load %arg3[%c2_16, %c0_17, %c0_18] : memref<4x1x50xf32, #tpu.memory_space<vmem>>, vector<1x1x50xf32>
    %19 = vector.shape_cast %18 : vector<1x1x50xf32> to vector<1x50xf32>
    %20 = vector.broadcast %19 : vector<1x50xf32> to vector<8x50xf32>
    %21 = arith.addf %17, %20 : vector<8x50xf32>
    %c3 = arith.constant 3 : index
    %c0_19 = arith.constant 0 : index
    %c0_20 = arith.constant 0 : index
    %22 = vector.load %arg1[%c3, %c0_19, %c0_20] : memref<4x16x50xf32, #tpu.memory_space<vmem>>, vector<1x16x50xf32>
    %23 = vector.shape_cast %22 : vector<1x16x50xf32> to vector<16x50xf32>
    %cst_21 = arith.constant dense<0.000000e+00> : vector<8x50xf32>
    %24 = tpu.matmul %0, %23, %cst_21 {dimension_numbers = #tpu.dot_dimension_numbers<[1], [0], [0], [1], [0, 0, 1, 1], [], []>} : vector<8x16xf32>, vector<16x50xf32>, vector<8x50xf32> -> vector<8x50xf32>
    %c3_22 = arith.constant 3 : index
    %c0_23 = arith.constant 0 : index
    %c0_24 = arith.constant 0 : index
    %25 = vector.load %arg3[%c3_22, %c0_23, %c0_24] : memref<4x1x50xf32, #tpu.memory_space<vmem>>, vector<1x1x50xf32>
    %26 = vector.shape_cast %25 : vector<1x1x50xf32> to vector<1x50xf32>
    %27 = vector.broadcast %26 : vector<1x50xf32> to vector<8x50xf32>
    %28 = arith.addf %24, %27 : vector<8x50xf32>
    %c0_25 = arith.constant 0 : index
    %c0_26 = arith.constant 0 : index
    %c0_27 = arith.constant 0 : index
    %29 = vector.load %arg4[%c0_25, %c0_26, %c0_27] : memref<4x16x50xf32, #tpu.memory_space<vmem>>, vector<1x16x50xf32>
    %30 = vector.shape_cast %29 : vector<1x16x50xf32> to vector<16x50xf32>
    %cst_28 = arith.constant dense<0.000000e+00> : vector<8x50xf32>
    %31 = tpu.matmul %0, %30, %cst_28 {dimension_numbers = #tpu.dot_dimension_numbers<[1], [0], [0], [1], [0, 0, 1, 1], [], []>} : vector<8x16xf32>, vector<16x50xf32>, vector<8x50xf32> -> vector<8x50xf32>
    %c0_29 = arith.constant 0 : index
    %c0_30 = arith.constant 0 : index
    %c0_31 = arith.constant 0 : index
    %32 = vector.load %arg6[%c0_29, %c0_30, %c0_31] : memref<4x1x50xf32, #tpu.memory_space<vmem>>, vector<1x1x50xf32>
    %33 = vector.shape_cast %32 : vector<1x1x50xf32> to vector<1x50xf32>
    %34 = vector.broadcast %33 : vector<1x50xf32> to vector<8x50xf32>
    %35 = arith.addf %31, %34 : vector<8x50xf32>
    %c1_32 = arith.constant 1 : index
    %c0_33 = arith.constant 0 : index
    %c0_34 = arith.constant 0 : index
    %36 = vector.load %arg4[%c1_32, %c0_33, %c0_34] : memref<4x16x50xf32, #tpu.memory_space<vmem>>, vector<1x16x50xf32>
    %37 = vector.shape_cast %36 : vector<1x16x50xf32> to vector<16x50xf32>
    %cst_35 = arith.constant dense<0.000000e+00> : vector<8x50xf32>
    %38 = tpu.matmul %0, %37, %cst_35 {dimension_numbers = #tpu.dot_dimension_numbers<[1], [0], [0], [1], [0, 0, 1, 1], [], []>} : vector<8x16xf32>, vector<16x50xf32>, vector<8x50xf32> -> vector<8x50xf32>
    %c1_36 = arith.constant 1 : index
    %c0_37 = arith.constant 0 : index
    %c0_38 = arith.constant 0 : index
    %39 = vector.load %arg6[%c1_36, %c0_37, %c0_38] : memref<4x1x50xf32, #tpu.memory_space<vmem>>, vector<1x1x50xf32>
    %40 = vector.shape_cast %39 : vector<1x1x50xf32> to vector<1x50xf32>
    %41 = vector.broadcast %40 : vector<1x50xf32> to vector<8x50xf32>
    %42 = arith.addf %38, %41 : vector<8x50xf32>
    %c2_39 = arith.constant 2 : index
    %c0_40 = arith.constant 0 : index
    %c0_41 = arith.constant 0 : index
    %43 = vector.load %arg4[%c2_39, %c0_40, %c0_41] : memref<4x16x50xf32, #tpu.memory_space<vmem>>, vector<1x16x50xf32>
    %44 = vector.shape_cast %43 : vector<1x16x50xf32> to vector<16x50xf32>
    %cst_42 = arith.constant dense<0.000000e+00> : vector<8x50xf32>
    %45 = tpu.matmul %0, %44, %cst_42 {dimension_numbers = #tpu.dot_dimension_numbers<[1], [0], [0], [1], [0, 0, 1, 1], [], []>} : vector<8x16xf32>, vector<16x50xf32>, vector<8x50xf32> -> vector<8x50xf32>
    %c2_43 = arith.constant 2 : index
    %c0_44 = arith.constant 0 : index
    %c0_45 = arith.constant 0 : index
    %46 = vector.load %arg6[%c2_43, %c0_44, %c0_45] : memref<4x1x50xf32, #tpu.memory_space<vmem>>, vector<1x1x50xf32>
    %47 = vector.shape_cast %46 : vector<1x1x50xf32> to vector<1x50xf32>
    %48 = vector.broadcast %47 : vector<1x50xf32> to vector<8x50xf32>
    %49 = arith.addf %45, %48 : vector<8x50xf32>
    %c3_46 = arith.constant 3 : index
    %c0_47 = arith.constant 0 : index
    %c0_48 = arith.constant 0 : index
    %50 = vector.load %arg4[%c3_46, %c0_47, %c0_48] : memref<4x16x50xf32, #tpu.memory_space<vmem>>, vector<1x16x50xf32>
    %51 = vector.shape_cast %50 : vector<1x16x50xf32> to vector<16x50xf32>
    %cst_49 = arith.constant dense<0.000000e+00> : vector<8x50xf32>
    %52 = tpu.matmul %0, %51, %cst_49 {dimension_numbers = #tpu.dot_dimension_numbers<[1], [0], [0], [1], [0, 0, 1, 1], [], []>} : vector<8x16xf32>, vector<16x50xf32>, vector<8x50xf32> -> vector<8x50xf32>
    %c3_50 = arith.constant 3 : index
    %c0_51 = arith.constant 0 : index
    %c0_52 = arith.constant 0 : index
    %53 = vector.load %arg6[%c3_50, %c0_51, %c0_52] : memref<4x1x50xf32, #tpu.memory_space<vmem>>, vector<1x1x50xf32>
    %54 = vector.shape_cast %53 : vector<1x1x50xf32> to vector<1x50xf32>
    %55 = vector.broadcast %54 : vector<1x50xf32> to vector<8x50xf32>
    %56 = arith.addf %52, %55 : vector<8x50xf32>
    %c0_53 = arith.constant 0 : index
    %c0_54 = arith.constant 0 : index
    %c0_55 = arith.constant 0 : index
    %57 = vector.load %arg2[%c0_53, %c0_54, %c0_55] : memref<4x50x50xf32, #tpu.memory_space<vmem>>, vector<1x50x50xf32>
    %58 = vector.shape_cast %57 : vector<1x50x50xf32> to vector<50x50xf32>
    %c1_56 = arith.constant 1 : index
    %c0_57 = arith.constant 0 : index
    %c0_58 = arith.constant 0 : index
    %59 = vector.load %arg2[%c1_56, %c0_57, %c0_58] : memref<4x50x50xf32, #tpu.memory_space<vmem>>, vector<1x50x50xf32>
    %60 = vector.shape_cast %59 : vector<1x50x50xf32> to vector<50x50xf32>
    %c2_59 = arith.constant 2 : index
    %c0_60 = arith.constant 0 : index
    %c0_61 = arith.constant 0 : index
    %61 = vector.load %arg2[%c2_59, %c0_60, %c0_61] : memref<4x50x50xf32, #tpu.memory_space<vmem>>, vector<1x50x50xf32>
    %62 = vector.shape_cast %61 : vector<1x50x50xf32> to vector<50x50xf32>
    %c3_62 = arith.constant 3 : index
    %c0_63 = arith.constant 0 : index
    %c0_64 = arith.constant 0 : index
    %63 = vector.load %arg2[%c3_62, %c0_63, %c0_64] : memref<4x50x50xf32, #tpu.memory_space<vmem>>, vector<1x50x50xf32>
    %64 = vector.shape_cast %63 : vector<1x50x50xf32> to vector<50x50xf32>
    %c0_65 = arith.constant 0 : index
    %c0_66 = arith.constant 0 : index
    %c0_67 = arith.constant 0 : index
    %65 = vector.load %arg5[%c0_65, %c0_66, %c0_67] : memref<4x50x50xf32, #tpu.memory_space<vmem>>, vector<1x50x50xf32>
    %66 = vector.shape_cast %65 : vector<1x50x50xf32> to vector<50x50xf32>
    %c1_68 = arith.constant 1 : index
    %c0_69 = arith.constant 0 : index
    %c0_70 = arith.constant 0 : index
    %67 = vector.load %arg5[%c1_68, %c0_69, %c0_70] : memref<4x50x50xf32, #tpu.memory_space<vmem>>, vector<1x50x50xf32>
    %68 = vector.shape_cast %67 : vector<1x50x50xf32> to vector<50x50xf32>
    %c2_71 = arith.constant 2 : index
    %c0_72 = arith.constant 0 : index
    %c0_73 = arith.constant 0 : index
    %69 = vector.load %arg5[%c2_71, %c0_72, %c0_73] : memref<4x50x50xf32, #tpu.memory_space<vmem>>, vector<1x50x50xf32>
    %70 = vector.shape_cast %69 : vector<1x50x50xf32> to vector<50x50xf32>
    %c3_74 = arith.constant 3 : index
    %c0_75 = arith.constant 0 : index
    %c0_76 = arith.constant 0 : index
    %71 = vector.load %arg5[%c3_74, %c0_75, %c0_76] : memref<4x50x50xf32, #tpu.memory_space<vmem>>, vector<1x50x50xf32>
    %72 = vector.shape_cast %71 : vector<1x50x50xf32> to vector<50x50xf32>
    %cst_77 = arith.constant 0.000000e+00 : f32
    %73 = vector.broadcast %cst_77 : f32 to vector<1x50xf32>
    %cst_78 = arith.constant 0.000000e+00 : f32
    %74 = vector.broadcast %cst_78 : f32 to vector<1x50xf32>
    %cst_79 = arith.constant 0.000000e+00 : f32
    %75 = vector.broadcast %cst_79 : f32 to vector<1x50xf32>
    %cst_80 = arith.constant 0.000000e+00 : f32
    %76 = vector.broadcast %cst_80 : f32 to vector<1x50xf32>
    %77 = vector.extract_strided_slice %7 {offsets = [0, 0], sizes = [1, 50], strides = [1, 1]} : vector<8x50xf32> to vector<1x50xf32>
    %cst_81 = arith.constant dense<0.000000e+00> : vector<1x50xf32>
    %78 = tpu.matmul %73, %58, %cst_81 {dimension_numbers = #tpu.dot_dimension_numbers<[1], [0], [0], [1], [0, 0, 1, 1], [], []>} : vector<1x50xf32>, vector<50x50xf32>, vector<1x50xf32> -> vector<1x50xf32>
    %79 = arith.addf %77, %78 : vector<1x50xf32>
    %80 = vector.extract_strided_slice %14 {offsets = [0, 0], sizes = [1, 50], strides = [1, 1]} : vector<8x50xf32> to vector<1x50xf32>
    %cst_82 = arith.constant dense<0.000000e+00> : vector<1x50xf32>
    %81 = tpu.matmul %73, %60, %cst_82 {dimension_numbers = #tpu.dot_dimension_numbers<[1], [0], [0], [1], [0, 0, 1, 1], [], []>} : vector<1x50xf32>, vector<50x50xf32>, vector<1x50xf32> -> vector<1x50xf32>
    %82 = arith.addf %80, %81 : vector<1x50xf32>
    %83 = vector.extract_strided_slice %21 {offsets = [0, 0], sizes = [1, 50], strides = [1, 1]} : vector<8x50xf32> to vector<1x50xf32>
    %cst_83 = arith.constant dense<0.000000e+00> : vector<1x50xf32>
    %84 = tpu.matmul %73, %62, %cst_83 {dimension_numbers = #tpu.dot_dimension_numbers<[1], [0], [0], [1], [0, 0, 1, 1], [], []>} : vector<1x50xf32>, vector<50x50xf32>, vector<1x50xf32> -> vector<1x50xf32>
    %85 = arith.addf %83, %84 : vector<1x50xf32>
    %86 = vector.extract_strided_slice %28 {offsets = [0, 0], sizes = [1, 50], strides = [1, 1]} : vector<8x50xf32> to vector<1x50xf32>
    %cst_84 = arith.constant dense<0.000000e+00> : vector<1x50xf32>
    %87 = tpu.matmul %73, %64, %cst_84 {dimension_numbers = #tpu.dot_dimension_numbers<[1], [0], [0], [1], [0, 0, 1, 1], [], []>} : vector<1x50xf32>, vector<50x50xf32>, vector<1x50xf32> -> vector<1x50xf32>
    %88 = arith.addf %86, %87 : vector<1x50xf32>
    %89 = vector.extract_strided_slice %35 {offsets = [7, 0], sizes = [1, 50], strides = [1, 1]} : vector<8x50xf32> to vector<1x50xf32>
    %cst_85 = arith.constant dense<0.000000e+00> : vector<1x50xf32>
    %90 = tpu.matmul %75, %66, %cst_85 {dimension_numbers = #tpu.dot_dimension_numbers<[1], [0], [0], [1], [0, 0, 1, 1], [], []>} : vector<1x50xf32>, vector<50x50xf32>, vector<1x50xf32> -> vector<1x50xf32>
    %91 = arith.addf %89, %90 : vector<1x50xf32>
    %92 = vector.extract_strided_slice %42 {offsets = [7, 0], sizes = [1, 50], strides = [1, 1]} : vector<8x50xf32> to vector<1x50xf32>
    %cst_86 = arith.constant dense<0.000000e+00> : vector<1x50xf32>
    %93 = tpu.matmul %75, %68, %cst_86 {dimension_numbers = #tpu.dot_dimension_numbers<[1], [0], [0], [1], [0, 0, 1, 1], [], []>} : vector<1x50xf32>, vector<50x50xf32>, vector<1x50xf32> -> vector<1x50xf32>
    %94 = arith.addf %92, %93 : vector<1x50xf32>
    %95 = vector.extract_strided_slice %49 {offsets = [7, 0], sizes = [1, 50], strides = [1, 1]} : vector<8x50xf32> to vector<1x50xf32>
    %cst_87 = arith.constant dense<0.000000e+00> : vector<1x50xf32>
    %96 = tpu.matmul %75, %70, %cst_87 {dimension_numbers = #tpu.dot_dimension_numbers<[1], [0], [0], [1], [0, 0, 1, 1], [], []>} : vector<1x50xf32>, vector<50x50xf32>, vector<1x50xf32> -> vector<1x50xf32>
    %97 = arith.addf %95, %96 : vector<1x50xf32>
    %98 = vector.extract_strided_slice %56 {offsets = [7, 0], sizes = [1, 50], strides = [1, 1]} : vector<8x50xf32> to vector<1x50xf32>
    %cst_88 = arith.constant dense<0.000000e+00> : vector<1x50xf32>
    %99 = tpu.matmul %75, %72, %cst_88 {dimension_numbers = #tpu.dot_dimension_numbers<[1], [0], [0], [1], [0, 0, 1, 1], [], []>} : vector<1x50xf32>, vector<50x50xf32>, vector<1x50xf32> -> vector<1x50xf32>
    %100 = arith.addf %98, %99 : vector<1x50xf32>
    %101 = arith.negf %82 : vector<1x50xf32>
    %102 = math.exp %101 : vector<1x50xf32>
    %cst_89 = arith.constant 1.000000e+00 : f32
    %103 = vector.broadcast %cst_89 : f32 to vector<1x50xf32>
    %104 = arith.addf %103, %102 : vector<1x50xf32>
    %105 = arith.divf %103, %104 : vector<1x50xf32>
    %106 = arith.mulf %105, %74 : vector<1x50xf32>
    %107 = arith.negf %79 : vector<1x50xf32>
    %108 = math.exp %107 : vector<1x50xf32>
    %cst_90 = arith.constant 1.000000e+00 : f32
    %109 = vector.broadcast %cst_90 : f32 to vector<1x50xf32>
    %110 = arith.addf %109, %108 : vector<1x50xf32>
    %111 = arith.divf %109, %110 : vector<1x50xf32>
    %112 = math.tanh %85 : vector<1x50xf32>
    %113 = arith.mulf %111, %112 : vector<1x50xf32>
    %114 = arith.addf %106, %113 : vector<1x50xf32>
    %115 = arith.negf %88 : vector<1x50xf32>
    %116 = math.exp %115 : vector<1x50xf32>
    %cst_91 = arith.constant 1.000000e+00 : f32
    %117 = vector.broadcast %cst_91 : f32 to vector<1x50xf32>
    %118 = arith.addf %117, %116 : vector<1x50xf32>
    %119 = arith.divf %117, %118 : vector<1x50xf32>
    %120 = math.tanh %114 : vector<1x50xf32>
    %121 = arith.mulf %119, %120 : vector<1x50xf32>
    %122 = arith.negf %94 : vector<1x50xf32>
    %123 = math.exp %122 : vector<1x50xf32>
    %cst_92 = arith.constant 1.000000e+00 : f32
    %124 = vector.broadcast %cst_92 : f32 to vector<1x50xf32>
    %125 = arith.addf %124, %123 : vector<1x50xf32>
    %126 = arith.divf %124, %125 : vector<1x50xf32>
    %127 = arith.mulf %126, %76 : vector<1x50xf32>
    %128 = arith.negf %91 : vector<1x50xf32>
    %129 = math.exp %128 : vector<1x50xf32>
    %cst_93 = arith.constant 1.000000e+00 : f32
    %130 = vector.broadcast %cst_93 : f32 to vector<1x50xf32>
    %131 = arith.addf %130, %129 : vector<1x50xf32>
    %132 = arith.divf %130, %131 : vector<1x50xf32>
    %133 = math.tanh %97 : vector<1x50xf32>
    %134 = arith.mulf %132, %133 : vector<1x50xf32>
    %135 = arith.addf %127, %134 : vector<1x50xf32>
    %136 = arith.negf %100 : vector<1x50xf32>
    %137 = math.exp %136 : vector<1x50xf32>
    %cst_94 = arith.constant 1.000000e+00 : f32
    %138 = vector.broadcast %cst_94 : f32 to vector<1x50xf32>
    %139 = arith.addf %138, %137 : vector<1x50xf32>
    %140 = arith.divf %138, %139 : vector<1x50xf32>
    %141 = math.tanh %135 : vector<1x50xf32>
    %142 = arith.mulf %140, %141 : vector<1x50xf32>
    %c0_95 = arith.constant 0 : index
    %c0_96 = arith.constant 0 : index
    %143 = vector.load %arg18[%c0_95, %c0_96] : memref<8x50xf32, #tpu.memory_space<vmem>>, vector<1x50xf32>
    tpu.vector_store %arg18[%c0_95, %c0_96], %121 {strides = array<i32>} : memref<8x50xf32, #tpu.memory_space<vmem>>, vector<1x50xf32>,
    %c7 = arith.constant 7 : index
    %c0_97 = arith.constant 0 : index
    %144 = vector.load %arg19[%c7, %c0_97] : memref<8x50xf32, #tpu.memory_space<vmem>>, vector<1x50xf32>
    tpu.vector_store %arg19[%c7, %c0_97], %142 {strides = array<i32>} : memref<8x50xf32, #tpu.memory_space<vmem>>, vector<1x50xf32>,
    %145 = vector.extract_strided_slice %7 {offsets = [1, 0], sizes = [1, 50], strides = [1, 1]} : vector<8x50xf32> to vector<1x50xf32>
    %cst_98 = arith.constant dense<0.000000e+00> : vector<1x50xf32>
    %146 = tpu.matmul %121, %58, %cst_98 {dimension_numbers = #tpu.dot_dimension_numbers<[1], [0], [0], [1], [0, 0, 1, 1], [], []>} : vector<1x50xf32>, vector<50x50xf32>, vector<1x50xf32> -> vector<1x50xf32>
    %147 = arith.addf %145, %146 : vector<1x50xf32>
    %148 = vector.extract_strided_slice %14 {offsets = [1, 0], sizes = [1, 50], strides = [1, 1]} : vector<8x50xf32> to vector<1x50xf32>
    %cst_99 = arith.constant dense<0.000000e+00> : vector<1x50xf32>
    %149 = tpu.matmul %121, %60, %cst_99 {dimension_numbers = #tpu.dot_dimension_numbers<[1], [0], [0], [1], [0, 0, 1, 1], [], []>} : vector<1x50xf32>, vector<50x50xf32>, vector<1x50xf32> -> vector<1x50xf32>
    %150 = arith.addf %148, %149 : vector<1x50xf32>
    %151 = vector.extract_strided_slice %21 {offsets = [1, 0], sizes = [1, 50], strides = [1, 1]} : vector<8x50xf32> to vector<1x50xf32>
    %cst_100 = arith.constant dense<0.000000e+00> : vector<1x50xf32>
    %152 = tpu.matmul %121, %62, %cst_100 {dimension_numbers = #tpu.dot_dimension_numbers<[1], [0], [0], [1], [0, 0, 1, 1], [], []>} : vector<1x50xf32>, vector<50x50xf32>, vector<1x50xf32> -> vector<1x50xf32>
    %153 = arith.addf %151, %152 : vector<1x50xf32>
    %154 = vector.extract_strided_slice %28 {offsets = [1, 0], sizes = [1, 50], strides = [1, 1]} : vector<8x50xf32> to vector<1x50xf32>
    %cst_101 = arith.constant dense<0.000000e+00> : vector<1x50xf32>
    %155 = tpu.matmul %121, %64, %cst_101 {dimension_numbers = #tpu.dot_dimension_numbers<[1], [0], [0], [1], [0, 0, 1, 1], [], []>} : vector<1x50xf32>, vector<50x50xf32>, vector<1x50xf32> -> vector<1x50xf32>
    %156 = arith.addf %154, %155 : vector<1x50xf32>
    %157 = vector.extract_strided_slice %35 {offsets = [6, 0], sizes = [1, 50], strides = [1, 1]} : vector<8x50xf32> to vector<1x50xf32>
    %cst_102 = arith.constant dense<0.000000e+00> : vector<1x50xf32>
    %158 = tpu.matmul %142, %66, %cst_102 {dimension_numbers = #tpu.dot_dimension_numbers<[1], [0], [0], [1], [0, 0, 1, 1], [], []>} : vector<1x50xf32>, vector<50x50xf32>, vector<1x50xf32> -> vector<1x50xf32>
    %159 = arith.addf %157, %158 : vector<1x50xf32>
    %160 = vector.extract_strided_slice %42 {offsets = [6, 0], sizes = [1, 50], strides = [1, 1]} : vector<8x50xf32> to vector<1x50xf32>
    %cst_103 = arith.constant dense<0.000000e+00> : vector<1x50xf32>
    %161 = tpu.matmul %142, %68, %cst_103 {dimension_numbers = #tpu.dot_dimension_numbers<[1], [0], [0], [1], [0, 0, 1, 1], [], []>} : vector<1x50xf32>, vector<50x50xf32>, vector<1x50xf32> -> vector<1x50xf32>
    %162 = arith.addf %160, %161 : vector<1x50xf32>
    %163 = vector.extract_strided_slice %49 {offsets = [6, 0], sizes = [1, 50], strides = [1, 1]} : vector<8x50xf32> to vector<1x50xf32>
    %cst_104 = arith.constant dense<0.000000e+00> : vector<1x50xf32>
    %164 = tpu.matmul %142, %70, %cst_104 {dimension_numbers = #tpu.dot_dimension_numbers<[1], [0], [0], [1], [0, 0, 1, 1], [], []>} : vector<1x50xf32>, vector<50x50xf32>, vector<1x50xf32> -> vector<1x50xf32>
    %165 = arith.addf %163, %164 : vector<1x50xf32>
    %166 = vector.extract_strided_slice %56 {offsets = [6, 0], sizes = [1, 50], strides = [1, 1]} : vector<8x50xf32> to vector<1x50xf32>
    %cst_105 = arith.constant dense<0.000000e+00> : vector<1x50xf32>
    %167 = tpu.matmul %142, %72, %cst_105 {dimension_numbers = #tpu.dot_dimension_numbers<[1], [0], [0], [1], [0, 0, 1, 1], [], []>} : vector<1x50xf32>, vector<50x50xf32>, vector<1x50xf32> -> vector<1x50xf32>
    %168 = arith.addf %166, %167 : vector<1x50xf32>
    %169 = arith.negf %150 : vector<1x50xf32>
    %170 = math.exp %169 : vector<1x50xf32>
    %cst_106 = arith.constant 1.000000e+00 : f32
    %171 = vector.broadcast %cst_106 : f32 to vector<1x50xf32>
    %172 = arith.addf %171, %170 : vector<1x50xf32>
    %173 = arith.divf %171, %172 : vector<1x50xf32>
    %174 = arith.mulf %173, %114 : vector<1x50xf32>
    %175 = arith.negf %147 : vector<1x50xf32>
    %176 = math.exp %175 : vector<1x50xf32>
    %cst_107 = arith.constant 1.000000e+00 : f32
    %177 = vector.broadcast %cst_107 : f32 to vector<1x50xf32>
    %178 = arith.addf %177, %176 : vector<1x50xf32>
    %179 = arith.divf %177, %178 : vector<1x50xf32>
    %180 = math.tanh %153 : vector<1x50xf32>
    %181 = arith.mulf %179, %180 : vector<1x50xf32>
    %182 = arith.addf %174, %181 : vector<1x50xf32>
    %183 = arith.negf %156 : vector<1x50xf32>
    %184 = math.exp %183 : vector<1x50xf32>
    %cst_108 = arith.constant 1.000000e+00 : f32
    %185 = vector.broadcast %cst_108 : f32 to vector<1x50xf32>
    %186 = arith.addf %185, %184 : vector<1x50xf32>
    %187 = arith.divf %185, %186 : vector<1x50xf32>
    %188 = math.tanh %182 : vector<1x50xf32>
    %189 = arith.mulf %187, %188 : vector<1x50xf32>
    %190 = arith.negf %162 : vector<1x50xf32>
    %191 = math.exp %190 : vector<1x50xf32>
    %cst_109 = arith.constant 1.000000e+00 : f32
    %192 = vector.broadcast %cst_109 : f32 to vector<1x50xf32>
    %193 = arith.addf %192, %191 : vector<1x50xf32>
    %194 = arith.divf %192, %193 : vector<1x50xf32>
    %195 = arith.mulf %194, %135 : vector<1x50xf32>
    %196 = arith.negf %159 : vector<1x50xf32>
    %197 = math.exp %196 : vector<1x50xf32>
    %cst_110 = arith.constant 1.000000e+00 : f32
    %198 = vector.broadcast %cst_110 : f32 to vector<1x50xf32>
    %199 = arith.addf %198, %197 : vector<1x50xf32>
    %200 = arith.divf %198, %199 : vector<1x50xf32>
    %201 = math.tanh %165 : vector<1x50xf32>
    %202 = arith.mulf %200, %201 : vector<1x50xf32>
    %203 = arith.addf %195, %202 : vector<1x50xf32>
    %204 = arith.negf %168 : vector<1x50xf32>
    %205 = math.exp %204 : vector<1x50xf32>
    %cst_111 = arith.constant 1.000000e+00 : f32
    %206 = vector.broadcast %cst_111 : f32 to vector<1x50xf32>
    %207 = arith.addf %206, %205 : vector<1x50xf32>
    %208 = arith.divf %206, %207 : vector<1x50xf32>
    %209 = math.tanh %203 : vector<1x50xf32>
    %210 = arith.mulf %208, %209 : vector<1x50xf32>
    %c1_112 = arith.constant 1 : index
    %c0_113 = arith.constant 0 : index
    %211 = vector.load %arg18[%c1_112, %c0_113] : memref<8x50xf32, #tpu.memory_space<vmem>>, vector<1x50xf32>
    tpu.vector_store %arg18[%c1_112, %c0_113], %189 {strides = array<i32>} : memref<8x50xf32, #tpu.memory_space<vmem>>, vector<1x50xf32>,
    %c6 = arith.constant 6 : index
    %c0_114 = arith.constant 0 : index
    %212 = vector.load %arg19[%c6, %c0_114] : memref<8x50xf32, #tpu.memory_space<vmem>>, vector<1x50xf32>
    tpu.vector_store %arg19[%c6, %c0_114], %210 {strides = array<i32>} : memref<8x50xf32, #tpu.memory_space<vmem>>, vector<1x50xf32>,
    %213 = vector.extract_strided_slice %7 {offsets = [2, 0], sizes = [1, 50], strides = [1, 1]} : vector<8x50xf32> to vector<1x50xf32>
    %cst_115 = arith.constant dense<0.000000e+00> : vector<1x50xf32>
    %214 = tpu.matmul %189, %58, %cst_115 {dimension_numbers = #tpu.dot_dimension_numbers<[1], [0], [0], [1], [0, 0, 1, 1], [], []>} : vector<1x50xf32>, vector<50x50xf32>, vector<1x50xf32> -> vector<1x50xf32>
    %215 = arith.addf %213, %214 : vector<1x50xf32>
    %216 = vector.extract_strided_slice %14 {offsets = [2, 0], sizes = [1, 50], strides = [1, 1]} : vector<8x50xf32> to vector<1x50xf32>
    %cst_116 = arith.constant dense<0.000000e+00> : vector<1x50xf32>
    %217 = tpu.matmul %189, %60, %cst_116 {dimension_numbers = #tpu.dot_dimension_numbers<[1], [0], [0], [1], [0, 0, 1, 1], [], []>} : vector<1x50xf32>, vector<50x50xf32>, vector<1x50xf32> -> vector<1x50xf32>
    %218 = arith.addf %216, %217 : vector<1x50xf32>
    %219 = vector.extract_strided_slice %21 {offsets = [2, 0], sizes = [1, 50], strides = [1, 1]} : vector<8x50xf32> to vector<1x50xf32>
    %cst_117 = arith.constant dense<0.000000e+00> : vector<1x50xf32>
    %220 = tpu.matmul %189, %62, %cst_117 {dimension_numbers = #tpu.dot_dimension_numbers<[1], [0], [0], [1], [0, 0, 1, 1], [], []>} : vector<1x50xf32>, vector<50x50xf32>, vector<1x50xf32> -> vector<1x50xf32>
    %221 = arith.addf %219, %220 : vector<1x50xf32>
    %222 = vector.extract_strided_slice %28 {offsets = [2, 0], sizes = [1, 50], strides = [1, 1]} : vector<8x50xf32> to vector<1x50xf32>
    %cst_118 = arith.constant dense<0.000000e+00> : vector<1x50xf32>
    %223 = tpu.matmul %189, %64, %cst_118 {dimension_numbers = #tpu.dot_dimension_numbers<[1], [0], [0], [1], [0, 0, 1, 1], [], []>} : vector<1x50xf32>, vector<50x50xf32>, vector<1x50xf32> -> vector<1x50xf32>
    %224 = arith.addf %222, %223 : vector<1x50xf32>
    %225 = vector.extract_strided_slice %35 {offsets = [5, 0], sizes = [1, 50], strides = [1, 1]} : vector<8x50xf32> to vector<1x50xf32>
    %cst_119 = arith.constant dense<0.000000e+00> : vector<1x50xf32>
    %226 = tpu.matmul %210, %66, %cst_119 {dimension_numbers = #tpu.dot_dimension_numbers<[1], [0], [0], [1], [0, 0, 1, 1], [], []>} : vector<1x50xf32>, vector<50x50xf32>, vector<1x50xf32> -> vector<1x50xf32>
    %227 = arith.addf %225, %226 : vector<1x50xf32>
    %228 = vector.extract_strided_slice %42 {offsets = [5, 0], sizes = [1, 50], strides = [1, 1]} : vector<8x50xf32> to vector<1x50xf32>
    %cst_120 = arith.constant dense<0.000000e+00> : vector<1x50xf32>
    %229 = tpu.matmul %210, %68, %cst_120 {dimension_numbers = #tpu.dot_dimension_numbers<[1], [0], [0], [1], [0, 0, 1, 1], [], []>} : vector<1x50xf32>, vector<50x50xf32>, vector<1x50xf32> -> vector<1x50xf32>
    %230 = arith.addf %228, %229 : vector<1x50xf32>
    %231 = vector.extract_strided_slice %49 {offsets = [5, 0], sizes = [1, 50], strides = [1, 1]} : vector<8x50xf32> to vector<1x50xf32>
    %cst_121 = arith.constant dense<0.000000e+00> : vector<1x50xf32>
    %232 = tpu.matmul %210, %70, %cst_121 {dimension_numbers = #tpu.dot_dimension_numbers<[1], [0], [0], [1], [0, 0, 1, 1], [], []>} : vector<1x50xf32>, vector<50x50xf32>, vector<1x50xf32> -> vector<1x50xf32>
    %233 = arith.addf %231, %232 : vector<1x50xf32>
    %234 = vector.extract_strided_slice %56 {offsets = [5, 0], sizes = [1, 50], strides = [1, 1]} : vector<8x50xf32> to vector<1x50xf32>
    %cst_122 = arith.constant dense<0.000000e+00> : vector<1x50xf32>
    %235 = tpu.matmul %210, %72, %cst_122 {dimension_numbers = #tpu.dot_dimension_numbers<[1], [0], [0], [1], [0, 0, 1, 1], [], []>} : vector<1x50xf32>, vector<50x50xf32>, vector<1x50xf32> -> vector<1x50xf32>
    %236 = arith.addf %234, %235 : vector<1x50xf32>
    %237 = arith.negf %218 : vector<1x50xf32>
    %238 = math.exp %237 : vector<1x50xf32>
    %cst_123 = arith.constant 1.000000e+00 : f32
    %239 = vector.broadcast %cst_123 : f32 to vector<1x50xf32>
    %240 = arith.addf %239, %238 : vector<1x50xf32>
    %241 = arith.divf %239, %240 : vector<1x50xf32>
    %242 = arith.mulf %241, %182 : vector<1x50xf32>
    %243 = arith.negf %215 : vector<1x50xf32>
    %244 = math.exp %243 : vector<1x50xf32>
    %cst_124 = arith.constant 1.000000e+00 : f32
    %245 = vector.broadcast %cst_124 : f32 to vector<1x50xf32>
    %246 = arith.addf %245, %244 : vector<1x50xf32>
    %247 = arith.divf %245, %246 : vector<1x50xf32>
    %248 = math.tanh %221 : vector<1x50xf32>
    %249 = arith.mulf %247, %248 : vector<1x50xf32>
    %250 = arith.addf %242, %249 : vector<1x50xf32>
    %251 = arith.negf %224 : vector<1x50xf32>
    %252 = math.exp %251 : vector<1x50xf32>
    %cst_125 = arith.constant 1.000000e+00 : f32
    %253 = vector.broadcast %cst_125 : f32 to vector<1x50xf32>
    %254 = arith.addf %253, %252 : vector<1x50xf32>
    %255 = arith.divf %253, %254 : vector<1x50xf32>
    %256 = math.tanh %250 : vector<1x50xf32>
    %257 = arith.mulf %255, %256 : vector<1x50xf32>
    %258 = arith.negf %230 : vector<1x50xf32>
    %259 = math.exp %258 : vector<1x50xf32>
    %cst_126 = arith.constant 1.000000e+00 : f32
    %260 = vector.broadcast %cst_126 : f32 to vector<1x50xf32>
    %261 = arith.addf %260, %259 : vector<1x50xf32>
    %262 = arith.divf %260, %261 : vector<1x50xf32>
    %263 = arith.mulf %262, %203 : vector<1x50xf32>
    %264 = arith.negf %227 : vector<1x50xf32>
    %265 = math.exp %264 : vector<1x50xf32>
    %cst_127 = arith.constant 1.000000e+00 : f32
    %266 = vector.broadcast %cst_127 : f32 to vector<1x50xf32>
    %267 = arith.addf %266, %265 : vector<1x50xf32>
    %268 = arith.divf %266, %267 : vector<1x50xf32>
    %269 = math.tanh %233 : vector<1x50xf32>
    %270 = arith.mulf %268, %269 : vector<1x50xf32>
    %271 = arith.addf %263, %270 : vector<1x50xf32>
    %272 = arith.negf %236 : vector<1x50xf32>
    %273 = math.exp %272 : vector<1x50xf32>
    %cst_128 = arith.constant 1.000000e+00 : f32
    %274 = vector.broadcast %cst_128 : f32 to vector<1x50xf32>
    %275 = arith.addf %274, %273 : vector<1x50xf32>
    %276 = arith.divf %274, %275 : vector<1x50xf32>
    %277 = math.tanh %271 : vector<1x50xf32>
    %278 = arith.mulf %276, %277 : vector<1x50xf32>
    %c2_129 = arith.constant 2 : index
    %c0_130 = arith.constant 0 : index
    %279 = vector.load %arg18[%c2_129, %c0_130] : memref<8x50xf32, #tpu.memory_space<vmem>>, vector<1x50xf32>
    tpu.vector_store %arg18[%c2_129, %c0_130], %257 {strides = array<i32>} : memref<8x50xf32, #tpu.memory_space<vmem>>, vector<1x50xf32>,
    %c5 = arith.constant 5 : index
    %c0_131 = arith.constant 0 : index
    %280 = vector.load %arg19[%c5, %c0_131] : memref<8x50xf32, #tpu.memory_space<vmem>>, vector<1x50xf32>
    tpu.vector_store %arg19[%c5, %c0_131], %278 {strides = array<i32>} : memref<8x50xf32, #tpu.memory_space<vmem>>, vector<1x50xf32>,
    %281 = vector.extract_strided_slice %7 {offsets = [3, 0], sizes = [1, 50], strides = [1, 1]} : vector<8x50xf32> to vector<1x50xf32>
    %cst_132 = arith.constant dense<0.000000e+00> : vector<1x50xf32>
    %282 = tpu.matmul %257, %58, %cst_132 {dimension_numbers = #tpu.dot_dimension_numbers<[1], [0], [0], [1], [0, 0, 1, 1], [], []>} : vector<1x50xf32>, vector<50x50xf32>, vector<1x50xf32> -> vector<1x50xf32>
    %283 = arith.addf %281, %282 : vector<1x50xf32>
    %284 = vector.extract_strided_slice %14 {offsets = [3, 0], sizes = [1, 50], strides = [1, 1]} : vector<8x50xf32> to vector<1x50xf32>
    %cst_133 = arith.constant dense<0.000000e+00> : vector<1x50xf32>
    %285 = tpu.matmul %257, %60, %cst_133 {dimension_numbers = #tpu.dot_dimension_numbers<[1], [0], [0], [1], [0, 0, 1, 1], [], []>} : vector<1x50xf32>, vector<50x50xf32>, vector<1x50xf32> -> vector<1x50xf32>
    %286 = arith.addf %284, %285 : vector<1x50xf32>
    %287 = vector.extract_strided_slice %21 {offsets = [3, 0], sizes = [1, 50], strides = [1, 1]} : vector<8x50xf32> to vector<1x50xf32>
    %cst_134 = arith.constant dense<0.000000e+00> : vector<1x50xf32>
    %288 = tpu.matmul %257, %62, %cst_134 {dimension_numbers = #tpu.dot_dimension_numbers<[1], [0], [0], [1], [0, 0, 1, 1], [], []>} : vector<1x50xf32>, vector<50x50xf32>, vector<1x50xf32> -> vector<1x50xf32>
    %289 = arith.addf %287, %288 : vector<1x50xf32>
    %290 = vector.extract_strided_slice %28 {offsets = [3, 0], sizes = [1, 50], strides = [1, 1]} : vector<8x50xf32> to vector<1x50xf32>
    %cst_135 = arith.constant dense<0.000000e+00> : vector<1x50xf32>
    %291 = tpu.matmul %257, %64, %cst_135 {dimension_numbers = #tpu.dot_dimension_numbers<[1], [0], [0], [1], [0, 0, 1, 1], [], []>} : vector<1x50xf32>, vector<50x50xf32>, vector<1x50xf32> -> vector<1x50xf32>
    %292 = arith.addf %290, %291 : vector<1x50xf32>
    %293 = vector.extract_strided_slice %35 {offsets = [4, 0], sizes = [1, 50], strides = [1, 1]} : vector<8x50xf32> to vector<1x50xf32>
    %cst_136 = arith.constant dense<0.000000e+00> : vector<1x50xf32>
    %294 = tpu.matmul %278, %66, %cst_136 {dimension_numbers = #tpu.dot_dimension_numbers<[1], [0], [0], [1], [0, 0, 1, 1], [], []>} : vector<1x50xf32>, vector<50x50xf32>, vector<1x50xf32> -> vector<1x50xf32>
    %295 = arith.addf %293, %294 : vector<1x50xf32>
    %296 = vector.extract_strided_slice %42 {offsets = [4, 0], sizes = [1, 50], strides = [1, 1]} : vector<8x50xf32> to vector<1x50xf32>
    %cst_137 = arith.constant dense<0.000000e+00> : vector<1x50xf32>
    %297 = tpu.matmul %278, %68, %cst_137 {dimension_numbers = #tpu.dot_dimension_numbers<[1], [0], [0], [1], [0, 0, 1, 1], [], []>} : vector<1x50xf32>, vector<50x50xf32>, vector<1x50xf32> -> vector<1x50xf32>
    %298 = arith.addf %296, %297 : vector<1x50xf32>
    %299 = vector.extract_strided_slice %49 {offsets = [4, 0], sizes = [1, 50], strides = [1, 1]} : vector<8x50xf32> to vector<1x50xf32>
    %cst_138 = arith.constant dense<0.000000e+00> : vector<1x50xf32>
    %300 = tpu.matmul %278, %70, %cst_138 {dimension_numbers = #tpu.dot_dimension_numbers<[1], [0], [0], [1], [0, 0, 1, 1], [], []>} : vector<1x50xf32>, vector<50x50xf32>, vector<1x50xf32> -> vector<1x50xf32>
    %301 = arith.addf %299, %300 : vector<1x50xf32>
    %302 = vector.extract_strided_slice %56 {offsets = [4, 0], sizes = [1, 50], strides = [1, 1]} : vector<8x50xf32> to vector<1x50xf32>
    %cst_139 = arith.constant dense<0.000000e+00> : vector<1x50xf32>
    %303 = tpu.matmul %278, %72, %cst_139 {dimension_numbers = #tpu.dot_dimension_numbers<[1], [0], [0], [1], [0, 0, 1, 1], [], []>} : vector<1x50xf32>, vector<50x50xf32>, vector<1x50xf32> -> vector<1x50xf32>
    %304 = arith.addf %302, %303 : vector<1x50xf32>
    %305 = arith.negf %286 : vector<1x50xf32>
    %306 = math.exp %305 : vector<1x50xf32>
    %cst_140 = arith.constant 1.000000e+00 : f32
    %307 = vector.broadcast %cst_140 : f32 to vector<1x50xf32>
    %308 = arith.addf %307, %306 : vector<1x50xf32>
    %309 = arith.divf %307, %308 : vector<1x50xf32>
    %310 = arith.mulf %309, %250 : vector<1x50xf32>
    %311 = arith.negf %283 : vector<1x50xf32>
    %312 = math.exp %311 : vector<1x50xf32>
    %cst_141 = arith.constant 1.000000e+00 : f32
    %313 = vector.broadcast %cst_141 : f32 to vector<1x50xf32>
    %314 = arith.addf %313, %312 : vector<1x50xf32>
    %315 = arith.divf %313, %314 : vector<1x50xf32>
    %316 = math.tanh %289 : vector<1x50xf32>
    %317 = arith.mulf %315, %316 : vector<1x50xf32>
    %318 = arith.addf %310, %317 : vector<1x50xf32>
    %319 = arith.negf %292 : vector<1x50xf32>
    %320 = math.exp %319 : vector<1x50xf32>
    %cst_142 = arith.constant 1.000000e+00 : f32
    %321 = vector.broadcast %cst_142 : f32 to vector<1x50xf32>
    %322 = arith.addf %321, %320 : vector<1x50xf32>
    %323 = arith.divf %321, %322 : vector<1x50xf32>
    %324 = math.tanh %318 : vector<1x50xf32>
    %325 = arith.mulf %323, %324 : vector<1x50xf32>
    %326 = arith.negf %298 : vector<1x50xf32>
    %327 = math.exp %326 : vector<1x50xf32>
    %cst_143 = arith.constant 1.000000e+00 : f32
    %328 = vector.broadcast %cst_143 : f32 to vector<1x50xf32>
    %329 = arith.addf %328, %327 : vector<1x50xf32>
    %330 = arith.divf %328, %329 : vector<1x50xf32>
    %331 = arith.mulf %330, %271 : vector<1x50xf32>
    %332 = arith.negf %295 : vector<1x50xf32>
    %333 = math.exp %332 : vector<1x50xf32>
    %cst_144 = arith.constant 1.000000e+00 : f32
    %334 = vector.broadcast %cst_144 : f32 to vector<1x50xf32>
    %335 = arith.addf %334, %333 : vector<1x50xf32>
    %336 = arith.divf %334, %335 : vector<1x50xf32>
    %337 = math.tanh %301 : vector<1x50xf32>
    %338 = arith.mulf %336, %337 : vector<1x50xf32>
    %339 = arith.addf %331, %338 : vector<1x50xf32>
    %340 = arith.negf %304 : vector<1x50xf32>
    %341 = math.exp %340 : vector<1x50xf32>
    %cst_145 = arith.constant 1.000000e+00 : f32
    %342 = vector.broadcast %cst_145 : f32 to vector<1x50xf32>
    %343 = arith.addf %342, %341 : vector<1x50xf32>
    %344 = arith.divf %342, %343 : vector<1x50xf32>
    %345 = math.tanh %339 : vector<1x50xf32>
    %346 = arith.mulf %344, %345 : vector<1x50xf32>
    %c3_146 = arith.constant 3 : index
    %c0_147 = arith.constant 0 : index
    %347 = vector.load %arg18[%c3_146, %c0_147] : memref<8x50xf32, #tpu.memory_space<vmem>>, vector<1x50xf32>
    tpu.vector_store %arg18[%c3_146, %c0_147], %325 {strides = array<i32>} : memref<8x50xf32, #tpu.memory_space<vmem>>, vector<1x50xf32>,
    %c4 = arith.constant 4 : index
    %c0_148 = arith.constant 0 : index
    %348 = vector.load %arg19[%c4, %c0_148] : memref<8x50xf32, #tpu.memory_space<vmem>>, vector<1x50xf32>
    tpu.vector_store %arg19[%c4, %c0_148], %346 {strides = array<i32>} : memref<8x50xf32, #tpu.memory_space<vmem>>, vector<1x50xf32>,
    %349 = vector.extract_strided_slice %7 {offsets = [4, 0], sizes = [1, 50], strides = [1, 1]} : vector<8x50xf32> to vector<1x50xf32>
    %cst_149 = arith.constant dense<0.000000e+00> : vector<1x50xf32>
    %350 = tpu.matmul %325, %58, %cst_149 {dimension_numbers = #tpu.dot_dimension_numbers<[1], [0], [0], [1], [0, 0, 1, 1], [], []>} : vector<1x50xf32>, vector<50x50xf32>, vector<1x50xf32> -> vector<1x50xf32>
    %351 = arith.addf %349, %350 : vector<1x50xf32>
    %352 = vector.extract_strided_slice %14 {offsets = [4, 0], sizes = [1, 50], strides = [1, 1]} : vector<8x50xf32> to vector<1x50xf32>
    %cst_150 = arith.constant dense<0.000000e+00> : vector<1x50xf32>
    %353 = tpu.matmul %325, %60, %cst_150 {dimension_numbers = #tpu.dot_dimension_numbers<[1], [0], [0], [1], [0, 0, 1, 1], [], []>} : vector<1x50xf32>, vector<50x50xf32>, vector<1x50xf32> -> vector<1x50xf32>
    %354 = arith.addf %352, %353 : vector<1x50xf32>
    %355 = vector.extract_strided_slice %21 {offsets = [4, 0], sizes = [1, 50], strides = [1, 1]} : vector<8x50xf32> to vector<1x50xf32>
    %cst_151 = arith.constant dense<0.000000e+00> : vector<1x50xf32>
    %356 = tpu.matmul %325, %62, %cst_151 {dimension_numbers = #tpu.dot_dimension_numbers<[1], [0], [0], [1], [0, 0, 1, 1], [], []>} : vector<1x50xf32>, vector<50x50xf32>, vector<1x50xf32> -> vector<1x50xf32>
    %357 = arith.addf %355, %356 : vector<1x50xf32>
    %358 = vector.extract_strided_slice %28 {offsets = [4, 0], sizes = [1, 50], strides = [1, 1]} : vector<8x50xf32> to vector<1x50xf32>
    %cst_152 = arith.constant dense<0.000000e+00> : vector<1x50xf32>
    %359 = tpu.matmul %325, %64, %cst_152 {dimension_numbers = #tpu.dot_dimension_numbers<[1], [0], [0], [1], [0, 0, 1, 1], [], []>} : vector<1x50xf32>, vector<50x50xf32>, vector<1x50xf32> -> vector<1x50xf32>
    %360 = arith.addf %358, %359 : vector<1x50xf32>
    %361 = vector.extract_strided_slice %35 {offsets = [3, 0], sizes = [1, 50], strides = [1, 1]} : vector<8x50xf32> to vector<1x50xf32>
    %cst_153 = arith.constant dense<0.000000e+00> : vector<1x50xf32>
    %362 = tpu.matmul %346, %66, %cst_153 {dimension_numbers = #tpu.dot_dimension_numbers<[1], [0], [0], [1], [0, 0, 1, 1], [], []>} : vector<1x50xf32>, vector<50x50xf32>, vector<1x50xf32> -> vector<1x50xf32>
    %363 = arith.addf %361, %362 : vector<1x50xf32>
    %364 = vector.extract_strided_slice %42 {offsets = [3, 0], sizes = [1, 50], strides = [1, 1]} : vector<8x50xf32> to vector<1x50xf32>
    %cst_154 = arith.constant dense<0.000000e+00> : vector<1x50xf32>
    %365 = tpu.matmul %346, %68, %cst_154 {dimension_numbers = #tpu.dot_dimension_numbers<[1], [0], [0], [1], [0, 0, 1, 1], [], []>} : vector<1x50xf32>, vector<50x50xf32>, vector<1x50xf32> -> vector<1x50xf32>
    %366 = arith.addf %364, %365 : vector<1x50xf32>
    %367 = vector.extract_strided_slice %49 {offsets = [3, 0], sizes = [1, 50], strides = [1, 1]} : vector<8x50xf32> to vector<1x50xf32>
    %cst_155 = arith.constant dense<0.000000e+00> : vector<1x50xf32>
    %368 = tpu.matmul %346, %70, %cst_155 {dimension_numbers = #tpu.dot_dimension_numbers<[1], [0], [0], [1], [0, 0, 1, 1], [], []>} : vector<1x50xf32>, vector<50x50xf32>, vector<1x50xf32> -> vector<1x50xf32>
    %369 = arith.addf %367, %368 : vector<1x50xf32>
    %370 = vector.extract_strided_slice %56 {offsets = [3, 0], sizes = [1, 50], strides = [1, 1]} : vector<8x50xf32> to vector<1x50xf32>
    %cst_156 = arith.constant dense<0.000000e+00> : vector<1x50xf32>
    %371 = tpu.matmul %346, %72, %cst_156 {dimension_numbers = #tpu.dot_dimension_numbers<[1], [0], [0], [1], [0, 0, 1, 1], [], []>} : vector<1x50xf32>, vector<50x50xf32>, vector<1x50xf32> -> vector<1x50xf32>
    %372 = arith.addf %370, %371 : vector<1x50xf32>
    %373 = arith.negf %354 : vector<1x50xf32>
    %374 = math.exp %373 : vector<1x50xf32>
    %cst_157 = arith.constant 1.000000e+00 : f32
    %375 = vector.broadcast %cst_157 : f32 to vector<1x50xf32>
    %376 = arith.addf %375, %374 : vector<1x50xf32>
    %377 = arith.divf %375, %376 : vector<1x50xf32>
    %378 = arith.mulf %377, %318 : vector<1x50xf32>
    %379 = arith.negf %351 : vector<1x50xf32>
    %380 = math.exp %379 : vector<1x50xf32>
    %cst_158 = arith.constant 1.000000e+00 : f32
    %381 = vector.broadcast %cst_158 : f32 to vector<1x50xf32>
    %382 = arith.addf %381, %380 : vector<1x50xf32>
    %383 = arith.divf %381, %382 : vector<1x50xf32>
    %384 = math.tanh %357 : vector<1x50xf32>
    %385 = arith.mulf %383, %384 : vector<1x50xf32>
    %386 = arith.addf %378, %385 : vector<1x50xf32>
    %387 = arith.negf %360 : vector<1x50xf32>
    %388 = math.exp %387 : vector<1x50xf32>
    %cst_159 = arith.constant 1.000000e+00 : f32
    %389 = vector.broadcast %cst_159 : f32 to vector<1x50xf32>
    %390 = arith.addf %389, %388 : vector<1x50xf32>
    %391 = arith.divf %389, %390 : vector<1x50xf32>
    %392 = math.tanh %386 : vector<1x50xf32>
    %393 = arith.mulf %391, %392 : vector<1x50xf32>
    %394 = arith.negf %366 : vector<1x50xf32>
    %395 = math.exp %394 : vector<1x50xf32>
    %cst_160 = arith.constant 1.000000e+00 : f32
    %396 = vector.broadcast %cst_160 : f32 to vector<1x50xf32>
    %397 = arith.addf %396, %395 : vector<1x50xf32>
    %398 = arith.divf %396, %397 : vector<1x50xf32>
    %399 = arith.mulf %398, %339 : vector<1x50xf32>
    %400 = arith.negf %363 : vector<1x50xf32>
    %401 = math.exp %400 : vector<1x50xf32>
    %cst_161 = arith.constant 1.000000e+00 : f32
    %402 = vector.broadcast %cst_161 : f32 to vector<1x50xf32>
    %403 = arith.addf %402, %401 : vector<1x50xf32>
    %404 = arith.divf %402, %403 : vector<1x50xf32>
    %405 = math.tanh %369 : vector<1x50xf32>
    %406 = arith.mulf %404, %405 : vector<1x50xf32>
    %407 = arith.addf %399, %406 : vector<1x50xf32>
    %408 = arith.negf %372 : vector<1x50xf32>
    %409 = math.exp %408 : vector<1x50xf32>
    %cst_162 = arith.constant 1.000000e+00 : f32
    %410 = vector.broadcast %cst_162 : f32 to vector<1x50xf32>
    %411 = arith.addf %410, %409 : vector<1x50xf32>
    %412 = arith.divf %410, %411 : vector<1x50xf32>
    %413 = math.tanh %407 : vector<1x50xf32>
    %414 = arith.mulf %412, %413 : vector<1x50xf32>
    %c4_163 = arith.constant 4 : index
    %c0_164 = arith.constant 0 : index
    %415 = vector.load %arg18[%c4_163, %c0_164] : memref<8x50xf32, #tpu.memory_space<vmem>>, vector<1x50xf32>
    tpu.vector_store %arg18[%c4_163, %c0_164], %393 {strides = array<i32>} : memref<8x50xf32, #tpu.memory_space<vmem>>, vector<1x50xf32>,
    %c3_165 = arith.constant 3 : index
    %c0_166 = arith.constant 0 : index
    %416 = vector.load %arg19[%c3_165, %c0_166] : memref<8x50xf32, #tpu.memory_space<vmem>>, vector<1x50xf32>
    tpu.vector_store %arg19[%c3_165, %c0_166], %414 {strides = array<i32>} : memref<8x50xf32, #tpu.memory_space<vmem>>, vector<1x50xf32>,
    %417 = vector.extract_strided_slice %7 {offsets = [5, 0], sizes = [1, 50], strides = [1, 1]} : vector<8x50xf32> to vector<1x50xf32>
    %cst_167 = arith.constant dense<0.000000e+00> : vector<1x50xf32>
    %418 = tpu.matmul %393, %58, %cst_167 {dimension_numbers = #tpu.dot_dimension_numbers<[1], [0], [0], [1], [0, 0, 1, 1], [], []>} : vector<1x50xf32>, vector<50x50xf32>, vector<1x50xf32> -> vector<1x50xf32>
    %419 = arith.addf %417, %418 : vector<1x50xf32>
    %420 = vector.extract_strided_slice %14 {offsets = [5, 0], sizes = [1, 50], strides = [1, 1]} : vector<8x50xf32> to vector<1x50xf32>
    %cst_168 = arith.constant dense<0.000000e+00> : vector<1x50xf32>
    %421 = tpu.matmul %393, %60, %cst_168 {dimension_numbers = #tpu.dot_dimension_numbers<[1], [0], [0], [1], [0, 0, 1, 1], [], []>} : vector<1x50xf32>, vector<50x50xf32>, vector<1x50xf32> -> vector<1x50xf32>
    %422 = arith.addf %420, %421 : vector<1x50xf32>
    %423 = vector.extract_strided_slice %21 {offsets = [5, 0], sizes = [1, 50], strides = [1, 1]} : vector<8x50xf32> to vector<1x50xf32>
    %cst_169 = arith.constant dense<0.000000e+00> : vector<1x50xf32>
    %424 = tpu.matmul %393, %62, %cst_169 {dimension_numbers = #tpu.dot_dimension_numbers<[1], [0], [0], [1], [0, 0, 1, 1], [], []>} : vector<1x50xf32>, vector<50x50xf32>, vector<1x50xf32> -> vector<1x50xf32>
    %425 = arith.addf %423, %424 : vector<1x50xf32>
    %426 = vector.extract_strided_slice %28 {offsets = [5, 0], sizes = [1, 50], strides = [1, 1]} : vector<8x50xf32> to vector<1x50xf32>
    %cst_170 = arith.constant dense<0.000000e+00> : vector<1x50xf32>
    %427 = tpu.matmul %393, %64, %cst_170 {dimension_numbers = #tpu.dot_dimension_numbers<[1], [0], [0], [1], [0, 0, 1, 1], [], []>} : vector<1x50xf32>, vector<50x50xf32>, vector<1x50xf32> -> vector<1x50xf32>
    %428 = arith.addf %426, %427 : vector<1x50xf32>
    %429 = vector.extract_strided_slice %35 {offsets = [2, 0], sizes = [1, 50], strides = [1, 1]} : vector<8x50xf32> to vector<1x50xf32>
    %cst_171 = arith.constant dense<0.000000e+00> : vector<1x50xf32>
    %430 = tpu.matmul %414, %66, %cst_171 {dimension_numbers = #tpu.dot_dimension_numbers<[1], [0], [0], [1], [0, 0, 1, 1], [], []>} : vector<1x50xf32>, vector<50x50xf32>, vector<1x50xf32> -> vector<1x50xf32>
    %431 = arith.addf %429, %430 : vector<1x50xf32>
    %432 = vector.extract_strided_slice %42 {offsets = [2, 0], sizes = [1, 50], strides = [1, 1]} : vector<8x50xf32> to vector<1x50xf32>
    %cst_172 = arith.constant dense<0.000000e+00> : vector<1x50xf32>
    %433 = tpu.matmul %414, %68, %cst_172 {dimension_numbers = #tpu.dot_dimension_numbers<[1], [0], [0], [1], [0, 0, 1, 1], [], []>} : vector<1x50xf32>, vector<50x50xf32>, vector<1x50xf32> -> vector<1x50xf32>
    %434 = arith.addf %432, %433 : vector<1x50xf32>
    %435 = vector.extract_strided_slice %49 {offsets = [2, 0], sizes = [1, 50], strides = [1, 1]} : vector<8x50xf32> to vector<1x50xf32>
    %cst_173 = arith.constant dense<0.000000e+00> : vector<1x50xf32>
    %436 = tpu.matmul %414, %70, %cst_173 {dimension_numbers = #tpu.dot_dimension_numbers<[1], [0], [0], [1], [0, 0, 1, 1], [], []>} : vector<1x50xf32>, vector<50x50xf32>, vector<1x50xf32> -> vector<1x50xf32>
    %437 = arith.addf %435, %436 : vector<1x50xf32>
    %438 = vector.extract_strided_slice %56 {offsets = [2, 0], sizes = [1, 50], strides = [1, 1]} : vector<8x50xf32> to vector<1x50xf32>
    %cst_174 = arith.constant dense<0.000000e+00> : vector<1x50xf32>
    %439 = tpu.matmul %414, %72, %cst_174 {dimension_numbers = #tpu.dot_dimension_numbers<[1], [0], [0], [1], [0, 0, 1, 1], [], []>} : vector<1x50xf32>, vector<50x50xf32>, vector<1x50xf32> -> vector<1x50xf32>
    %440 = arith.addf %438, %439 : vector<1x50xf32>
    %441 = arith.negf %422 : vector<1x50xf32>
    %442 = math.exp %441 : vector<1x50xf32>
    %cst_175 = arith.constant 1.000000e+00 : f32
    %443 = vector.broadcast %cst_175 : f32 to vector<1x50xf32>
    %444 = arith.addf %443, %442 : vector<1x50xf32>
    %445 = arith.divf %443, %444 : vector<1x50xf32>
    %446 = arith.mulf %445, %386 : vector<1x50xf32>
    %447 = arith.negf %419 : vector<1x50xf32>
    %448 = math.exp %447 : vector<1x50xf32>
    %cst_176 = arith.constant 1.000000e+00 : f32
    %449 = vector.broadcast %cst_176 : f32 to vector<1x50xf32>
    %450 = arith.addf %449, %448 : vector<1x50xf32>
    %451 = arith.divf %449, %450 : vector<1x50xf32>
    %452 = math.tanh %425 : vector<1x50xf32>
    %453 = arith.mulf %451, %452 : vector<1x50xf32>
    %454 = arith.addf %446, %453 : vector<1x50xf32>
    %455 = arith.negf %428 : vector<1x50xf32>
    %456 = math.exp %455 : vector<1x50xf32>
    %cst_177 = arith.constant 1.000000e+00 : f32
    %457 = vector.broadcast %cst_177 : f32 to vector<1x50xf32>
    %458 = arith.addf %457, %456 : vector<1x50xf32>
    %459 = arith.divf %457, %458 : vector<1x50xf32>
    %460 = math.tanh %454 : vector<1x50xf32>
    %461 = arith.mulf %459, %460 : vector<1x50xf32>
    %462 = arith.negf %434 : vector<1x50xf32>
    %463 = math.exp %462 : vector<1x50xf32>
    %cst_178 = arith.constant 1.000000e+00 : f32
    %464 = vector.broadcast %cst_178 : f32 to vector<1x50xf32>
    %465 = arith.addf %464, %463 : vector<1x50xf32>
    %466 = arith.divf %464, %465 : vector<1x50xf32>
    %467 = arith.mulf %466, %407 : vector<1x50xf32>
    %468 = arith.negf %431 : vector<1x50xf32>
    %469 = math.exp %468 : vector<1x50xf32>
    %cst_179 = arith.constant 1.000000e+00 : f32
    %470 = vector.broadcast %cst_179 : f32 to vector<1x50xf32>
    %471 = arith.addf %470, %469 : vector<1x50xf32>
    %472 = arith.divf %470, %471 : vector<1x50xf32>
    %473 = math.tanh %437 : vector<1x50xf32>
    %474 = arith.mulf %472, %473 : vector<1x50xf32>
    %475 = arith.addf %467, %474 : vector<1x50xf32>
    %476 = arith.negf %440 : vector<1x50xf32>
    %477 = math.exp %476 : vector<1x50xf32>
    %cst_180 = arith.constant 1.000000e+00 : f32
    %478 = vector.broadcast %cst_180 : f32 to vector<1x50xf32>
    %479 = arith.addf %478, %477 : vector<1x50xf32>
    %480 = arith.divf %478, %479 : vector<1x50xf32>
    %481 = math.tanh %475 : vector<1x50xf32>
    %482 = arith.mulf %480, %481 : vector<1x50xf32>
    %c5_181 = arith.constant 5 : index
    %c0_182 = arith.constant 0 : index
    %483 = vector.load %arg18[%c5_181, %c0_182] : memref<8x50xf32, #tpu.memory_space<vmem>>, vector<1x50xf32>
    tpu.vector_store %arg18[%c5_181, %c0_182], %461 {strides = array<i32>} : memref<8x50xf32, #tpu.memory_space<vmem>>, vector<1x50xf32>,
    %c2_183 = arith.constant 2 : index
    %c0_184 = arith.constant 0 : index
    %484 = vector.load %arg19[%c2_183, %c0_184] : memref<8x50xf32, #tpu.memory_space<vmem>>, vector<1x50xf32>
    tpu.vector_store %arg19[%c2_183, %c0_184], %482 {strides = array<i32>} : memref<8x50xf32, #tpu.memory_space<vmem>>, vector<1x50xf32>,
    %485 = vector.extract_strided_slice %7 {offsets = [6, 0], sizes = [1, 50], strides = [1, 1]} : vector<8x50xf32> to vector<1x50xf32>
    %cst_185 = arith.constant dense<0.000000e+00> : vector<1x50xf32>
    %486 = tpu.matmul %461, %58, %cst_185 {dimension_numbers = #tpu.dot_dimension_numbers<[1], [0], [0], [1], [0, 0, 1, 1], [], []>} : vector<1x50xf32>, vector<50x50xf32>, vector<1x50xf32> -> vector<1x50xf32>
    %487 = arith.addf %485, %486 : vector<1x50xf32>
    %488 = vector.extract_strided_slice %14 {offsets = [6, 0], sizes = [1, 50], strides = [1, 1]} : vector<8x50xf32> to vector<1x50xf32>
    %cst_186 = arith.constant dense<0.000000e+00> : vector<1x50xf32>
    %489 = tpu.matmul %461, %60, %cst_186 {dimension_numbers = #tpu.dot_dimension_numbers<[1], [0], [0], [1], [0, 0, 1, 1], [], []>} : vector<1x50xf32>, vector<50x50xf32>, vector<1x50xf32> -> vector<1x50xf32>
    %490 = arith.addf %488, %489 : vector<1x50xf32>
    %491 = vector.extract_strided_slice %21 {offsets = [6, 0], sizes = [1, 50], strides = [1, 1]} : vector<8x50xf32> to vector<1x50xf32>
    %cst_187 = arith.constant dense<0.000000e+00> : vector<1x50xf32>
    %492 = tpu.matmul %461, %62, %cst_187 {dimension_numbers = #tpu.dot_dimension_numbers<[1], [0], [0], [1], [0, 0, 1, 1], [], []>} : vector<1x50xf32>, vector<50x50xf32>, vector<1x50xf32> -> vector<1x50xf32>
    %493 = arith.addf %491, %492 : vector<1x50xf32>
    %494 = vector.extract_strided_slice %28 {offsets = [6, 0], sizes = [1, 50], strides = [1, 1]} : vector<8x50xf32> to vector<1x50xf32>
    %cst_188 = arith.constant dense<0.000000e+00> : vector<1x50xf32>
    %495 = tpu.matmul %461, %64, %cst_188 {dimension_numbers = #tpu.dot_dimension_numbers<[1], [0], [0], [1], [0, 0, 1, 1], [], []>} : vector<1x50xf32>, vector<50x50xf32>, vector<1x50xf32> -> vector<1x50xf32>
    %496 = arith.addf %494, %495 : vector<1x50xf32>
    %497 = vector.extract_strided_slice %35 {offsets = [1, 0], sizes = [1, 50], strides = [1, 1]} : vector<8x50xf32> to vector<1x50xf32>
    %cst_189 = arith.constant dense<0.000000e+00> : vector<1x50xf32>
    %498 = tpu.matmul %482, %66, %cst_189 {dimension_numbers = #tpu.dot_dimension_numbers<[1], [0], [0], [1], [0, 0, 1, 1], [], []>} : vector<1x50xf32>, vector<50x50xf32>, vector<1x50xf32> -> vector<1x50xf32>
    %499 = arith.addf %497, %498 : vector<1x50xf32>
    %500 = vector.extract_strided_slice %42 {offsets = [1, 0], sizes = [1, 50], strides = [1, 1]} : vector<8x50xf32> to vector<1x50xf32>
    %cst_190 = arith.constant dense<0.000000e+00> : vector<1x50xf32>
    %501 = tpu.matmul %482, %68, %cst_190 {dimension_numbers = #tpu.dot_dimension_numbers<[1], [0], [0], [1], [0, 0, 1, 1], [], []>} : vector<1x50xf32>, vector<50x50xf32>, vector<1x50xf32> -> vector<1x50xf32>
    %502 = arith.addf %500, %501 : vector<1x50xf32>
    %503 = vector.extract_strided_slice %49 {offsets = [1, 0], sizes = [1, 50], strides = [1, 1]} : vector<8x50xf32> to vector<1x50xf32>
    %cst_191 = arith.constant dense<0.000000e+00> : vector<1x50xf32>
    %504 = tpu.matmul %482, %70, %cst_191 {dimension_numbers = #tpu.dot_dimension_numbers<[1], [0], [0], [1], [0, 0, 1, 1], [], []>} : vector<1x50xf32>, vector<50x50xf32>, vector<1x50xf32> -> vector<1x50xf32>
    %505 = arith.addf %503, %504 : vector<1x50xf32>
    %506 = vector.extract_strided_slice %56 {offsets = [1, 0], sizes = [1, 50], strides = [1, 1]} : vector<8x50xf32> to vector<1x50xf32>
    %cst_192 = arith.constant dense<0.000000e+00> : vector<1x50xf32>
    %507 = tpu.matmul %482, %72, %cst_192 {dimension_numbers = #tpu.dot_dimension_numbers<[1], [0], [0], [1], [0, 0, 1, 1], [], []>} : vector<1x50xf32>, vector<50x50xf32>, vector<1x50xf32> -> vector<1x50xf32>
    %508 = arith.addf %506, %507 : vector<1x50xf32>
    %509 = arith.negf %490 : vector<1x50xf32>
    %510 = math.exp %509 : vector<1x50xf32>
    %cst_193 = arith.constant 1.000000e+00 : f32
    %511 = vector.broadcast %cst_193 : f32 to vector<1x50xf32>
    %512 = arith.addf %511, %510 : vector<1x50xf32>
    %513 = arith.divf %511, %512 : vector<1x50xf32>
    %514 = arith.mulf %513, %454 : vector<1x50xf32>
    %515 = arith.negf %487 : vector<1x50xf32>
    %516 = math.exp %515 : vector<1x50xf32>
    %cst_194 = arith.constant 1.000000e+00 : f32
    %517 = vector.broadcast %cst_194 : f32 to vector<1x50xf32>
    %518 = arith.addf %517, %516 : vector<1x50xf32>
    %519 = arith.divf %517, %518 : vector<1x50xf32>
    %520 = math.tanh %493 : vector<1x50xf32>
    %521 = arith.mulf %519, %520 : vector<1x50xf32>
    %522 = arith.addf %514, %521 : vector<1x50xf32>
    %523 = arith.negf %496 : vector<1x50xf32>
    %524 = math.exp %523 : vector<1x50xf32>
    %cst_195 = arith.constant 1.000000e+00 : f32
    %525 = vector.broadcast %cst_195 : f32 to vector<1x50xf32>
    %526 = arith.addf %525, %524 : vector<1x50xf32>
    %527 = arith.divf %525, %526 : vector<1x50xf32>
    %528 = math.tanh %522 : vector<1x50xf32>
    %529 = arith.mulf %527, %528 : vector<1x50xf32>
    %530 = arith.negf %502 : vector<1x50xf32>
    %531 = math.exp %530 : vector<1x50xf32>
    %cst_196 = arith.constant 1.000000e+00 : f32
    %532 = vector.broadcast %cst_196 : f32 to vector<1x50xf32>
    %533 = arith.addf %532, %531 : vector<1x50xf32>
    %534 = arith.divf %532, %533 : vector<1x50xf32>
    %535 = arith.mulf %534, %475 : vector<1x50xf32>
    %536 = arith.negf %499 : vector<1x50xf32>
    %537 = math.exp %536 : vector<1x50xf32>
    %cst_197 = arith.constant 1.000000e+00 : f32
    %538 = vector.broadcast %cst_197 : f32 to vector<1x50xf32>
    %539 = arith.addf %538, %537 : vector<1x50xf32>
    %540 = arith.divf %538, %539 : vector<1x50xf32>
    %541 = math.tanh %505 : vector<1x50xf32>
    %542 = arith.mulf %540, %541 : vector<1x50xf32>
    %543 = arith.addf %535, %542 : vector<1x50xf32>
    %544 = arith.negf %508 : vector<1x50xf32>
    %545 = math.exp %544 : vector<1x50xf32>
    %cst_198 = arith.constant 1.000000e+00 : f32
    %546 = vector.broadcast %cst_198 : f32 to vector<1x50xf32>
    %547 = arith.addf %546, %545 : vector<1x50xf32>
    %548 = arith.divf %546, %547 : vector<1x50xf32>
    %549 = math.tanh %543 : vector<1x50xf32>
    %550 = arith.mulf %548, %549 : vector<1x50xf32>
    %c6_199 = arith.constant 6 : index
    %c0_200 = arith.constant 0 : index
    %551 = vector.load %arg18[%c6_199, %c0_200] : memref<8x50xf32, #tpu.memory_space<vmem>>, vector<1x50xf32>
    tpu.vector_store %arg18[%c6_199, %c0_200], %529 {strides = array<i32>} : memref<8x50xf32, #tpu.memory_space<vmem>>, vector<1x50xf32>,
    %c1_201 = arith.constant 1 : index
    %c0_202 = arith.constant 0 : index
    %552 = vector.load %arg19[%c1_201, %c0_202] : memref<8x50xf32, #tpu.memory_space<vmem>>, vector<1x50xf32>
    tpu.vector_store %arg19[%c1_201, %c0_202], %550 {strides = array<i32>} : memref<8x50xf32, #tpu.memory_space<vmem>>, vector<1x50xf32>,
    %553 = vector.extract_strided_slice %7 {offsets = [7, 0], sizes = [1, 50], strides = [1, 1]} : vector<8x50xf32> to vector<1x50xf32>
    %cst_203 = arith.constant dense<0.000000e+00> : vector<1x50xf32>
    %554 = tpu.matmul %529, %58, %cst_203 {dimension_numbers = #tpu.dot_dimension_numbers<[1], [0], [0], [1], [0, 0, 1, 1], [], []>} : vector<1x50xf32>, vector<50x50xf32>, vector<1x50xf32> -> vector<1x50xf32>
    %555 = arith.addf %553, %554 : vector<1x50xf32>
    %556 = vector.extract_strided_slice %14 {offsets = [7, 0], sizes = [1, 50], strides = [1, 1]} : vector<8x50xf32> to vector<1x50xf32>
    %cst_204 = arith.constant dense<0.000000e+00> : vector<1x50xf32>
    %557 = tpu.matmul %529, %60, %cst_204 {dimension_numbers = #tpu.dot_dimension_numbers<[1], [0], [0], [1], [0, 0, 1, 1], [], []>} : vector<1x50xf32>, vector<50x50xf32>, vector<1x50xf32> -> vector<1x50xf32>
    %558 = arith.addf %556, %557 : vector<1x50xf32>
    %559 = vector.extract_strided_slice %21 {offsets = [7, 0], sizes = [1, 50], strides = [1, 1]} : vector<8x50xf32> to vector<1x50xf32>
    %cst_205 = arith.constant dense<0.000000e+00> : vector<1x50xf32>
    %560 = tpu.matmul %529, %62, %cst_205 {dimension_numbers = #tpu.dot_dimension_numbers<[1], [0], [0], [1], [0, 0, 1, 1], [], []>} : vector<1x50xf32>, vector<50x50xf32>, vector<1x50xf32> -> vector<1x50xf32>
    %561 = arith.addf %559, %560 : vector<1x50xf32>
    %562 = vector.extract_strided_slice %28 {offsets = [7, 0], sizes = [1, 50], strides = [1, 1]} : vector<8x50xf32> to vector<1x50xf32>
    %cst_206 = arith.constant dense<0.000000e+00> : vector<1x50xf32>
    %563 = tpu.matmul %529, %64, %cst_206 {dimension_numbers = #tpu.dot_dimension_numbers<[1], [0], [0], [1], [0, 0, 1, 1], [], []>} : vector<1x50xf32>, vector<50x50xf32>, vector<1x50xf32> -> vector<1x50xf32>
    %564 = arith.addf %562, %563 : vector<1x50xf32>
    %565 = vector.extract_strided_slice %35 {offsets = [0, 0], sizes = [1, 50], strides = [1, 1]} : vector<8x50xf32> to vector<1x50xf32>
    %cst_207 = arith.constant dense<0.000000e+00> : vector<1x50xf32>
    %566 = tpu.matmul %550, %66, %cst_207 {dimension_numbers = #tpu.dot_dimension_numbers<[1], [0], [0], [1], [0, 0, 1, 1], [], []>} : vector<1x50xf32>, vector<50x50xf32>, vector<1x50xf32> -> vector<1x50xf32>
    %567 = arith.addf %565, %566 : vector<1x50xf32>
    %568 = vector.extract_strided_slice %42 {offsets = [0, 0], sizes = [1, 50], strides = [1, 1]} : vector<8x50xf32> to vector<1x50xf32>
    %cst_208 = arith.constant dense<0.000000e+00> : vector<1x50xf32>
    %569 = tpu.matmul %550, %68, %cst_208 {dimension_numbers = #tpu.dot_dimension_numbers<[1], [0], [0], [1], [0, 0, 1, 1], [], []>} : vector<1x50xf32>, vector<50x50xf32>, vector<1x50xf32> -> vector<1x50xf32>
    %570 = arith.addf %568, %569 : vector<1x50xf32>
    %571 = vector.extract_strided_slice %49 {offsets = [0, 0], sizes = [1, 50], strides = [1, 1]} : vector<8x50xf32> to vector<1x50xf32>
    %cst_209 = arith.constant dense<0.000000e+00> : vector<1x50xf32>
    %572 = tpu.matmul %550, %70, %cst_209 {dimension_numbers = #tpu.dot_dimension_numbers<[1], [0], [0], [1], [0, 0, 1, 1], [], []>} : vector<1x50xf32>, vector<50x50xf32>, vector<1x50xf32> -> vector<1x50xf32>
    %573 = arith.addf %571, %572 : vector<1x50xf32>
    %574 = vector.extract_strided_slice %56 {offsets = [0, 0], sizes = [1, 50], strides = [1, 1]} : vector<8x50xf32> to vector<1x50xf32>
    %cst_210 = arith.constant dense<0.000000e+00> : vector<1x50xf32>
    %575 = tpu.matmul %550, %72, %cst_210 {dimension_numbers = #tpu.dot_dimension_numbers<[1], [0], [0], [1], [0, 0, 1, 1], [], []>} : vector<1x50xf32>, vector<50x50xf32>, vector<1x50xf32> -> vector<1x50xf32>
    %576 = arith.addf %574, %575 : vector<1x50xf32>
    %577 = arith.negf %558 : vector<1x50xf32>
    %578 = math.exp %577 : vector<1x50xf32>
    %cst_211 = arith.constant 1.000000e+00 : f32
    %579 = vector.broadcast %cst_211 : f32 to vector<1x50xf32>
    %580 = arith.addf %579, %578 : vector<1x50xf32>
    %581 = arith.divf %579, %580 : vector<1x50xf32>
    %582 = arith.mulf %581, %522 : vector<1x50xf32>
    %583 = arith.negf %555 : vector<1x50xf32>
    %584 = math.exp %583 : vector<1x50xf32>
    %cst_212 = arith.constant 1.000000e+00 : f32
    %585 = vector.broadcast %cst_212 : f32 to vector<1x50xf32>
    %586 = arith.addf %585, %584 : vector<1x50xf32>
    %587 = arith.divf %585, %586 : vector<1x50xf32>
    %588 = math.tanh %561 : vector<1x50xf32>
    %589 = arith.mulf %587, %588 : vector<1x50xf32>
    %590 = arith.addf %582, %589 : vector<1x50xf32>
    %591 = arith.negf %564 : vector<1x50xf32>
    %592 = math.exp %591 : vector<1x50xf32>
    %cst_213 = arith.constant 1.000000e+00 : f32
    %593 = vector.broadcast %cst_213 : f32 to vector<1x50xf32>
    %594 = arith.addf %593, %592 : vector<1x50xf32>
    %595 = arith.divf %593, %594 : vector<1x50xf32>
    %596 = math.tanh %590 : vector<1x50xf32>
    %597 = arith.mulf %595, %596 : vector<1x50xf32>
    %598 = arith.negf %570 : vector<1x50xf32>
    %599 = math.exp %598 : vector<1x50xf32>
    %cst_214 = arith.constant 1.000000e+00 : f32
    %600 = vector.broadcast %cst_214 : f32 to vector<1x50xf32>
    %601 = arith.addf %600, %599 : vector<1x50xf32>
    %602 = arith.divf %600, %601 : vector<1x50xf32>
    %603 = arith.mulf %602, %543 : vector<1x50xf32>
    %604 = arith.negf %567 : vector<1x50xf32>
    %605 = math.exp %604 : vector<1x50xf32>
    %cst_215 = arith.constant 1.000000e+00 : f32
    %606 = vector.broadcast %cst_215 : f32 to vector<1x50xf32>
    %607 = arith.addf %606, %605 : vector<1x50xf32>
    %608 = arith.divf %606, %607 : vector<1x50xf32>
    %609 = math.tanh %573 : vector<1x50xf32>
    %610 = arith.mulf %608, %609 : vector<1x50xf32>
    %611 = arith.addf %603, %610 : vector<1x50xf32>
    %612 = arith.negf %576 : vector<1x50xf32>
    %613 = math.exp %612 : vector<1x50xf32>
    %cst_216 = arith.constant 1.000000e+00 : f32
    %614 = vector.broadcast %cst_216 : f32 to vector<1x50xf32>
    %615 = arith.addf %614, %613 : vector<1x50xf32>
    %616 = arith.divf %614, %615 : vector<1x50xf32>
    %617 = math.tanh %611 : vector<1x50xf32>
    %618 = arith.mulf %616, %617 : vector<1x50xf32>
    %c7_217 = arith.constant 7 : index
    %c0_218 = arith.constant 0 : index
    %619 = vector.load %arg18[%c7_217, %c0_218] : memref<8x50xf32, #tpu.memory_space<vmem>>, vector<1x50xf32>
    tpu.vector_store %arg18[%c7_217, %c0_218], %597 {strides = array<i32>} : memref<8x50xf32, #tpu.memory_space<vmem>>, vector<1x50xf32>,
    %c0_219 = arith.constant 0 : index
    %c0_220 = arith.constant 0 : index
    %620 = vector.load %arg19[%c0_219, %c0_220] : memref<8x50xf32, #tpu.memory_space<vmem>>, vector<1x50xf32>
    tpu.vector_store %arg19[%c0_219, %c0_220], %618 {strides = array<i32>} : memref<8x50xf32, #tpu.memory_space<vmem>>, vector<1x50xf32>,
    %c0_221 = arith.constant 0 : index
    %c0_222 = arith.constant 0 : index
    %621 = vector.load %arg18[%c0_221, %c0_222] : memref<8x50xf32, #tpu.memory_space<vmem>>, vector<8x50xf32>
    %c0_223 = arith.constant 0 : index
    %c0_224 = arith.constant 0 : index
    %622 = vector.load %arg19[%c0_223, %c0_224] : memref<8x50xf32, #tpu.memory_space<vmem>>, vector<8x50xf32>
    %c0_225 = arith.constant 0 : index
    %c0_226 = arith.constant 0 : index
    %c0_227 = arith.constant 0 : index
    %623 = vector.load %arg7[%c0_225, %c0_226, %c0_227] : memref<4x50x32xf32, #tpu.memory_space<vmem>>, vector<1x50x32xf32>
    %624 = vector.shape_cast %623 : vector<1x50x32xf32> to vector<50x32xf32>
    %cst_228 = arith.constant dense<0.000000e+00> : vector<8x32xf32>
    %625 = tpu.matmul %621, %624, %cst_228 {dimension_numbers = #tpu.dot_dimension_numbers<[1], [0], [0], [1], [0, 0, 1, 1], [], []>} : vector<8x50xf32>, vector<50x32xf32>, vector<8x32xf32> -> vector<8x32xf32>
    %c0_229 = arith.constant 0 : index
    %c0_230 = arith.constant 0 : index
    %c0_231 = arith.constant 0 : index
    %626 = vector.load %arg8[%c0_229, %c0_230, %c0_231] : memref<4x50x32xf32, #tpu.memory_space<vmem>>, vector<1x50x32xf32>
    %627 = vector.shape_cast %626 : vector<1x50x32xf32> to vector<50x32xf32>
    %cst_232 = arith.constant dense<0.000000e+00> : vector<8x32xf32>
    %628 = tpu.matmul %622, %627, %cst_232 {dimension_numbers = #tpu.dot_dimension_numbers<[1], [0], [0], [1], [0, 0, 1, 1], [], []>} : vector<8x50xf32>, vector<50x32xf32>, vector<8x32xf32> -> vector<8x32xf32>
    %629 = arith.addf %625, %628 : vector<8x32xf32>
    %c0_233 = arith.constant 0 : index
    %c0_234 = arith.constant 0 : index
    %c0_235 = arith.constant 0 : index
    %630 = vector.load %arg10[%c0_233, %c0_234, %c0_235] : memref<4x1x32xf32, #tpu.memory_space<vmem>>, vector<1x1x32xf32>
    %631 = vector.shape_cast %630 : vector<1x1x32xf32> to vector<1x32xf32>
    %632 = vector.broadcast %631 : vector<1x32xf32> to vector<8x32xf32>
    %633 = arith.addf %629, %632 : vector<8x32xf32>
    %c1_236 = arith.constant 1 : index
    %c0_237 = arith.constant 0 : index
    %c0_238 = arith.constant 0 : index
    %634 = vector.load %arg7[%c1_236, %c0_237, %c0_238] : memref<4x50x32xf32, #tpu.memory_space<vmem>>, vector<1x50x32xf32>
    %635 = vector.shape_cast %634 : vector<1x50x32xf32> to vector<50x32xf32>
    %cst_239 = arith.constant dense<0.000000e+00> : vector<8x32xf32>
    %636 = tpu.matmul %621, %635, %cst_239 {dimension_numbers = #tpu.dot_dimension_numbers<[1], [0], [0], [1], [0, 0, 1, 1], [], []>} : vector<8x50xf32>, vector<50x32xf32>, vector<8x32xf32> -> vector<8x32xf32>
    %c1_240 = arith.constant 1 : index
    %c0_241 = arith.constant 0 : index
    %c0_242 = arith.constant 0 : index
    %637 = vector.load %arg8[%c1_240, %c0_241, %c0_242] : memref<4x50x32xf32, #tpu.memory_space<vmem>>, vector<1x50x32xf32>
    %638 = vector.shape_cast %637 : vector<1x50x32xf32> to vector<50x32xf32>
    %cst_243 = arith.constant dense<0.000000e+00> : vector<8x32xf32>
    %639 = tpu.matmul %622, %638, %cst_243 {dimension_numbers = #tpu.dot_dimension_numbers<[1], [0], [0], [1], [0, 0, 1, 1], [], []>} : vector<8x50xf32>, vector<50x32xf32>, vector<8x32xf32> -> vector<8x32xf32>
    %640 = arith.addf %636, %639 : vector<8x32xf32>
    %c1_244 = arith.constant 1 : index
    %c0_245 = arith.constant 0 : index
    %c0_246 = arith.constant 0 : index
    %641 = vector.load %arg10[%c1_244, %c0_245, %c0_246] : memref<4x1x32xf32, #tpu.memory_space<vmem>>, vector<1x1x32xf32>
    %642 = vector.shape_cast %641 : vector<1x1x32xf32> to vector<1x32xf32>
    %643 = vector.broadcast %642 : vector<1x32xf32> to vector<8x32xf32>
    %644 = arith.addf %640, %643 : vector<8x32xf32>
    %c2_247 = arith.constant 2 : index
    %c0_248 = arith.constant 0 : index
    %c0_249 = arith.constant 0 : index
    %645 = vector.load %arg7[%c2_247, %c0_248, %c0_249] : memref<4x50x32xf32, #tpu.memory_space<vmem>>, vector<1x50x32xf32>
    %646 = vector.shape_cast %645 : vector<1x50x32xf32> to vector<50x32xf32>
    %cst_250 = arith.constant dense<0.000000e+00> : vector<8x32xf32>
    %647 = tpu.matmul %621, %646, %cst_250 {dimension_numbers = #tpu.dot_dimension_numbers<[1], [0], [0], [1], [0, 0, 1, 1], [], []>} : vector<8x50xf32>, vector<50x32xf32>, vector<8x32xf32> -> vector<8x32xf32>
    %c2_251 = arith.constant 2 : index
    %c0_252 = arith.constant 0 : index
    %c0_253 = arith.constant 0 : index
    %648 = vector.load %arg8[%c2_251, %c0_252, %c0_253] : memref<4x50x32xf32, #tpu.memory_space<vmem>>, vector<1x50x32xf32>
    %649 = vector.shape_cast %648 : vector<1x50x32xf32> to vector<50x32xf32>
    %cst_254 = arith.constant dense<0.000000e+00> : vector<8x32xf32>
    %650 = tpu.matmul %622, %649, %cst_254 {dimension_numbers = #tpu.dot_dimension_numbers<[1], [0], [0], [1], [0, 0, 1, 1], [], []>} : vector<8x50xf32>, vector<50x32xf32>, vector<8x32xf32> -> vector<8x32xf32>
    %651 = arith.addf %647, %650 : vector<8x32xf32>
    %c2_255 = arith.constant 2 : index
    %c0_256 = arith.constant 0 : index
    %c0_257 = arith.constant 0 : index
    %652 = vector.load %arg10[%c2_255, %c0_256, %c0_257] : memref<4x1x32xf32, #tpu.memory_space<vmem>>, vector<1x1x32xf32>
    %653 = vector.shape_cast %652 : vector<1x1x32xf32> to vector<1x32xf32>
    %654 = vector.broadcast %653 : vector<1x32xf32> to vector<8x32xf32>
    %655 = arith.addf %651, %654 : vector<8x32xf32>
    %c3_258 = arith.constant 3 : index
    %c0_259 = arith.constant 0 : index
    %c0_260 = arith.constant 0 : index
    %656 = vector.load %arg7[%c3_258, %c0_259, %c0_260] : memref<4x50x32xf32, #tpu.memory_space<vmem>>, vector<1x50x32xf32>
    %657 = vector.shape_cast %656 : vector<1x50x32xf32> to vector<50x32xf32>
    %cst_261 = arith.constant dense<0.000000e+00> : vector<8x32xf32>
    %658 = tpu.matmul %621, %657, %cst_261 {dimension_numbers = #tpu.dot_dimension_numbers<[1], [0], [0], [1], [0, 0, 1, 1], [], []>} : vector<8x50xf32>, vector<50x32xf32>, vector<8x32xf32> -> vector<8x32xf32>
    %c3_262 = arith.constant 3 : index
    %c0_263 = arith.constant 0 : index
    %c0_264 = arith.constant 0 : index
    %659 = vector.load %arg8[%c3_262, %c0_263, %c0_264] : memref<4x50x32xf32, #tpu.memory_space<vmem>>, vector<1x50x32xf32>
    %660 = vector.shape_cast %659 : vector<1x50x32xf32> to vector<50x32xf32>
    %cst_265 = arith.constant dense<0.000000e+00> : vector<8x32xf32>
    %661 = tpu.matmul %622, %660, %cst_265 {dimension_numbers = #tpu.dot_dimension_numbers<[1], [0], [0], [1], [0, 0, 1, 1], [], []>} : vector<8x50xf32>, vector<50x32xf32>, vector<8x32xf32> -> vector<8x32xf32>
    %662 = arith.addf %658, %661 : vector<8x32xf32>
    %c3_266 = arith.constant 3 : index
    %c0_267 = arith.constant 0 : index
    %c0_268 = arith.constant 0 : index
    %663 = vector.load %arg10[%c3_266, %c0_267, %c0_268] : memref<4x1x32xf32, #tpu.memory_space<vmem>>, vector<1x1x32xf32>
    %664 = vector.shape_cast %663 : vector<1x1x32xf32> to vector<1x32xf32>
    %665 = vector.broadcast %664 : vector<1x32xf32> to vector<8x32xf32>
    %666 = arith.addf %662, %665 : vector<8x32xf32>
    %c0_269 = arith.constant 0 : index
    %c0_270 = arith.constant 0 : index
    %c0_271 = arith.constant 0 : index
    %667 = vector.load %arg9[%c0_269, %c0_270, %c0_271] : memref<4x32x32xf32, #tpu.memory_space<vmem>>, vector<1x32x32xf32>
    %668 = vector.shape_cast %667 : vector<1x32x32xf32> to vector<32x32xf32>
    %c1_272 = arith.constant 1 : index
    %c0_273 = arith.constant 0 : index
    %c0_274 = arith.constant 0 : index
    %669 = vector.load %arg9[%c1_272, %c0_273, %c0_274] : memref<4x32x32xf32, #tpu.memory_space<vmem>>, vector<1x32x32xf32>
    %670 = vector.shape_cast %669 : vector<1x32x32xf32> to vector<32x32xf32>
    %c2_275 = arith.constant 2 : index
    %c0_276 = arith.constant 0 : index
    %c0_277 = arith.constant 0 : index
    %671 = vector.load %arg9[%c2_275, %c0_276, %c0_277] : memref<4x32x32xf32, #tpu.memory_space<vmem>>, vector<1x32x32xf32>
    %672 = vector.shape_cast %671 : vector<1x32x32xf32> to vector<32x32xf32>
    %c3_278 = arith.constant 3 : index
    %c0_279 = arith.constant 0 : index
    %c0_280 = arith.constant 0 : index
    %673 = vector.load %arg9[%c3_278, %c0_279, %c0_280] : memref<4x32x32xf32, #tpu.memory_space<vmem>>, vector<1x32x32xf32>
    %674 = vector.shape_cast %673 : vector<1x32x32xf32> to vector<32x32xf32>
    %cst_281 = arith.constant 0.000000e+00 : f32
    %675 = vector.broadcast %cst_281 : f32 to vector<1x32xf32>
    %cst_282 = arith.constant 0.000000e+00 : f32
    %676 = vector.broadcast %cst_282 : f32 to vector<1x32xf32>
    %677 = vector.extract_strided_slice %633 {offsets = [0, 0], sizes = [1, 32], strides = [1, 1]} : vector<8x32xf32> to vector<1x32xf32>
    %cst_283 = arith.constant dense<0.000000e+00> : vector<1x32xf32>
    %678 = tpu.matmul %675, %668, %cst_283 {dimension_numbers = #tpu.dot_dimension_numbers<[1], [0], [0], [1], [0, 0, 1, 1], [], []>} : vector<1x32xf32>, vector<32x32xf32>, vector<1x32xf32> -> vector<1x32xf32>
    %679 = arith.addf %677, %678 : vector<1x32xf32>
    %680 = vector.extract_strided_slice %644 {offsets = [0, 0], sizes = [1, 32], strides = [1, 1]} : vector<8x32xf32> to vector<1x32xf32>
    %cst_284 = arith.constant dense<0.000000e+00> : vector<1x32xf32>
    %681 = tpu.matmul %675, %670, %cst_284 {dimension_numbers = #tpu.dot_dimension_numbers<[1], [0], [0], [1], [0, 0, 1, 1], [], []>} : vector<1x32xf32>, vector<32x32xf32>, vector<1x32xf32> -> vector<1x32xf32>
    %682 = arith.addf %680, %681 : vector<1x32xf32>
    %683 = vector.extract_strided_slice %655 {offsets = [0, 0], sizes = [1, 32], strides = [1, 1]} : vector<8x32xf32> to vector<1x32xf32>
    %cst_285 = arith.constant dense<0.000000e+00> : vector<1x32xf32>
    %684 = tpu.matmul %675, %672, %cst_285 {dimension_numbers = #tpu.dot_dimension_numbers<[1], [0], [0], [1], [0, 0, 1, 1], [], []>} : vector<1x32xf32>, vector<32x32xf32>, vector<1x32xf32> -> vector<1x32xf32>
    %685 = arith.addf %683, %684 : vector<1x32xf32>
    %686 = vector.extract_strided_slice %666 {offsets = [0, 0], sizes = [1, 32], strides = [1, 1]} : vector<8x32xf32> to vector<1x32xf32>
    %cst_286 = arith.constant dense<0.000000e+00> : vector<1x32xf32>
    %687 = tpu.matmul %675, %674, %cst_286 {dimension_numbers = #tpu.dot_dimension_numbers<[1], [0], [0], [1], [0, 0, 1, 1], [], []>} : vector<1x32xf32>, vector<32x32xf32>, vector<1x32xf32> -> vector<1x32xf32>
    %688 = arith.addf %686, %687 : vector<1x32xf32>
    %689 = arith.negf %682 : vector<1x32xf32>
    %690 = math.exp %689 : vector<1x32xf32>
    %cst_287 = arith.constant 1.000000e+00 : f32
    %691 = vector.broadcast %cst_287 : f32 to vector<1x32xf32>
    %692 = arith.addf %691, %690 : vector<1x32xf32>
    %693 = arith.divf %691, %692 : vector<1x32xf32>
    %694 = arith.mulf %693, %676 : vector<1x32xf32>
    %695 = arith.negf %679 : vector<1x32xf32>
    %696 = math.exp %695 : vector<1x32xf32>
    %cst_288 = arith.constant 1.000000e+00 : f32
    %697 = vector.broadcast %cst_288 : f32 to vector<1x32xf32>
    %698 = arith.addf %697, %696 : vector<1x32xf32>
    %699 = arith.divf %697, %698 : vector<1x32xf32>
    %700 = math.tanh %685 : vector<1x32xf32>
    %701 = arith.mulf %699, %700 : vector<1x32xf32>
    %702 = arith.addf %694, %701 : vector<1x32xf32>
    %703 = arith.negf %688 : vector<1x32xf32>
    %704 = math.exp %703 : vector<1x32xf32>
    %cst_289 = arith.constant 1.000000e+00 : f32
    %705 = vector.broadcast %cst_289 : f32 to vector<1x32xf32>
    %706 = arith.addf %705, %704 : vector<1x32xf32>
    %707 = arith.divf %705, %706 : vector<1x32xf32>
    %708 = math.tanh %702 : vector<1x32xf32>
    %709 = arith.mulf %707, %708 : vector<1x32xf32>
    %710 = vector.extract_strided_slice %633 {offsets = [1, 0], sizes = [1, 32], strides = [1, 1]} : vector<8x32xf32> to vector<1x32xf32>
    %cst_290 = arith.constant dense<0.000000e+00> : vector<1x32xf32>
    %711 = tpu.matmul %709, %668, %cst_290 {dimension_numbers = #tpu.dot_dimension_numbers<[1], [0], [0], [1], [0, 0, 1, 1], [], []>} : vector<1x32xf32>, vector<32x32xf32>, vector<1x32xf32> -> vector<1x32xf32>
    %712 = arith.addf %710, %711 : vector<1x32xf32>
    %713 = vector.extract_strided_slice %644 {offsets = [1, 0], sizes = [1, 32], strides = [1, 1]} : vector<8x32xf32> to vector<1x32xf32>
    %cst_291 = arith.constant dense<0.000000e+00> : vector<1x32xf32>
    %714 = tpu.matmul %709, %670, %cst_291 {dimension_numbers = #tpu.dot_dimension_numbers<[1], [0], [0], [1], [0, 0, 1, 1], [], []>} : vector<1x32xf32>, vector<32x32xf32>, vector<1x32xf32> -> vector<1x32xf32>
    %715 = arith.addf %713, %714 : vector<1x32xf32>
    %716 = vector.extract_strided_slice %655 {offsets = [1, 0], sizes = [1, 32], strides = [1, 1]} : vector<8x32xf32> to vector<1x32xf32>
    %cst_292 = arith.constant dense<0.000000e+00> : vector<1x32xf32>
    %717 = tpu.matmul %709, %672, %cst_292 {dimension_numbers = #tpu.dot_dimension_numbers<[1], [0], [0], [1], [0, 0, 1, 1], [], []>} : vector<1x32xf32>, vector<32x32xf32>, vector<1x32xf32> -> vector<1x32xf32>
    %718 = arith.addf %716, %717 : vector<1x32xf32>
    %719 = vector.extract_strided_slice %666 {offsets = [1, 0], sizes = [1, 32], strides = [1, 1]} : vector<8x32xf32> to vector<1x32xf32>
    %cst_293 = arith.constant dense<0.000000e+00> : vector<1x32xf32>
    %720 = tpu.matmul %709, %674, %cst_293 {dimension_numbers = #tpu.dot_dimension_numbers<[1], [0], [0], [1], [0, 0, 1, 1], [], []>} : vector<1x32xf32>, vector<32x32xf32>, vector<1x32xf32> -> vector<1x32xf32>
    %721 = arith.addf %719, %720 : vector<1x32xf32>
    %722 = arith.negf %715 : vector<1x32xf32>
    %723 = math.exp %722 : vector<1x32xf32>
    %cst_294 = arith.constant 1.000000e+00 : f32
    %724 = vector.broadcast %cst_294 : f32 to vector<1x32xf32>
    %725 = arith.addf %724, %723 : vector<1x32xf32>
    %726 = arith.divf %724, %725 : vector<1x32xf32>
    %727 = arith.mulf %726, %702 : vector<1x32xf32>
    %728 = arith.negf %712 : vector<1x32xf32>
    %729 = math.exp %728 : vector<1x32xf32>
    %cst_295 = arith.constant 1.000000e+00 : f32
    %730 = vector.broadcast %cst_295 : f32 to vector<1x32xf32>
    %731 = arith.addf %730, %729 : vector<1x32xf32>
    %732 = arith.divf %730, %731 : vector<1x32xf32>
    %733 = math.tanh %718 : vector<1x32xf32>
    %734 = arith.mulf %732, %733 : vector<1x32xf32>
    %735 = arith.addf %727, %734 : vector<1x32xf32>
    %736 = arith.negf %721 : vector<1x32xf32>
    %737 = math.exp %736 : vector<1x32xf32>
    %cst_296 = arith.constant 1.000000e+00 : f32
    %738 = vector.broadcast %cst_296 : f32 to vector<1x32xf32>
    %739 = arith.addf %738, %737 : vector<1x32xf32>
    %740 = arith.divf %738, %739 : vector<1x32xf32>
    %741 = math.tanh %735 : vector<1x32xf32>
    %742 = arith.mulf %740, %741 : vector<1x32xf32>
    %743 = vector.extract_strided_slice %633 {offsets = [2, 0], sizes = [1, 32], strides = [1, 1]} : vector<8x32xf32> to vector<1x32xf32>
    %cst_297 = arith.constant dense<0.000000e+00> : vector<1x32xf32>
    %744 = tpu.matmul %742, %668, %cst_297 {dimension_numbers = #tpu.dot_dimension_numbers<[1], [0], [0], [1], [0, 0, 1, 1], [], []>} : vector<1x32xf32>, vector<32x32xf32>, vector<1x32xf32> -> vector<1x32xf32>
    %745 = arith.addf %743, %744 : vector<1x32xf32>
    %746 = vector.extract_strided_slice %644 {offsets = [2, 0], sizes = [1, 32], strides = [1, 1]} : vector<8x32xf32> to vector<1x32xf32>
    %cst_298 = arith.constant dense<0.000000e+00> : vector<1x32xf32>
    %747 = tpu.matmul %742, %670, %cst_298 {dimension_numbers = #tpu.dot_dimension_numbers<[1], [0], [0], [1], [0, 0, 1, 1], [], []>} : vector<1x32xf32>, vector<32x32xf32>, vector<1x32xf32> -> vector<1x32xf32>
    %748 = arith.addf %746, %747 : vector<1x32xf32>
    %749 = vector.extract_strided_slice %655 {offsets = [2, 0], sizes = [1, 32], strides = [1, 1]} : vector<8x32xf32> to vector<1x32xf32>
    %cst_299 = arith.constant dense<0.000000e+00> : vector<1x32xf32>
    %750 = tpu.matmul %742, %672, %cst_299 {dimension_numbers = #tpu.dot_dimension_numbers<[1], [0], [0], [1], [0, 0, 1, 1], [], []>} : vector<1x32xf32>, vector<32x32xf32>, vector<1x32xf32> -> vector<1x32xf32>
    %751 = arith.addf %749, %750 : vector<1x32xf32>
    %752 = vector.extract_strided_slice %666 {offsets = [2, 0], sizes = [1, 32], strides = [1, 1]} : vector<8x32xf32> to vector<1x32xf32>
    %cst_300 = arith.constant dense<0.000000e+00> : vector<1x32xf32>
    %753 = tpu.matmul %742, %674, %cst_300 {dimension_numbers = #tpu.dot_dimension_numbers<[1], [0], [0], [1], [0, 0, 1, 1], [], []>} : vector<1x32xf32>, vector<32x32xf32>, vector<1x32xf32> -> vector<1x32xf32>
    %754 = arith.addf %752, %753 : vector<1x32xf32>
    %755 = arith.negf %748 : vector<1x32xf32>
    %756 = math.exp %755 : vector<1x32xf32>
    %cst_301 = arith.constant 1.000000e+00 : f32
    %757 = vector.broadcast %cst_301 : f32 to vector<1x32xf32>
    %758 = arith.addf %757, %756 : vector<1x32xf32>
    %759 = arith.divf %757, %758 : vector<1x32xf32>
    %760 = arith.mulf %759, %735 : vector<1x32xf32>
    %761 = arith.negf %745 : vector<1x32xf32>
    %762 = math.exp %761 : vector<1x32xf32>
    %cst_302 = arith.constant 1.000000e+00 : f32
    %763 = vector.broadcast %cst_302 : f32 to vector<1x32xf32>
    %764 = arith.addf %763, %762 : vector<1x32xf32>
    %765 = arith.divf %763, %764 : vector<1x32xf32>
    %766 = math.tanh %751 : vector<1x32xf32>
    %767 = arith.mulf %765, %766 : vector<1x32xf32>
    %768 = arith.addf %760, %767 : vector<1x32xf32>
    %769 = arith.negf %754 : vector<1x32xf32>
    %770 = math.exp %769 : vector<1x32xf32>
    %cst_303 = arith.constant 1.000000e+00 : f32
    %771 = vector.broadcast %cst_303 : f32 to vector<1x32xf32>
    %772 = arith.addf %771, %770 : vector<1x32xf32>
    %773 = arith.divf %771, %772 : vector<1x32xf32>
    %774 = math.tanh %768 : vector<1x32xf32>
    %775 = arith.mulf %773, %774 : vector<1x32xf32>
    %776 = vector.extract_strided_slice %633 {offsets = [3, 0], sizes = [1, 32], strides = [1, 1]} : vector<8x32xf32> to vector<1x32xf32>
    %cst_304 = arith.constant dense<0.000000e+00> : vector<1x32xf32>
    %777 = tpu.matmul %775, %668, %cst_304 {dimension_numbers = #tpu.dot_dimension_numbers<[1], [0], [0], [1], [0, 0, 1, 1], [], []>} : vector<1x32xf32>, vector<32x32xf32>, vector<1x32xf32> -> vector<1x32xf32>
    %778 = arith.addf %776, %777 : vector<1x32xf32>
    %779 = vector.extract_strided_slice %644 {offsets = [3, 0], sizes = [1, 32], strides = [1, 1]} : vector<8x32xf32> to vector<1x32xf32>
    %cst_305 = arith.constant dense<0.000000e+00> : vector<1x32xf32>
    %780 = tpu.matmul %775, %670, %cst_305 {dimension_numbers = #tpu.dot_dimension_numbers<[1], [0], [0], [1], [0, 0, 1, 1], [], []>} : vector<1x32xf32>, vector<32x32xf32>, vector<1x32xf32> -> vector<1x32xf32>
    %781 = arith.addf %779, %780 : vector<1x32xf32>
    %782 = vector.extract_strided_slice %655 {offsets = [3, 0], sizes = [1, 32], strides = [1, 1]} : vector<8x32xf32> to vector<1x32xf32>
    %cst_306 = arith.constant dense<0.000000e+00> : vector<1x32xf32>
    %783 = tpu.matmul %775, %672, %cst_306 {dimension_numbers = #tpu.dot_dimension_numbers<[1], [0], [0], [1], [0, 0, 1, 1], [], []>} : vector<1x32xf32>, vector<32x32xf32>, vector<1x32xf32> -> vector<1x32xf32>
    %784 = arith.addf %782, %783 : vector<1x32xf32>
    %785 = vector.extract_strided_slice %666 {offsets = [3, 0], sizes = [1, 32], strides = [1, 1]} : vector<8x32xf32> to vector<1x32xf32>
    %cst_307 = arith.constant dense<0.000000e+00> : vector<1x32xf32>
    %786 = tpu.matmul %775, %674, %cst_307 {dimension_numbers = #tpu.dot_dimension_numbers<[1], [0], [0], [1], [0, 0, 1, 1], [], []>} : vector<1x32xf32>, vector<32x32xf32>, vector<1x32xf32> -> vector<1x32xf32>
    %787 = arith.addf %785, %786 : vector<1x32xf32>
    %788 = arith.negf %781 : vector<1x32xf32>
    %789 = math.exp %788 : vector<1x32xf32>
    %cst_308 = arith.constant 1.000000e+00 : f32
    %790 = vector.broadcast %cst_308 : f32 to vector<1x32xf32>
    %791 = arith.addf %790, %789 : vector<1x32xf32>
    %792 = arith.divf %790, %791 : vector<1x32xf32>
    %793 = arith.mulf %792, %768 : vector<1x32xf32>
    %794 = arith.negf %778 : vector<1x32xf32>
    %795 = math.exp %794 : vector<1x32xf32>
    %cst_309 = arith.constant 1.000000e+00 : f32
    %796 = vector.broadcast %cst_309 : f32 to vector<1x32xf32>
    %797 = arith.addf %796, %795 : vector<1x32xf32>
    %798 = arith.divf %796, %797 : vector<1x32xf32>
    %799 = math.tanh %784 : vector<1x32xf32>
    %800 = arith.mulf %798, %799 : vector<1x32xf32>
    %801 = arith.addf %793, %800 : vector<1x32xf32>
    %802 = arith.negf %787 : vector<1x32xf32>
    %803 = math.exp %802 : vector<1x32xf32>
    %cst_310 = arith.constant 1.000000e+00 : f32
    %804 = vector.broadcast %cst_310 : f32 to vector<1x32xf32>
    %805 = arith.addf %804, %803 : vector<1x32xf32>
    %806 = arith.divf %804, %805 : vector<1x32xf32>
    %807 = math.tanh %801 : vector<1x32xf32>
    %808 = arith.mulf %806, %807 : vector<1x32xf32>
    %809 = vector.extract_strided_slice %633 {offsets = [4, 0], sizes = [1, 32], strides = [1, 1]} : vector<8x32xf32> to vector<1x32xf32>
    %cst_311 = arith.constant dense<0.000000e+00> : vector<1x32xf32>
    %810 = tpu.matmul %808, %668, %cst_311 {dimension_numbers = #tpu.dot_dimension_numbers<[1], [0], [0], [1], [0, 0, 1, 1], [], []>} : vector<1x32xf32>, vector<32x32xf32>, vector<1x32xf32> -> vector<1x32xf32>
    %811 = arith.addf %809, %810 : vector<1x32xf32>
    %812 = vector.extract_strided_slice %644 {offsets = [4, 0], sizes = [1, 32], strides = [1, 1]} : vector<8x32xf32> to vector<1x32xf32>
    %cst_312 = arith.constant dense<0.000000e+00> : vector<1x32xf32>
    %813 = tpu.matmul %808, %670, %cst_312 {dimension_numbers = #tpu.dot_dimension_numbers<[1], [0], [0], [1], [0, 0, 1, 1], [], []>} : vector<1x32xf32>, vector<32x32xf32>, vector<1x32xf32> -> vector<1x32xf32>
    %814 = arith.addf %812, %813 : vector<1x32xf32>
    %815 = vector.extract_strided_slice %655 {offsets = [4, 0], sizes = [1, 32], strides = [1, 1]} : vector<8x32xf32> to vector<1x32xf32>
    %cst_313 = arith.constant dense<0.000000e+00> : vector<1x32xf32>
    %816 = tpu.matmul %808, %672, %cst_313 {dimension_numbers = #tpu.dot_dimension_numbers<[1], [0], [0], [1], [0, 0, 1, 1], [], []>} : vector<1x32xf32>, vector<32x32xf32>, vector<1x32xf32> -> vector<1x32xf32>
    %817 = arith.addf %815, %816 : vector<1x32xf32>
    %818 = vector.extract_strided_slice %666 {offsets = [4, 0], sizes = [1, 32], strides = [1, 1]} : vector<8x32xf32> to vector<1x32xf32>
    %cst_314 = arith.constant dense<0.000000e+00> : vector<1x32xf32>
    %819 = tpu.matmul %808, %674, %cst_314 {dimension_numbers = #tpu.dot_dimension_numbers<[1], [0], [0], [1], [0, 0, 1, 1], [], []>} : vector<1x32xf32>, vector<32x32xf32>, vector<1x32xf32> -> vector<1x32xf32>
    %820 = arith.addf %818, %819 : vector<1x32xf32>
    %821 = arith.negf %814 : vector<1x32xf32>
    %822 = math.exp %821 : vector<1x32xf32>
    %cst_315 = arith.constant 1.000000e+00 : f32
    %823 = vector.broadcast %cst_315 : f32 to vector<1x32xf32>
    %824 = arith.addf %823, %822 : vector<1x32xf32>
    %825 = arith.divf %823, %824 : vector<1x32xf32>
    %826 = arith.mulf %825, %801 : vector<1x32xf32>
    %827 = arith.negf %811 : vector<1x32xf32>
    %828 = math.exp %827 : vector<1x32xf32>
    %cst_316 = arith.constant 1.000000e+00 : f32
    %829 = vector.broadcast %cst_316 : f32 to vector<1x32xf32>
    %830 = arith.addf %829, %828 : vector<1x32xf32>
    %831 = arith.divf %829, %830 : vector<1x32xf32>
    %832 = math.tanh %817 : vector<1x32xf32>
    %833 = arith.mulf %831, %832 : vector<1x32xf32>
    %834 = arith.addf %826, %833 : vector<1x32xf32>
    %835 = arith.negf %820 : vector<1x32xf32>
    %836 = math.exp %835 : vector<1x32xf32>
    %cst_317 = arith.constant 1.000000e+00 : f32
    %837 = vector.broadcast %cst_317 : f32 to vector<1x32xf32>
    %838 = arith.addf %837, %836 : vector<1x32xf32>
    %839 = arith.divf %837, %838 : vector<1x32xf32>
    %840 = math.tanh %834 : vector<1x32xf32>
    %841 = arith.mulf %839, %840 : vector<1x32xf32>
    %842 = vector.extract_strided_slice %633 {offsets = [5, 0], sizes = [1, 32], strides = [1, 1]} : vector<8x32xf32> to vector<1x32xf32>
    %cst_318 = arith.constant dense<0.000000e+00> : vector<1x32xf32>
    %843 = tpu.matmul %841, %668, %cst_318 {dimension_numbers = #tpu.dot_dimension_numbers<[1], [0], [0], [1], [0, 0, 1, 1], [], []>} : vector<1x32xf32>, vector<32x32xf32>, vector<1x32xf32> -> vector<1x32xf32>
    %844 = arith.addf %842, %843 : vector<1x32xf32>
    %845 = vector.extract_strided_slice %644 {offsets = [5, 0], sizes = [1, 32], strides = [1, 1]} : vector<8x32xf32> to vector<1x32xf32>
    %cst_319 = arith.constant dense<0.000000e+00> : vector<1x32xf32>
    %846 = tpu.matmul %841, %670, %cst_319 {dimension_numbers = #tpu.dot_dimension_numbers<[1], [0], [0], [1], [0, 0, 1, 1], [], []>} : vector<1x32xf32>, vector<32x32xf32>, vector<1x32xf32> -> vector<1x32xf32>
    %847 = arith.addf %845, %846 : vector<1x32xf32>
    %848 = vector.extract_strided_slice %655 {offsets = [5, 0], sizes = [1, 32], strides = [1, 1]} : vector<8x32xf32> to vector<1x32xf32>
    %cst_320 = arith.constant dense<0.000000e+00> : vector<1x32xf32>
    %849 = tpu.matmul %841, %672, %cst_320 {dimension_numbers = #tpu.dot_dimension_numbers<[1], [0], [0], [1], [0, 0, 1, 1], [], []>} : vector<1x32xf32>, vector<32x32xf32>, vector<1x32xf32> -> vector<1x32xf32>
    %850 = arith.addf %848, %849 : vector<1x32xf32>
    %851 = vector.extract_strided_slice %666 {offsets = [5, 0], sizes = [1, 32], strides = [1, 1]} : vector<8x32xf32> to vector<1x32xf32>
    %cst_321 = arith.constant dense<0.000000e+00> : vector<1x32xf32>
    %852 = tpu.matmul %841, %674, %cst_321 {dimension_numbers = #tpu.dot_dimension_numbers<[1], [0], [0], [1], [0, 0, 1, 1], [], []>} : vector<1x32xf32>, vector<32x32xf32>, vector<1x32xf32> -> vector<1x32xf32>
    %853 = arith.addf %851, %852 : vector<1x32xf32>
    %854 = arith.negf %847 : vector<1x32xf32>
    %855 = math.exp %854 : vector<1x32xf32>
    %cst_322 = arith.constant 1.000000e+00 : f32
    %856 = vector.broadcast %cst_322 : f32 to vector<1x32xf32>
    %857 = arith.addf %856, %855 : vector<1x32xf32>
    %858 = arith.divf %856, %857 : vector<1x32xf32>
    %859 = arith.mulf %858, %834 : vector<1x32xf32>
    %860 = arith.negf %844 : vector<1x32xf32>
    %861 = math.exp %860 : vector<1x32xf32>
    %cst_323 = arith.constant 1.000000e+00 : f32
    %862 = vector.broadcast %cst_323 : f32 to vector<1x32xf32>
    %863 = arith.addf %862, %861 : vector<1x32xf32>
    %864 = arith.divf %862, %863 : vector<1x32xf32>
    %865 = math.tanh %850 : vector<1x32xf32>
    %866 = arith.mulf %864, %865 : vector<1x32xf32>
    %867 = arith.addf %859, %866 : vector<1x32xf32>
    %868 = arith.negf %853 : vector<1x32xf32>
    %869 = math.exp %868 : vector<1x32xf32>
    %cst_324 = arith.constant 1.000000e+00 : f32
    %870 = vector.broadcast %cst_324 : f32 to vector<1x32xf32>
    %871 = arith.addf %870, %869 : vector<1x32xf32>
    %872 = arith.divf %870, %871 : vector<1x32xf32>
    %873 = math.tanh %867 : vector<1x32xf32>
    %874 = arith.mulf %872, %873 : vector<1x32xf32>
    %875 = vector.extract_strided_slice %633 {offsets = [6, 0], sizes = [1, 32], strides = [1, 1]} : vector<8x32xf32> to vector<1x32xf32>
    %cst_325 = arith.constant dense<0.000000e+00> : vector<1x32xf32>
    %876 = tpu.matmul %874, %668, %cst_325 {dimension_numbers = #tpu.dot_dimension_numbers<[1], [0], [0], [1], [0, 0, 1, 1], [], []>} : vector<1x32xf32>, vector<32x32xf32>, vector<1x32xf32> -> vector<1x32xf32>
    %877 = arith.addf %875, %876 : vector<1x32xf32>
    %878 = vector.extract_strided_slice %644 {offsets = [6, 0], sizes = [1, 32], strides = [1, 1]} : vector<8x32xf32> to vector<1x32xf32>
    %cst_326 = arith.constant dense<0.000000e+00> : vector<1x32xf32>
    %879 = tpu.matmul %874, %670, %cst_326 {dimension_numbers = #tpu.dot_dimension_numbers<[1], [0], [0], [1], [0, 0, 1, 1], [], []>} : vector<1x32xf32>, vector<32x32xf32>, vector<1x32xf32> -> vector<1x32xf32>
    %880 = arith.addf %878, %879 : vector<1x32xf32>
    %881 = vector.extract_strided_slice %655 {offsets = [6, 0], sizes = [1, 32], strides = [1, 1]} : vector<8x32xf32> to vector<1x32xf32>
    %cst_327 = arith.constant dense<0.000000e+00> : vector<1x32xf32>
    %882 = tpu.matmul %874, %672, %cst_327 {dimension_numbers = #tpu.dot_dimension_numbers<[1], [0], [0], [1], [0, 0, 1, 1], [], []>} : vector<1x32xf32>, vector<32x32xf32>, vector<1x32xf32> -> vector<1x32xf32>
    %883 = arith.addf %881, %882 : vector<1x32xf32>
    %884 = vector.extract_strided_slice %666 {offsets = [6, 0], sizes = [1, 32], strides = [1, 1]} : vector<8x32xf32> to vector<1x32xf32>
    %cst_328 = arith.constant dense<0.000000e+00> : vector<1x32xf32>
    %885 = tpu.matmul %874, %674, %cst_328 {dimension_numbers = #tpu.dot_dimension_numbers<[1], [0], [0], [1], [0, 0, 1, 1], [], []>} : vector<1x32xf32>, vector<32x32xf32>, vector<1x32xf32> -> vector<1x32xf32>
    %886 = arith.addf %884, %885 : vector<1x32xf32>
    %887 = arith.negf %880 : vector<1x32xf32>
    %888 = math.exp %887 : vector<1x32xf32>
    %cst_329 = arith.constant 1.000000e+00 : f32
    %889 = vector.broadcast %cst_329 : f32 to vector<1x32xf32>
    %890 = arith.addf %889, %888 : vector<1x32xf32>
    %891 = arith.divf %889, %890 : vector<1x32xf32>
    %892 = arith.mulf %891, %867 : vector<1x32xf32>
    %893 = arith.negf %877 : vector<1x32xf32>
    %894 = math.exp %893 : vector<1x32xf32>
    %cst_330 = arith.constant 1.000000e+00 : f32
    %895 = vector.broadcast %cst_330 : f32 to vector<1x32xf32>
    %896 = arith.addf %895, %894 : vector<1x32xf32>
    %897 = arith.divf %895, %896 : vector<1x32xf32>
    %898 = math.tanh %883 : vector<1x32xf32>
    %899 = arith.mulf %897, %898 : vector<1x32xf32>
    %900 = arith.addf %892, %899 : vector<1x32xf32>
    %901 = arith.negf %886 : vector<1x32xf32>
    %902 = math.exp %901 : vector<1x32xf32>
    %cst_331 = arith.constant 1.000000e+00 : f32
    %903 = vector.broadcast %cst_331 : f32 to vector<1x32xf32>
    %904 = arith.addf %903, %902 : vector<1x32xf32>
    %905 = arith.divf %903, %904 : vector<1x32xf32>
    %906 = math.tanh %900 : vector<1x32xf32>
    %907 = arith.mulf %905, %906 : vector<1x32xf32>
    %908 = vector.extract_strided_slice %633 {offsets = [7, 0], sizes = [1, 32], strides = [1, 1]} : vector<8x32xf32> to vector<1x32xf32>
    %cst_332 = arith.constant dense<0.000000e+00> : vector<1x32xf32>
    %909 = tpu.matmul %907, %668, %cst_332 {dimension_numbers = #tpu.dot_dimension_numbers<[1], [0], [0], [1], [0, 0, 1, 1], [], []>} : vector<1x32xf32>, vector<32x32xf32>, vector<1x32xf32> -> vector<1x32xf32>
    %910 = arith.addf %908, %909 : vector<1x32xf32>
    %911 = vector.extract_strided_slice %644 {offsets = [7, 0], sizes = [1, 32], strides = [1, 1]} : vector<8x32xf32> to vector<1x32xf32>
    %cst_333 = arith.constant dense<0.000000e+00> : vector<1x32xf32>
    %912 = tpu.matmul %907, %670, %cst_333 {dimension_numbers = #tpu.dot_dimension_numbers<[1], [0], [0], [1], [0, 0, 1, 1], [], []>} : vector<1x32xf32>, vector<32x32xf32>, vector<1x32xf32> -> vector<1x32xf32>
    %913 = arith.addf %911, %912 : vector<1x32xf32>
    %914 = vector.extract_strided_slice %655 {offsets = [7, 0], sizes = [1, 32], strides = [1, 1]} : vector<8x32xf32> to vector<1x32xf32>
    %cst_334 = arith.constant dense<0.000000e+00> : vector<1x32xf32>
    %915 = tpu.matmul %907, %672, %cst_334 {dimension_numbers = #tpu.dot_dimension_numbers<[1], [0], [0], [1], [0, 0, 1, 1], [], []>} : vector<1x32xf32>, vector<32x32xf32>, vector<1x32xf32> -> vector<1x32xf32>
    %916 = arith.addf %914, %915 : vector<1x32xf32>
    %917 = vector.extract_strided_slice %666 {offsets = [7, 0], sizes = [1, 32], strides = [1, 1]} : vector<8x32xf32> to vector<1x32xf32>
    %cst_335 = arith.constant dense<0.000000e+00> : vector<1x32xf32>
    %918 = tpu.matmul %907, %674, %cst_335 {dimension_numbers = #tpu.dot_dimension_numbers<[1], [0], [0], [1], [0, 0, 1, 1], [], []>} : vector<1x32xf32>, vector<32x32xf32>, vector<1x32xf32> -> vector<1x32xf32>
    %919 = arith.addf %917, %918 : vector<1x32xf32>
    %920 = arith.negf %913 : vector<1x32xf32>
    %921 = math.exp %920 : vector<1x32xf32>
    %cst_336 = arith.constant 1.000000e+00 : f32
    %922 = vector.broadcast %cst_336 : f32 to vector<1x32xf32>
    %923 = arith.addf %922, %921 : vector<1x32xf32>
    %924 = arith.divf %922, %923 : vector<1x32xf32>
    %925 = arith.mulf %924, %900 : vector<1x32xf32>
    %926 = arith.negf %910 : vector<1x32xf32>
    %927 = math.exp %926 : vector<1x32xf32>
    %cst_337 = arith.constant 1.000000e+00 : f32
    %928 = vector.broadcast %cst_337 : f32 to vector<1x32xf32>
    %929 = arith.addf %928, %927 : vector<1x32xf32>
    %930 = arith.divf %928, %929 : vector<1x32xf32>
    %931 = math.tanh %916 : vector<1x32xf32>
    %932 = arith.mulf %930, %931 : vector<1x32xf32>
    %933 = arith.addf %925, %932 : vector<1x32xf32>
    %934 = arith.negf %919 : vector<1x32xf32>
    %935 = math.exp %934 : vector<1x32xf32>
    %cst_338 = arith.constant 1.000000e+00 : f32
    %936 = vector.broadcast %cst_338 : f32 to vector<1x32xf32>
    %937 = arith.addf %936, %935 : vector<1x32xf32>
    %938 = arith.divf %936, %937 : vector<1x32xf32>
    %939 = math.tanh %933 : vector<1x32xf32>
    %940 = arith.mulf %938, %939 : vector<1x32xf32>
    %c0_339 = arith.constant 0 : index
    %c0_340 = arith.constant 0 : index
    %941 = vector.load %arg12[%c0_339, %c0_340] : memref<32x32xf32, #tpu.memory_space<vmem>>, vector<32x32xf32>
    %cst_341 = arith.constant dense<0.000000e+00> : vector<1x32xf32>
    %942 = tpu.matmul %940, %941, %cst_341 {dimension_numbers = #tpu.dot_dimension_numbers<[1], [0], [0], [1], [0, 0, 1, 1], [], []>} : vector<1x32xf32>, vector<32x32xf32>, vector<1x32xf32> -> vector<1x32xf32>
    %c0_342 = arith.constant 0 : index
    %c0_343 = arith.constant 0 : index
    %943 = vector.load %arg11[%c0_342, %c0_343] : memref<1x8xf32, #tpu.memory_space<vmem>>, vector<1x8xf32>
    %c0_344 = arith.constant 0 : index
    %c0_345 = arith.constant 0 : index
    %944 = vector.load %arg13[%c0_344, %c0_345] : memref<8x32xf32, #tpu.memory_space<vmem>>, vector<8x32xf32>
    %cst_346 = arith.constant dense<0.000000e+00> : vector<1x32xf32>
    %945 = tpu.matmul %943, %944, %cst_346 {dimension_numbers = #tpu.dot_dimension_numbers<[1], [0], [0], [1], [0, 0, 1, 1], [], []>} : vector<1x8xf32>, vector<8x32xf32>, vector<1x32xf32> -> vector<1x32xf32>
    %946 = arith.addf %942, %945 : vector<1x32xf32>
    %c0_347 = arith.constant 0 : index
    %c0_348 = arith.constant 0 : index
    %947 = vector.load %arg14[%c0_347, %c0_348] : memref<1x32xf32, #tpu.memory_space<vmem>>, vector<1x32xf32>
    %948 = arith.addf %946, %947 : vector<1x32xf32>
    %cst_349 = arith.constant 0.000000e+00 : f32
    %949 = vector.broadcast %cst_349 : f32 to vector<1x32xf32>
    %950 = arith.maximumf %948, %949 : vector<1x32xf32>
    %c0_350 = arith.constant 0 : index
    %c0_351 = arith.constant 0 : index
    %951 = vector.load %arg15[%c0_350, %c0_351] : memref<32x10xf32, #tpu.memory_space<vmem>>, vector<32x10xf32>
    %cst_352 = arith.constant dense<0.000000e+00> : vector<1x10xf32>
    %952 = tpu.matmul %950, %951, %cst_352 {dimension_numbers = #tpu.dot_dimension_numbers<[1], [0], [0], [1], [0, 0, 1, 1], [], []>} : vector<1x32xf32>, vector<32x10xf32>, vector<1x10xf32> -> vector<1x10xf32>
    %c0_353 = arith.constant 0 : index
    %c0_354 = arith.constant 0 : index
    %953 = vector.load %arg16[%c0_353, %c0_354] : memref<1x10xf32, #tpu.memory_space<vmem>>, vector<1x10xf32>
    %954 = arith.addf %952, %953 : vector<1x10xf32>
    %cst_355 = arith.constant dense<0xFF800000> : vector<1xf32>
    %955 = vector.multi_reduction <maximumf>, %954, %cst_355 [1] : vector<1x10xf32> to vector<1xf32>
    %956 = vector.shape_cast %955 : vector<1xf32> to vector<1x1xf32>
    %957 = vector.broadcast %956 : vector<1x1xf32> to vector<1x10xf32>
    %958 = arith.subf %954, %957 : vector<1x10xf32>
    %959 = math.exp %958 : vector<1x10xf32>
    %cst_356 = arith.constant dense<0.000000e+00> : vector<1xf32>
    %960 = vector.multi_reduction <add>, %959, %cst_356 [1] : vector<1x10xf32> to vector<1xf32>
    %961 = vector.shape_cast %960 : vector<1xf32> to vector<1x1xf32>
    %962 = vector.broadcast %961 : vector<1x1xf32> to vector<1x10xf32>
    %963 = arith.divf %959, %962 : vector<1x10xf32>
    %c0_357 = arith.constant 0 : index
    %c0_358 = arith.constant 0 : index
    %964 = vector.load %arg17[%c0_357, %c0_358] : memref<1x10xf32, #tpu.memory_space<vmem>>, vector<1x10xf32>
    tpu.vector_store %arg17[%c0_357, %c0_358], %963 {strides = array<i32>} : memref<1x10xf32, #tpu.memory_space<vmem>>, vector<1x10xf32>,
    return
  }
}

</mosaic_0001>

<bundles_post_ra>
// kernel: tpu_custom_call.1
= control target key start
LH: loop header
LB: loop body
LE: loop exit
PB: predicated region body
PF: predicated region fallthrough
CT: control target
= control target key end

     0   :  { %s8409_s0 = inlined_call_operand.vmem [shape: f32[8,16], index: 0, kind: input, shape index: {}]   ;;  %s8410_s1 = inlined_call_operand.vmem [shape: f32[4,16,50], index: 1, kind: input, shape index: {}]   ;;  %s8411_s2 = inlined_call_operand.vmem [shape: f32[4,50,50], index: 2, kind: input, shape index: {}]   ;;  %s8412_s3 = inlined_call_operand.vmem [shape: f32[4,1,50], index: 3, kind: input, shape index: {}]   ;;  %s8413_s4 = inlined_call_operand.vmem [shape: f32[4,16,50], index: 4, kind: input, shape index: {}]   ;;  %s8414_s5 = inlined_call_operand.vmem [shape: f32[4,50,50], index: 5, kind: input, shape index: {}]   ;;  %s8415_s6 = inlined_call_operand.vmem [shape: f32[4,1,50], index: 6, kind: input, shape index: {}]   ;;  %s8416_s7 = inlined_call_operand.vmem [shape: f32[4,50,32], index: 7, kind: input, shape index: {}]   ;;  %s8417_s8 = inlined_call_operand.vmem [shape: f32[4,50,32], index: 8, kind: input, shape index: {}]   ;;  %s8418_s9 = inlined_call_operand.vmem [shape: f32[4,32,32], index: 9, kind: input, shape index: {}]   ;;  %s8419_s10 = inlined_call_operand.vmem [shape: f32[4,1,32], index: 10, kind: input, shape index: {}]   ;;  %s8420_s11 = inlined_call_operand.vmem [shape: f32[1,8], index: 11, kind: input, shape index: {}]   ;;  %s8421_s12 = inlined_call_operand.vmem [shape: f32[32,32], index: 12, kind: input, shape index: {}]   ;;  %s8422_s13 = inlined_call_operand.vmem [shape: f32[8,32], index: 13, kind: input, shape index: {}]   ;;  %s8423_s14 = inlined_call_operand.vmem [shape: f32[1,32], index: 14, kind: input, shape index: {}]   ;;  %s8424_s15 = inlined_call_operand.vmem [shape: f32[32,10], index: 15, kind: input, shape index: {}]   ;;  %s8425_s16 = inlined_call_operand.vmem [shape: f32[1,10], index: 16, kind: input, shape index: {}]   ;;  %s8426_s17 = inlined_call_operand.hbm [shape: f32[1,10], index: 17, kind: output, shape index: {}]  }
   0x1   :  { %8549 = sst [smem:[#allocation37_spill]] %s8409_s0 }
   0x2   :  { %8550 = sst [smem:[#allocation38_spill]] %s8410_s1 }
   0x3   :  { %s8551_s26 = sld [smem:[#allocation38_spill]]  ;;  %vm64_vm0 = vcmask 130048   ;;  %v173_v9 = vld [vmem:[%s8413_s4 + $0x8] sm:$0xff]  ;;  %v4763_v10 = vld [vmem:[%s8413_s4 + $0x18] sm:$0xff]  ;;  %v172_v13 = vld [vmem:[%s8413_s4] sm:$0xff]  ;;  %vm348_vm1 = vcmask 1041408  }
   0x4   :  { %s8552_s29 = sld [smem:[#allocation37_spill]]  ;;  %v4767_v11 = vld [vmem:[%s8413_s4 + $0x28] sm:$0xff]  ;;  %v4771_v12 = vld [vmem:[%s8413_s4 + $0x38] sm:$0xff]  ;;  %v4762_v14 = vld [vmem:[%s8413_s4 + $0x10] sm:$0xff]  ;;  %v8428_v52 = vmov 0.0  }
   0x5   :  { %v4766_v15 = vld [vmem:[%s8413_s4 + $0x20] sm:$0xff]  ;;  %v4770_v16 = vld [vmem:[%s8413_s4 + $0x30] sm:$0xff]  ;;  %v5827_v18 = vld [vmem:[%s8411_s2 + $0x68] sm:$0x3] }
   0x6   :  { %v5822_v17 = vld [vmem:[%s8411_s2 + $0x30] sm:$0x3]  ;;  %v5832_v19 = vld [vmem:[%s8411_s2 + $0xa0] sm:$0x3]  ;;  %v5837_v20 = vld [vmem:[%s8411_s2 + $0xd8] sm:$0x3] }
   0x7   :  { %v5844_v21 = vld [vmem:[%s8411_s2 + $0x28] sm:$0xff]  ;;  %v5849_v22 = vld [vmem:[%s8411_s2 + $0x60] sm:$0xff]  ;;  %v5858_v23 = vld [vmem:[%s8411_s2 + $0x98] sm:$0xff] }
   0x8   :  { %v5863_v24 = vld [vmem:[%s8411_s2 + $0xd0] sm:$0xff]  ;;  %v5872_v25 = vld [vmem:[%s8411_s2 + $0x20] sm:$0xff]  ;;  %v5877_v26 = vld [vmem:[%s8411_s2 + $0x58] sm:$0xff] }
   0x9   :  { %v59_v0 = vld [vmem:[%s8551_s26 + $0x8] sm:$0xff]  ;;  %v4750_v1 = vld [vmem:[%s8551_s26 + $0x18] sm:$0xff]  ;;  %v58_v4 = vld [vmem:[%s8551_s26] sm:$0xff] }
   0xa   :  { %v4754_v2 = vld [vmem:[%s8551_s26 + $0x28] sm:$0xff]  ;;  %82 = vmatpush.msra.mxu0 %v59_v0  ;;  %110 = vmatpush.msra.mxu1 %v4750_v1  ;;  %v4758_v3 = vld [vmem:[%s8551_s26 + $0x38] sm:$0xff]  ;;  %v4749_v5 = vld [vmem:[%s8551_s26 + $0x10] sm:$0xff] }
   0xb   :  { %138 = vmatpush.msra.mxu2 %v4754_v2  ;;  %166 = vmatpush.msra.mxu3 %v4758_v3  ;;  %v4753_v6 = vld [vmem:[%s8551_s26 + $0x20] sm:$0xff]  ;;  %v4757_v7 = vld [vmem:[%s8551_s26 + $0x30] sm:$0xff]  ;;  %v5889_v28 = vld [vmem:[%s8411_s2 + $0xc8] sm:$0xff] }
   0xc   :  { %v5787_v8 = vld [vmem:[%s8552_s29] sm:$0xff]  ;;  %83 = vmatpush.msra.mxu0 %v58_v4  ;;  %111 = vmatpush.msra.mxu1 %v4749_v5  ;;  %v5884_v27 = vld [vmem:[%s8411_s2 + $0x90] sm:$0xff]  ;;  %v5898_v29 = vld [vmem:[%s8411_s2 + $0x18] sm:$0xff] }
   0xd   :  { %139 = vmatpush.msra.mxu2 %v4753_v6  ;;  %167 = vmatpush.msra.mxu3 %v4757_v7  ;;  %v5905_v30 = vld [vmem:[%s8411_s2 + $0x50] sm:$0xff]  ;;  %v5910_v31 = vld [vmem:[%s8411_s2 + $0x88] sm:$0xff]  ;;  %v5919_v32 = vld [vmem:[%s8411_s2 + $0xc0] sm:$0xff] }
   0xe   :  { %4748 = vmatmul.msk.f32.vlgmr.msra.gmra.mxu0 %vm64_vm0, %v5787_v8  ;;  %4752 = vmatmul.msk.f32.vlgmr.msra.gmra.mxu1 %vm64_vm0, %v5787_v8  ;;  %v5924_v33 = vld [vmem:[%s8411_s2 + $0x10] sm:$0xff]  ;;  %v5932_v34 = vld [vmem:[%s8411_s2 + $0x48] sm:$0xff]  ;;  %v5937_v35 = vld [vmem:[%s8411_s2 + $0x80] sm:$0xff] }
   0xf   :  { %4760 = vmatmul.msk.f32.vlgmr.msra.gmra.mxu3 %vm64_vm0, %v5787_v8  ;;  %192 = vmatpush.msrb.mxu0 %v173_v9  ;;  %v5944_v36 = vld [vmem:[%s8411_s2 + $0xb8] sm:$0xff]  ;;  %v5951_v37 = vld [vmem:[%s8411_s2 + $0x8] sm:$0xff]  ;;  %v5956_v38 = vld [vmem:[%s8411_s2 + $0x40] sm:$0xff] }
  0x10   :  { %220 = vmatpush.msrb.mxu1 %v4763_v10  ;;  %248 = vmatpush.msrb.mxu2 %v4767_v11  ;;  %v5963_v39 = vld [vmem:[%s8411_s2 + $0x78] sm:$0xff]  ;;  %v5968_v40 = vld [vmem:[%s8411_s2 + $0xb0] sm:$0xff]  ;;  %v5976_v41 = vld [vmem:[%s8411_s2] sm:$0xff] }
  0x11   :  { %276 = vmatpush.msrb.mxu3 %v4771_v12  ;;  %193 = vmatpush.msrb.mxu0 %v172_v13  ;;  %v5981_v42 = vld [vmem:[%s8411_s2 + $0x38] sm:$0xff]  ;;  %v5988_v43 = vld [vmem:[%s8411_s2 + $0x70] sm:$0xff]  ;;  %v5993_v44 = vld [vmem:[%s8411_s2 + $0xa8] sm:$0xff] }
  0x12   :  { %221 = vmatpush.msrb.mxu1 %v4762_v14  ;;  %249 = vmatpush.msrb.mxu2 %v4766_v15  ;;  %v5998_v45 = vld [vmem:[%s8414_s5 + $0x30] sm:$0x3]  ;;  %v6005_v46 = vld [vmem:[%s8414_s5 + $0x68] sm:$0x3]  ;;  %v6010_v47 = vld [vmem:[%s8414_s5 + $0xa0] sm:$0x3] }
  0x13   :  { %277 = vmatpush.msrb.mxu3 %v4770_v16  ;;  %4756 = vmatmul.msk.f32.vlgmr.msra.gmra.mxu2 %vm64_vm0, %v5787_v8  ;;  %v6017_v48 = vld [vmem:[%s8414_s5 + $0xd8] sm:$0x3]  ;;  %v6022_v49 = vld [vmem:[%s8414_s5 + $0x28] sm:$0xff]  ;;  %v6029_v50 = vld [vmem:[%s8414_s5 + $0x60] sm:$0xff] }
  0x14   :  { %4816 = vmatpush.msk.msra.mxu0 %vm348_vm1, %v5822_v17  ;;  %4817 = vmatpush.msk.msra.mxu1 %vm348_vm1, %v5827_v18  ;;  %v6034_v51 = vld [vmem:[%s8414_s5 + $0x98] sm:$0xff] }
  0x15   :  { %4818 = vmatpush.msk.msra.mxu2 %vm348_vm1, %v5832_v19  ;;  %4819 = vmatpush.msk.msra.mxu3 %vm348_vm1, %v5837_v20 }
  0x16   :  { %362 = vmatpush.msra.mxu0 %v5844_v21  ;;  %386 = vmatpush.msra.mxu1 %v5849_v22 }
  0x17   :  { %410 = vmatpush.msra.mxu2 %v5858_v23  ;;  %434 = vmatpush.msra.mxu3 %v5863_v24 }
  0x18   :  { %363 = vmatpush.msra.mxu0 %v5872_v25  ;;  %387 = vmatpush.msra.mxu1 %v5877_v26 }
  0x19   :  { %411 = vmatpush.msra.mxu2 %v5884_v27  ;;  %435 = vmatpush.msra.mxu3 %v5889_v28 }
  0x1a   :  { %4761 = vmatmul.msk.f32.vlgmr.msrb.gmra.mxu0 %vm64_vm0, %v5787_v8  ;;  %4765 = vmatmul.msk.f32.vlgmr.msrb.gmra.mxu1 %vm64_vm0, %v5787_v8 }
  0x1b   :  { %4773 = vmatmul.msk.f32.vlgmr.msrb.gmra.mxu3 %vm64_vm0, %v5787_v8  ;;  %364 = vmatpush.msra.mxu0 %v5898_v29 }
  0x1c   :  { %388 = vmatpush.msra.mxu1 %v5905_v30  ;;  %412 = vmatpush.msra.mxu2 %v5910_v31 }
  0x1d   :  { %436 = vmatpush.msra.mxu3 %v5919_v32  ;;  %365 = vmatpush.msra.mxu0 %v5924_v33 }
  0x1e   :  { %389 = vmatpush.msra.mxu1 %v5932_v34  ;;  %413 = vmatpush.msra.mxu2 %v5937_v35 }
  0x1f   :  { %437 = vmatpush.msra.mxu3 %v5944_v36  ;;  %4769 = vmatmul.msk.f32.vlgmr.msrb.gmra.mxu2 %vm64_vm0, %v5787_v8 }
  0x20   :  { %366 = vmatpush.msra.mxu0 %v5951_v37  ;;  %390 = vmatpush.msra.mxu1 %v5956_v38 }
  0x21   :  { %414 = vmatpush.msra.mxu2 %v5963_v39  ;;  %438 = vmatpush.msra.mxu3 %v5968_v40 }
  0x22   :  { %367 = vmatpush.msra.mxu0 %v5976_v41  ;;  %391 = vmatpush.msra.mxu1 %v5981_v42 }
  0x23   :  { %415 = vmatpush.msra.mxu2 %v5988_v43  ;;  %439 = vmatpush.msra.mxu3 %v5993_v44 }
  0x24   :  { %368 = vmatmul.f32.vlgmr.msra.gmra.mxu0 %v8428_v52  ;;  %392 = vmatmul.f32.vlgmr.msra.gmra.mxu1 %v8428_v52 }
  0x25   :  { %440 = vmatmul.f32.vlgmr.msra.gmra.mxu3 %v8428_v52  ;;  %4820 = vmatpush.msk.msrb.mxu0 %vm348_vm1, %v5998_v45 }
  0x26   :  { %22 = vsyncpa [#allocation5], 0  ;;  %4821 = vmatpush.msk.msrb.mxu1 %vm348_vm1, %v6005_v46  ;;  %4822 = vmatpush.msk.msrb.mxu2 %vm348_vm1, %v6010_v47  ;;  %v6048_v53 = vld [vmem:[%s8414_s5 + $0xd0] sm:$0xff]  ;;  %v6056_v54 = vld [vmem:[%s8414_s5 + $0x20] sm:$0xff]  ;;  %vm344_vm14 = vcmask 408576   ;;  %vm8517_vm15 = vcmask 401408  }
  0x27   :  { %4823 = vmatpush.msk.msrb.mxu3 %vm348_vm1, %v6017_v48  ;;  %458 = vmatpush.msrb.mxu0 %v6022_v49  ;;  %v6061_v55 = vld [vmem:[%s8414_s5 + $0x58] sm:$0xff]  ;;  %v6068_v56 = vld [vmem:[%s8414_s5 + $0x90] sm:$0xff]  ;;  %v6073_v57 = vld [vmem:[%s8414_s5 + $0xc8] sm:$0xff] }
  0x28   :  { %8553 = vst [vmem:[#allocation7_spill] sm:$0xff] %v6061_v55  ;;  %485 = vmatpush.msrb.mxu1 %v6029_v50  ;;  %512 = vmatpush.msrb.mxu2 %v6034_v51  ;;  %v6080_v58 = vld [vmem:[%s8414_s5 + $0x18] sm:$0xff]  ;;  %v6085_v59 = vld [vmem:[%s8414_s5 + $0x50] sm:$0xff]  ;;  %v6092_v60 = vld [vmem:[%s8414_s5 + $0x88] sm:$0xff] }
  0x29   :  { %8554 = vst [vmem:[#allocation8_spill] sm:$0xff] %v6068_v56  ;;  %539 = vmatpush.msrb.mxu3 %v6048_v53  ;;  %416 = vmatmul.f32.vlgmr.msra.gmra.mxu2 %v8428_v52  ;;  %v6097_v61 = vld [vmem:[%s8414_s5 + $0xc0] sm:$0xff]  ;;  %v6104_v62 = vld [vmem:[%s8414_s5 + $0x10] sm:$0xff]  ;;  %v6109_v63 = vld [vmem:[%s8414_s5 + $0x48] sm:$0xff] }
  0x2a   :  { %8555 = vst [vmem:[#allocation9_spill] sm:$0xff] %v6073_v57  ;;  %459 = vmatpush.msrb.mxu0 %v6056_v54  ;;  %486 = vmatpush.msrb.mxu1 %v6061_v55  ;;  %v6116_v0 = vld [vmem:[%s8414_s5 + $0x80] sm:$0xff]  ;;  %v6121_v1 = vld [vmem:[%s8414_s5 + $0xb8] sm:$0xff]  ;;  %v6128_v2 = vld [vmem:[%s8414_s5 + $0x8] sm:$0xff] }
  0x2b   :  { %8556 = vst [vmem:[#allocation10_spill] sm:$0xff] %v6080_v58  ;;  %513 = vmatpush.msrb.mxu2 %v6068_v56  ;;  %540 = vmatpush.msrb.mxu3 %v6073_v57  ;;  %v6133_v3 = vld [vmem:[%s8414_s5 + $0x40] sm:$0xff]  ;;  %v6140_v4 = vld [vmem:[%s8414_s5 + $0x78] sm:$0xff]  ;;  %v6145_v5 = vld [vmem:[%s8414_s5 + $0xb0] sm:$0xff] }
  0x2c   :  { %8557 = vst [vmem:[#allocation11_spill] sm:$0xff] %v6085_v59  ;;  %460 = vmatpush.msrb.mxu0 %v6080_v58  ;;  %487 = vmatpush.msrb.mxu1 %v6085_v59  ;;  %v6152_v6 = vld [vmem:[%s8414_s5] sm:$0xff]  ;;  %v6157_v7 = vld [vmem:[%s8414_s5 + $0x38] sm:$0xff]  ;;  %v6164_v8 = vld [vmem:[%s8414_s5 + $0x70] sm:$0xff] }
  0x2d   :  { %8558 = vst [vmem:[#allocation12_spill] sm:$0xff] %v6092_v60  ;;  %514 = vmatpush.msrb.mxu2 %v6092_v60  ;;  %541 = vmatpush.msrb.mxu3 %v6097_v61  ;;  %v6169_v9 = vld [vmem:[%s8414_s5 + $0xa8] sm:$0xff]  ;;  %v5114_v15 = vld [vmem:[%s8412_s3] ss:$0 sm:$0xff]  ;;  %v5115_v16 = vld [vmem:[%s8412_s3 + $0x1] ss:$0 sm:$0xff] }
  0x2e   :  { %8559 = vst [vmem:[#allocation13_spill] sm:$0xff] %v6097_v61  ;;  %461 = vmatpush.msrb.mxu0 %v6104_v62  ;;  %488 = vmatpush.msrb.mxu1 %v6109_v63 }
  0x2f   :  { %8560 = vst [vmem:[#allocation14_spill] sm:$0xff] %v6104_v62  ;;  %515 = vmatpush.msrb.mxu2 %v6116_v0  ;;  %542 = vmatpush.msrb.mxu3 %v6121_v1 }
  0x30   :  { %8561 = vst [vmem:[#allocation15_spill] sm:$0xff] %v6109_v63  ;;  %462 = vmatpush.msrb.mxu0 %v6128_v2  ;;  %489 = vmatpush.msrb.mxu1 %v6133_v3 }
  0x31   :  { %8562 = vst [vmem:[#allocation16_spill] sm:$0xff] %v6116_v0  ;;  %516 = vmatpush.msrb.mxu2 %v6140_v4  ;;  %543 = vmatpush.msrb.mxu3 %v6145_v5 }
  0x32   :  { %8563 = vst [vmem:[#allocation17_spill] sm:$0xff] %v6121_v1  ;;  %463 = vmatpush.msrb.mxu0 %v6152_v6  ;;  %490 = vmatpush.msrb.mxu1 %v6157_v7 }
  0x33   :  { %8564 = vst [vmem:[#allocation18_spill] sm:$0xff] %v6128_v2  ;;  %517 = vmatpush.msrb.mxu2 %v6164_v8  ;;  %544 = vmatpush.msrb.mxu3 %v6169_v9 }
  0x34   :  { %8565 = vst [vmem:[#allocation19_spill] sm:$0xff] %v6133_v3  ;;  %464 = vmatmul.f32.vlgmr.msrb.gmra.mxu0 %v8428_v52  ;;  %491 = vmatmul.f32.vlgmr.msrb.gmra.mxu1 %v8428_v52 }
  0x35   :  { %8566 = vst [vmem:[#allocation20_spill] sm:$0xff] %v6140_v4  ;;  %518 = vmatmul.f32.vlgmr.msrb.gmra.mxu2 %v8428_v52  ;;  %545 = vmatmul.f32.vlgmr.msrb.gmra.mxu3 %v8428_v52 }
  0x36   :  { %8567 = vst [vmem:[#allocation21_spill] sm:$0xff] %v6145_v5  ;;  %4830 = vmatpush.msk.msra.mxu0 %vm348_vm1, %v5822_v17  ;;  %4832 = vmatpush.msk.msra.mxu1 %vm348_vm1, %v5827_v18 }
  0x37   :  { %8568 = vst [vmem:[#allocation22_spill] sm:$0xff] %v6152_v6  ;;  %4834 = vmatpush.msk.msra.mxu2 %vm348_vm1, %v5832_v19  ;;  %4836 = vmatpush.msk.msra.mxu3 %vm348_vm1, %v5837_v20 }
  0x38   :  { %8569 = vst [vmem:[#allocation23_spill] sm:$0xff] %v6157_v7  ;;  %696 = vmatpush.msra.mxu0 %v5844_v21  ;;  %720 = vmatpush.msra.mxu1 %v5849_v22 }
  0x39   :  { %8570 = vst [vmem:[#allocation24_spill] sm:$0xff] %v6164_v8  ;;  %744 = vmatpush.msra.mxu2 %v5858_v23  ;;  %768 = vmatpush.msra.mxu3 %v5863_v24 }
  0x3a   :  { %8571 = vst [vmem:[#allocation25_spill] sm:$0xff] %v6169_v9  ;;  %697 = vmatpush.msra.mxu0 %v5872_v25  ;;  %721 = vmatpush.msra.mxu1 %v5877_v26 }
  0x3b   :  { %745 = vmatpush.msra.mxu2 %v5884_v27  ;;  %769 = vmatpush.msra.mxu3 %v5889_v28 }
  0x3c   :  { %698 = vmatpush.msra.mxu0 %v5898_v29  ;;  %722 = vmatpush.msra.mxu1 %v5905_v30 }
  0x3d   :  { %746 = vmatpush.msra.mxu2 %v5910_v31  ;;  %770 = vmatpush.msra.mxu3 %v5919_v32 }
  0x3e   :  { %699 = vmatpush.msra.mxu0 %v5924_v33  ;;  %723 = vmatpush.msra.mxu1 %v5932_v34 }
  0x3f   :  { %747 = vmatpush.msra.mxu2 %v5937_v35  ;;  %771 = vmatpush.msra.mxu3 %v5944_v36 }
  0x40   :  { %700 = vmatpush.msra.mxu0 %v5951_v37  ;;  %724 = vmatpush.msra.mxu1 %v5956_v38 }
  0x41   :  { %748 = vmatpush.msra.mxu2 %v5963_v39  ;;  %772 = vmatpush.msra.mxu3 %v5968_v40 }
  0x42   :  { %701 = vmatpush.msra.mxu0 %v5976_v41  ;;  %725 = vmatpush.msra.mxu1 %v5981_v42 }
  0x43   :  { %749 = vmatpush.msra.mxu2 %v5988_v43  ;;  %773 = vmatpush.msra.mxu3 %v5993_v44 }
  0x44   :  { %4838 = vmatpush.msk.msrb.mxu0 %vm348_vm1, %v5998_v45  ;;  %4840 = vmatpush.msk.msrb.mxu1 %vm348_vm1, %v6005_v46 }
  0x45   :  { %4842 = vmatpush.msk.msrb.mxu2 %vm348_vm1, %v6010_v47  ;;  %4844 = vmatpush.msk.msrb.mxu3 %vm348_vm1, %v6017_v48 }
  0x46   :  { %796 = vmatpush.msrb.mxu0 %v6022_v49  ;;  %820 = vmatpush.msrb.mxu1 %v6029_v50 }
  0x47   :  { %844 = vmatpush.msrb.mxu2 %v6034_v51  ;;  %868 = vmatpush.msrb.mxu3 %v6048_v53 }
  0x48   :  { %797 = vmatpush.msrb.mxu0 %v6056_v54  ;;  %821 = vmatpush.msrb.mxu1 %v6061_v55 }
  0x49   :  { %845 = vmatpush.msrb.mxu2 %v6068_v56  ;;  %869 = vmatpush.msrb.mxu3 %v6073_v57 }
  0x4a   :  { %798 = vmatpush.msrb.mxu0 %v6080_v58  ;;  %822 = vmatpush.msrb.mxu1 %v6085_v59 }
  0x4b   :  { %846 = vmatpush.msrb.mxu2 %v6092_v60  ;;  %870 = vmatpush.msrb.mxu3 %v6097_v61  ;;  %v5120_v61 = vld [vmem:[%s8415_s6 + $0x3] ss:$0 sm:$0xff] }
  0x4c   :  { %799 = vmatpush.msrb.mxu0 %v6104_v62  ;;  %823 = vmatpush.msrb.mxu1 %v6109_v63 }
  0x4d   :  { %847 = vmatpush.msrb.mxu2 %v6116_v0  ;;  %871 = vmatpush.msrb.mxu3 %v6121_v1 }
  0x4e   :  { %800 = vmatpush.msrb.mxu0 %v6128_v2  ;;  %824 = vmatpush.msrb.mxu1 %v6133_v3  ;;  %v5116_v2 = vld [vmem:[%s8412_s3 + $0x3] ss:$0 sm:$0xff] }
  0x4f   :  { %848 = vmatpush.msrb.mxu2 %v6140_v4  ;;  %872 = vmatpush.msrb.mxu3 %v6145_v5 }
  0x50   :  { %801 = vmatpush.msrb.mxu0 %v6152_v6  ;;  %825 = vmatpush.msrb.mxu1 %v6157_v7 }
  0x51   :  { %849 = vmatpush.msrb.mxu2 %v6164_v8  ;;  %873 = vmatpush.msrb.mxu3 %v6169_v9 }
  0x8b   :  { %v85_v10 = vpop.f32.mrf.mxu0  ;;  %v113_v11 = vpop.f32.mrf.mxu1 }
  0x8c   :  { %v6251_v7 = vadd.f32 %v5114_v15, %v85_v10  ;;  %v6253_v8 = vadd.f32 %v5115_v16, %v113_v11 }
  0x8e   :  { %8572 = vst [vmem:[#allocation26_spill] sm:$0xff] %v6251_v7 }
  0x8f   :  { %8573 = vst [vmem:[#allocation27_spill] sm:$0xff] %v6253_v8 }
  0x92   :  { %v169_v12 = vpop.f32.mrf.mxu3 }
  0x93   :  { %v6262_v62 = vadd.f32 %v5116_v2, %v169_v12 }
  0x95   :  { %8574 = vst [vmem:[#allocation28_spill] sm:$0xff] %v6262_v62 }
  0x96   :  { %v141_v52 = vpop.f32.mrf.mxu2 }
  0x97   :  { %v195_v13 = vpop.f32.mrf.mxu0  ;;  %v223_v14 = vpop.f32.mrf.mxu1 }
  0x9e   :  { %v279_v6 = vpop.f32.mrf.mxu3 }
  0xa1   :  { %v369_v9 = vpop.f32.mrf.mxu0  ;;  %v393_v5 = vpop.f32.mrf.mxu1 }
  0xa2   :  { %v372_v4 = vadd.f32 %v369_v9, %v6251_v7  ;;  %v396_v3 = vadd.f32 %v393_v5, %v6253_v8  ;;  %v6260_v63 = vpop.f32.mrf.mxu2  ;;  %v5119_v5 = vld [vmem:[%s8412_s3 + $0x2] ss:$0 sm:$0xff] }
  0xa4   :  { %v4825_v1 = vmul.f32 -1.442695, %v372_v4  ;;  %v4824_v0 = vmul.f32 -1.442695, %v396_v3  ;;  %v6274_v3 = vadd.f32 %v5119_v5, %v141_v52 }
  0xa6   :  { %5126 = vpow2.f32 %v4825_v1  ;;  %v5117_v1 = vld [vmem:[%s8415_s6] ss:$0 sm:$0xff]  ;;  %8575 = vst [vmem:[#allocation29_spill] sm:$0xff] %v6274_v3 }
  0xa7   :  { %5128 = vpow2.f32 %v4824_v0  ;;  %v5118_v0 = vld [vmem:[%s8415_s6 + $0x1] ss:$0 sm:$0xff] }
  0xa8   :  { %v441_v10 = vpop.f32.mrf.mxu3 }
  0xa9   :  { %v444_v11 = vadd.f32 %v441_v10, %v6262_v62 }
  0xab   :  { %v4826_v15 = vmul.f32 -1.442695, %v444_v11  ;;  %v6276_v11 = vadd.f32 %v5117_v1, %v195_v13 }
  0xac   :  { %v5127_v16 = vpop.eup %5126  ;;  %v417_v4 = vpop.f32.mrf.mxu2 }
  0xad   :  { %v5129_v9 = vpop.eup %5128  ;;  %v576_v8 = vadd.f32 1.0, %v5127_v16  ;;  %5130 = vpow2.f32 %v4826_v15  ;;  %8576 = vst [vmem:[#allocation30_spill] sm:$0xff] %v6276_v11  ;;  %v6278_v16 = vadd.f32 %v5118_v0, %v223_v14  ;;  %v420_v52 = vadd.f32 %v417_v4, %v6274_v3 }
  0xae   :  { %v556_v2 = vadd.f32 1.0, %v5129_v9  ;;  %v6289_v14 = vadd.f32 %v5120_v61, %v279_v6 }
  0xaf   :  { %5132 = vrcp.f32 %v576_v8  ;;  %8577 = vst [vmem:[#allocation31_spill] sm:$0xff] %v6278_v16  ;;  %v588_v57 = vand.u32 2147483648, %v576_v8  ;;  %vm582_vm5 = vweird.f32 %v576_v8 }
  0xb0   :  { %5134 = vrcp.f32 %v556_v2  ;;  %8578 = vst [vmem:[#allocation32_spill] sm:$0xff] %v6289_v14  ;;  %v568_v3 = vand.u32 2147483648, %v556_v2  ;;  %vm562_vm4 = vweird.f32 %v556_v2 }
  0xb1   :  { %v465_v12 = vpop.f32.mrf.mxu0  ;;  %v492_v10 = vpop.f32.mrf.mxu1 }
  0xb2   :  { %v469_v15 = vrot.slane %v465_v12, 1  ;;  %v496_v62 = vrot.slane %v492_v10, 1  ;;  %v586_v12 = vand.u32 2147483647, %v576_v8 }
  0xb3   :  { %v5131_v7 = vpop.eup %5130 }
  0xb4   :  { %v6283_v60 = vadd.f32 1.0, %v5131_v7  ;;  %v471_v5 = vadd.f32 %v469_v15, %v6276_v11  ;;  %v498_v9 = vadd.f32 %v496_v62, %v6278_v16  ;;  %v566_v62 = vand.u32 2147483647, %v556_v2 }
  0xb5   :  { %v5133_v59 = vpop.eup %5132  ;;  %vm587_vm9 = vcmp.eq.f32.partialorder %v586_v12, 8.507059e+37 }
  0xb6   :  { %v5135_v13 = vpop.eup %5134  ;;  %v578_v1 = vmul.f32 %v5133_v59, %v576_v8  ;;  %5136 = vrcp.f32 %v6283_v60  ;;  %v4828_v10 = vmul.f32 -1.442695, %v471_v5  ;;  %v4827_v7 = vmul.f32 -1.442695, %v498_v9  ;;  %v5121_v8 = vld [vmem:[%s8415_s6 + $0x2] ss:$0 sm:$0xff] }
  0xb7   :  { %v558_v0 = vmul.f32 %v5135_v13, %v556_v2  ;;  %5138 = vtanh.f32 %v420_v52  ;;  %vm583_vm2 = vweird.f32 %v5133_v59  ;;  %vm563_vm3 = vweird.f32 %v5135_v13 }
  0xb8   :  { %v579_v58 = vsub.f32 1.0, %v578_v1  ;;  %v546_v56 = vpop.f32.mrf.mxu3  ;;  %5140 = vpow2.f32 %v4828_v10  ;;  %vm584_vm6 = vmor %vm582_vm5, %vm583_vm2  ;;  %v589_v1 = vor.u32 1.1754944e-38, %v588_v57  ;;  %vm567_vm8 = vcmp.eq.f32.partialorder %v566_v62, 8.507059e+37 }
  0xb9   :  { %v559_v4 = vsub.f32 1.0, %v558_v0  ;;  %v550_v15 = vrot.slane %v546_v56, 1  ;;  %5142 = vpow2.f32 %v4827_v7  ;;  %v569_v56 = vor.u32 1.1754944e-38, %v568_v3  ;;  %vm564_vm7 = vmor %vm562_vm4, %vm563_vm3 }
  0xba   :  { %v580_v16 = vmul.f32 %v5133_v59, %v579_v58  ;;  %vm604_vm11 = vweird.f32 %v6283_v60 }
  0xbb   :  { %v560_v11 = vmul.f32 %v5135_v13, %v559_v4  ;;  %v552_v61 = vadd.f32 %v550_v15, %v6289_v14 }
  0xbc   :  { %v5137_v6 = vpop.eup %5136  ;;  %v581_v5 = vadd.f32 %v5133_v59, %v580_v16 }
  0xbd   :  { %v600_v52 = vmul.f32 %v5137_v6, %v6283_v60  ;;  %v561_v9 = vadd.f32 %v5135_v13, %v560_v11  ;;  %v4829_v0 = vmul.f32 -1.442695, %v552_v61  ;;  %v5139_v10 = vpop.eup %5138  ;;  %vm605_vm10 = vweird.f32 %v5137_v6 }
  0xbe   :  { %v585_v58 = vsel %vm584_vm6, %v5133_v59, %v581_v5  ;;  %v5141_v7 = vpop.eup %5140  ;;  %v519_v59 = vpop.f32.mrf.mxu2  ;;  %vm606_vm12 = vmor %vm604_vm11, %vm605_vm10 }
  0xbf   :  { %v601_v4 = vsub.f32 1.0, %v600_v52  ;;  %v565_v55 = vsel %vm564_vm7, %v5135_v13, %v561_v9  ;;  %v590_v15 = vsel %vm587_vm9, %v589_v1, %v585_v58  ;;  %5144 = vpow2.f32 %v4829_v0  ;;  %v5143_v2 = vpop.eup %5142 }
  0xc0   :  { %v570_v11 = vsel %vm567_vm8, %v569_v56, %v565_v55  ;;  %v593_v16 = vmul.f32 %v5139_v10, %v590_v15  ;;  %v6296_v57 = vadd.f32 1.0, %v5141_v7  ;;  %v6298_v14 = vadd.f32 1.0, %v5143_v2 }
  0xc1   :  { %v602_v61 = vmul.f32 %v5137_v6, %v601_v4  ;;  %v572_v3 = vmul.f32 0.0, %v570_v11  ;;  %v6305_v13 = vadd.f32 %v5121_v8, %v6260_v63  ;;  %v523_v62 = vrot.slane %v519_v59, 1 }
  0xc2   :  { %5146 = vrcp.f32 %v6296_v57  ;;  %v610_v52 = vand.u32 2147483648, %v6283_v60  ;;  %v608_v1 = vand.u32 2147483647, %v6283_v60  ;;  %v651_v11 = vand.u32 2147483648, %v6296_v57 }
  0xc3   :  { %v6301_v12 = vadd.f32 %v593_v16, %v572_v3  ;;  %5148 = vrcp.f32 %v6298_v14  ;;  %v603_v5 = vadd.f32 %v5137_v6, %v602_v61  ;;  %v525_v10 = vadd.f32 %v523_v62, %v6305_v13 }
  0xc4   :  { %v611_v7 = vor.u32 1.1754944e-38, %v610_v52  ;;  %vm609_vm13 = vcmp.eq.f32.partialorder %v608_v1, 8.507059e+37  ;;  %v631_v61 = vand.u32 2147483648, %v6298_v14  ;;  %v649_v3 = vand.u32 2147483647, %v6296_v57 }
  0xc5   :  { %v5145_v55 = vpop.eup %5144  ;;  %5150 = vtanh.f32 %v6301_v12  ;;  %v607_v63 = vsel %vm606_vm12, %v5137_v6, %v603_v5  ;;  %v629_v5 = vand.u32 2147483647, %v6298_v14  ;;  %vm645_vm3 = vweird.f32 %v6296_v57 }
  0xc6   :  { %v6310_v9 = vadd.f32 1.0, %v5145_v55  ;;  %v612_v8 = vsel %vm609_vm13, %v611_v7, %v607_v63  ;;  %vm625_vm4 = vweird.f32 %v6298_v14  ;;  %vm650_vm7 = vcmp.eq.f32.partialorder %v649_v3, 8.507059e+37 }
  0xc7   :  { %vm630_vm8 = vcmp.eq.f32.partialorder %v629_v5, 8.507059e+37  ;;  %vm8518_vm13 = vcmask 408583  }
  0xc8   :  { %v5147_v0 = vpop.eup %5146  ;;  %5152 = vrcp.f32 %v6310_v9  ;;  %vm667_vm10 = vweird.f32 %v6310_v9 }
  0xc9   :  { %v5149_v56 = vpop.eup %5148  ;;  %v641_v58 = vmul.f32 %v5147_v0, %v6296_v57  ;;  %5154 = vtanh.f32 %v525_v10  ;;  %vm646_vm0 = vweird.f32 %v5147_v0  ;;  %v652_v10 = vor.u32 1.1754944e-38, %v651_v11 }
  0xca   :  { %v621_v4 = vmul.f32 %v5149_v56, %v6298_v14  ;;  %vm626_vm2 = vweird.f32 %v5149_v56  ;;  %vm647_vm5 = vmor %vm645_vm3, %vm646_vm0  ;;  %v632_v57 = vor.u32 1.1754944e-38, %v631_v61 }
  0xcb   :  { %v5151_v15 = vpop.eup %5150  ;;  %v642_v2 = vsub.f32 1.0, %v641_v58  ;;  %vm627_vm6 = vmor %vm625_vm4, %vm626_vm2 }
  0xcc   :  { %v622_v60 = vsub.f32 1.0, %v621_v4  ;;  %v615_v16 = vmul.f32 %v5151_v15, %v612_v8 }
  0xcd   :  { %v643_v6 = vmul.f32 %v5147_v0, %v642_v2 }
  0xce   :  { %v6320_v59 = vpop.eup %5152  ;;  %v623_v62 = vmul.f32 %v5149_v56, %v622_v60  ;;  %4831 = vmatmul.msk.f32.vlgmr.msra.gmra.mxu0 %vm344_vm14, %v615_v16  ;;  %4833 = vmatmul.msk.f32.vlgmr.msra.gmra.mxu1 %vm344_vm14, %v615_v16  ;;  %680 = vst.msk [vmem:[#allocation2] sm:$0x1] %vm8517_vm15, %v615_v16 }
  0xcf   :  { %v644_v55 = vadd.f32 %v5147_v0, %v643_v6  ;;  %v663_v52 = vmul.f32 %v6320_v59, %v6310_v9  ;;  %4835 = vmatmul.msk.f32.vlgmr.msra.gmra.mxu2 %vm344_vm14, %v615_v16  ;;  %4837 = vmatmul.msk.f32.vlgmr.msra.gmra.mxu3 %vm344_vm14, %v615_v16  ;;  %v5155_v14 = vpop.eup %5154  ;;  %vm668_vm9 = vweird.f32 %v6320_v59  ;;  %v8600_v16 = vld [vmem:[#allocation28_spill] sm:$0xff] }
  0xd0   :  { %v624_v1 = vadd.f32 %v5149_v56, %v623_v62  ;;  %4852 = vmatpush.msk.msra.mxu0 %vm348_vm1, %v5822_v17  ;;  %4854 = vmatpush.msk.msra.mxu1 %vm348_vm1, %v5827_v18  ;;  %vm669_vm11 = vmor %vm667_vm10, %vm668_vm9 }
  0xd1   :  { %v648_v63 = vsel %vm647_vm5, %v5147_v0, %v644_v55  ;;  %v664_v58 = vsub.f32 1.0, %v663_v52  ;;  %4856 = vmatpush.msk.msra.mxu2 %vm348_vm1, %v5832_v19  ;;  %4858 = vmatpush.msk.msra.mxu3 %vm348_vm1, %v5837_v20 }
  0xd2   :  { %v628_v7 = vsel %vm627_vm6, %v5149_v56, %v624_v1  ;;  %v653_v4 = vsel %vm650_vm7, %v652_v10, %v648_v63  ;;  %1032 = vmatpush.msra.mxu0 %v5844_v21  ;;  %1056 = vmatpush.msra.mxu1 %v5849_v22  ;;  %v673_v22 = vand.u32 2147483648, %v6310_v9  ;;  %v8599_v56 = vld [vmem:[#allocation27_spill] sm:$0xff]  ;;  %v8601_v10 = vld [vmem:[#allocation29_spill] sm:$0xff] }
  0xd3   :  { %v633_v17 = vsel %vm630_vm8, %v632_v57, %v628_v7  ;;  %v656_v18 = vmul.f32 %v5155_v14, %v653_v4  ;;  %v665_v0 = vmul.f32 %v6320_v59, %v664_v58  ;;  %1080 = vmatpush.msra.mxu2 %v5858_v23  ;;  %1104 = vmatpush.msra.mxu3 %v5863_v24  ;;  %v671_v23 = vand.u32 2147483647, %v6310_v9 }
  0xd4   :  { %v635_v19 = vmul.f32 0.0, %v633_v17  ;;  %1033 = vmatpush.msra.mxu0 %v5872_v25  ;;  %1057 = vmatpush.msra.mxu1 %v5877_v26  ;;  %v674_v25 = vor.u32 1.1754944e-38, %v673_v22 }
  0xd5   :  { %1081 = vmatpush.msra.mxu2 %v5884_v27  ;;  %1105 = vmatpush.msra.mxu3 %v5889_v28  ;;  %v666_v21 = vadd.f32 %v6320_v59, %v665_v0  ;;  %vm672_vm12 = vcmp.eq.f32.partialorder %v671_v23, 8.507059e+37  ;;  %v902_v23 = vrot.slane %v6301_v12, 7 }
  0xd6   :  { %v6351_v20 = vadd.f32 %v656_v18, %v635_v19  ;;  %1034 = vmatpush.msra.mxu0 %v5898_v29  ;;  %1058 = vmatpush.msra.mxu1 %v5905_v30  ;;  %v8579_v30 = vld [vmem:[#allocation7_spill] sm:$0xff] }
  0xd7   :  { %1082 = vmatpush.msra.mxu2 %v5910_v31  ;;  %1106 = vmatpush.msra.mxu3 %v5919_v32  ;;  %v670_v24 = vsel %vm669_vm11, %v6320_v59, %v666_v21  ;;  %v8580_v31 = vld [vmem:[#allocation8_spill] sm:$0xff]  ;;  %v8581_v32 = vld [vmem:[#allocation9_spill] sm:$0xff]  ;;  %v8602_v21 = vld [vmem:[#allocation30_spill] sm:$0xff] }
  0xd8   :  { %5156 = vtanh.f32 %v6351_v20  ;;  %1035 = vmatpush.msra.mxu0 %v5924_v33  ;;  %1059 = vmatpush.msra.mxu1 %v5932_v34  ;;  %v675_v27 = vsel %vm672_vm12, %v674_v25, %v670_v24  ;;  %v8582_v33 = vld [vmem:[#allocation10_spill] sm:$0xff]  ;;  %v8583_v34 = vld [vmem:[#allocation11_spill] sm:$0xff] }
  0xd9   :  { %1083 = vmatpush.msra.mxu2 %v5937_v35  ;;  %1107 = vmatpush.msra.mxu3 %v5944_v36  ;;  %v8584_v35 = vld [vmem:[#allocation12_spill] sm:$0xff]  ;;  %v8585_v36 = vld [vmem:[#allocation13_spill] sm:$0xff]  ;;  %v8603_v25 = vld [vmem:[#allocation31_spill] sm:$0xff] }
  0xda   :  { %1036 = vmatpush.msra.mxu0 %v5951_v37  ;;  %1060 = vmatpush.msra.mxu1 %v5956_v38  ;;  %v8586_v37 = vld [vmem:[#allocation14_spill] sm:$0xff]  ;;  %v8587_v38 = vld [vmem:[#allocation15_spill] sm:$0xff] }
  0xdb   :  { %1084 = vmatpush.msra.mxu2 %v5963_v39  ;;  %1108 = vmatpush.msra.mxu3 %v5968_v40  ;;  %v8588_v39 = vld [vmem:[#allocation16_spill] sm:$0xff]  ;;  %v8589_v40 = vld [vmem:[#allocation17_spill] sm:$0xff] }
  0xdc   :  { %1037 = vmatpush.msra.mxu0 %v5976_v41  ;;  %1061 = vmatpush.msra.mxu1 %v5981_v42  ;;  %v8590_v41 = vld [vmem:[#allocation18_spill] sm:$0xff]  ;;  %v8591_v42 = vld [vmem:[#allocation19_spill] sm:$0xff] }
  0xdd   :  { %1085 = vmatpush.msra.mxu2 %v5988_v43  ;;  %1109 = vmatpush.msra.mxu3 %v5993_v44  ;;  %v8592_v43 = vld [vmem:[#allocation20_spill] sm:$0xff]  ;;  %v8593_v44 = vld [vmem:[#allocation21_spill] sm:$0xff] }
  0xde   :  { %v5157_v26 = vpop.eup %5156 }
  0xdf   :  { %v678_v28 = vmul.f32 %v5157_v26, %v675_v27 }
  0xe1   :  { %682 = vst.msk [vmem:[#allocation3] sm:$0x80] %vm8518_vm13, %v678_v28  ;;  %v783_v29 = vrot.slane %v678_v28, 7 }
  0xe3   :  { %4839 = vmatmul.msk.f32.vlgmr.msrb.gmra.mxu0 %vm344_vm14, %v783_v29  ;;  %4841 = vmatmul.msk.f32.vlgmr.msrb.gmra.mxu1 %vm344_vm14, %v783_v29 }
  0xe4   :  { %4843 = vmatmul.msk.f32.vlgmr.msrb.gmra.mxu2 %vm344_vm14, %v783_v29  ;;  %4845 = vmatmul.msk.f32.vlgmr.msrb.gmra.mxu3 %vm344_vm14, %v783_v29 }
  0xe5   :  { %4860 = vmatpush.msk.msrb.mxu0 %vm348_vm1, %v5998_v45  ;;  %4862 = vmatpush.msk.msrb.mxu1 %vm348_vm1, %v6005_v46  ;;  %v8594_v45 = vld [vmem:[#allocation22_spill] sm:$0xff]  ;;  %v8595_v46 = vld [vmem:[#allocation23_spill] sm:$0xff] }
  0xe6   :  { %4864 = vmatpush.msk.msrb.mxu2 %vm348_vm1, %v6010_v47  ;;  %4866 = vmatpush.msk.msrb.mxu3 %vm348_vm1, %v6017_v48  ;;  %v8596_v47 = vld [vmem:[#allocation24_spill] sm:$0xff]  ;;  %v8597_v48 = vld [vmem:[#allocation25_spill] sm:$0xff] }
  0xe7   :  { %1132 = vmatpush.msrb.mxu0 %v6022_v49  ;;  %1156 = vmatpush.msrb.mxu1 %v6029_v50 }
  0xe8   :  { %1180 = vmatpush.msrb.mxu2 %v6034_v51  ;;  %1204 = vmatpush.msrb.mxu3 %v6048_v53 }
  0xe9   :  { %1133 = vmatpush.msrb.mxu0 %v6056_v54  ;;  %1157 = vmatpush.msrb.mxu1 %v8579_v30  ;;  %v8598_v54 = vld [vmem:[#allocation26_spill] sm:$0xff] }
  0xea   :  { %1181 = vmatpush.msrb.mxu2 %v8580_v31  ;;  %1205 = vmatpush.msrb.mxu3 %v8581_v32 }
  0xeb   :  { %1134 = vmatpush.msrb.mxu0 %v8582_v33  ;;  %1158 = vmatpush.msrb.mxu1 %v8583_v34 }
  0xec   :  { %1182 = vmatpush.msrb.mxu2 %v8584_v35  ;;  %1206 = vmatpush.msrb.mxu3 %v8585_v36 }
  0xed   :  { %1135 = vmatpush.msrb.mxu0 %v8586_v37  ;;  %1159 = vmatpush.msrb.mxu1 %v8587_v38 }
  0xee   :  { %1183 = vmatpush.msrb.mxu2 %v8588_v39  ;;  %1207 = vmatpush.msrb.mxu3 %v8589_v40 }
  0xef   :  { %1136 = vmatpush.msrb.mxu0 %v8590_v41  ;;  %1160 = vmatpush.msrb.mxu1 %v8591_v42 }
  0xf0   :  { %1184 = vmatpush.msrb.mxu2 %v8592_v43  ;;  %1208 = vmatpush.msrb.mxu3 %v8593_v44 }
  0xf1   :  { %1137 = vmatpush.msrb.mxu0 %v8594_v45  ;;  %1161 = vmatpush.msrb.mxu1 %v8595_v46  ;;  %v8604_v45 = vld [vmem:[#allocation32_spill] sm:$0xff] }
  0xf2   :  { %1185 = vmatpush.msrb.mxu2 %v8596_v47  ;;  %1209 = vmatpush.msrb.mxu3 %v8597_v48 }
 0x14b   :  { %v703_v49 = vpop.f32.mrf.mxu0  ;;  %v727_v50 = vpop.f32.mrf.mxu1 }
 0x14c   :  { %v707_v51 = vrot.slane %v703_v49, 7  ;;  %v731_v53 = vrot.slane %v727_v50, 7 }
 0x14e   :  { %v709_v9 = vadd.f32 %v707_v51, %v8598_v54  ;;  %v733_v15 = vadd.f32 %v731_v53, %v8599_v56 }
 0x150   :  { %v4847_v2 = vmul.f32 -1.442695, %v709_v9  ;;  %v4846_v8 = vmul.f32 -1.442695, %v733_v15 }
 0x152   :  { %5158 = vpow2.f32 %v4847_v2  ;;  %v775_v60 = vpop.f32.mrf.mxu3  ;;  %v751_v5 = vpop.f32.mrf.mxu2 }
 0x153   :  { %5160 = vpow2.f32 %v4846_v8  ;;  %v779_v11 = vrot.slane %v775_v60, 7  ;;  %v755_v52 = vrot.slane %v751_v5, 7 }
 0x155   :  { %v781_v61 = vadd.f32 %v779_v11, %v8600_v16  ;;  %v757_v57 = vadd.f32 %v755_v52, %v8601_v10 }
 0x157   :  { %v4848_v6 = vmul.f32 -1.442695, %v781_v61 }
 0x158   :  { %v5159_v3 = vpop.eup %5158 }
 0x159   :  { %v5161_v59 = vpop.eup %5160  ;;  %v908_v62 = vadd.f32 1.0, %v5159_v3  ;;  %5162 = vpow2.f32 %v4848_v6 }
 0x15a   :  { %v885_v55 = vadd.f32 1.0, %v5161_v59 }
 0x15b   :  { %5164 = vrcp.f32 %v908_v62  ;;  %v918_v28 = vand.u32 2147483647, %v908_v62  ;;  %v920_v29 = vand.u32 2147483648, %v908_v62  ;;  %vm914_vm3 = vweird.f32 %v908_v62 }
 0x15c   :  { %5166 = vrcp.f32 %v885_v55  ;;  %v897_v31 = vand.u32 2147483648, %v885_v55  ;;  %v895_v35 = vand.u32 2147483647, %v885_v55  ;;  %vm891_vm4 = vweird.f32 %v885_v55 }
 0x15d   :  { %v921_v40 = vor.u32 1.1754944e-38, %v920_v29  ;;  %vm919_vm7 = vcmp.eq.f32.partialorder %v918_v28, 8.507059e+37 }
 0x15e   :  { %v898_v43 = vor.u32 1.1754944e-38, %v897_v31  ;;  %vm896_vm8 = vcmp.eq.f32.partialorder %v895_v35, 8.507059e+37 }
 0x15f   :  { %v5163_v1 = vpop.eup %5162 }
 0x160   :  { %v6417_v63 = vadd.f32 1.0, %v5163_v1  ;;  %v803_v58 = vpop.f32.mrf.mxu0  ;;  %v827_v14 = vpop.f32.mrf.mxu1 }
 0x161   :  { %v5165_v7 = vpop.eup %5164  ;;  %v807_v4 = vrot.slane %v803_v58, 2  ;;  %v831_v17 = vrot.slane %v827_v14, 2 }
 0x162   :  { %v5167_v18 = vpop.eup %5166  ;;  %v910_v0 = vmul.f32 %v5165_v7, %v908_v62  ;;  %5168 = vrcp.f32 %v6417_v63  ;;  %vm915_vm0 = vweird.f32 %v5165_v7  ;;  %v942_v59 = vand.u32 2147483648, %v6417_v63 }
 0x163   :  { %v887_v19 = vmul.f32 %v5167_v18, %v885_v55  ;;  %v809_v22 = vadd.f32 %v807_v4, %v8602_v21  ;;  %5170 = vtanh.f32 %v757_v57  ;;  %v833_v26 = vadd.f32 %v831_v17, %v8603_v25  ;;  %vm916_vm5 = vmor %vm914_vm3, %vm915_vm0 }
 0x164   :  { %v911_v24 = vsub.f32 1.0, %v910_v0  ;;  %vm892_vm2 = vweird.f32 %v5167_v18  ;;  %vm936_vm10 = vweird.f32 %v6417_v63  ;;  %v940_v5 = vand.u32 2147483647, %v6417_v63 }
 0x165   :  { %v888_v27 = vsub.f32 1.0, %v887_v19  ;;  %v4850_v30 = vmul.f32 -1.442695, %v809_v22  ;;  %v4849_v33 = vmul.f32 -1.442695, %v833_v26  ;;  %vm893_vm6 = vmor %vm891_vm4, %vm892_vm2  ;;  %v943_v1 = vor.u32 1.1754944e-38, %v942_v59 }
 0x166   :  { %v912_v32 = vmul.f32 %v5165_v7, %v911_v24  ;;  %vm941_vm12 = vcmp.eq.f32.partialorder %v940_v5, 8.507059e+37  ;;  %vm1014_vm0 = vcmask 402433   ;;  %v6552_v59 = vld [vmem:[%s8411_s2 + $0x50] sm:$0xff]  ;;  %v6560_v5 = vld [vmem:[%s8411_s2 + $0x88] sm:$0xff] }
 0x167   :  { %v889_v34 = vmul.f32 %v5167_v18, %v888_v27  ;;  %5172 = vpow2.f32 %v4850_v30  ;;  %v875_v36 = vpop.f32.mrf.mxu3  ;;  %v851_v6 = vpop.f32.mrf.mxu2 }
 0x168   :  { %v5169_v37 = vpop.eup %5168  ;;  %v913_v38 = vadd.f32 %v5165_v7, %v912_v32  ;;  %5174 = vpow2.f32 %v4849_v33  ;;  %v879_v12 = vrot.slane %v875_v36, 2  ;;  %v855_v62 = vrot.slane %v851_v6, 2  ;;  %v6458_v36 = vld [vmem:[%s8411_s2 + $0x30] sm:$0x3]  ;;  %v6540_v6 = vld [vmem:[%s8411_s2 + $0xc8] sm:$0xff] }
 0x169   :  { %v890_v39 = vadd.f32 %v5167_v18, %v889_v34  ;;  %v932_v41 = vmul.f32 %v5169_v37, %v6417_v63  ;;  %v5171_v42 = vpop.eup %5170  ;;  %vm937_vm9 = vweird.f32 %v5169_v37  ;;  %v6664_v33 = vld [vmem:[%s8414_s5 + $0x30] sm:$0x3] }
 0x16a   :  { %v917_v44 = vsel %vm916_vm5, %v5165_v7, %v913_v38  ;;  %v881_v46 = vadd.f32 %v879_v12, %v8604_v45  ;;  %vm938_vm11 = vmor %vm936_vm10, %vm937_vm9  ;;  %v857_v14 = vadd.f32 %v855_v62, %v6305_v13 }
 0x16b   :  { %v894_v47 = vsel %vm893_vm6, %v5167_v18, %v890_v39  ;;  %v922_v48 = vsel %vm919_vm7, %v921_v40, %v917_v44  ;;  %v933_v49 = vsub.f32 1.0, %v932_v41  ;;  %v6475_v39 = vld [vmem:[%s8411_s2 + $0xa0] sm:$0x3]  ;;  %v6482_v40 = vld [vmem:[%s8411_s2 + $0xd8] sm:$0x3] }
 0x16c   :  { %v899_v50 = vsel %vm896_vm8, %v898_v43, %v894_v47  ;;  %v925_v51 = vmul.f32 %v5171_v42, %v922_v48  ;;  %v4851_v53 = vmul.f32 -1.442695, %v881_v46  ;;  %v6494_v47 = vld [vmem:[%s8411_s2 + $0x28] sm:$0xff]  ;;  %v6500_v48 = vld [vmem:[%s8411_s2 + $0x60] sm:$0xff]  ;;  %v6704_v42 = vld [vmem:[%s8414_s5 + $0x98] sm:$0xff] }
 0x16d   :  { %v5173_v9 = vpop.eup %5172  ;;  %v904_v15 = vmul.f32 %v902_v23, %v899_v50  ;;  %v934_v2 = vmul.f32 %v5169_v37, %v933_v49  ;;  %v968_v49 = vrot.slane %v6351_v20, 1  ;;  %8613 = vst [vmem:[#allocation9_spill] sm:$0xff] %v6704_v42 }
 0x16e   :  { %v5175_v8 = vpop.eup %5174  ;;  %v974_v60 = vadd.f32 1.0, %v5173_v9  ;;  %5176 = vpow2.f32 %v4851_v53  ;;  %v6509_v53 = vld [vmem:[%s8411_s2 + $0x98] sm:$0xff]  ;;  %v6515_v9 = vld [vmem:[%s8411_s2 + $0xd0] sm:$0xff] }
 0x16f   :  { %v6426_v11 = vadd.f32 %v925_v51, %v904_v15  ;;  %v6428_v61 = vadd.f32 1.0, %v5175_v8  ;;  %v935_v3 = vadd.f32 %v5169_v37, %v934_v2  ;;  %v6522_v2 = vld [vmem:[%s8411_s2 + $0x20] sm:$0xff]  ;;  %v6528_v8 = vld [vmem:[%s8411_s2 + $0x58] sm:$0xff] }
 0x170   :  { %5178 = vrcp.f32 %v974_v60  ;;  %v986_v22 = vand.u32 2147483648, %v974_v60  ;;  %v984_v27 = vand.u32 2147483647, %v974_v60  ;;  %vm980_vm3 = vweird.f32 %v974_v60 }
 0x171   :  { %5180 = vtanh.f32 %v6426_v11  ;;  %v939_v52 = vsel %vm938_vm11, %v5169_v37, %v935_v3  ;;  %v963_v28 = vand.u32 2147483648, %v6428_v61  ;;  %v961_v31 = vand.u32 2147483647, %v6428_v61  ;;  %v6465_v37 = vld [vmem:[%s8411_s2 + $0x68] sm:$0x3]  ;;  %v6546_v3 = vld [vmem:[%s8411_s2 + $0x18] sm:$0xff] }
 0x172   :  { %5182 = vrcp.f32 %v6428_v61  ;;  %v944_v17 = vsel %vm941_vm12, %v943_v1, %v939_v52  ;;  %v987_v34 = vor.u32 1.1754944e-38, %v986_v22  ;;  %vm957_vm6 = vweird.f32 %v6428_v61  ;;  %v6574_v1 = vld [vmem:[%s8411_s2 + $0x10] sm:$0xff] }
 0x173   :  { %vm985_vm7 = vcmp.eq.f32.partialorder %v984_v27, 8.507059e+37  ;;  %v964_v43 = vor.u32 1.1754944e-38, %v963_v28  ;;  %vm962_vm9 = vcmp.eq.f32.partialorder %v961_v31, 8.507059e+37  ;;  %v6647_v27 = vld [vmem:[%s8411_s2 + $0x70] sm:$0xff]  ;;  %v6653_v28 = vld [vmem:[%s8411_s2 + $0xa8] sm:$0xff] }
 0x174   :  { %v5177_v55 = vpop.eup %5176 }
 0x175   :  { %v6435_v57 = vadd.f32 1.0, %v5177_v55  ;;  %v6566_v55 = vld [vmem:[%s8411_s2 + $0xc0] sm:$0xff] }
 0x176   :  { %v5179_v58 = vpop.eup %5178 }
 0x177   :  { %v5181_v7 = vpop.eup %5180  ;;  %v976_v4 = vmul.f32 %v5179_v58, %v974_v60  ;;  %5184 = vrcp.f32 %v6435_v57  ;;  %vm981_vm2 = vweird.f32 %v5179_v58  ;;  %vm1002_vm11 = vweird.f32 %v6435_v57 }
 0x178   :  { %v5183_v18 = vpop.eup %5182  ;;  %v947_v0 = vmul.f32 %v5181_v7, %v944_v17  ;;  %5186 = vtanh.f32 %v857_v14  ;;  %vm6449_vm5 = vmor %vm980_vm3, %vm981_vm2  ;;  %v1008_v14 = vand.u32 2147483648, %v6435_v57  ;;  %v6588_v7 = vld [vmem:[%s8411_s2 + $0x80] sm:$0xff]  ;;  %v1006_v17 = vand.u32 2147483647, %v6435_v57 }
 0x179   :  { %v977_v19 = vsub.f32 1.0, %v976_v4  ;;  %v953_v63 = vmul.f32 %v5183_v18, %v6428_v61  ;;  %vm958_vm4 = vweird.f32 %v5183_v18  ;;  %v6534_v61 = vld [vmem:[%s8411_s2 + $0x90] sm:$0xff]  ;;  %v6594_v4 = vld [vmem:[%s8411_s2 + $0xb8] sm:$0xff]  ;;  %vm1016_vm3 = vcmask 407558  }
 0x17a   :  { %1015 = vst.msk [vmem:[#allocation2] sm:$0x2] %vm1014_vm0, %v947_v0  ;;  %v1019_v23 = vrot.slane %v947_v0, 1  ;;  %vm6487_vm8 = vmor %vm957_vm6, %vm958_vm4  ;;  %v6608_v0 = vld [vmem:[%s8411_s2 + $0x40] sm:$0xff]  ;;  %vm1007_vm2 = vcmp.eq.f32.partialorder %v1006_v17, 8.507059e+37 }
 0x17b   :  { %v954_v24 = vsub.f32 1.0, %v953_v63  ;;  %v978_v26 = vmul.f32 %v5179_v58, %v977_v19  ;;  %v6626_v63 = vld [vmem:[%s8411_s2 + $0xb0] sm:$0xff]  ;;  %v6776_v17 = vld [vmem:[%s8414_s5 + $0x80] sm:$0xff]  ;;  %v6782_v19 = vld [vmem:[%s8414_s5 + $0xb8] sm:$0xff] }
 0x17c   :  { %4853 = vmatmul.msk.f32.vlgmr.msra.gmra.mxu0 %vm344_vm14, %v1019_v23  ;;  %4855 = vmatmul.msk.f32.vlgmr.msra.gmra.mxu1 %vm344_vm14, %v1019_v23  ;;  %8625 = vst [vmem:[#allocation21_spill] sm:$0xff] %v6776_v17 }
 0x17d   :  { %v6444_v29 = vpop.eup %5184  ;;  %v955_v30 = vmul.f32 %v5183_v18, %v954_v24  ;;  %v979_v32 = vadd.f32 %v5179_v58, %v978_v26  ;;  %4857 = vmatmul.msk.f32.vlgmr.msra.gmra.mxu2 %vm344_vm14, %v1019_v23  ;;  %4859 = vmatmul.msk.f32.vlgmr.msra.gmra.mxu3 %vm344_vm14, %v1019_v23  ;;  %v6635_v23 = vld [vmem:[%s8411_s2] sm:$0xff]  ;;  %v6641_v24 = vld [vmem:[%s8411_s2 + $0x38] sm:$0xff]  ;;  %v1009_v26 = vor.u32 1.1754944e-38, %v1008_v14  ;;  %v6770_v14 = vld [vmem:[%s8414_s5 + $0x48] sm:$0xff]  ;;  %8626 = vst [vmem:[#allocation22_spill] sm:$0xff] %v6782_v19 }
 0x17e   :  { %v998_v35 = vmul.f32 %v6444_v29, %v6435_v57  ;;  %4874 = vmatpush.msk.msra.mxu0 %vm348_vm1, %v6458_v36  ;;  %4876 = vmatpush.msk.msra.mxu1 %vm348_vm1, %v6465_v37  ;;  %v5187_v41 = vpop.eup %5186  ;;  %vm1003_vm10 = vweird.f32 %v6444_v29  ;;  %v6620_v57 = vld [vmem:[%s8411_s2 + $0x78] sm:$0xff]  ;;  %8624 = vst [vmem:[#allocation20_spill] sm:$0xff] %v6770_v14 }
 0x17f   :  { %v956_v38 = vadd.f32 %v5183_v18, %v955_v30  ;;  %v983_v12 = vsel %vm6449_vm5, %v5179_v58, %v979_v32  ;;  %4878 = vmatpush.msk.msra.mxu2 %vm348_vm1, %v6475_v39  ;;  %4880 = vmatpush.msk.msra.mxu3 %vm348_vm1, %v6482_v40  ;;  %v6580_v58 = vld [vmem:[%s8411_s2 + $0x48] sm:$0xff]  ;;  %vm6613_vm12 = vmor %vm1002_vm11, %vm1003_vm10 }
 0x180   :  { %v988_v44 = vsel %vm985_vm7, %v987_v34, %v983_v12  ;;  %v999_v46 = vsub.f32 1.0, %v998_v35  ;;  %1368 = vmatpush.msra.mxu0 %v6494_v47  ;;  %1392 = vmatpush.msra.mxu1 %v6500_v48  ;;  %v6671_v34 = vld [vmem:[%s8414_s5 + $0x68] sm:$0x3]  ;;  %v6678_v35 = vld [vmem:[%s8414_s5 + $0xa0] sm:$0x3] }
 0x181   :  { %v960_v50 = vsel %vm6487_vm8, %v5183_v18, %v956_v38  ;;  %v991_v51 = vmul.f32 %v5187_v41, %v988_v44  ;;  %1416 = vmatpush.msra.mxu2 %v6509_v53  ;;  %1440 = vmatpush.msra.mxu3 %v6515_v9  ;;  %v6602_v18 = vld [vmem:[%s8411_s2 + $0x8] sm:$0xff]  ;;  %v6685_v38 = vld [vmem:[%s8414_s5 + $0xd8] sm:$0x3]  ;;  %v6698_v41 = vld [vmem:[%s8414_s5 + $0x60] sm:$0xff] }
 0x182   :  { %v965_v20 = vsel %vm962_vm9, %v964_v43, %v960_v50  ;;  %v1000_v15 = vmul.f32 %v6444_v29, %v999_v46  ;;  %1369 = vmatpush.msra.mxu0 %v6522_v2  ;;  %1393 = vmatpush.msra.mxu1 %v6528_v8  ;;  %v6692_v12 = vld [vmem:[%s8414_s5 + $0x28] sm:$0xff]  ;;  %8612 = vst [vmem:[#allocation8_spill] sm:$0xff] %v6698_v41  ;;  %v6710_v43 = vld [vmem:[%s8414_s5 + $0xd0] sm:$0xff]  ;;  %v6716_v44 = vld [vmem:[%s8414_s5 + $0x20] sm:$0xff] }
 0x183   :  { %v970_v60 = vmul.f32 %v968_v49, %v965_v20  ;;  %1417 = vmatpush.msra.mxu2 %v6534_v61  ;;  %1441 = vmatpush.msra.mxu3 %v6540_v6  ;;  %8611 = vst [vmem:[#allocation7_spill] sm:$0xff] %v6692_v12  ;;  %v6722_v46 = vld [vmem:[%s8414_s5 + $0x58] sm:$0xff]  ;;  %v6728_v49 = vld [vmem:[%s8414_s5 + $0x90] sm:$0xff]  ;;  %v6734_v50 = vld [vmem:[%s8414_s5 + $0xc8] sm:$0xff] }
 0x184   :  { %1370 = vmatpush.msra.mxu0 %v6546_v3  ;;  %1394 = vmatpush.msra.mxu1 %v6552_v59  ;;  %v1001_v52 = vadd.f32 %v6444_v29, %v1000_v15  ;;  %8614 = vst [vmem:[#allocation10_spill] sm:$0xff] %v6710_v43  ;;  %v6746_v20 = vld [vmem:[%s8414_s5 + $0x50] sm:$0xff]  ;;  %v6752_v15 = vld [vmem:[%s8414_s5 + $0x88] sm:$0xff] }
 0x185   :  { %v6555_v62 = vadd.f32 %v991_v51, %v970_v60  ;;  %1418 = vmatpush.msra.mxu2 %v6560_v5  ;;  %1442 = vmatpush.msra.mxu3 %v6566_v55  ;;  %8615 = vst [vmem:[#allocation11_spill] sm:$0xff] %v6716_v44  ;;  %v6740_v51 = vld [vmem:[%s8414_s5 + $0x18] sm:$0xff]  ;;  %v6758_v60 = vld [vmem:[%s8414_s5 + $0xc0] sm:$0xff] }
 0x186   :  { %1371 = vmatpush.msra.mxu0 %v6574_v1  ;;  %1395 = vmatpush.msra.mxu1 %v6580_v58  ;;  %v1005_v22 = vsel %vm6613_vm12, %v6444_v29, %v1001_v52  ;;  %8616 = vst [vmem:[#allocation12_spill] sm:$0xff] %v6722_v46  ;;  %v6764_v52 = vld [vmem:[%s8414_s5 + $0x10] sm:$0xff] }
 0x187   :  { %5188 = vtanh.f32 %v6555_v62  ;;  %1419 = vmatpush.msra.mxu2 %v6588_v7  ;;  %1443 = vmatpush.msra.mxu3 %v6594_v4  ;;  %v1010_v30 = vsel %vm1007_vm2, %v1009_v26, %v1005_v22  ;;  %8617 = vst [vmem:[#allocation13_spill] sm:$0xff] %v6728_v49  ;;  %v6788_v22 = vld [vmem:[%s8414_s5 + $0x8] sm:$0xff]  ;;  %v6794_v26 = vld [vmem:[%s8414_s5 + $0x40] sm:$0xff] }
 0x188   :  { %1372 = vmatpush.msra.mxu0 %v6602_v18  ;;  %1396 = vmatpush.msra.mxu1 %v6608_v0  ;;  %8618 = vst [vmem:[#allocation14_spill] sm:$0xff] %v6734_v50 }
 0x189   :  { %1420 = vmatpush.msra.mxu2 %v6620_v57  ;;  %1444 = vmatpush.msra.mxu3 %v6626_v63  ;;  %8619 = vst [vmem:[#allocation15_spill] sm:$0xff] %v6740_v51 }
 0x18a   :  { %1373 = vmatpush.msra.mxu0 %v6635_v23  ;;  %1397 = vmatpush.msra.mxu1 %v6641_v24  ;;  %8620 = vst [vmem:[#allocation16_spill] sm:$0xff] %v6746_v20 }
 0x18b   :  { %1421 = vmatpush.msra.mxu2 %v6647_v27  ;;  %1445 = vmatpush.msra.mxu3 %v6653_v28  ;;  %8621 = vst [vmem:[#allocation17_spill] sm:$0xff] %v6752_v15 }
 0x18c   :  { %8622 = vst [vmem:[#allocation18_spill] sm:$0xff] %v6758_v60 }
 0x18d   :  { %v5189_v29 = vpop.eup %5188  ;;  %8623 = vst [vmem:[#allocation19_spill] sm:$0xff] %v6764_v52 }
 0x18e   :  { %v1013_v31 = vmul.f32 %v5189_v29, %v1010_v30  ;;  %8627 = vst [vmem:[#allocation23_spill] sm:$0xff] %v6788_v22  ;;  %v6800_v29 = vld [vmem:[%s8414_s5 + $0x78] sm:$0xff]  ;;  %v6806_v30 = vld [vmem:[%s8414_s5 + $0xb0] sm:$0xff] }
 0x18f   :  { %8628 = vst [vmem:[#allocation24_spill] sm:$0xff] %v6794_v26 }
 0x190   :  { %1017 = vst.msk [vmem:[#allocation3] sm:$0x40] %vm1016_vm3, %v1013_v31  ;;  %v1119_v32 = vrot.slane %v1013_v31, 6  ;;  %v6812_v31 = vld [vmem:[%s8414_s5] sm:$0xff] }
 0x191   :  { %8629 = vst [vmem:[#allocation25_spill] sm:$0xff] %v6800_v29 }
 0x192   :  { %4861 = vmatmul.msk.f32.vlgmr.msrb.gmra.mxu0 %vm344_vm14, %v1119_v32  ;;  %4863 = vmatmul.msk.f32.vlgmr.msrb.gmra.mxu1 %vm344_vm14, %v1119_v32  ;;  %8630 = vst [vmem:[#allocation32_spill] sm:$0xff] %v6806_v30 }
 0x193   :  { %4865 = vmatmul.msk.f32.vlgmr.msrb.gmra.mxu2 %vm344_vm14, %v1119_v32  ;;  %4867 = vmatmul.msk.f32.vlgmr.msrb.gmra.mxu3 %vm344_vm14, %v1119_v32  ;;  %8631 = vst [vmem:[#allocation33_spill] sm:$0xff] %v6812_v31  ;;  %v6818_v32 = vld [vmem:[%s8414_s5 + $0x38] sm:$0xff] }
 0x194   :  { %4882 = vmatpush.msk.msrb.mxu0 %vm348_vm1, %v6664_v33  ;;  %4884 = vmatpush.msk.msrb.mxu1 %vm348_vm1, %v6671_v34  ;;  %8632 = vst [vmem:[#allocation34_spill] sm:$0xff] %v6818_v32 }
 0x195   :  { %4886 = vmatpush.msk.msrb.mxu2 %vm348_vm1, %v6678_v35  ;;  %4888 = vmatpush.msk.msrb.mxu3 %vm348_vm1, %v6685_v38 }
 0x196   :  { %1468 = vmatpush.msrb.mxu0 %v6692_v12  ;;  %1492 = vmatpush.msrb.mxu1 %v6698_v41 }
 0x197   :  { %1516 = vmatpush.msrb.mxu2 %v6704_v42  ;;  %1540 = vmatpush.msrb.mxu3 %v6710_v43 }
 0x198   :  { %1469 = vmatpush.msrb.mxu0 %v6716_v44  ;;  %1493 = vmatpush.msrb.mxu1 %v6722_v46 }
 0x199   :  { %1517 = vmatpush.msrb.mxu2 %v6728_v49  ;;  %1541 = vmatpush.msrb.mxu3 %v6734_v50 }
 0x19a   :  { %1470 = vmatpush.msrb.mxu0 %v6740_v51  ;;  %1494 = vmatpush.msrb.mxu1 %v6746_v20 }
 0x19b   :  { %1518 = vmatpush.msrb.mxu2 %v6752_v15  ;;  %1542 = vmatpush.msrb.mxu3 %v6758_v60 }
 0x19c   :  { %1471 = vmatpush.msrb.mxu0 %v6764_v52  ;;  %1495 = vmatpush.msrb.mxu1 %v6770_v14 }
 0x19d   :  { %1519 = vmatpush.msrb.mxu2 %v6776_v17  ;;  %1543 = vmatpush.msrb.mxu3 %v6782_v19 }
 0x19e   :  { %1472 = vmatpush.msrb.mxu0 %v6788_v22  ;;  %1496 = vmatpush.msrb.mxu1 %v6794_v26 }
 0x19f   :  { %1520 = vmatpush.msrb.mxu2 %v6800_v29  ;;  %1544 = vmatpush.msrb.mxu3 %v6806_v30  ;;  %v6824_v29 = vld [vmem:[%s8414_s5 + $0x70] sm:$0xff]  ;;  %v6830_v30 = vld [vmem:[%s8414_s5 + $0xa8] sm:$0xff] }
 0x1a0   :  { %1473 = vmatpush.msrb.mxu0 %v6812_v31  ;;  %1497 = vmatpush.msrb.mxu1 %v6818_v32  ;;  %8633 = vst [vmem:[#allocation35_spill] sm:$0xff] %v6824_v29 }
 0x1a1   :  { %1521 = vmatpush.msrb.mxu2 %v6824_v29  ;;  %8634 = vst [vmem:[#allocation36_spill] sm:$0xff] %v6830_v30  ;;  %1545 = vmatpush.msrb.mxu3 %v6830_v30 }
 0x1f9   :  { %v1039_v31 = vpop.f32.mrf.mxu0  ;;  %v1063_v26 = vpop.f32.mrf.mxu1 }
 0x1fa   :  { %v1043_v22 = vrot.slane %v1039_v31, 6  ;;  %v1067_v19 = vrot.slane %v1063_v26, 6 }
 0x1fc   :  { %v1045_v32 = vadd.f32 %v1043_v22, %v8598_v54  ;;  %v1069_v17 = vadd.f32 %v1067_v19, %v8599_v56 }
 0x1fe   :  { %v4869_v14 = vmul.f32 -1.442695, %v1045_v32  ;;  %v4868_v52 = vmul.f32 -1.442695, %v1069_v17 }
 0x200   :  { %5190 = vpow2.f32 %v4869_v14  ;;  %v1111_v60 = vpop.f32.mrf.mxu3  ;;  %v1087_v49 = vpop.f32.mrf.mxu2 }
 0x201   :  { %5192 = vpow2.f32 %v4868_v52  ;;  %v1115_v29 = vrot.slane %v1111_v60, 6  ;;  %v1091_v22 = vrot.slane %v1087_v49, 6 }
 0x203   :  { %v1117_v15 = vadd.f32 %v1115_v29, %v8600_v16  ;;  %v1093_v19 = vadd.f32 %v1091_v22, %v8601_v10 }
 0x205   :  { %v4870_v20 = vmul.f32 -1.442695, %v1117_v15 }
 0x206   :  { %v5191_v51 = vpop.eup %5190 }
 0x207   :  { %v5193_v50 = vpop.eup %5192  ;;  %v1244_v30 = vadd.f32 1.0, %v5191_v51  ;;  %5194 = vpow2.f32 %v4870_v20  ;;  %v1238_v51 = vrot.slane %v6426_v11, 7 }
 0x208   :  { %v1221_v31 = vadd.f32 1.0, %v5193_v50 }
 0x209   :  { %5196 = vrcp.f32 %v1244_v30  ;;  %v1254_v16 = vand.u32 2147483647, %v1244_v30  ;;  %vm1250_vm4 = vweird.f32 %v1244_v30  ;;  %v1256_v22 = vand.u32 2147483648, %v1244_v30 }
 0x20a   :  { %5198 = vrcp.f32 %v1221_v31  ;;  %v1233_v10 = vand.u32 2147483648, %v1221_v31  ;;  %v1231_v43 = vand.u32 2147483647, %v1221_v31  ;;  %vm1227_vm7 = vweird.f32 %v1221_v31 }
 0x20b   :  { %vm6843_vm8 = vcmp.eq.f32.partialorder %v1254_v16, 8.507059e+37 }
 0x20c   :  { %vm1232_vm11 = vcmp.eq.f32.partialorder %v1231_v43, 8.507059e+37 }
 0x20d   :  { %v5195_v26 = vpop.eup %5194 }
 0x20e   :  { %v6837_v17 = vadd.f32 1.0, %v5195_v26 }
 0x20f   :  { %v5197_v14 = vpop.eup %5196  ;;  %v1139_v52 = vpop.f32.mrf.mxu0 }
 0x210   :  { %v1163_v60 = vpop.f32.mrf.mxu1  ;;  %v5199_v32 = vpop.eup %5198  ;;  %v1246_v29 = vmul.f32 %v5197_v14, %v1244_v30  ;;  %5200 = vrcp.f32 %v6837_v17  ;;  %v1143_v20 = vrot.slane %v1139_v52, 3  ;;  %vm1251_vm5 = vweird.f32 %v5197_v14 }
 0x211   :  { %v1223_v15 = vmul.f32 %v5199_v32, %v1221_v31  ;;  %5202 = vtanh.f32 %v1093_v19  ;;  %v1167_v49 = vrot.slane %v1163_v60, 3  ;;  %vm1228_vm6 = vweird.f32 %v5199_v32  ;;  %vm1252_vm9 = vmor %vm1250_vm4, %vm1251_vm5 }
 0x212   :  { %v1247_v50 = vsub.f32 1.0, %v1246_v29  ;;  %v1145_v26 = vadd.f32 %v1143_v20, %v8602_v21  ;;  %v1257_v20 = vor.u32 1.1754944e-38, %v1256_v22  ;;  %vm1229_vm10 = vmor %vm1227_vm7, %vm1228_vm6  ;;  %vm1272_vm2 = vweird.f32 %v6837_v17 }
 0x213   :  { %v1224_v56 = vsub.f32 1.0, %v1223_v15  ;;  %v1169_v46 = vadd.f32 %v1167_v49, %v8603_v25  ;;  %v1234_v49 = vor.u32 1.1754944e-38, %v1233_v10  ;;  %vm1350_vm6 = vcmask 403458  }
 0x214   :  { %v1248_v54 = vmul.f32 %v5197_v14, %v1247_v50  ;;  %v4872_v11 = vmul.f32 -1.442695, %v1145_v26 }
 0x215   :  { %v1225_v44 = vmul.f32 %v5199_v32, %v1224_v56  ;;  %v4871_v60 = vmul.f32 -1.442695, %v1169_v46 }
 0x216   :  { %v5201_v42 = vpop.eup %5200  ;;  %v1249_v52 = vadd.f32 %v5197_v14, %v1248_v54  ;;  %v1211_v29 = vpop.f32.mrf.mxu3  ;;  %5204 = vpow2.f32 %v4872_v11 }
 0x217   :  { %v1226_v15 = vadd.f32 %v5199_v32, %v1225_v44  ;;  %v1268_v50 = vmul.f32 %v5201_v42, %v6837_v17  ;;  %v5203_v56 = vpop.eup %5202  ;;  %5206 = vpow2.f32 %v4871_v60  ;;  %v1215_v54 = vrot.slane %v1211_v29, 3  ;;  %v1187_v19 = vpop.f32.mrf.mxu2 }
 0x218   :  { %v1253_v26 = vsel %vm1252_vm9, %v5197_v14, %v1249_v52  ;;  %vm1273_vm12 = vweird.f32 %v5201_v42 }
 0x219   :  { %v1230_v16 = vsel %vm1229_vm10, %v5199_v32, %v1226_v15  ;;  %v1258_v46 = vsel %vm6843_vm8, %v1257_v20, %v1253_v26  ;;  %v1269_v31 = vsub.f32 1.0, %v1268_v50  ;;  %v1217_v22 = vadd.f32 %v1215_v54, %v8604_v45  ;;  %vm1274_vm4 = vmor %vm1272_vm2, %vm1273_vm12 }
 0x21a   :  { %v1235_v44 = vsel %vm1232_vm11, %v1234_v49, %v1230_v16  ;;  %v1261_v30 = vmul.f32 %v5203_v56, %v1258_v46  ;;  %v1278_v32 = vand.u32 2147483648, %v6837_v17 }
 0x21b   :  { %v1240_v25 = vmul.f32 %v1238_v51, %v1235_v44  ;;  %v1270_v21 = vmul.f32 %v5201_v42, %v1269_v31  ;;  %v4873_v11 = vmul.f32 -1.442695, %v1217_v22 }
 0x21c   :  { %v5205_v41 = vpop.eup %5204  ;;  %v1279_v60 = vor.u32 1.1754944e-38, %v1278_v32 }
 0x21d   :  { %v6853_v12 = vadd.f32 %v1261_v30, %v1240_v25  ;;  %v5207_v10 = vpop.eup %5206  ;;  %v6855_v14 = vadd.f32 1.0, %v5205_v41  ;;  %5208 = vpow2.f32 %v4873_v11  ;;  %v1271_v43 = vadd.f32 %v5201_v42, %v1270_v21 }
 0x21e   :  { %v6859_v52 = vadd.f32 1.0, %v5207_v10  ;;  %v1276_v25 = vand.u32 2147483647, %v6837_v17  ;;  %v1191_v41 = vrot.slane %v1187_v19, 3 }
 0x21f   :  { %5210 = vtanh.f32 %v6853_v12  ;;  %v1275_v51 = vsel %vm1274_vm4, %v5201_v42, %v1271_v43  ;;  %v1322_v31 = vand.u32 2147483648, %v6855_v14  ;;  %v1320_v22 = vand.u32 2147483647, %v6855_v14 }
 0x220   :  { %5212 = vrcp.f32 %v6855_v14  ;;  %vm1277_vm5 = vcmp.eq.f32.partialorder %v1276_v25, 8.507059e+37  ;;  %v1193_v56 = vadd.f32 %v1191_v41, %v6305_v13  ;;  %v1299_v44 = vand.u32 2147483648, %v6859_v52  ;;  %v8644_v25 = vld [vmem:[#allocation12_spill] sm:$0xff] }
 0x221   :  { %5214 = vrcp.f32 %v6859_v52  ;;  %v1280_v20 = vsel %vm1277_vm5, %v1279_v60, %v1275_v51  ;;  %v1297_v10 = vand.u32 2147483647, %v6859_v52  ;;  %vm1316_vm9 = vweird.f32 %v6855_v14 }
 0x222   :  { %vm1293_vm10 = vweird.f32 %v6859_v52  ;;  %v1323_v41 = vor.u32 1.1754944e-38, %v1322_v31  ;;  %v1300_v60 = vor.u32 1.1754944e-38, %v1299_v44  ;;  %vm1321_vm2 = vcmp.eq.f32.partialorder %v1320_v22, 8.507059e+37 }
 0x223   :  { %v5209_v21 = vpop.eup %5208  ;;  %vm1298_vm4 = vcmp.eq.f32.partialorder %v1297_v10, 8.507059e+37  ;;  %v8640_v10 = vld [vmem:[#allocation8_spill] sm:$0xff] }
 0x224   :  { %v6865_v15 = vadd.f32 1.0, %v5209_v21 }
 0x225   :  { %v5211_v29 = vpop.eup %5210 }
 0x226   :  { %v5213_v50 = vpop.eup %5212  ;;  %v1283_v49 = vmul.f32 %v5211_v29, %v1280_v20  ;;  %5216 = vrcp.f32 %v6865_v15 }
 0x227   :  { %v5215_v26 = vpop.eup %5214  ;;  %v1312_v17 = vmul.f32 %v5213_v50, %v6855_v14  ;;  %5218 = vtanh.f32 %v1193_v56  ;;  %vm1317_vm7 = vweird.f32 %v5213_v50  ;;  %v1304_v14 = vrot.slane %v6555_v62, 1 }
 0x228   :  { %v1289_v54 = vmul.f32 %v5215_v26, %v6859_v52  ;;  %1351 = vst.msk [vmem:[#allocation2] sm:$0x4] %vm1350_vm6, %v1283_v49  ;;  %v1355_v42 = vrot.slane %v1283_v49, 2  ;;  %vm1294_vm8 = vweird.f32 %v5215_v26  ;;  %vm6891_vm11 = vmor %vm1316_vm9, %vm1317_vm7  ;;  %vm1338_vm7 = vweird.f32 %v6865_v15 }
 0x229   :  { %v1313_v16 = vsub.f32 1.0, %v1312_v17  ;;  %vm1295_vm12 = vmor %vm1293_vm10, %vm1294_vm8  ;;  %vm1352_vm10 = vcmask 406533  }
 0x22a   :  { %v1290_v46 = vsub.f32 1.0, %v1289_v54  ;;  %4875 = vmatmul.msk.f32.vlgmr.msra.gmra.mxu0 %vm344_vm14, %v1355_v42  ;;  %4877 = vmatmul.msk.f32.vlgmr.msra.gmra.mxu1 %vm344_vm14, %v1355_v42 }
 0x22b   :  { %v1314_v30 = vmul.f32 %v5213_v50, %v1313_v16  ;;  %4879 = vmatmul.msk.f32.vlgmr.msra.gmra.mxu2 %vm344_vm14, %v1355_v42  ;;  %4881 = vmatmul.msk.f32.vlgmr.msra.gmra.mxu3 %vm344_vm14, %v1355_v42  ;;  %v1344_v42 = vand.u32 2147483648, %v6865_v15  ;;  %v1342_v16 = vand.u32 2147483647, %v6865_v15 }
 0x22c   :  { %v1291_v11 = vmul.f32 %v5215_v26, %v1290_v46  ;;  %4896 = vmatpush.msk.msra.mxu0 %vm348_vm1, %v6458_v36  ;;  %4898 = vmatpush.msk.msra.mxu1 %vm348_vm1, %v6465_v37  ;;  %v5217_v43 = vpop.eup %5216 }
 0x22d   :  { %v1315_v32 = vadd.f32 %v5213_v50, %v1314_v30  ;;  %4900 = vmatpush.msk.msra.mxu2 %vm348_vm1, %v6475_v39  ;;  %4902 = vmatpush.msk.msra.mxu3 %vm348_vm1, %v6482_v40  ;;  %v1334_v51 = vmul.f32 %v5217_v43, %v6865_v15  ;;  %v5219_v21 = vpop.eup %5218  ;;  %vm1339_vm5 = vweird.f32 %v5217_v43  ;;  %v1345_v31 = vor.u32 1.1754944e-38, %v1344_v42  ;;  %v8659_v42 = vld [vmem:[#allocation33_spill] sm:$0xff] }
 0x22e   :  { %v1292_v19 = vadd.f32 %v5215_v26, %v1291_v11  ;;  %1704 = vmatpush.msra.mxu0 %v6494_v47  ;;  %1728 = vmatpush.msra.mxu1 %v6500_v48  ;;  %vm1340_vm8 = vmor %vm1338_vm7, %vm1339_vm5  ;;  %vm1343_vm9 = vcmp.eq.f32.partialorder %v1342_v16, 8.507059e+37  ;;  %v8639_v11 = vld [vmem:[#allocation7_spill] sm:$0xff]  ;;  %v8660_v16 = vld [vmem:[#allocation34_spill] sm:$0xff] }
 0x22f   :  { %v1319_v52 = vsel %vm6891_vm11, %v5213_v50, %v1315_v32  ;;  %1752 = vmatpush.msra.mxu2 %v6509_v53  ;;  %1776 = vmatpush.msra.mxu3 %v6515_v9  ;;  %v1335_v56 = vsub.f32 1.0, %v1334_v51  ;;  %v8642_v32 = vld [vmem:[#allocation10_spill] sm:$0xff] }
 0x230   :  { %v1296_v29 = vsel %vm1295_vm12, %v5215_v26, %v1292_v19  ;;  %v1324_v20 = vsel %vm1321_vm2, %v1323_v41, %v1319_v52  ;;  %1705 = vmatpush.msra.mxu0 %v6522_v2  ;;  %1729 = vmatpush.msra.mxu1 %v6528_v8  ;;  %v8643_v19 = vld [vmem:[#allocation11_spill] sm:$0xff]  ;;  %v8645_v41 = vld [vmem:[#allocation13_spill] sm:$0xff]  ;;  %v8646_v51 = vld [vmem:[#allocation14_spill] sm:$0xff] }
 0x231   :  { %v1301_v62 = vsel %vm1298_vm4, %v1300_v60, %v1296_v29  ;;  %v1327_v49 = vmul.f32 %v5219_v21, %v1324_v20  ;;  %1753 = vmatpush.msra.mxu2 %v6534_v61  ;;  %1777 = vmatpush.msra.mxu3 %v6540_v6  ;;  %v1336_v17 = vmul.f32 %v5217_v43, %v1335_v56  ;;  %v8648_v60 = vld [vmem:[#allocation16_spill] sm:$0xff]  ;;  %v8649_v52 = vld [vmem:[#allocation17_spill] sm:$0xff]  ;;  %v8650_v21 = vld [vmem:[#allocation18_spill] sm:$0xff] }
 0x232   :  { %v1306_v50 = vmul.f32 %v1304_v14, %v1301_v62  ;;  %1706 = vmatpush.msra.mxu0 %v6546_v3  ;;  %1730 = vmatpush.msra.mxu1 %v6552_v59  ;;  %v8647_v14 = vld [vmem:[#allocation15_spill] sm:$0xff]  ;;  %v8652_v20 = vld [vmem:[#allocation20_spill] sm:$0xff]  ;;  %v8653_v56 = vld [vmem:[#allocation21_spill] sm:$0xff] }
 0x233   :  { %1754 = vmatpush.msra.mxu2 %v6560_v5  ;;  %1778 = vmatpush.msra.mxu3 %v6566_v55  ;;  %v1337_v54 = vadd.f32 %v5217_v43, %v1336_v17  ;;  %v8651_v29 = vld [vmem:[#allocation19_spill] sm:$0xff]  ;;  %v8654_v62 = vld [vmem:[#allocation22_spill] sm:$0xff]  ;;  %v8657_v17 = vld [vmem:[#allocation25_spill] sm:$0xff] }
 0x234   :  { %v6912_v26 = vadd.f32 %v1327_v49, %v1306_v50  ;;  %1707 = vmatpush.msra.mxu0 %v6574_v1  ;;  %1731 = vmatpush.msra.mxu1 %v6580_v58  ;;  %v8655_v49 = vld [vmem:[#allocation23_spill] sm:$0xff]  ;;  %v8656_v50 = vld [vmem:[#allocation24_spill] sm:$0xff] }
 0x235   :  { %1755 = vmatpush.msra.mxu2 %v6588_v7  ;;  %1779 = vmatpush.msra.mxu3 %v6594_v4  ;;  %v1341_v46 = vsel %vm1340_vm8, %v5217_v43, %v1337_v54  ;;  %v8641_v43 = vld [vmem:[#allocation9_spill] sm:$0xff]  ;;  %v8658_v54 = vld [vmem:[#allocation32_spill] sm:$0xff] }
 0x236   :  { %5220 = vtanh.f32 %v6912_v26  ;;  %1708 = vmatpush.msra.mxu0 %v6602_v18  ;;  %1732 = vmatpush.msra.mxu1 %v6608_v0  ;;  %v1346_v30 = vsel %vm1343_vm9, %v1345_v31, %v1341_v46  ;;  %v8661_v46 = vld [vmem:[#allocation35_spill] sm:$0xff]  ;;  %v8662_v31 = vld [vmem:[#allocation36_spill] sm:$0xff] }
 0x237   :  { %1756 = vmatpush.msra.mxu2 %v6620_v57  ;;  %1780 = vmatpush.msra.mxu3 %v6626_v63 }
 0x238   :  { %1709 = vmatpush.msra.mxu0 %v6635_v23  ;;  %1733 = vmatpush.msra.mxu1 %v6641_v24 }
 0x239   :  { %1757 = vmatpush.msra.mxu2 %v6647_v27  ;;  %1781 = vmatpush.msra.mxu3 %v6653_v28 }
 0x23c   :  { %v5221_v44 = vpop.eup %5220 }
 0x23d   :  { %v1349_v15 = vmul.f32 %v5221_v44, %v1346_v30 }
 0x23f   :  { %1353 = vst.msk [vmem:[#allocation3] sm:$0x20] %vm1352_vm10, %v1349_v15  ;;  %v1455_v22 = vrot.slane %v1349_v15, 5 }
 0x241   :  { %4883 = vmatmul.msk.f32.vlgmr.msrb.gmra.mxu0 %vm344_vm14, %v1455_v22  ;;  %4885 = vmatmul.msk.f32.vlgmr.msrb.gmra.mxu1 %vm344_vm14, %v1455_v22 }
 0x242   :  { %4887 = vmatmul.msk.f32.vlgmr.msrb.gmra.mxu2 %vm344_vm14, %v1455_v22  ;;  %4889 = vmatmul.msk.f32.vlgmr.msrb.gmra.mxu3 %vm344_vm14, %v1455_v22 }
 0x243   :  { %4904 = vmatpush.msk.msrb.mxu0 %vm348_vm1, %v6664_v33  ;;  %4906 = vmatpush.msk.msrb.mxu1 %vm348_vm1, %v6671_v34 }
 0x244   :  { %4908 = vmatpush.msk.msrb.mxu2 %vm348_vm1, %v6678_v35  ;;  %4910 = vmatpush.msk.msrb.mxu3 %vm348_vm1, %v6685_v38 }
 0x245   :  { %1804 = vmatpush.msrb.mxu0 %v8639_v11  ;;  %1828 = vmatpush.msrb.mxu1 %v8640_v10 }
 0x246   :  { %1852 = vmatpush.msrb.mxu2 %v8641_v43  ;;  %1876 = vmatpush.msrb.mxu3 %v8642_v32 }
 0x247   :  { %1805 = vmatpush.msrb.mxu0 %v8643_v19  ;;  %1829 = vmatpush.msrb.mxu1 %v8644_v25 }
 0x248   :  { %1853 = vmatpush.msrb.mxu2 %v8645_v41  ;;  %1877 = vmatpush.msrb.mxu3 %v8646_v51  ;;  %v8668_v41 = vld [vmem:[#allocation31_spill] sm:$0xff] }
 0x249   :  { %1806 = vmatpush.msrb.mxu0 %v8647_v14  ;;  %1830 = vmatpush.msrb.mxu1 %v8648_v60 }
 0x24a   :  { %1854 = vmatpush.msrb.mxu2 %v8649_v52  ;;  %1878 = vmatpush.msrb.mxu3 %v8650_v21 }
 0x24b   :  { %1807 = vmatpush.msrb.mxu0 %v8651_v29  ;;  %1831 = vmatpush.msrb.mxu1 %v8652_v20  ;;  %v8665_v29 = vld [vmem:[#allocation28_spill] sm:$0xff] }
 0x24c   :  { %1855 = vmatpush.msrb.mxu2 %v8653_v56  ;;  %1879 = vmatpush.msrb.mxu3 %v8654_v62  ;;  %v8663_v62 = vld [vmem:[#allocation26_spill] sm:$0xff]  ;;  %v8664_v56 = vld [vmem:[#allocation27_spill] sm:$0xff] }
 0x24d   :  { %1808 = vmatpush.msrb.mxu0 %v8655_v49  ;;  %1832 = vmatpush.msrb.mxu1 %v8656_v50 }
 0x24e   :  { %1856 = vmatpush.msrb.mxu2 %v8657_v17  ;;  %1880 = vmatpush.msrb.mxu3 %v8658_v54 }
 0x24f   :  { %1809 = vmatpush.msrb.mxu0 %v8659_v42  ;;  %1833 = vmatpush.msrb.mxu1 %v8660_v16 }
 0x250   :  { %1857 = vmatpush.msrb.mxu2 %v8661_v46  ;;  %1881 = vmatpush.msrb.mxu3 %v8662_v31 }
 0x2a7   :  { %v1375_v44 = vpop.f32.mrf.mxu0  ;;  %v1399_v30 = vpop.f32.mrf.mxu1 }
 0x2a8   :  { %v1379_v15 = vrot.slane %v1375_v44, 5  ;;  %v1403_v22 = vrot.slane %v1399_v30, 5 }
 0x2aa   :  { %v1381_v49 = vadd.f32 %v1379_v15, %v8663_v62  ;;  %v1405_v50 = vadd.f32 %v1403_v22, %v8664_v56  ;;  %v8666_v22 = vld [vmem:[#allocation29_spill] sm:$0xff] }
 0x2ac   :  { %v4891_v20 = vmul.f32 -1.442695, %v1381_v49  ;;  %v4890_v17 = vmul.f32 -1.442695, %v1405_v50 }
 0x2ae   :  { %5222 = vpow2.f32 %v4891_v20  ;;  %v1447_v54 = vpop.f32.mrf.mxu3  ;;  %v1423_v60 = vpop.f32.mrf.mxu2 }
 0x2af   :  { %5224 = vpow2.f32 %v4890_v17  ;;  %v1451_v42 = vrot.slane %v1447_v54, 5  ;;  %v1427_v30 = vrot.slane %v1423_v60, 5 }
 0x2b1   :  { %v1453_v16 = vadd.f32 %v1451_v42, %v8665_v29  ;;  %v1429_v49 = vadd.f32 %v1427_v30, %v8666_v22 }
 0x2b3   :  { %v4892_v21 = vmul.f32 -1.442695, %v1453_v16 }
 0x2b4   :  { %v5223_v46 = vpop.eup %5222 }
 0x2b5   :  { %v5225_v52 = vpop.eup %5224  ;;  %v1580_v31 = vadd.f32 1.0, %v5223_v46  ;;  %5226 = vpow2.f32 %v4892_v21  ;;  %v1574_v46 = vrot.slane %v6853_v12, 7 }
 0x2b6   :  { %v1557_v44 = vadd.f32 1.0, %v5225_v52 }
 0x2b7   :  { %5228 = vrcp.f32 %v1580_v31  ;;  %v1590_v56 = vand.u32 2147483647, %v1580_v31  ;;  %vm1586_vm11 = vweird.f32 %v1580_v31  ;;  %v1592_v30 = vand.u32 2147483648, %v1580_v31 }
 0x2b8   :  { %5230 = vrcp.f32 %v1557_v44  ;;  %v1569_v14 = vand.u32 2147483648, %v1557_v44  ;;  %v1567_v32 = vand.u32 2147483647, %v1557_v44  ;;  %vm1563_vm4 = vweird.f32 %v1557_v44 }
 0x2b9   :  { %vm6977_vm5 = vcmp.eq.f32.partialorder %v1590_v56, 8.507059e+37 }
 0x2ba   :  { %vm1568_vm9 = vcmp.eq.f32.partialorder %v1567_v32, 8.507059e+37 }
 0x2bb   :  { %v5227_v15 = vpop.eup %5226 }
 0x2bc   :  { %v6971_v50 = vadd.f32 1.0, %v5227_v15  ;;  %v8667_v15 = vld [vmem:[#allocation30_spill] sm:$0xff] }
 0x2bd   :  { %v5229_v20 = vpop.eup %5228 }
 0x2be   :  { %v5231_v17 = vpop.eup %5230  ;;  %v1582_v54 = vmul.f32 %v5229_v20, %v1580_v31  ;;  %5232 = vrcp.f32 %v6971_v50  ;;  %v1475_v42 = vpop.f32.mrf.mxu0  ;;  %vm1587_vm12 = vweird.f32 %v5229_v20 }
 0x2bf   :  { %v1499_v16 = vpop.f32.mrf.mxu1  ;;  %v1559_v29 = vmul.f32 %v5231_v17, %v1557_v44  ;;  %v1479_v21 = vrot.slane %v1475_v42, 4  ;;  %5234 = vtanh.f32 %v1429_v49  ;;  %vm1564_vm2 = vweird.f32 %v5231_v17  ;;  %vm1588_vm7 = vmor %vm1586_vm11, %vm1587_vm12 }
 0x2c0   :  { %v1583_v52 = vsub.f32 1.0, %v1582_v54  ;;  %v1503_v60 = vrot.slane %v1499_v16, 4  ;;  %v1593_v16 = vor.u32 1.1754944e-38, %v1592_v30  ;;  %vm1565_vm8 = vmor %vm1563_vm4, %vm1564_vm2  ;;  %vm1608_vm12 = vweird.f32 %v6971_v50 }
 0x2c1   :  { %v1560_v62 = vsub.f32 1.0, %v1559_v29  ;;  %v1481_v22 = vadd.f32 %v1479_v21, %v8667_v15 }
 0x2c2   :  { %v1584_v51 = vmul.f32 %v5229_v20, %v1583_v52  ;;  %v1505_v25 = vadd.f32 %v1503_v60, %v8668_v41 }
 0x2c3   :  { %v1561_v19 = vmul.f32 %v5231_v17, %v1560_v62  ;;  %v4894_v12 = vmul.f32 -1.442695, %v1481_v22  ;;  %v1570_v22 = vor.u32 1.1754944e-38, %v1569_v14 }
 0x2c4   :  { %v5233_v43 = vpop.eup %5232  ;;  %v1585_v54 = vadd.f32 %v5229_v20, %v1584_v51  ;;  %v4893_v29 = vmul.f32 -1.442695, %v1505_v25 }
 0x2c5   :  { %v1562_v42 = vadd.f32 %v5231_v17, %v1561_v19  ;;  %v1604_v21 = vmul.f32 %v5233_v43, %v6971_v50  ;;  %5236 = vpow2.f32 %v4894_v12  ;;  %v1547_v52 = vpop.f32.mrf.mxu3  ;;  %v5235_v62 = vpop.eup %5234  ;;  %vm1609_vm11 = vweird.f32 %v5233_v43 }
 0x2c6   :  { %v1589_v60 = vsel %vm1588_vm7, %v5229_v20, %v1585_v54  ;;  %5238 = vpow2.f32 %v4893_v29  ;;  %v1551_v51 = vrot.slane %v1547_v52, 4  ;;  %v1523_v49 = vpop.f32.mrf.mxu2  ;;  %vm1610_vm2 = vmor %vm1608_vm12, %vm1609_vm11 }
 0x2c7   :  { %v1566_v56 = vsel %vm1565_vm8, %v5231_v17, %v1562_v42  ;;  %v1594_v25 = vsel %vm6977_vm5, %v1593_v16, %v1589_v60  ;;  %v1605_v19 = vsub.f32 1.0, %v1604_v21  ;;  %v1614_v17 = vand.u32 2147483648, %v6971_v50 }
 0x2c8   :  { %v1571_v31 = vsel %vm1568_vm9, %v1570_v22, %v1566_v56  ;;  %v1597_v44 = vmul.f32 %v5235_v62, %v1594_v25  ;;  %v1553_v30 = vadd.f32 %v1551_v51, %v8604_v45  ;;  %vm1686_vm5 = vcmask 404483  }
 0x2c9   :  { %v1576_v41 = vmul.f32 %v1574_v46, %v1571_v31  ;;  %v1606_v12 = vmul.f32 %v5233_v43, %v1605_v19 }
 0x2ca   :  { %v4895_v15 = vmul.f32 -1.442695, %v1553_v30 }
 0x2cb   :  { %v5237_v10 = vpop.eup %5236  ;;  %v6987_v11 = vadd.f32 %v1597_v44, %v1576_v41  ;;  %v1607_v32 = vadd.f32 %v5233_v43, %v1606_v12  ;;  %v1612_v41 = vand.u32 2147483647, %v6971_v50 }
 0x2cc   :  { %v5239_v14 = vpop.eup %5238  ;;  %v6989_v20 = vadd.f32 1.0, %v5237_v10  ;;  %5240 = vpow2.f32 %v4895_v15  ;;  %v1527_v10 = vrot.slane %v1523_v49, 4  ;;  %v1615_v15 = vor.u32 1.1754944e-38, %v1614_v17 }
 0x2cd   :  { %5242 = vtanh.f32 %v6987_v11  ;;  %v6993_v54 = vadd.f32 1.0, %v5239_v14  ;;  %v1611_v46 = vsel %vm1610_vm2, %v5233_v43, %v1607_v32  ;;  %vm1613_vm4 = vcmp.eq.f32.partialorder %v1612_v41, 8.507059e+37 }
 0x2ce   :  { %5244 = vrcp.f32 %v6989_v20  ;;  %v1616_v21 = vsel %vm1613_vm4, %v1615_v15, %v1611_v46  ;;  %v1529_v62 = vadd.f32 %v1527_v10, %v6305_v13  ;;  %v1658_v19 = vand.u32 2147483648, %v6989_v20 }
 0x2cf   :  { %5246 = vrcp.f32 %v6993_v54  ;;  %v1635_v31 = vand.u32 2147483648, %v6993_v54  ;;  %v1656_v30 = vand.u32 2147483647, %v6989_v20  ;;  %v1633_v14 = vand.u32 2147483647, %v6993_v54 }
 0x2d0   :  { %vm1652_vm9 = vweird.f32 %v6989_v20  ;;  %vm1629_vm11 = vweird.f32 %v6993_v54 }
 0x2d1   :  { %vm1657_vm4 = vcmp.eq.f32.partialorder %v1656_v30, 8.507059e+37 }
 0x2d2   :  { %v5241_v29 = vpop.eup %5240 }
 0x2d3   :  { %v5243_v42 = vpop.eup %5242  ;;  %v6999_v16 = vadd.f32 1.0, %v5241_v29 }
 0x2d4   :  { %v5245_v52 = vpop.eup %5244  ;;  %v1619_v22 = vmul.f32 %v5243_v42, %v1616_v21  ;;  %v8689_v42 = vld [vmem:[#allocation23_spill] sm:$0xff]  ;;  %v8691_v21 = vld [vmem:[#allocation25_spill] sm:$0xff] }
 0x2d5   :  { %v5247_v60 = vpop.eup %5246  ;;  %v1648_v50 = vmul.f32 %v5245_v52, %v6989_v20  ;;  %5248 = vrcp.f32 %v6999_v16  ;;  %vm1653_vm7 = vweird.f32 %v5245_v52 }
 0x2d6   :  { %v1625_v51 = vmul.f32 %v5247_v60, %v6993_v54  ;;  %1687 = vst.msk [vmem:[#allocation2] sm:$0x8] %vm1686_vm5, %v1619_v22  ;;  %v1691_v43 = vrot.slane %v1619_v22, 3  ;;  %5250 = vtanh.f32 %v1529_v62  ;;  %vm1630_vm8 = vweird.f32 %v5247_v60  ;;  %vm7025_vm12 = vmor %vm1652_vm9, %vm1653_vm7  ;;  %v8693_v62 = vld [vmem:[#allocation33_spill] sm:$0xff]  ;;  %v8694_v22 = vld [vmem:[#allocation34_spill] sm:$0xff] }
 0x2d7   :  { %v1649_v56 = vsub.f32 1.0, %v1648_v50  ;;  %vm1631_vm2 = vmor %vm1629_vm11, %vm1630_vm8  ;;  %vm1634_vm7 = vcmp.eq.f32.partialorder %v1633_v14, 8.507059e+37  ;;  %vm1674_vm9 = vweird.f32 %v6999_v16  ;;  %v8696_v50 = vld [vmem:[#allocation36_spill] sm:$0xff] }
 0x2d8   :  { %v1626_v25 = vsub.f32 1.0, %v1625_v51  ;;  %4897 = vmatmul.msk.f32.vlgmr.msra.gmra.mxu0 %vm344_vm14, %v1691_v43  ;;  %4899 = vmatmul.msk.f32.vlgmr.msra.gmra.mxu1 %vm344_vm14, %v1691_v43 }
 0x2d9   :  { %v1650_v44 = vmul.f32 %v5245_v52, %v1649_v56  ;;  %4901 = vmatmul.msk.f32.vlgmr.msra.gmra.mxu2 %vm344_vm14, %v1691_v43  ;;  %4903 = vmatmul.msk.f32.vlgmr.msra.gmra.mxu3 %vm344_vm14, %v1691_v43 }
 0x2da   :  { %v1627_v12 = vmul.f32 %v5247_v60, %v1626_v25  ;;  %4918 = vmatpush.msk.msra.mxu0 %vm348_vm1, %v6458_v36  ;;  %4920 = vmatpush.msk.msra.mxu1 %vm348_vm1, %v6465_v37  ;;  %v1659_v36 = vor.u32 1.1754944e-38, %v1658_v19  ;;  %v8697_v19 = vld [vmem:[#allocation26_spill] sm:$0xff] }
 0x2db   :  { %v5249_v32 = vpop.eup %5248  ;;  %v1651_v17 = vadd.f32 %v5245_v52, %v1650_v44  ;;  %4922 = vmatpush.msk.msra.mxu2 %vm348_vm1, %v6475_v39  ;;  %4924 = vmatpush.msk.msra.mxu3 %vm348_vm1, %v6482_v40  ;;  %v1640_v39 = vrot.slane %v6912_v26, 1  ;;  %v1636_v40 = vor.u32 1.1754944e-38, %v1635_v31  ;;  %v8698_v44 = vld [vmem:[#allocation27_spill] sm:$0xff] }
 0x2dc   :  { %v1628_v49 = vadd.f32 %v5247_v60, %v1627_v12  ;;  %v1670_v37 = vmul.f32 %v5249_v32, %v6999_v16  ;;  %2038 = vmatpush.msra.mxu0 %v6494_v47  ;;  %2062 = vmatpush.msra.mxu1 %v6500_v48  ;;  %v5251_v54 = vpop.eup %5250  ;;  %vm1675_vm8 = vweird.f32 %v5249_v32 }
 0x2dd   :  { %v1655_v20 = vsel %vm7025_vm12, %v5245_v52, %v1651_v17  ;;  %2086 = vmatpush.msra.mxu2 %v6509_v53  ;;  %2110 = vmatpush.msra.mxu3 %v6515_v9  ;;  %vm1676_vm11 = vmor %vm1674_vm9, %vm1675_vm8  ;;  %v8692_v52 = vld [vmem:[#allocation32_spill] sm:$0xff] }
 0x2de   :  { %v1632_v10 = vsel %vm1631_vm2, %v5247_v60, %v1628_v49  ;;  %v1660_v46 = vsel %vm1657_vm4, %v1659_v36, %v1655_v20  ;;  %v1671_v47 = vsub.f32 1.0, %v1670_v37  ;;  %2039 = vmatpush.msra.mxu0 %v6522_v2  ;;  %2063 = vmatpush.msra.mxu1 %v6528_v8  ;;  %v1680_v2 = vand.u32 2147483648, %v6999_v16  ;;  %v8695_v60 = vld [vmem:[#allocation35_spill] sm:$0xff]  ;;  %v8699_v49 = vld [vmem:[#allocation28_spill] sm:$0xff] }
 0x2df   :  { %v1637_v48 = vsel %vm1634_vm7, %v1636_v40, %v1632_v10  ;;  %v1663_v26 = vmul.f32 %v5251_v54, %v1660_v46  ;;  %2087 = vmatpush.msra.mxu2 %v6534_v61  ;;  %2111 = vmatpush.msra.mxu3 %v6540_v6  ;;  %v1678_v8 = vand.u32 2147483647, %v6999_v16  ;;  %vm1688_vm2 = vcmask 405508   ;;  %v8690_v16 = vld [vmem:[#allocation24_spill] sm:$0xff] }
 0x2e0   :  { %v1642_v15 = vmul.f32 %v1640_v39, %v1637_v48  ;;  %v1672_v29 = vmul.f32 %v5249_v32, %v1671_v47  ;;  %2040 = vmatpush.msra.mxu0 %v6546_v3  ;;  %2064 = vmatpush.msra.mxu1 %v6552_v59  ;;  %v1681_v6 = vor.u32 1.1754944e-38, %v1680_v2  ;;  %v8700_v47 = vld [vmem:[#allocation29_spill] sm:$0xff] }
 0x2e1   :  { %2088 = vmatpush.msra.mxu2 %v6560_v5  ;;  %2112 = vmatpush.msra.mxu3 %v6566_v55  ;;  %vm1679_vm12 = vcmp.eq.f32.partialorder %v1678_v8, 8.507059e+37 }
 0x2e2   :  { %v7046_v53 = vadd.f32 %v1663_v26, %v1642_v15  ;;  %2041 = vmatpush.msra.mxu0 %v6574_v1  ;;  %2065 = vmatpush.msra.mxu1 %v6580_v58  ;;  %v1673_v9 = vadd.f32 %v5249_v32, %v1672_v29  ;;  %v8673_v1 = vld [vmem:[#allocation7_spill] sm:$0xff]  ;;  %v8674_v58 = vld [vmem:[#allocation8_spill] sm:$0xff] }
 0x2e3   :  { %2089 = vmatpush.msra.mxu2 %v6588_v7  ;;  %2113 = vmatpush.msra.mxu3 %v6594_v4  ;;  %v8675_v7 = vld [vmem:[#allocation9_spill] sm:$0xff]  ;;  %v8676_v4 = vld [vmem:[#allocation10_spill] sm:$0xff] }
 0x2e4   :  { %5252 = vtanh.f32 %v7046_v53  ;;  %2042 = vmatpush.msra.mxu0 %v6602_v18  ;;  %2066 = vmatpush.msra.mxu1 %v6608_v0  ;;  %v1677_v61 = vsel %vm1676_vm11, %v5249_v32, %v1673_v9  ;;  %v8677_v18 = vld [vmem:[#allocation11_spill] sm:$0xff]  ;;  %v8678_v0 = vld [vmem:[#allocation12_spill] sm:$0xff] }
 0x2e5   :  { %2090 = vmatpush.msra.mxu2 %v6620_v57  ;;  %2114 = vmatpush.msra.mxu3 %v6626_v63  ;;  %v1682_v59 = vsel %vm1679_vm12, %v1681_v6, %v1677_v61  ;;  %v8679_v57 = vld [vmem:[#allocation13_spill] sm:$0xff]  ;;  %v8680_v63 = vld [vmem:[#allocation14_spill] sm:$0xff]  ;;  %v1910_v61 = vrot.slane %v6987_v11, 7 }
 0x2e6   :  { %2043 = vmatpush.msra.mxu0 %v6635_v23  ;;  %2067 = vmatpush.msra.mxu1 %v6641_v24  ;;  %v8681_v23 = vld [vmem:[#allocation15_spill] sm:$0xff]  ;;  %v8682_v24 = vld [vmem:[#allocation16_spill] sm:$0xff] }
 0x2e7   :  { %2091 = vmatpush.msra.mxu2 %v6647_v27  ;;  %2115 = vmatpush.msra.mxu3 %v6653_v28  ;;  %v8683_v27 = vld [vmem:[#allocation17_spill] sm:$0xff]  ;;  %v8684_v28 = vld [vmem:[#allocation18_spill] sm:$0xff] }
 0x2ea   :  { %v5253_v3 = vpop.eup %5252 }
 0x2eb   :  { %v1685_v5 = vmul.f32 %v5253_v3, %v1682_v59 }
 0x2ed   :  { %1689 = vst.msk [vmem:[#allocation3] sm:$0x10] %vm1688_vm2, %v1685_v5  ;;  %v1791_v55 = vrot.slane %v1685_v5, 4 }
 0x2ef   :  { %4905 = vmatmul.msk.f32.vlgmr.msrb.gmra.mxu0 %vm344_vm14, %v1791_v55  ;;  %4907 = vmatmul.msk.f32.vlgmr.msrb.gmra.mxu1 %vm344_vm14, %v1791_v55 }
 0x2f0   :  { %4909 = vmatmul.msk.f32.vlgmr.msrb.gmra.mxu2 %vm344_vm14, %v1791_v55  ;;  %4911 = vmatmul.msk.f32.vlgmr.msrb.gmra.mxu3 %vm344_vm14, %v1791_v55 }
 0x2f1   :  { %4926 = vmatpush.msk.msrb.mxu0 %vm348_vm1, %v6664_v33  ;;  %4928 = vmatpush.msk.msrb.mxu1 %vm348_vm1, %v6671_v34  ;;  %v8685_v33 = vld [vmem:[#allocation19_spill] sm:$0xff]  ;;  %v8686_v34 = vld [vmem:[#allocation20_spill] sm:$0xff] }
 0x2f2   :  { %4930 = vmatpush.msk.msrb.mxu2 %vm348_vm1, %v6678_v35  ;;  %4932 = vmatpush.msk.msrb.mxu3 %vm348_vm1, %v6685_v38  ;;  %v8687_v35 = vld [vmem:[#allocation21_spill] sm:$0xff]  ;;  %v8688_v38 = vld [vmem:[#allocation22_spill] sm:$0xff] }
 0x2f3   :  { %2138 = vmatpush.msrb.mxu0 %v8673_v1  ;;  %2162 = vmatpush.msrb.mxu1 %v8674_v58 }
 0x2f4   :  { %2186 = vmatpush.msrb.mxu2 %v8675_v7  ;;  %2210 = vmatpush.msrb.mxu3 %v8676_v4  ;;  %v8701_v7 = vld [vmem:[#allocation30_spill] sm:$0xff] }
 0x2f5   :  { %2139 = vmatpush.msrb.mxu0 %v8677_v18  ;;  %2163 = vmatpush.msrb.mxu1 %v8678_v0 }
 0x2f6   :  { %2187 = vmatpush.msrb.mxu2 %v8679_v57  ;;  %2211 = vmatpush.msrb.mxu3 %v8680_v63  ;;  %v8702_v57 = vld [vmem:[#allocation31_spill] sm:$0xff] }
 0x2f7   :  { %2140 = vmatpush.msrb.mxu0 %v8681_v23  ;;  %2164 = vmatpush.msrb.mxu1 %v8682_v24 }
 0x2f8   :  { %2188 = vmatpush.msrb.mxu2 %v8683_v27  ;;  %2212 = vmatpush.msrb.mxu3 %v8684_v28 }
 0x2f9   :  { %2141 = vmatpush.msrb.mxu0 %v8685_v33  ;;  %2165 = vmatpush.msrb.mxu1 %v8686_v34  ;;  %v7175_v33 = vld [vmem:[%s8411_s2 + $0xd8] sm:$0x3] }
 0x2fa   :  { %2189 = vmatpush.msrb.mxu2 %v8687_v35  ;;  %2213 = vmatpush.msrb.mxu3 %v8688_v38 }
 0x2fb   :  { %2142 = vmatpush.msrb.mxu0 %v8689_v42  ;;  %2166 = vmatpush.msrb.mxu1 %v8690_v16 }
 0x2fc   :  { %2190 = vmatpush.msrb.mxu2 %v8691_v21  ;;  %2214 = vmatpush.msrb.mxu3 %v8692_v52 }
 0x2fd   :  { %2143 = vmatpush.msrb.mxu0 %v8693_v62  ;;  %2167 = vmatpush.msrb.mxu1 %v8694_v22 }
 0x2fe   :  { %2191 = vmatpush.msrb.mxu2 %v8695_v60  ;;  %2215 = vmatpush.msrb.mxu3 %v8696_v50 }
 0x355   :  { %v1711_v51 = vpop.f32.mrf.mxu0  ;;  %v1735_v43 = vpop.f32.mrf.mxu1 }
 0x356   :  { %v1715_v56 = vrot.slane %v1711_v51, 4  ;;  %v1739_v25 = vrot.slane %v1735_v43, 4 }
 0x358   :  { %v1717_v31 = vadd.f32 %v1715_v56, %v8697_v19  ;;  %v1741_v30 = vadd.f32 %v1739_v25, %v8698_v44 }
 0x35a   :  { %v4913_v12 = vmul.f32 -1.442695, %v1717_v31  ;;  %v4912_v14 = vmul.f32 -1.442695, %v1741_v30 }
 0x35c   :  { %5254 = vpow2.f32 %v4913_v12  ;;  %v1783_v32 = vpop.f32.mrf.mxu3  ;;  %v1759_v20 = vpop.f32.mrf.mxu2 }
 0x35d   :  { %5256 = vpow2.f32 %v4912_v14  ;;  %v1787_v17 = vrot.slane %v1783_v32, 4  ;;  %v1763_v10 = vrot.slane %v1759_v20, 4 }
 0x35f   :  { %v1789_v41 = vadd.f32 %v1787_v17, %v8699_v49  ;;  %v1765_v48 = vadd.f32 %v1763_v10, %v8700_v47 }
 0x361   :  { %v4914_v36 = vmul.f32 -1.442695, %v1789_v41 }
 0x362   :  { %v5255_v37 = vpop.eup %5254 }
 0x363   :  { %v5257_v39 = vpop.eup %5256  ;;  %v1916_v40 = vadd.f32 1.0, %v5255_v37  ;;  %5258 = vpow2.f32 %v4914_v36 }
 0x364   :  { %v1893_v54 = vadd.f32 1.0, %v5257_v39 }
 0x365   :  { %5260 = vrcp.f32 %v1916_v40  ;;  %v1926_v5 = vand.u32 2147483647, %v1916_v40  ;;  %vm1922_vm4 = vweird.f32 %v1916_v40  ;;  %v1928_v58 = vand.u32 2147483648, %v1916_v40 }
 0x366   :  { %5262 = vrcp.f32 %v1893_v54  ;;  %v1905_v18 = vand.u32 2147483648, %v1893_v54  ;;  %v1903_v24 = vand.u32 2147483647, %v1893_v54  ;;  %vm1899_vm9 = vweird.f32 %v1893_v54 }
 0x367   :  { %vm7111_vm11 = vcmp.eq.f32.partialorder %v1926_v5, 8.507059e+37  ;;  %v1929_v38 = vor.u32 1.1754944e-38, %v1928_v58 }
 0x368   :  { %v1906_v52 = vor.u32 1.1754944e-38, %v1905_v18  ;;  %vm1904_vm13 = vcmp.eq.f32.partialorder %v1903_v24, 8.507059e+37  ;;  %v7158_v24 = vld [vmem:[%s8411_s2 + $0x68] sm:$0x3] }
 0x369   :  { %v5259_v46 = vpop.eup %5258 }
 0x36a   :  { %v7105_v26 = vadd.f32 1.0, %v5259_v46 }
 0x36b   :  { %v5261_v15 = vpop.eup %5260 }
 0x36c   :  { %v5263_v29 = vpop.eup %5262  ;;  %v1918_v9 = vmul.f32 %v5261_v15, %v1916_v40  ;;  %5264 = vrcp.f32 %v7105_v26  ;;  %v1811_v2 = vpop.f32.mrf.mxu0  ;;  %vm1923_vm7 = vweird.f32 %v5261_v15  ;;  %v1950_v37 = vand.u32 2147483648, %v7105_v26 }
 0x36d   :  { %v1835_v8 = vpop.f32.mrf.mxu1  ;;  %v1895_v6 = vmul.f32 %v5263_v29, %v1893_v54  ;;  %v1815_v3 = vrot.slane %v1811_v2, 5  ;;  %5266 = vtanh.f32 %v1765_v48  ;;  %vm1900_vm8 = vweird.f32 %v5263_v29  ;;  %vm1924_vm12 = vmor %vm1922_vm4, %vm1923_vm7 }
 0x36e   :  { %v1919_v59 = vsub.f32 1.0, %v1918_v9  ;;  %v1839_v55 = vrot.slane %v1835_v8, 5  ;;  %vm1901_vm15 = vmor %vm1899_vm9, %vm1900_vm8  ;;  %v1948_v20 = vand.u32 2147483647, %v7105_v26  ;;  %v1951_v46 = vor.u32 1.1754944e-38, %v1950_v37 }
 0x36f   :  { %v1896_v1 = vsub.f32 1.0, %v1895_v6  ;;  %v1817_v4 = vadd.f32 %v1815_v3, %v8701_v7 }
 0x370   :  { %v1920_v0 = vmul.f32 %v5261_v15, %v1919_v59  ;;  %v1841_v63 = vadd.f32 %v1839_v55, %v8702_v57  ;;  %vm1949_vm7 = vcmp.eq.f32.partialorder %v1948_v20, 8.507059e+37  ;;  %v7261_v20 = vld [vmem:[%s8411_s2 + $0x88] sm:$0xff] }
 0x371   :  { %v1897_v23 = vmul.f32 %v5263_v29, %v1896_v1  ;;  %v4916_v11 = vmul.f32 -1.442695, %v1817_v4 }
 0x372   :  { %v5265_v27 = vpop.eup %5264  ;;  %v1921_v28 = vadd.f32 %v5261_v15, %v1920_v0  ;;  %v4915_v34 = vmul.f32 -1.442695, %v1841_v63 }
 0x373   :  { %v1898_v35 = vadd.f32 %v5263_v29, %v1897_v23  ;;  %v1940_v42 = vmul.f32 %v5265_v27, %v7105_v26  ;;  %5268 = vpow2.f32 %v4916_v11  ;;  %v1883_v16 = vpop.f32.mrf.mxu3  ;;  %v5267_v21 = vpop.eup %5266  ;;  %vm1945_vm4 = vweird.f32 %v5265_v27  ;;  %v7151_v23 = vld [vmem:[%s8411_s2 + $0x30] sm:$0x3] }
 0x374   :  { %v1925_v62 = vsel %vm1924_vm12, %v5261_v15, %v1921_v28  ;;  %5270 = vpow2.f32 %v4915_v34  ;;  %v1887_v22 = vrot.slane %v1883_v16, 5  ;;  %v1859_v40 = vpop.f32.mrf.mxu2  ;;  %v7168_v28 = vld [vmem:[%s8411_s2 + $0xa0] sm:$0x3]  ;;  %v7190_v16 = vld [vmem:[%s8411_s2 + $0x28] sm:$0xff] }
 0x375   :  { %v1902_v60 = vsel %vm1901_vm15, %v5263_v29, %v1898_v35  ;;  %v1930_v50 = vsel %vm7111_vm11, %v1929_v38, %v1925_v62  ;;  %v1941_v51 = vsub.f32 1.0, %v1940_v42  ;;  %vm1944_vm15 = vweird.f32 %v7105_v26  ;;  %v7375_v35 = vld [vmem:[%s8414_s5 + $0xa0] sm:$0x3]  ;;  %v7401_v62 = vld [vmem:[%s8414_s5 + $0x98] sm:$0xff] }
 0x376   :  { %v1907_v43 = vsel %vm1904_vm13, %v1906_v52, %v1902_v60  ;;  %v1933_v56 = vmul.f32 %v5267_v21, %v1930_v50  ;;  %v1889_v25 = vadd.f32 %v1887_v22, %v8604_v45  ;;  %vm1946_vm13 = vmor %vm1944_vm15, %vm1945_vm4  ;;  %v1863_v54 = vrot.slane %v1859_v40, 5  ;;  %v7196_v21 = vld [vmem:[%s8411_s2 + $0x60] sm:$0xff]  ;;  %v7210_v50 = vld [vmem:[%s8411_s2 + $0x98] sm:$0xff]  ;;  %8711 = vst [vmem:[#allocation9_spill] sm:$0xff] %v7401_v62 }
 0x377   :  { %v1912_v31 = vmul.f32 %v1910_v61, %v1907_v43  ;;  %v1942_v30 = vmul.f32 %v5265_v27, %v1941_v51  ;;  %v1976_v52 = vrot.slane %v7046_v53, 1  ;;  %v7216_v53 = vld [vmem:[%s8411_s2 + $0xd0] sm:$0xff] }
 0x378   :  { %v4917_v12 = vmul.f32 -1.442695, %v1889_v25  ;;  %v1865_v8 = vadd.f32 %v1863_v54, %v6305_v13  ;;  %v7255_v40 = vld [vmem:[%s8411_s2 + $0x50] sm:$0xff]  ;;  %v7267_v54 = vld [vmem:[%s8411_s2 + $0xc0] sm:$0xff] }
 0x379   :  { %v5269_v14 = vpop.eup %5268  ;;  %v7121_v32 = vadd.f32 %v1933_v56, %v1912_v31  ;;  %v1943_v36 = vadd.f32 %v5265_v27, %v1942_v30  ;;  %v7224_v31 = vld [vmem:[%s8411_s2 + $0x20] sm:$0xff]  ;;  %v7230_v30 = vld [vmem:[%s8411_s2 + $0x58] sm:$0xff] }
 0x37a   :  { %v5271_v17 = vpop.eup %5270  ;;  %v7123_v41 = vadd.f32 1.0, %v5269_v14  ;;  %5272 = vpow2.f32 %v4917_v12 }
 0x37b   :  { %5274 = vtanh.f32 %v7121_v32  ;;  %v7127_v39 = vadd.f32 1.0, %v5271_v17  ;;  %v1947_v10 = vsel %vm1946_vm13, %v5265_v27, %v1943_v36  ;;  %v7236_v17 = vld [vmem:[%s8411_s2 + $0x90] sm:$0xff] }
 0x37c   :  { %5276 = vrcp.f32 %v7123_v41  ;;  %v1952_v9 = vsel %vm1949_vm7, %v1951_v46, %v1947_v10  ;;  %v1994_v1 = vand.u32 2147483648, %v7123_v41  ;;  %v1992_v18 = vand.u32 2147483647, %v7123_v41  ;;  %v7275_v46 = vld [vmem:[%s8411_s2 + $0x10] sm:$0xff] }
 0x37d   :  { %5278 = vrcp.f32 %v7127_v39  ;;  %v1971_v58 = vand.u32 2147483648, %v7127_v39  ;;  %v1969_v63 = vand.u32 2147483647, %v7127_v39  ;;  %vm1988_vm9 = vweird.f32 %v7123_v41 }
 0x37e   :  { %vm1965_vm11 = vweird.f32 %v7127_v39  ;;  %v1995_v38 = vor.u32 1.1754944e-38, %v1994_v1  ;;  %vm1993_vm15 = vcmp.eq.f32.partialorder %v1992_v18, 8.507059e+37  ;;  %v7344_v1 = vld [vmem:[%s8411_s2 + $0x70] sm:$0xff] }
 0x37f   :  { %v1972_v22 = vor.u32 1.1754944e-38, %v1971_v58  ;;  %vm1970_vm13 = vcmp.eq.f32.partialorder %v1969_v63, 8.507059e+37  ;;  %v7350_v58 = vld [vmem:[%s8411_s2 + $0xa8] sm:$0xff] }
 0x380   :  { %v5273_v48 = vpop.eup %5272 }
 0x381   :  { %v5275_v15 = vpop.eup %5274  ;;  %v7133_v29 = vadd.f32 1.0, %v5273_v48  ;;  %v7281_v48 = vld [vmem:[%s8411_s2 + $0x48] sm:$0xff] }
 0x382   :  { %v5277_v2 = vpop.eup %5276  ;;  %v1955_v61 = vmul.f32 %v5275_v15, %v1952_v9  ;;  %v7289_v9 = vld [vmem:[%s8411_s2 + $0x80] sm:$0xff] }
 0x383   :  { %v5279_v6 = vpop.eup %5278  ;;  %v1984_v3 = vmul.f32 %v5277_v2, %v7123_v41  ;;  %5280 = vrcp.f32 %v7133_v29  ;;  %vm1989_vm8 = vweird.f32 %v5277_v2  ;;  %v7242_v41 = vld [vmem:[%s8411_s2 + $0xc8] sm:$0xff] }
 0x384   :  { %v1961_v26 = vmul.f32 %v5279_v6, %v7127_v39  ;;  %2022 = vst.msk [vmem:[#allocation2] sm:$0x10] %vm1688_vm2, %v1955_v61  ;;  %v2025_v59 = vrot.slane %v1955_v61, 4  ;;  %5282 = vtanh.f32 %v1865_v8  ;;  %vm1966_vm2 = vweird.f32 %v5279_v6  ;;  %vm7181_vm12 = vmor %vm1988_vm9, %vm1989_vm8  ;;  %v7249_v39 = vld [vmem:[%s8411_s2 + $0x18] sm:$0xff]  ;;  %v7303_v61 = vld [vmem:[%s8411_s2 + $0x8] sm:$0xff] }
 0x385   :  { %v1985_v5 = vsub.f32 1.0, %v1984_v3  ;;  %vm7201_vm4 = vmor %vm1965_vm11, %vm1966_vm2  ;;  %v2016_v8 = vand.u32 2147483648, %v7133_v29  ;;  %vm2010_vm8 = vweird.f32 %v7133_v29  ;;  %v2014_v3 = vand.u32 2147483647, %v7133_v29 }
 0x386   :  { %v1962_v55 = vsub.f32 1.0, %v1961_v26  ;;  %4919 = vmatmul.msk.f32.vlgmr.msra.gmra.mxu0 %vm344_vm14, %v2025_v59  ;;  %4921 = vmatmul.msk.f32.vlgmr.msra.gmra.mxu1 %vm344_vm14, %v2025_v59  ;;  %v7317_v26 = vld [vmem:[%s8411_s2 + $0x78] sm:$0xff] }
 0x387   :  { %v1986_v4 = vmul.f32 %v5277_v2, %v1985_v5  ;;  %4923 = vmatmul.msk.f32.vlgmr.msra.gmra.mxu2 %vm344_vm14, %v2025_v59  ;;  %4925 = vmatmul.msk.f32.vlgmr.msra.gmra.mxu3 %vm344_vm14, %v2025_v59  ;;  %v7323_v59 = vld [vmem:[%s8411_s2 + $0xb0] sm:$0xff]  ;;  %v7337_v5 = vld [vmem:[%s8411_s2 + $0x38] sm:$0xff]  ;;  %vm2015_vm9 = vcmp.eq.f32.partialorder %v2014_v3, 8.507059e+37 }
 0x388   :  { %v1963_v0 = vmul.f32 %v5279_v6, %v1962_v55  ;;  %4940 = vmatpush.msk.msra.mxu0 %vm348_vm1, %v7151_v23  ;;  %4942 = vmatpush.msk.msra.mxu1 %vm348_vm1, %v7158_v24  ;;  %v7479_v3 = vld [vmem:[%s8414_s5 + $0xb8] sm:$0xff] }
 0x389   :  { %v7162_v11 = vpop.eup %5280  ;;  %v1987_v27 = vadd.f32 %v5277_v2, %v1986_v4  ;;  %4944 = vmatpush.msk.msra.mxu2 %vm348_vm1, %v7168_v28  ;;  %4946 = vmatpush.msk.msra.mxu3 %vm348_vm1, %v7175_v33  ;;  %v2017_v4 = vor.u32 1.1754944e-38, %v2016_v8  ;;  %v7473_v8 = vld [vmem:[%s8414_s5 + $0x80] sm:$0xff]  ;;  %8724 = vst [vmem:[#allocation22_spill] sm:$0xff] %v7479_v3 }
 0x38a   :  { %v1964_v34 = vadd.f32 %v5279_v6, %v1963_v0  ;;  %v2006_v42 = vmul.f32 %v7162_v11, %v7133_v29  ;;  %2372 = vmatpush.msra.mxu0 %v7190_v16  ;;  %2396 = vmatpush.msra.mxu1 %v7196_v21  ;;  %v5283_v51 = vpop.eup %5282  ;;  %vm2011_vm7 = vweird.f32 %v7162_v11  ;;  %v7331_v29 = vld [vmem:[%s8411_s2] sm:$0xff]  ;;  %8723 = vst [vmem:[#allocation21_spill] sm:$0xff] %v7473_v8 }
 0x38b   :  { %v1991_v60 = vsel %vm7181_vm12, %v5277_v2, %v1987_v27  ;;  %2420 = vmatpush.msra.mxu2 %v7210_v50  ;;  %2444 = vmatpush.msra.mxu3 %v7216_v53  ;;  %v7295_v2 = vld [vmem:[%s8411_s2 + $0xb8] sm:$0xff]  ;;  %vm2012_vm2 = vmor %vm2010_vm8, %vm2011_vm7  ;;  %v7361_v27 = vld [vmem:[%s8414_s5 + $0x30] sm:$0x3] }
 0x38c   :  { %v1968_v43 = vsel %vm7201_vm4, %v5279_v6, %v1964_v34  ;;  %v1996_v56 = vsel %vm1993_vm15, %v1995_v38, %v1991_v60  ;;  %v2007_v25 = vsub.f32 1.0, %v2006_v42  ;;  %2373 = vmatpush.msra.mxu0 %v7224_v31  ;;  %2397 = vmatpush.msra.mxu1 %v7230_v30  ;;  %v7309_v6 = vld [vmem:[%s8411_s2 + $0x40] sm:$0xff]  ;;  %v7368_v34 = vld [vmem:[%s8414_s5 + $0x68] sm:$0x3]  ;;  %v7382_v38 = vld [vmem:[%s8414_s5 + $0xd8] sm:$0x3] }
 0x38d   :  { %v1973_v12 = vsel %vm1970_vm13, %v1972_v22, %v1968_v43  ;;  %v1999_v14 = vmul.f32 %v5283_v51, %v1996_v56  ;;  %2421 = vmatpush.msra.mxu2 %v7236_v17  ;;  %2445 = vmatpush.msra.mxu3 %v7242_v41  ;;  %v7389_v42 = vld [vmem:[%s8414_s5 + $0x28] sm:$0xff]  ;;  %v7407_v22 = vld [vmem:[%s8414_s5 + $0xd0] sm:$0xff]  ;;  %v7413_v60 = vld [vmem:[%s8414_s5 + $0x20] sm:$0xff] }
 0x38e   :  { %v1978_v36 = vmul.f32 %v1976_v52, %v1973_v12  ;;  %v2008_v37 = vmul.f32 %v7162_v11, %v2007_v25  ;;  %2374 = vmatpush.msra.mxu0 %v7249_v39  ;;  %2398 = vmatpush.msra.mxu1 %v7255_v40  ;;  %8709 = vst [vmem:[#allocation7_spill] sm:$0xff] %v7389_v42  ;;  %v7395_v52 = vld [vmem:[%s8414_s5 + $0x60] sm:$0xff]  ;;  %v7419_v51 = vld [vmem:[%s8414_s5 + $0x58] sm:$0xff]  ;;  %v7425_v43 = vld [vmem:[%s8414_s5 + $0x90] sm:$0xff] }
 0x38f   :  { %2422 = vmatpush.msra.mxu2 %v7261_v20  ;;  %2446 = vmatpush.msra.mxu3 %v7267_v54  ;;  %8710 = vst [vmem:[#allocation8_spill] sm:$0xff] %v7395_v52  ;;  %v7431_v56 = vld [vmem:[%s8414_s5 + $0xc8] sm:$0xff]  ;;  %v7437_v25 = vld [vmem:[%s8414_s5 + $0x18] sm:$0xff]  ;;  %v7443_v12 = vld [vmem:[%s8414_s5 + $0x50] sm:$0xff] }
 0x390   :  { %v7270_v10 = vadd.f32 %v1999_v14, %v1978_v36  ;;  %2375 = vmatpush.msra.mxu0 %v7275_v46  ;;  %2399 = vmatpush.msra.mxu1 %v7281_v48  ;;  %v2009_v15 = vadd.f32 %v7162_v11, %v2008_v37  ;;  %8712 = vst [vmem:[#allocation10_spill] sm:$0xff] %v7407_v22  ;;  %v7449_v14 = vld [vmem:[%s8414_s5 + $0x88] sm:$0xff]  ;;  %v7455_v36 = vld [vmem:[%s8414_s5 + $0xc0] sm:$0xff]  ;;  %v7461_v37 = vld [vmem:[%s8414_s5 + $0x10] sm:$0xff] }
 0x391   :  { %2423 = vmatpush.msra.mxu2 %v7289_v9  ;;  %2447 = vmatpush.msra.mxu3 %v7295_v2  ;;  %8713 = vst [vmem:[#allocation11_spill] sm:$0xff] %v7413_v60 }
 0x392   :  { %5284 = vtanh.f32 %v7270_v10  ;;  %2376 = vmatpush.msra.mxu0 %v7303_v61  ;;  %2400 = vmatpush.msra.mxu1 %v7309_v6  ;;  %v2013_v55 = vsel %vm2012_vm2, %v7162_v11, %v2009_v15  ;;  %8714 = vst [vmem:[#allocation12_spill] sm:$0xff] %v7419_v51  ;;  %v7467_v15 = vld [vmem:[%s8414_s5 + $0x48] sm:$0xff] }
 0x393   :  { %2424 = vmatpush.msra.mxu2 %v7317_v26  ;;  %2448 = vmatpush.msra.mxu3 %v7323_v59  ;;  %v2018_v0 = vsel %vm2015_vm9, %v2017_v4, %v2013_v55  ;;  %8715 = vst [vmem:[#allocation13_spill] sm:$0xff] %v7425_v43  ;;  %v7485_v55 = vld [vmem:[%s8414_s5 + $0x8] sm:$0xff]  ;;  %v7491_v4 = vld [vmem:[%s8414_s5 + $0x40] sm:$0xff] }
 0x394   :  { %2377 = vmatpush.msra.mxu0 %v7331_v29  ;;  %2401 = vmatpush.msra.mxu1 %v7337_v5  ;;  %8716 = vst [vmem:[#allocation14_spill] sm:$0xff] %v7431_v56 }
 0x395   :  { %2425 = vmatpush.msra.mxu2 %v7344_v1  ;;  %2449 = vmatpush.msra.mxu3 %v7350_v58  ;;  %8717 = vst [vmem:[#allocation15_spill] sm:$0xff] %v7437_v25 }
 0x396   :  { %8718 = vst [vmem:[#allocation16_spill] sm:$0xff] %v7443_v12 }
 0x397   :  { %8719 = vst [vmem:[#allocation17_spill] sm:$0xff] %v7449_v14 }
 0x398   :  { %v5285_v18 = vpop.eup %5284  ;;  %8720 = vst [vmem:[#allocation18_spill] sm:$0xff] %v7455_v36 }
 0x399   :  { %v2021_v63 = vmul.f32 %v5285_v18, %v2018_v0  ;;  %8721 = vst [vmem:[#allocation19_spill] sm:$0xff] %v7461_v37  ;;  %v7497_v18 = vld [vmem:[%s8414_s5 + $0x78] sm:$0xff]  ;;  %v7503_v0 = vld [vmem:[%s8414_s5 + $0xb0] sm:$0xff] }
 0x39a   :  { %8722 = vst [vmem:[#allocation20_spill] sm:$0xff] %v7467_v15 }
 0x39b   :  { %2023 = vst.msk [vmem:[#allocation3] sm:$0x8] %vm1686_vm5, %v2021_v63  ;;  %v2125_v11 = vrot.slane %v2021_v63, 3  ;;  %v7509_v63 = vld [vmem:[%s8414_s5] sm:$0xff] }
 0x39c   :  { %8725 = vst [vmem:[#allocation23_spill] sm:$0xff] %v7485_v55 }
 0x39d   :  { %4927 = vmatmul.msk.f32.vlgmr.msrb.gmra.mxu0 %vm344_vm14, %v2125_v11  ;;  %4929 = vmatmul.msk.f32.vlgmr.msrb.gmra.mxu1 %vm344_vm14, %v2125_v11  ;;  %8726 = vst [vmem:[#allocation24_spill] sm:$0xff] %v7491_v4 }
 0x39e   :  { %4931 = vmatmul.msk.f32.vlgmr.msrb.gmra.mxu2 %vm344_vm14, %v2125_v11  ;;  %4933 = vmatmul.msk.f32.vlgmr.msrb.gmra.mxu3 %vm344_vm14, %v2125_v11  ;;  %8727 = vst [vmem:[#allocation25_spill] sm:$0xff] %v7497_v18  ;;  %v7515_v11 = vld [vmem:[%s8414_s5 + $0x38] sm:$0xff] }
 0x39f   :  { %4948 = vmatpush.msk.msrb.mxu0 %vm348_vm1, %v7361_v27  ;;  %4950 = vmatpush.msk.msrb.mxu1 %vm348_vm1, %v7368_v34  ;;  %8728 = vst [vmem:[#allocation32_spill] sm:$0xff] %v7503_v0 }
 0x3a0   :  { %4952 = vmatpush.msk.msrb.mxu2 %vm348_vm1, %v7375_v35  ;;  %4954 = vmatpush.msk.msrb.mxu3 %vm348_vm1, %v7382_v38  ;;  %8729 = vst [vmem:[#allocation33_spill] sm:$0xff] %v7509_v63 }
 0x3a1   :  { %2472 = vmatpush.msrb.mxu0 %v7389_v42  ;;  %2496 = vmatpush.msrb.mxu1 %v7395_v52  ;;  %8730 = vst [vmem:[#allocation34_spill] sm:$0xff] %v7515_v11 }
 0x3a2   :  { %2520 = vmatpush.msrb.mxu2 %v7401_v62  ;;  %2544 = vmatpush.msrb.mxu3 %v7407_v22 }
 0x3a3   :  { %2473 = vmatpush.msrb.mxu0 %v7413_v60  ;;  %2497 = vmatpush.msrb.mxu1 %v7419_v51 }
 0x3a4   :  { %2521 = vmatpush.msrb.mxu2 %v7425_v43  ;;  %2545 = vmatpush.msrb.mxu3 %v7431_v56 }
 0x3a5   :  { %2474 = vmatpush.msrb.mxu0 %v7437_v25  ;;  %2498 = vmatpush.msrb.mxu1 %v7443_v12 }
 0x3a6   :  { %2522 = vmatpush.msrb.mxu2 %v7449_v14  ;;  %2546 = vmatpush.msrb.mxu3 %v7455_v36 }
 0x3a7   :  { %2475 = vmatpush.msrb.mxu0 %v7461_v37  ;;  %2499 = vmatpush.msrb.mxu1 %v7467_v15 }
 0x3a8   :  { %2523 = vmatpush.msrb.mxu2 %v7473_v8  ;;  %2547 = vmatpush.msrb.mxu3 %v7479_v3 }
 0x3a9   :  { %2476 = vmatpush.msrb.mxu0 %v7485_v55  ;;  %2500 = vmatpush.msrb.mxu1 %v7491_v4 }
 0x3aa   :  { %2524 = vmatpush.msrb.mxu2 %v7497_v18  ;;  %2548 = vmatpush.msrb.mxu3 %v7503_v0  ;;  %v7521_v18 = vld [vmem:[%s8414_s5 + $0x70] sm:$0xff]  ;;  %v7527_v0 = vld [vmem:[%s8414_s5 + $0xa8] sm:$0xff] }
 0x3ab   :  { %2477 = vmatpush.msrb.mxu0 %v7509_v63  ;;  %2501 = vmatpush.msrb.mxu1 %v7515_v11  ;;  %8731 = vst [vmem:[#allocation35_spill] sm:$0xff] %v7521_v18 }
 0x3ac   :  { %2525 = vmatpush.msrb.mxu2 %v7521_v18  ;;  %8732 = vst [vmem:[#allocation36_spill] sm:$0xff] %v7527_v0  ;;  %2549 = vmatpush.msrb.mxu3 %v7527_v0 }
 0x403   :  { %v2045_v63 = vpop.f32.mrf.mxu0  ;;  %v2069_v4 = vpop.f32.mrf.mxu1 }
 0x404   :  { %v2049_v55 = vrot.slane %v2045_v63, 3  ;;  %v2073_v3 = vrot.slane %v2069_v4, 3 }
 0x406   :  { %v2051_v11 = vadd.f32 %v2049_v55, %v8697_v19  ;;  %v2075_v8 = vadd.f32 %v2073_v3, %v8698_v44 }
 0x408   :  { %v4935_v15 = vmul.f32 -1.442695, %v2051_v11  ;;  %v4934_v37 = vmul.f32 -1.442695, %v2075_v8 }
 0x40a   :  { %5286 = vpow2.f32 %v4935_v15  ;;  %v2117_v36 = vpop.f32.mrf.mxu3  ;;  %v2093_v43 = vpop.f32.mrf.mxu2 }
 0x40b   :  { %5288 = vpow2.f32 %v4934_v37  ;;  %v2121_v18 = vrot.slane %v2117_v36, 3  ;;  %v2097_v55 = vrot.slane %v2093_v43, 3 }
 0x40d   :  { %v2123_v14 = vadd.f32 %v2121_v18, %v8699_v49  ;;  %v2099_v3 = vadd.f32 %v2097_v55, %v8700_v47 }
 0x40f   :  { %v4936_v12 = vmul.f32 -1.442695, %v2123_v14 }
 0x410   :  { %v5287_v25 = vpop.eup %5286 }
 0x411   :  { %v5289_v56 = vpop.eup %5288  ;;  %v2250_v0 = vadd.f32 1.0, %v5287_v25  ;;  %5290 = vpow2.f32 %v4936_v12  ;;  %v2244_v25 = vrot.slane %v7121_v32, 7 }
 0x412   :  { %v2227_v63 = vadd.f32 1.0, %v5289_v56 }
 0x413   :  { %5292 = vrcp.f32 %v2250_v0  ;;  %v2260_v49 = vand.u32 2147483647, %v2250_v0  ;;  %vm2256_vm5 = vweird.f32 %v2250_v0  ;;  %v2262_v55 = vand.u32 2147483648, %v2250_v0 }
 0x414   :  { %5294 = vrcp.f32 %v2227_v63  ;;  %v2239_v47 = vand.u32 2147483648, %v2227_v63  ;;  %v2237_v22 = vand.u32 2147483647, %v2227_v63  ;;  %vm2233_vm4 = vweird.f32 %v2227_v63 }
 0x415   :  { %vm7540_vm15 = vcmp.eq.f32.partialorder %v2260_v49, 8.507059e+37 }
 0x416   :  { %vm2238_vm8 = vcmp.eq.f32.partialorder %v2237_v22, 8.507059e+37 }
 0x417   :  { %v5291_v4 = vpop.eup %5290 }
 0x418   :  { %v7534_v8 = vadd.f32 1.0, %v5291_v4 }
 0x419   :  { %v5293_v15 = vpop.eup %5292 }
 0x41a   :  { %v5295_v37 = vpop.eup %5294  ;;  %v2252_v36 = vmul.f32 %v5293_v15, %v2250_v0  ;;  %5296 = vrcp.f32 %v7534_v8  ;;  %v2145_v14 = vpop.f32.mrf.mxu0  ;;  %vm2257_vm11 = vweird.f32 %v5293_v15  ;;  %vm2278_vm9 = vweird.f32 %v7534_v8 }
 0x41b   :  { %v2169_v18 = vpop.f32.mrf.mxu1  ;;  %v2229_v11 = vmul.f32 %v5295_v37, %v2227_v63  ;;  %v2149_v12 = vrot.slane %v2145_v14, 6  ;;  %5298 = vtanh.f32 %v2099_v3  ;;  %vm2234_vm12 = vweird.f32 %v5295_v37  ;;  %vm2258_vm13 = vmor %vm2256_vm5, %vm2257_vm11 }
 0x41c   :  { %v2253_v56 = vsub.f32 1.0, %v2252_v36  ;;  %v2173_v43 = vrot.slane %v2169_v18, 6  ;;  %vm2235_vm7 = vmor %vm2233_vm4, %vm2234_vm12 }
 0x41d   :  { %v2230_v44 = vsub.f32 1.0, %v2229_v11  ;;  %v2151_v4 = vadd.f32 %v2149_v12, %v8701_v7  ;;  %v2263_v11 = vor.u32 1.1754944e-38, %v2262_v55 }
 0x41e   :  { %v2254_v19 = vmul.f32 %v5293_v15, %v2253_v56  ;;  %v2175_v51 = vadd.f32 %v2173_v43, %v8702_v57  ;;  %v2240_v43 = vor.u32 1.1754944e-38, %v2239_v47 }
 0x41f   :  { %v2231_v60 = vmul.f32 %v5295_v37, %v2230_v44  ;;  %v4938_v32 = vmul.f32 -1.442695, %v2151_v4 }
 0x420   :  { %v5297_v62 = vpop.eup %5296  ;;  %v2255_v36 = vadd.f32 %v5293_v15, %v2254_v19  ;;  %v4937_v14 = vmul.f32 -1.442695, %v2175_v51 }
 0x421   :  { %v2232_v18 = vadd.f32 %v5295_v37, %v2231_v60  ;;  %v2274_v12 = vmul.f32 %v5297_v62, %v7534_v8  ;;  %5300 = vpow2.f32 %v4938_v32  ;;  %v2217_v56 = vpop.f32.mrf.mxu3  ;;  %v5299_v44 = vpop.eup %5298  ;;  %vm2279_vm2 = vweird.f32 %v5297_v62 }
 0x422   :  { %v2259_v4 = vsel %vm2258_vm13, %v5293_v15, %v2255_v36  ;;  %5302 = vpow2.f32 %v4937_v14  ;;  %v2221_v19 = vrot.slane %v2217_v56, 6  ;;  %v2193_v3 = vpop.f32.mrf.mxu2  ;;  %vm2280_vm5 = vmor %vm2278_vm9, %vm2279_vm2 }
 0x423   :  { %v2236_v49 = vsel %vm2235_vm7, %v5295_v37, %v2232_v18  ;;  %v2264_v51 = vsel %vm7540_vm15, %v2263_v11, %v2259_v4  ;;  %v2275_v60 = vsub.f32 1.0, %v2274_v12  ;;  %v2284_v37 = vand.u32 2147483648, %v7534_v8 }
 0x424   :  { %v2241_v0 = vsel %vm2238_vm8, %v2240_v43, %v2236_v49  ;;  %v2267_v63 = vmul.f32 %v5299_v44, %v2264_v51  ;;  %v2223_v55 = vadd.f32 %v2221_v19, %v8604_v45 }
 0x425   :  { %v2246_v57 = vmul.f32 %v2244_v25, %v2241_v0  ;;  %v2276_v32 = vmul.f32 %v5297_v62, %v2275_v60 }
 0x426   :  { %v4939_v7 = vmul.f32 -1.442695, %v2223_v55 }
 0x427   :  { %v5301_v52 = vpop.eup %5300  ;;  %v7550_v42 = vadd.f32 %v2267_v63, %v2246_v57  ;;  %v2277_v22 = vadd.f32 %v5297_v62, %v2276_v32  ;;  %v2282_v57 = vand.u32 2147483647, %v7534_v8 }
 0x428   :  { %v5303_v47 = vpop.eup %5302  ;;  %v7552_v15 = vadd.f32 1.0, %v5301_v52  ;;  %5304 = vpow2.f32 %v4939_v7  ;;  %v2197_v52 = vrot.slane %v2193_v3, 6  ;;  %v2285_v7 = vor.u32 1.1754944e-38, %v2284_v37 }
 0x429   :  { %5306 = vtanh.f32 %v7550_v42  ;;  %v7556_v36 = vadd.f32 1.0, %v5303_v47  ;;  %v2281_v25 = vsel %vm2280_vm5, %v5297_v62, %v2277_v22  ;;  %vm2283_vm11 = vcmp.eq.f32.partialorder %v2282_v57, 8.507059e+37 }
 0x42a   :  { %5308 = vrcp.f32 %v7552_v15  ;;  %v2286_v12 = vsel %vm2283_vm11, %v2285_v7, %v2281_v25  ;;  %v2199_v44 = vadd.f32 %v2197_v52, %v6305_v13  ;;  %v2328_v60 = vand.u32 2147483648, %v7552_v15 }
 0x42b   :  { %5310 = vrcp.f32 %v7556_v36  ;;  %v2305_v0 = vand.u32 2147483648, %v7556_v36  ;;  %v2326_v55 = vand.u32 2147483647, %v7552_v15  ;;  %v2303_v47 = vand.u32 2147483647, %v7556_v36 }
 0x42c   :  { %vm2322_vm4 = vweird.f32 %v7552_v15  ;;  %vm2299_vm15 = vweird.f32 %v7556_v36 }
 0x42d   :  { %vm2327_vm8 = vcmp.eq.f32.partialorder %v2326_v55, 8.507059e+37  ;;  %vm2304_vm2 = vcmp.eq.f32.partialorder %v2303_v47, 8.507059e+37 }
 0x42e   :  { %v5305_v14 = vpop.eup %5304 }
 0x42f   :  { %v5307_v18 = vpop.eup %5306  ;;  %v7562_v11 = vadd.f32 1.0, %v5305_v14 }
 0x430   :  { %v5309_v56 = vpop.eup %5308  ;;  %v2289_v43 = vmul.f32 %v5307_v18, %v2286_v12  ;;  %v8753_v18 = vld [vmem:[#allocation23_spill] sm:$0xff]  ;;  %v8755_v12 = vld [vmem:[#allocation25_spill] sm:$0xff] }
 0x431   :  { %v5311_v4 = vpop.eup %5310  ;;  %v2318_v19 = vmul.f32 %v5309_v56, %v7552_v15  ;;  %5312 = vrcp.f32 %v7562_v11  ;;  %vm2323_vm12 = vweird.f32 %v5309_v56  ;;  %vm2344_vm5 = vweird.f32 %v7562_v11 }
 0x432   :  { %v2295_v8 = vmul.f32 %v5311_v4, %v7556_v36  ;;  %2356 = vst.msk [vmem:[#allocation2] sm:$0x20] %vm1352_vm10, %v2289_v43  ;;  %v2359_v62 = vrot.slane %v2289_v43, 5  ;;  %5314 = vtanh.f32 %v2199_v44  ;;  %vm2300_vm10 = vweird.f32 %v5311_v4  ;;  %vm7588_vm13 = vmor %vm2322_vm4, %vm2323_vm12  ;;  %v8757_v44 = vld [vmem:[#allocation33_spill] sm:$0xff]  ;;  %v8758_v43 = vld [vmem:[#allocation34_spill] sm:$0xff] }
 0x433   :  { %v2319_v49 = vsub.f32 1.0, %v2318_v19  ;;  %vm2301_vm7 = vmor %vm2299_vm15, %vm2300_vm10  ;;  %v8760_v19 = vld [vmem:[#allocation36_spill] sm:$0xff] }
 0x434   :  { %v2296_v51 = vsub.f32 1.0, %v2295_v8  ;;  %4941 = vmatmul.msk.f32.vlgmr.msra.gmra.mxu0 %vm344_vm14, %v2359_v62  ;;  %4943 = vmatmul.msk.f32.vlgmr.msra.gmra.mxu1 %vm344_vm14, %v2359_v62 }
 0x435   :  { %v2320_v63 = vmul.f32 %v5309_v56, %v2319_v49  ;;  %4945 = vmatmul.msk.f32.vlgmr.msra.gmra.mxu2 %vm344_vm14, %v2359_v62  ;;  %4947 = vmatmul.msk.f32.vlgmr.msra.gmra.mxu3 %vm344_vm14, %v2359_v62 }
 0x436   :  { %v2297_v32 = vmul.f32 %v5311_v4, %v2296_v51  ;;  %4962 = vmatpush.msk.msra.mxu0 %vm348_vm1, %v7151_v23  ;;  %4964 = vmatpush.msk.msra.mxu1 %vm348_vm1, %v7158_v24  ;;  %v2329_v23 = vor.u32 1.1754944e-38, %v2328_v60  ;;  %v8761_v60 = vld [vmem:[#allocation26_spill] sm:$0xff] }
 0x437   :  { %v5313_v22 = vpop.eup %5312  ;;  %v2321_v37 = vadd.f32 %v5309_v56, %v2320_v63  ;;  %4966 = vmatpush.msk.msra.mxu2 %vm348_vm1, %v7168_v28  ;;  %4968 = vmatpush.msk.msra.mxu3 %vm348_vm1, %v7175_v33  ;;  %v2310_v28 = vrot.slane %v7270_v10, 1  ;;  %v2306_v33 = vor.u32 1.1754944e-38, %v2305_v0  ;;  %v8762_v63 = vld [vmem:[#allocation27_spill] sm:$0xff] }
 0x438   :  { %v2298_v3 = vadd.f32 %v5311_v4, %v2297_v32  ;;  %v2340_v24 = vmul.f32 %v5313_v22, %v7562_v11  ;;  %2706 = vmatpush.msra.mxu0 %v7190_v16  ;;  %2730 = vmatpush.msra.mxu1 %v7196_v21  ;;  %v5315_v36 = vpop.eup %5314  ;;  %vm2345_vm9 = vweird.f32 %v5313_v22 }
 0x439   :  { %v2325_v15 = vsel %vm7588_vm13, %v5309_v56, %v2321_v37  ;;  %2754 = vmatpush.msra.mxu2 %v7210_v50  ;;  %2778 = vmatpush.msra.mxu3 %v7216_v53  ;;  %vm2346_vm11 = vmor %vm2344_vm5, %vm2345_vm9  ;;  %v8756_v56 = vld [vmem:[#allocation32_spill] sm:$0xff] }
 0x43a   :  { %v2302_v52 = vsel %vm2301_vm7, %v5311_v4, %v2298_v3  ;;  %v2330_v25 = vsel %vm2327_vm8, %v2329_v23, %v2325_v15  ;;  %v2341_v16 = vsub.f32 1.0, %v2340_v24  ;;  %2707 = vmatpush.msra.mxu0 %v7224_v31  ;;  %2731 = vmatpush.msra.mxu1 %v7230_v30  ;;  %v2350_v31 = vand.u32 2147483648, %v7562_v11  ;;  %v8759_v4 = vld [vmem:[#allocation35_spill] sm:$0xff]  ;;  %v8763_v3 = vld [vmem:[#allocation28_spill] sm:$0xff] }
 0x43b   :  { %v2307_v21 = vsel %vm2304_vm2, %v2306_v33, %v2302_v52  ;;  %v2333_v10 = vmul.f32 %v5315_v36, %v2330_v25  ;;  %2755 = vmatpush.msra.mxu2 %v7236_v17  ;;  %2779 = vmatpush.msra.mxu3 %v7242_v41  ;;  %v2348_v30 = vand.u32 2147483647, %v7562_v11  ;;  %v8754_v11 = vld [vmem:[#allocation24_spill] sm:$0xff] }
 0x43c   :  { %v2312_v7 = vmul.f32 %v2310_v28, %v2307_v21  ;;  %v2342_v14 = vmul.f32 %v5313_v22, %v2341_v16  ;;  %2708 = vmatpush.msra.mxu0 %v7249_v39  ;;  %2732 = vmatpush.msra.mxu1 %v7255_v40  ;;  %v2351_v41 = vor.u32 1.1754944e-38, %v2350_v31  ;;  %v8764_v16 = vld [vmem:[#allocation29_spill] sm:$0xff] }
 0x43d   :  { %2756 = vmatpush.msra.mxu2 %v7261_v20  ;;  %2780 = vmatpush.msra.mxu3 %v7267_v54  ;;  %vm2349_vm12 = vcmp.eq.f32.partialorder %v2348_v30, 8.507059e+37 }
 0x43e   :  { %v7609_v50 = vadd.f32 %v2333_v10, %v2312_v7  ;;  %2709 = vmatpush.msra.mxu0 %v7275_v46  ;;  %2733 = vmatpush.msra.mxu1 %v7281_v48  ;;  %v2343_v53 = vadd.f32 %v5313_v22, %v2342_v14  ;;  %v8737_v46 = vld [vmem:[#allocation7_spill] sm:$0xff]  ;;  %v8738_v48 = vld [vmem:[#allocation8_spill] sm:$0xff] }
 0x43f   :  { %2757 = vmatpush.msra.mxu2 %v7289_v9  ;;  %2781 = vmatpush.msra.mxu3 %v7295_v2  ;;  %v8739_v9 = vld [vmem:[#allocation9_spill] sm:$0xff]  ;;  %v8740_v2 = vld [vmem:[#allocation10_spill] sm:$0xff] }
 0x440   :  { %5316 = vtanh.f32 %v7609_v50  ;;  %2710 = vmatpush.msra.mxu0 %v7303_v61  ;;  %2734 = vmatpush.msra.mxu1 %v7309_v6  ;;  %v2347_v17 = vsel %vm2346_vm11, %v5313_v22, %v2343_v53  ;;  %v8741_v61 = vld [vmem:[#allocation11_spill] sm:$0xff]  ;;  %v8742_v6 = vld [vmem:[#allocation12_spill] sm:$0xff] }
 0x441   :  { %2758 = vmatpush.msra.mxu2 %v7317_v26  ;;  %2782 = vmatpush.msra.mxu3 %v7323_v59  ;;  %v2352_v40 = vsel %vm2349_vm12, %v2351_v41, %v2347_v17  ;;  %v8743_v26 = vld [vmem:[#allocation13_spill] sm:$0xff]  ;;  %v8744_v59 = vld [vmem:[#allocation14_spill] sm:$0xff]  ;;  %v2578_v17 = vrot.slane %v7550_v42, 7 }
 0x442   :  { %2711 = vmatpush.msra.mxu0 %v7331_v29  ;;  %2735 = vmatpush.msra.mxu1 %v7337_v5  ;;  %v8745_v29 = vld [vmem:[#allocation15_spill] sm:$0xff]  ;;  %v8746_v5 = vld [vmem:[#allocation16_spill] sm:$0xff] }
 0x443   :  { %2759 = vmatpush.msra.mxu2 %v7344_v1  ;;  %2783 = vmatpush.msra.mxu3 %v7350_v58  ;;  %v8747_v1 = vld [vmem:[#allocation17_spill] sm:$0xff]  ;;  %v8748_v58 = vld [vmem:[#allocation18_spill] sm:$0xff] }
 0x446   :  { %v5317_v39 = vpop.eup %5316 }
 0x447   :  { %v2355_v20 = vmul.f32 %v5317_v39, %v2352_v40 }
 0x449   :  { %2357 = vst.msk [vmem:[#allocation3] sm:$0x4] %vm1350_vm6, %v2355_v20  ;;  %v2459_v54 = vrot.slane %v2355_v20, 2 }
 0x44b   :  { %4949 = vmatmul.msk.f32.vlgmr.msrb.gmra.mxu0 %vm344_vm14, %v2459_v54  ;;  %4951 = vmatmul.msk.f32.vlgmr.msrb.gmra.mxu1 %vm344_vm14, %v2459_v54 }
 0x44c   :  { %4953 = vmatmul.msk.f32.vlgmr.msrb.gmra.mxu2 %vm344_vm14, %v2459_v54  ;;  %4955 = vmatmul.msk.f32.vlgmr.msrb.gmra.mxu3 %vm344_vm14, %v2459_v54 }
 0x44d   :  { %4970 = vmatpush.msk.msrb.mxu0 %vm348_vm1, %v7361_v27  ;;  %4972 = vmatpush.msk.msrb.mxu1 %vm348_vm1, %v7368_v34  ;;  %v8749_v27 = vld [vmem:[#allocation19_spill] sm:$0xff]  ;;  %v8750_v34 = vld [vmem:[#allocation20_spill] sm:$0xff] }
 0x44e   :  { %4974 = vmatpush.msk.msrb.mxu2 %vm348_vm1, %v7375_v35  ;;  %4976 = vmatpush.msk.msrb.mxu3 %vm348_vm1, %v7382_v38  ;;  %v8751_v35 = vld [vmem:[#allocation21_spill] sm:$0xff]  ;;  %v8752_v38 = vld [vmem:[#allocation22_spill] sm:$0xff] }
 0x44f   :  { %2806 = vmatpush.msrb.mxu0 %v8737_v46  ;;  %2827 = vmatpush.msrb.mxu1 %v8738_v48 }
 0x450   :  { %2848 = vmatpush.msrb.mxu2 %v8739_v9  ;;  %2869 = vmatpush.msrb.mxu3 %v8740_v2  ;;  %v8765_v9 = vld [vmem:[#allocation30_spill] sm:$0xff] }
 0x451   :  { %2807 = vmatpush.msrb.mxu0 %v8741_v61  ;;  %2828 = vmatpush.msrb.mxu1 %v8742_v6 }
 0x452   :  { %2849 = vmatpush.msrb.mxu2 %v8743_v26  ;;  %2870 = vmatpush.msrb.mxu3 %v8744_v59  ;;  %v8766_v26 = vld [vmem:[#allocation31_spill] sm:$0xff] }
 0x453   :  { %2808 = vmatpush.msrb.mxu0 %v8745_v29  ;;  %2829 = vmatpush.msrb.mxu1 %v8746_v5 }
 0x454   :  { %2850 = vmatpush.msrb.mxu2 %v8747_v1  ;;  %2871 = vmatpush.msrb.mxu3 %v8748_v58 }
 0x455   :  { %2809 = vmatpush.msrb.mxu0 %v8749_v27  ;;  %2830 = vmatpush.msrb.mxu1 %v8750_v34  ;;  %v2644_v27 = vrot.slane %v7609_v50, 1 }
 0x456   :  { %2851 = vmatpush.msrb.mxu2 %v8751_v35  ;;  %2872 = vmatpush.msrb.mxu3 %v8752_v38 }
 0x457   :  { %2810 = vmatpush.msrb.mxu0 %v8753_v18  ;;  %2831 = vmatpush.msrb.mxu1 %v8754_v11 }
 0x458   :  { %2852 = vmatpush.msrb.mxu2 %v8755_v12  ;;  %2873 = vmatpush.msrb.mxu3 %v8756_v56 }
 0x459   :  { %2811 = vmatpush.msrb.mxu0 %v8757_v44  ;;  %2832 = vmatpush.msrb.mxu1 %v8758_v43 }
 0x45a   :  { %2853 = vmatpush.msrb.mxu2 %v8759_v4  ;;  %2874 = vmatpush.msrb.mxu3 %v8760_v19 }
 0x4b1   :  { %v2379_v8 = vpop.f32.mrf.mxu0  ;;  %v2403_v62 = vpop.f32.mrf.mxu1 }
 0x4b2   :  { %v2383_v49 = vrot.slane %v2379_v8, 2  ;;  %v2407_v51 = vrot.slane %v2403_v62, 2 }
 0x4b4   :  { %v2385_v0 = vadd.f32 %v2383_v49, %v8761_v60  ;;  %v2409_v55 = vadd.f32 %v2407_v51, %v8762_v63 }
 0x4b6   :  { %v4957_v32 = vmul.f32 -1.442695, %v2385_v0  ;;  %v4956_v47 = vmul.f32 -1.442695, %v2409_v55 }
 0x4b8   :  { %5318 = vpow2.f32 %v4957_v32  ;;  %v2451_v22 = vpop.f32.mrf.mxu3  ;;  %v2427_v15 = vpop.f32.mrf.mxu2 }
 0x4b9   :  { %5320 = vpow2.f32 %v4956_v47  ;;  %v2455_v37 = vrot.slane %v2451_v22, 2  ;;  %v2431_v52 = vrot.slane %v2427_v15, 2 }
 0x4bb   :  { %v2457_v57 = vadd.f32 %v2455_v37, %v8763_v3  ;;  %v2433_v21 = vadd.f32 %v2431_v52, %v8764_v16 }
 0x4bd   :  { %v4958_v23 = vmul.f32 -1.442695, %v2457_v57 }
 0x4be   :  { %v5319_v24 = vpop.eup %5318 }
 0x4bf   :  { %v5321_v28 = vpop.eup %5320  ;;  %v2584_v33 = vadd.f32 1.0, %v5319_v24  ;;  %5322 = vpow2.f32 %v4958_v23 }
 0x4c0   :  { %v2561_v36 = vadd.f32 1.0, %v5321_v28 }
 0x4c1   :  { %5324 = vrcp.f32 %v2584_v33  ;;  %v2594_v20 = vand.u32 2147483647, %v2584_v33  ;;  %vm2590_vm6 = vweird.f32 %v2584_v33  ;;  %v2596_v48 = vand.u32 2147483648, %v2584_v33 }
 0x4c2   :  { %5326 = vrcp.f32 %v2561_v36  ;;  %v2573_v61 = vand.u32 2147483648, %v2561_v36  ;;  %v2571_v5 = vand.u32 2147483647, %v2561_v36  ;;  %vm2567_vm15 = vweird.f32 %v2561_v36 }
 0x4c3   :  { %vm7674_vm13 = vcmp.eq.f32.partialorder %v2594_v20, 8.507059e+37  ;;  %v2597_v38 = vor.u32 1.1754944e-38, %v2596_v48 }
 0x4c4   :  { %v2574_v56 = vor.u32 1.1754944e-38, %v2573_v61  ;;  %vm2572_vm2 = vcmp.eq.f32.partialorder %v2571_v5, 8.507059e+37 }
 0x4c5   :  { %v5323_v25 = vpop.eup %5322 }
 0x4c6   :  { %v7668_v10 = vadd.f32 1.0, %v5323_v25 }
 0x4c7   :  { %v5325_v7 = vpop.eup %5324 }
 0x4c8   :  { %v5327_v14 = vpop.eup %5326  ;;  %v2586_v53 = vmul.f32 %v5325_v7, %v2584_v33  ;;  %5328 = vrcp.f32 %v7668_v10  ;;  %v2479_v31 = vpop.f32.mrf.mxu0  ;;  %vm2591_vm10 = vweird.f32 %v5325_v7  ;;  %v2618_v24 = vand.u32 2147483648, %v7668_v10 }
 0x4c9   :  { %v2503_v30 = vpop.f32.mrf.mxu1  ;;  %v2563_v41 = vmul.f32 %v5327_v14, %v2561_v36  ;;  %v2483_v39 = vrot.slane %v2479_v31, 7  ;;  %5330 = vtanh.f32 %v2433_v21  ;;  %vm2568_vm4 = vweird.f32 %v5327_v14  ;;  %vm2592_vm7 = vmor %vm2590_vm6, %vm2591_vm10 }
 0x4ca   :  { %v2587_v40 = vsub.f32 1.0, %v2586_v53  ;;  %v2507_v54 = vrot.slane %v2503_v30, 7  ;;  %vm2569_vm8 = vmor %vm2567_vm15, %vm2568_vm4  ;;  %vm2612_vm5 = vweird.f32 %v7668_v10  ;;  %v2616_v15 = vand.u32 2147483647, %v7668_v10 }
 0x4cb   :  { %v2564_v46 = vsub.f32 1.0, %v2563_v41  ;;  %v2485_v2 = vadd.f32 %v2483_v39, %v8765_v9  ;;  %v2619_v25 = vor.u32 1.1754944e-38, %v2618_v24 }
 0x4cc   :  { %v2588_v6 = vmul.f32 %v5325_v7, %v2587_v40  ;;  %v2509_v59 = vadd.f32 %v2507_v54, %v8766_v26  ;;  %vm2617_vm12 = vcmp.eq.f32.partialorder %v2616_v15, 8.507059e+37 }
 0x4cd   :  { %v2565_v29 = vmul.f32 %v5327_v14, %v2564_v46  ;;  %v4960_v42 = vmul.f32 -1.442695, %v2485_v2 }
 0x4ce   :  { %v5329_v1 = vpop.eup %5328  ;;  %v2589_v58 = vadd.f32 %v5325_v7, %v2588_v6  ;;  %v4959_v34 = vmul.f32 -1.442695, %v2509_v59 }
 0x4cf   :  { %v2566_v35 = vadd.f32 %v5327_v14, %v2565_v29  ;;  %v2608_v18 = vmul.f32 %v5329_v1, %v7668_v10  ;;  %5332 = vpow2.f32 %v4960_v42  ;;  %v2551_v11 = vpop.f32.mrf.mxu3  ;;  %v5331_v12 = vpop.eup %5330  ;;  %vm2613_vm9 = vweird.f32 %v5329_v1 }
 0x4d0   :  { %v2593_v44 = vsel %vm2592_vm7, %v5325_v7, %v2589_v58  ;;  %5334 = vpow2.f32 %v4959_v34  ;;  %v2555_v43 = vrot.slane %v2551_v11, 7  ;;  %v2527_v33 = vpop.f32.mrf.mxu2  ;;  %vm2614_vm11 = vmor %vm2612_vm5, %vm2613_vm9 }
 0x4d1   :  { %v2570_v4 = vsel %vm2569_vm8, %v5327_v14, %v2566_v35  ;;  %v2598_v19 = vsel %vm7674_vm13, %v2597_v38, %v2593_v44  ;;  %v2609_v8 = vsub.f32 1.0, %v2608_v18  ;;  %v2531_v36 = vrot.slane %v2527_v33, 7 }
 0x4d2   :  { %v2575_v62 = vsel %vm2572_vm2, %v2574_v56, %v2570_v4  ;;  %v2601_v49 = vmul.f32 %v5331_v12, %v2598_v19  ;;  %v2557_v51 = vadd.f32 %v2555_v43, %v8604_v45 }
 0x4d3   :  { %v2580_v0 = vmul.f32 %v2578_v17, %v2575_v62  ;;  %v2610_v55 = vmul.f32 %v5329_v1, %v2609_v8  ;;  %v2533_v30 = vadd.f32 %v2531_v36, %v6305_v13 }
 0x4d4   :  { %v4961_v32 = vmul.f32 -1.442695, %v2557_v51 }
 0x4d5   :  { %v5333_v47 = vpop.eup %5332  ;;  %v7684_v22 = vadd.f32 %v2601_v49, %v2580_v0  ;;  %v2611_v23 = vadd.f32 %v5329_v1, %v2610_v55 }
 0x4d6   :  { %v5335_v37 = vpop.eup %5334  ;;  %v2650_v57 = vadd.f32 1.0, %v5333_v47  ;;  %5336 = vpow2.f32 %v4961_v32 }
 0x4d7   :  { %5338 = vtanh.f32 %v7684_v22  ;;  %v2627_v28 = vadd.f32 1.0, %v5335_v37  ;;  %v2615_v52 = vsel %vm2614_vm11, %v5329_v1, %v2611_v23 }
 0x4d8   :  { %5340 = vrcp.f32 %v2650_v57  ;;  %v2620_v53 = vsel %vm2617_vm12, %v2619_v25, %v2615_v52  ;;  %v2662_v46 = vand.u32 2147483648, %v2650_v57  ;;  %v2660_v61 = vand.u32 2147483647, %v2650_v57 }
 0x4d9   :  { %5342 = vrcp.f32 %v2627_v28  ;;  %v2639_v48 = vand.u32 2147483648, %v2627_v28  ;;  %v2637_v59 = vand.u32 2147483647, %v2627_v28  ;;  %vm2633_vm4 = vweird.f32 %v2627_v28 }
 0x4da   :  { %v2663_v1 = vor.u32 1.1754944e-38, %v2662_v46  ;;  %vm2661_vm7 = vcmp.eq.f32.partialorder %v2660_v61, 8.507059e+37 }
 0x4db   :  { %v2640_v34 = vor.u32 1.1754944e-38, %v2639_v48  ;;  %vm2638_vm8 = vcmp.eq.f32.partialorder %v2637_v59, 8.507059e+37  ;;  %v3018_v48 = vld [vmem:[%s8416_s7 + $0x10] sm:$0xff] }
 0x4dc   :  { %v5337_v21 = vpop.eup %5336 }
 0x4dd   :  { %v5339_v7 = vpop.eup %5338  ;;  %v2672_v14 = vadd.f32 1.0, %v5337_v21 }
 0x4de   :  { %v5341_v31 = vpop.eup %5340  ;;  %v2623_v17 = vmul.f32 %v5339_v7, %v2620_v53  ;;  %v4994_v53 = vld [vmem:[%s8416_s7 + $0x68] sm:$0x3] }
 0x4df   :  { %v5343_v41 = vpop.eup %5342  ;;  %v2652_v39 = vmul.f32 %v5341_v31, %v2650_v57  ;;  %5344 = vrcp.f32 %v2672_v14  ;;  %vm2657_vm6 = vweird.f32 %v5341_v31  ;;  %v2684_v50 = vand.u32 2147483648, %v2672_v14 }
 0x4e0   :  { %v2629_v40 = vmul.f32 %v5343_v41, %v2627_v28  ;;  %2690 = vst.msk [vmem:[#allocation2] sm:$0x40] %vm1016_vm3, %v2623_v17  ;;  %v2693_v10 = vrot.slane %v2623_v17, 6  ;;  %5346 = vtanh.f32 %v2533_v30  ;;  %vm2634_vm10 = vweird.f32 %v5343_v41  ;;  %v4993_v17 = vld [vmem:[%s8416_s7 + $0x60] sm:$0xff] }
 0x4e1   :  { %v2653_v20 = vsub.f32 1.0, %v2652_v39  ;;  %vm2656_vm3 = vweird.f32 %v2650_v57  ;;  %vm2635_vm13 = vmor %vm2633_vm4, %vm2634_vm10  ;;  %vm2678_vm9 = vweird.f32 %v2672_v14  ;;  %v2682_v62 = vand.u32 2147483647, %v2672_v14  ;;  %v3020_v39 = vld [vmem:[%s8416_s7 + $0x20] sm:$0xff] }
 0x4e2   :  { %v2630_v54 = vsub.f32 1.0, %v2629_v40  ;;  %4963 = vmatmul.msk.f32.vlgmr.msra.gmra.mxu0 %vm344_vm14, %v2693_v10  ;;  %4965 = vmatmul.msk.f32.vlgmr.msra.gmra.mxu1 %vm344_vm14, %v2693_v10  ;;  %vm2658_vm15 = vmor %vm2656_vm3, %vm2657_vm6  ;;  %v2685_v51 = vor.u32 1.1754944e-38, %v2684_v50  ;;  %v4992_v40 = vld [vmem:[%s8416_s7 + $0x58] sm:$0xff] }
 0x4e3   :  { %v2654_v2 = vmul.f32 %v5341_v31, %v2653_v20  ;;  %4967 = vmatmul.msk.f32.vlgmr.msra.gmra.mxu2 %vm344_vm14, %v2693_v10  ;;  %4969 = vmatmul.msk.f32.vlgmr.msra.gmra.mxu3 %vm344_vm14, %v2693_v10  ;;  %vm2683_vm11 = vcmp.eq.f32.partialorder %v2682_v62, 8.507059e+37  ;;  %v3019_v20 = vld [vmem:[%s8416_s7 + $0x18] sm:$0xff] }
 0x4e4   :  { %v2631_v6 = vmul.f32 %v5343_v41, %v2630_v54  ;;  %5004 = vmatpush.msk.msra.mxu3 %vm348_vm1, %v4994_v53  ;;  %v4991_v54 = vld [vmem:[%s8416_s7 + $0x50] sm:$0xff] }
 0x4e5   :  { %v5345_v29 = vpop.eup %5344  ;;  %v2655_v5 = vadd.f32 %v5341_v31, %v2654_v2  ;;  %v4990_v2 = vld [vmem:[%s8416_s7 + $0x48] sm:$0xff] }
 0x4e6   :  { %v2632_v42 = vadd.f32 %v5343_v41, %v2631_v6  ;;  %v2674_v58 = vmul.f32 %v5345_v29, %v2672_v14  ;;  %v5347_v38 = vpop.eup %5346  ;;  %vm2679_vm2 = vweird.f32 %v5345_v29  ;;  %v3022_v14 = vld [vmem:[%s8416_s7 + $0x30] sm:$0x3]  ;;  %3139 = vmatpush.msra.mxu3 %v4993_v17 }
 0x4e7   :  { %v2659_v35 = vsel %vm2658_vm15, %v5341_v31, %v2655_v5  ;;  %vm2680_vm5 = vmor %vm2678_vm9, %vm2679_vm2  ;;  %4986 = vmatpush.msk.msra.mxu1 %vm348_vm1, %v3022_v14  ;;  %v4989_v5 = vld [vmem:[%s8416_s7 + $0x40] sm:$0xff]  ;;  %v5015_v14 = vld [vmem:[%s8417_s8 + $0x78] sm:$0xff] }
 0x4e8   :  { %v2636_v18 = vsel %vm2635_vm13, %v5343_v41, %v2632_v42  ;;  %v2664_v11 = vsel %vm2661_vm7, %v2663_v1, %v2659_v35  ;;  %v2675_v12 = vsub.f32 1.0, %v2674_v58  ;;  %3140 = vmatpush.msra.mxu3 %v4992_v40  ;;  %v3016_v35 = vld [vmem:[%s8416_s7] sm:$0xff] }
 0x4e9   :  { %v2641_v56 = vsel %vm2638_vm8, %v2640_v34, %v2636_v18  ;;  %v2667_v44 = vmul.f32 %v5347_v38, %v2664_v11  ;;  %v4988_v38 = vld [vmem:[%s8416_s7 + $0x38] sm:$0xff] }
 0x4ea   :  { %v2646_v43 = vmul.f32 %v2644_v27, %v2641_v56  ;;  %v2676_v4 = vmul.f32 %v5345_v29, %v2675_v12  ;;  %3141 = vmatpush.msra.mxu3 %v4991_v54  ;;  %v2900_v27 = vrot.slane %v7684_v22, 7  ;;  %v5013_v56 = vld [vmem:[%s8416_s7 + $0xa0] sm:$0x3]  ;;  %v3026_v54 = vld [vmem:[%s8417_s8 + $0x18] sm:$0xff]  ;;  %v4997_v22 = vld [vmem:[%s8417_s8 + $0x48] sm:$0xff] }
 0x4ec   :  { %v7697_v19 = vadd.f32 %v2667_v44, %v2646_v43  ;;  %v2677_v8 = vadd.f32 %v5345_v29, %v2676_v4  ;;  %3142 = vmatpush.msra.mxu3 %v4990_v2  ;;  %v5032_v44 = vld [vmem:[%s8416_s7 + $0xd8] sm:$0x3] }
 0x4ee   :  { %5348 = vtanh.f32 %v7697_v19  ;;  %v2681_v49 = vsel %vm2680_vm5, %v5345_v29, %v2677_v8  ;;  %v3017_v29 = vld [vmem:[%s8416_s7 + $0x8] sm:$0xff]  ;;  %3143 = vmatpush.msra.mxu3 %v4989_v5  ;;  %v3025_v5 = vld [vmem:[%s8417_s8 + $0x10] sm:$0xff] }
 0x4ef   :  { %v2686_v55 = vsel %vm2683_vm11, %v2685_v51, %v2681_v49  ;;  %v3029_v49 = vld [vmem:[%s8417_s8 + $0x30] sm:$0x3] }
 0x4f0   :  { %3144 = vmatpush.msra.mxu3 %v4988_v38  ;;  %4984 = vmatpush.msk.msra.mxu0 %vm348_vm1, %v3029_v49  ;;  %v3024_v38 = vld [vmem:[%s8417_s8 + $0x8] sm:$0xff]  ;;  %v5038_v49 = vld [vmem:[%s8417_s8 + $0xd0] sm:$0xff] }
 0x4f4   :  { %v5349_v0 = vpop.eup %5348 }
 0x4f5   :  { %v2689_v32 = vmul.f32 %v5349_v0, %v2686_v55  ;;  %v5001_v55 = vld [vmem:[%s8417_s8 + $0x68] sm:$0x3] }
 0x4f6   :  { %5002 = vmatpush.msk.msra.mxu2 %vm348_vm1, %v5001_v55 }
 0x4f7   :  { %2691 = vst.msk [vmem:[#allocation3] sm:$0x2] %vm1014_vm0, %v2689_v32  ;;  %v2793_v47 = vrot.slane %v2689_v32, 1  ;;  %v5012_v32 = vld [vmem:[%s8416_s7 + $0x98] sm:$0xff] }
 0x4f9   :  { %4971 = vmatmul.msk.f32.vlgmr.msrb.gmra.mxu0 %vm344_vm14, %v2793_v47  ;;  %4973 = vmatmul.msk.f32.vlgmr.msrb.gmra.mxu1 %vm344_vm14, %v2793_v47 }
 0x4fa   :  { %4975 = vmatmul.msk.f32.vlgmr.msrb.gmra.mxu2 %vm344_vm14, %v2793_v47  ;;  %4977 = vmatmul.msk.f32.vlgmr.msrb.gmra.mxu3 %vm344_vm14, %v2793_v47  ;;  %v5031_v47 = vld [vmem:[%s8416_s7 + $0xd0] sm:$0xff] }
 0x4fb   :  { %5042 = vmatpush.msk.msrb.mxu3 %vm348_vm1, %v5032_v44  ;;  %v3023_v44 = vld [vmem:[%s8417_s8] sm:$0xff] }
 0x4fd   :  { %3275 = vmatpush.msrb.mxu3 %v5031_v47  ;;  %v5037_v47 = vld [vmem:[%s8417_s8 + $0xc8] sm:$0xff] }
 0x55f   :  { %v2713_v37 = vpop.f32.mrf.mxu0  ;;  %v2737_v57 = vpop.f32.mrf.mxu1 }
 0x560   :  { %v2717_v23 = vrot.slane %v2713_v37, 1  ;;  %v2741_v24 = vrot.slane %v2737_v57, 1 }
 0x562   :  { %v2719_v28 = vadd.f32 %v2717_v23, %v8761_v60  ;;  %v2743_v33 = vadd.f32 %v2741_v24, %v8762_v63  ;;  %v3028_v23 = vld [vmem:[%s8417_s8 + $0x28] sm:$0xff]  ;;  %v5000_v24 = vld [vmem:[%s8417_s8 + $0x60] sm:$0xff] }
 0x563   :  { %3046 = vmatpush.msra.mxu0 %v3028_v23  ;;  %3116 = vmatpush.msra.mxu2 %v5000_v24 }
 0x564   :  { %v4979_v15 = vmul.f32 -1.442695, %v2719_v28  ;;  %v4978_v36 = vmul.f32 -1.442695, %v2743_v33  ;;  %v5011_v28 = vld [vmem:[%s8416_s7 + $0x90] sm:$0xff] }
 0x566   :  { %5350 = vpow2.f32 %v4979_v15  ;;  %v2785_v52 = vpop.f32.mrf.mxu3  ;;  %v2761_v30 = vpop.f32.mrf.mxu2 }
 0x567   :  { %5352 = vpow2.f32 %v4978_v36  ;;  %v2789_v25 = vrot.slane %v2785_v52, 1  ;;  %v2765_v10 = vrot.slane %v2761_v30, 1  ;;  %v4999_v30 = vld [vmem:[%s8417_s8 + $0x58] sm:$0xff] }
 0x568   :  { %3117 = vmatpush.msra.mxu2 %v4999_v30 }
 0x569   :  { %v2791_v21 = vadd.f32 %v2789_v25, %v8763_v3  ;;  %v3021_v3 = vld [vmem:[%s8416_s7 + $0x28] sm:$0xff]  ;;  %v2767_v61 = vadd.f32 %v2765_v10, %v8764_v16 }
 0x56a   :  { %3072 = vmatpush.msra.mxu1 %v3021_v3 }
 0x56b   :  { %v4980_v7 = vmul.f32 -1.442695, %v2791_v21  ;;  %v5030_v21 = vld [vmem:[%s8416_s7 + $0xc8] sm:$0xff] }
 0x56c   :  { %v5351_v60 = vpop.eup %5350  ;;  %3073 = vmatpush.msra.mxu1 %v3020_v39  ;;  %3276 = vmatpush.msrb.mxu3 %v5030_v21  ;;  %v5029_v39 = vld [vmem:[%s8416_s7 + $0xc0] sm:$0xff]  ;;  %v5035_v21 = vld [vmem:[%s8417_s8 + $0xb8] sm:$0xff] }
 0x56d   :  { %v5353_v63 = vpop.eup %5352  ;;  %v7716_v31 = vadd.f32 1.0, %v5351_v60  ;;  %5354 = vpow2.f32 %v4980_v7 }
 0x56e   :  { %v7724_v41 = vadd.f32 1.0, %v5353_v63  ;;  %3074 = vmatpush.msra.mxu1 %v3019_v20  ;;  %3277 = vmatpush.msrb.mxu3 %v5029_v39 }
 0x56f   :  { %5356 = vrcp.f32 %v7716_v31  ;;  %v2916_v8 = vand.u32 2147483647, %v7716_v31  ;;  %v2918_v50 = vand.u32 2147483648, %v7716_v31  ;;  %vm2912_vm10 = vweird.f32 %v7716_v31 }
 0x570   :  { %5358 = vrcp.f32 %v7724_v41  ;;  %3075 = vmatpush.msra.mxu1 %v3018_v48  ;;  %v2895_v4 = vand.u32 2147483648, %v7724_v41  ;;  %v2893_v0 = vand.u32 2147483647, %v7724_v41  ;;  %vm2889_vm6 = vweird.f32 %v7724_v41  ;;  %v5009_v48 = vld [vmem:[%s8416_s7 + $0x80] sm:$0xff] }
 0x571   :  { %v2919_v36 = vor.u32 1.1754944e-38, %v2918_v50  ;;  %vm2917_vm15 = vcmp.eq.f32.partialorder %v2916_v8, 8.507059e+37  ;;  %v5020_v8 = vld [vmem:[%s8417_s8 + $0xa0] sm:$0x3]  ;;  %v5039_v50 = vld [vmem:[%s8417_s8 + $0xd8] sm:$0x3] }
 0x572   :  { %3076 = vmatpush.msra.mxu1 %v3017_v29  ;;  %v2896_v53 = vor.u32 1.1754944e-38, %v2895_v4  ;;  %vm2894_vm13 = vcmp.eq.f32.partialorder %v2893_v0, 8.507059e+37 }
 0x573   :  { %v5355_v46 = vpop.eup %5354 }
 0x574   :  { %v7747_v6 = vadd.f32 1.0, %v5355_v46  ;;  %3077 = vmatpush.msra.mxu1 %v3016_v35  ;;  %v4998_v46 = vld [vmem:[%s8417_s8 + $0x50] sm:$0xff] }
 0x575   :  { %v7749_v59 = vpop.eup %5356  ;;  %3118 = vmatpush.msra.mxu2 %v4998_v46 }
 0x576   :  { %v7757_v42 = vpop.eup %5358  ;;  %v2908_v1 = vmul.f32 %v7749_v59, %v7716_v31  ;;  %5360 = vrcp.f32 %v7747_v6  ;;  %v2813_v16 = vpop.f32.mrf.mxu0  ;;  %5023 = vmatpush.msk.msrb.mxu1 %vm348_vm1, %v5013_v56  ;;  %vm2913_vm0 = vweird.f32 %v7749_v59  ;;  %v3027_v31 = vld [vmem:[%s8417_s8 + $0x20] sm:$0xff]  ;;  %v5026_v56 = vld [vmem:[%s8416_s7 + $0xa8] sm:$0xff]  ;;  %vm2934_vm8 = vweird.f32 %v7747_v6 }
 0x577   :  { %v2834_v58 = vpop.f32.mrf.mxu1  ;;  %v2885_v34 = vmul.f32 %v7757_v42, %v7724_v41  ;;  %5362 = vtanh.f32 %v2767_v61  ;;  %v2816_v11 = vadd.f32 %v2813_v16, %v8765_v9  ;;  %vm2890_vm12 = vweird.f32 %v7757_v42  ;;  %vm7820_vm3 = vmor %vm2912_vm10, %vm2913_vm0  ;;  %3047 = vmatpush.msra.mxu0 %v3027_v31  ;;  %3119 = vmatpush.msra.mxu2 %v4997_v22 }
 0x578   :  { %v2909_v18 = vsub.f32 1.0, %v2908_v1  ;;  %v2837_v12 = vadd.f32 %v2834_v58, %v8766_v26  ;;  %3207 = vmatpush.msrb.mxu1 %v5012_v32  ;;  %vm7833_vm4 = vmor %vm2889_vm6, %vm2890_vm12  ;;  %v2938_v4 = vand.u32 2147483647, %v7747_v6  ;;  %v5018_v32 = vld [vmem:[%s8417_s8 + $0x90] sm:$0xff] }
 0x579   :  { %v2886_v43 = vsub.f32 1.0, %v2885_v34  ;;  %v4982_v26 = vmul.f32 -1.442695, %v2816_v11  ;;  %3048 = vmatpush.msra.mxu0 %v3026_v54  ;;  %v5007_v11 = vld [vmem:[%s8416_s7 + $0x70] sm:$0xff] }
 0x57a   :  { %v2910_v9 = vmul.f32 %v7749_v59, %v2909_v18  ;;  %v4981_v62 = vmul.f32 -1.442695, %v2837_v12  ;;  %3208 = vmatpush.msrb.mxu1 %v5011_v28  ;;  %v4996_v18 = vld [vmem:[%s8417_s8 + $0x40] sm:$0xff]  ;;  %v2940_v12 = vand.u32 2147483648, %v7747_v6  ;;  %vm2939_vm9 = vcmp.eq.f32.partialorder %v2938_v4, 8.507059e+37 }
 0x57b   :  { %v2887_v51 = vmul.f32 %v7757_v42, %v2886_v43  ;;  %5364 = vpow2.f32 %v4982_v26  ;;  %3049 = vmatpush.msra.mxu0 %v3025_v5  ;;  %v4995_v43 = vld [vmem:[%s8417_s8 + $0x38] sm:$0xff]  ;;  %3120 = vmatpush.msra.mxu2 %v4996_v18  ;;  %v8042_v4 = vld [vmem:[%s8418_s9 + $0x60] sm:$0xff] }
 0x57c   :  { %v7802_v37 = vpop.eup %5360  ;;  %v2911_v57 = vadd.f32 %v7749_v59, %v2910_v9  ;;  %5366 = vpow2.f32 %v4981_v62 }
 0x57d   :  { %v2888_v33 = vadd.f32 %v7757_v42, %v2887_v51  ;;  %v2930_v52 = vmul.f32 %v7802_v37, %v7747_v6  ;;  %v2876_v25 = vpop.f32.mrf.mxu3  ;;  %v5363_v7 = vpop.eup %5362  ;;  %vm2935_vm7 = vweird.f32 %v7802_v37  ;;  %3050 = vmatpush.msra.mxu0 %v3024_v38  ;;  %v5019_v6 = vld [vmem:[%s8417_s8 + $0x98] sm:$0xff]  ;;  %3121 = vmatpush.msra.mxu2 %v4995_v43  ;;  %v2941_v51 = vor.u32 1.1754944e-38, %v2940_v12  ;;  %v8025_v12 = vld [vmem:[%s8418_s9 + $0x28] sm:$0xff]  ;;  %v8037_v43 = vld [vmem:[%s8418_s9 + $0x20] sm:$0xff] }
 0x57e   :  { %v2915_v60 = vsel %vm7820_vm3, %v7749_v59, %v2911_v57  ;;  %v2879_v63 = vadd.f32 %v2876_v25, %v8604_v45  ;;  %v5010_v45 = vld [vmem:[%s8416_s7 + $0x88] sm:$0xff]  ;;  %v5028_v59 = vld [vmem:[%s8416_s7 + $0xb8] sm:$0xff]  ;;  %vm7919_vm2 = vmor %vm2934_vm8, %vm2935_vm7  ;;  %v2855_v0 = vpop.f32.mrf.mxu2 }
 0x57f   :  { %v2892_v3 = vsel %vm7833_vm4, %v7757_v42, %v2888_v33  ;;  %v2920_v17 = vsel %vm2917_vm15, %v2919_v36, %v2915_v60  ;;  %v2931_v41 = vsub.f32 1.0, %v2930_v52  ;;  %3209 = vmatpush.msrb.mxu1 %v5010_v45  ;;  %v5008_v42 = vld [vmem:[%s8416_s7 + $0x78] sm:$0xff]  ;;  %3278 = vmatpush.msrb.mxu3 %v5028_v59  ;;  %v2858_v28 = vadd.f32 %v2855_v0, %v6305_v13  ;;  %v5017_v36 = vld [vmem:[%s8417_s8 + $0x88] sm:$0xff]  ;;  %v5036_v52 = vld [vmem:[%s8417_s8 + $0xc0] sm:$0xff] }
 0x580   :  { %v2897_v40 = vsel %vm2894_vm13, %v2896_v53, %v2892_v3  ;;  %v2923_v10 = vmul.f32 %v5363_v7, %v2920_v17  ;;  %v4983_v20 = vmul.f32 -1.442695, %v2879_v63  ;;  %3051 = vmatpush.msra.mxu0 %v3023_v44  ;;  %5040 = vmatpush.msk.msrb.mxu2 %vm348_vm1, %v5039_v50  ;;  %v5016_v25 = vld [vmem:[%s8417_s8 + $0x80] sm:$0xff]  ;;  %v5034_v63 = vld [vmem:[%s8417_s8 + $0xb0] sm:$0xff]  ;;  %v7995_v59 = vld [vmem:[%s8418_s9 + $0x78] sm:$0xff]  ;;  %v8781_v0 = vmov 0.0  }
 0x581   :  { %v2902_v2 = vmul.f32 %v2900_v27, %v2897_v40  ;;  %v2932_v61 = vmul.f32 %v7802_v37, %v2931_v41  ;;  %v5365_v29 = vpop.eup %5364  ;;  %3210 = vmatpush.msrb.mxu1 %v5009_v48  ;;  %v5027_v27 = vld [vmem:[%s8416_s7 + $0xb0] sm:$0xff] }
 0x582   :  { %5368 = vpow2.f32 %v4983_v20  ;;  %v5367_v1 = vpop.eup %5366  ;;  %v7880_v58 = vadd.f32 1.0, %v5365_v29  ;;  %3279 = vmatpush.msrb.mxu3 %v5027_v27  ;;  %5021 = vmatpush.msk.msrb.mxu0 %vm348_vm1, %v5020_v8  ;;  %vm8775_vm1 = vcmask 408583   ;;  %v5014_v41 = vld [vmem:[%s8417_s8 + $0x70] sm:$0xff] }
 0x583   :  { %v2924_v16 = vadd.f32 %v2923_v10, %v2902_v2  ;;  %v2933_v34 = vadd.f32 %v7802_v37, %v2932_v61  ;;  %v7887_v35 = vadd.f32 1.0, %v5367_v1  ;;  %3211 = vmatpush.msrb.mxu1 %v5008_v42  ;;  %3252 = vmatpush.msrb.mxu2 %v5038_v49  ;;  %v5033_v10 = vld [vmem:[%s8417_s8 + $0xa8] sm:$0xff]  ;;  %v7990_v61 = vld [vmem:[%s8418_s9 + $0x38] sm:$0xff]  ;;  %s4739_s8 = sshll.u32 %s8426_s17, 4  ;;  %s4740_s8 = int_to_ptr.hbm [resolvable:$true] %s4739_s8 }
 0x584   :  { %3280 = vmatpush.msrb.mxu3 %v5026_v56  ;;  %3184 = vmatpush.msrb.mxu0 %v5019_v6  ;;  %v2984_v60 = vand.u32 2147483648, %v7880_v58  ;;  %v2982_v17 = vand.u32 2147483647, %v7880_v58  ;;  %vm2978_vm0 = vweird.f32 %v7880_v58  ;;  %v8030_v56 = vld [vmem:[%s8418_s9 + $0x68] sm:$0xff] }
 0x585   :  { %5370 = vtanh.f32 %v2924_v16  ;;  %3212 = vmatpush.msrb.mxu1 %v5007_v11  ;;  %v2937_v62 = vsel %vm7919_vm2, %v7802_v37, %v2933_v34  ;;  %3253 = vmatpush.msrb.mxu2 %v5037_v47  ;;  %v2961_v30 = vand.u32 2147483648, %v7887_v35  ;;  %v2959_v39 = vand.u32 2147483647, %v7887_v35  ;;  %v8012_v34 = vld [vmem:[%s8418_s9 + $0x30] sm:$0xff] }
 0x586   :  { %5372 = vrcp.f32 %v7880_v58  ;;  %v2942_v57 = vsel %vm2939_vm9, %v2941_v51, %v2937_v62  ;;  %3185 = vmatpush.msrb.mxu0 %v5018_v32  ;;  %vm2955_vm12 = vweird.f32 %v7887_v35  ;;  %v2985_v48 = vor.u32 1.1754944e-38, %v2984_v60  ;;  %v8079_v32 = vld [vmem:[%s8418_s9 + $0x58] sm:$0xff] }
 0x587   :  { %5374 = vrcp.f32 %v7887_v35  ;;  %3254 = vmatpush.msrb.mxu2 %v5036_v52  ;;  %v2962_v5 = vor.u32 1.1754944e-38, %v2961_v30  ;;  %vm2983_vm3 = vcmp.eq.f32.partialorder %v2982_v17, 8.507059e+37  ;;  %vm2960_vm4 = vcmp.eq.f32.partialorder %v2959_v39, 8.507059e+37  ;;  %v5122_v30 = vld [vmem:[%s8419_s10] ss:$0 sm:$0xff] }
 0x588   :  { %v5369_v26 = vpop.eup %5368  ;;  %3186 = vmatpush.msrb.mxu0 %v5017_v36  ;;  %vm8780_vm2 = vcmask 401408  }
 0x589   :  { %v7934_v55 = vadd.f32 1.0, %v5369_v26  ;;  %3255 = vmatpush.msrb.mxu2 %v5035_v21 }
 0x58a   :  { %3187 = vmatpush.msrb.mxu0 %v5016_v25 }
 0x58b   :  { %v5371_v37 = vpop.eup %5370  ;;  %5376 = vrcp.f32 %v7934_v55  ;;  %3256 = vmatpush.msrb.mxu2 %v5034_v63  ;;  %v3006_v50 = vand.u32 2147483648, %v7934_v55  ;;  %vm3000_vm13 = vweird.f32 %v7934_v55  ;;  %v3004_v9 = vand.u32 2147483647, %v7934_v55 }
 0x58c   :  { %v5373_v23 = vpop.eup %5372  ;;  %v2945_v24 = vmul.f32 %v5371_v37, %v2942_v57  ;;  %5378 = vtanh.f32 %v2858_v28  ;;  %3188 = vmatpush.msrb.mxu0 %v5015_v14  ;;  %v8088_v37 = vld [vmem:[%s8418_s9 + $0x10] sm:$0xff]  ;;  %v8114_v28 = vld [vmem:[%s8418_s9] sm:$0xff] }
 0x58d   :  { %v5375_v33 = vpop.eup %5374  ;;  %v2974_v15 = vmul.f32 %v5373_v23, %v7880_v58  ;;  %vm2979_vm5 = vweird.f32 %v5373_v23  ;;  %3257 = vmatpush.msrb.mxu2 %v5033_v10  ;;  %v2966_v58 = vrot.slane %v7697_v19, 1  ;;  %v3007_v26 = vor.u32 1.1754944e-38, %v3006_v50  ;;  %v8093_v57 = vld [vmem:[%s8418_s9 + $0x50] sm:$0xff] }
 0x58e   :  { %3012 = vst.msk [vmem:[#allocation2] sm:$0x80] %vm8775_vm1, %v2945_v24  ;;  %v2951_v13 = vmul.f32 %v5375_v33, %v7887_v35  ;;  %vm2956_vm11 = vweird.f32 %v5375_v33  ;;  %vm7983_vm6 = vmor %vm2978_vm0, %vm2979_vm5  ;;  %3189 = vmatpush.msrb.mxu0 %v5014_v41  ;;  %v8017_v35 = vld [vmem:[%s8418_s9 + $0x70] sm:$0xff]  ;;  %vm3005_vm8 = vcmp.eq.f32.partialorder %v3004_v9, 8.507059e+37  ;;  %v8105_v24 = vld [vmem:[%s8418_s9 + $0x48] sm:$0xff] }
 0x58f   :  { %v2975_v7 = vsub.f32 1.0, %v2974_v15  ;;  %vm7998_vm10 = vmor %vm2955_vm12, %vm2956_vm11  ;;  %v5125_v41 = vld [vmem:[%s8419_s10 + $0x3] ss:$0 sm:$0xff] }
 0x590   :  { %v2952_v53 = vsub.f32 1.0, %v2951_v13  ;;  %v5123_v13 = vld [vmem:[%s8419_s10 + $0x1] ss:$0 sm:$0xff] }
 0x591   :  { %v7967_v31 = vpop.eup %5376  ;;  %v2976_v3 = vmul.f32 %v5373_v23, %v2975_v7 }
 0x592   :  { %v2953_v45 = vmul.f32 %v5375_v33, %v2952_v53  ;;  %v2996_v40 = vmul.f32 %v7967_v31, %v7934_v55  ;;  %v5379_v1 = vpop.eup %5378  ;;  %vm3001_vm15 = vweird.f32 %v7967_v31  ;;  %v8074_v55 = vld [vmem:[%s8418_s9 + $0x18] sm:$0xff] }
 0x593   :  { %v2977_v20 = vadd.f32 %v5373_v23, %v2976_v3  ;;  %vm3002_vm7 = vmor %vm3000_vm13, %vm3001_vm15  ;;  %vm3310_vm13 = vcmask 261120  }
 0x594   :  { %v2954_v54 = vadd.f32 %v5375_v33, %v2953_v45  ;;  %v2997_v2 = vsub.f32 1.0, %v2996_v40 }
 0x595   :  { %v2981_v22 = vsel %vm7983_vm6, %v5373_v23, %v2977_v20  ;;  %v3014_v42 = vld [vmem:[#allocation2] sm:$0xff]  ;;  %v8100_v23 = vld [vmem:[%s8418_s9 + $0x8] sm:$0xff] }
 0x596   :  { %v2958_v16 = vsel %vm7998_vm10, %v5375_v33, %v2954_v54  ;;  %v2986_v27 = vsel %vm2983_vm3, %v2985_v48, %v2981_v22  ;;  %4987 = vmatmul.msk.f32.vlgmr.msra.gmra.mxu1 %vm344_vm14, %v3014_v42  ;;  %5005 = vmatmul.msk.f32.vlgmr.msra.gmra.mxu3 %vm344_vm14, %v3014_v42  ;;  %v2998_v11 = vmul.f32 %v7967_v31, %v2997_v2  ;;  %v8119_v33 = vld [vmem:[%s8418_s9 + $0x40] sm:$0xff] }
 0x597   :  { %v2963_v38 = vsel %vm2960_vm4, %v2962_v5, %v2958_v16  ;;  %v2989_v18 = vmul.f32 %v5379_v1, %v2986_v27  ;;  %3346 = vmatpush.msra.mxu1 %v7990_v61  ;;  %3388 = vmatpush.msra.mxu3 %v7995_v59 }
 0x598   :  { %v2968_v19 = vmul.f32 %v2966_v58, %v2963_v38  ;;  %v2999_v8 = vadd.f32 %v7967_v31, %v2998_v11  ;;  %v5124_v38 = vld [vmem:[%s8419_s10 + $0x2] ss:$0 sm:$0xff] }
 0x599   :  { %3347 = vmatpush.msra.mxu1 %v8012_v34  ;;  %3389 = vmatpush.msra.mxu3 %v8017_v35 }
 0x59a   :  { %v2990_v44 = vadd.f32 %v2989_v18, %v2968_v19  ;;  %v3003_v6 = vsel %vm3002_vm7, %v7967_v31, %v2999_v8 }
 0x59b   :  { %3348 = vmatpush.msra.mxu1 %v8025_v12  ;;  %3390 = vmatpush.msra.mxu3 %v8030_v56  ;;  %v3008_v49 = vsel %vm3005_vm8, %v3007_v26, %v3003_v6 }
 0x59c   :  { %5380 = vtanh.f32 %v2990_v44 }
 0x59d   :  { %3349 = vmatpush.msra.mxu1 %v8037_v43  ;;  %3391 = vmatpush.msra.mxu3 %v8042_v4 }
 0x59e   :  { %5024 = vmatmul.msk.f32.vlgmr.msrb.gmra.mxu1 %vm344_vm14, %v3014_v42  ;;  %5043 = vmatmul.msk.f32.vlgmr.msrb.gmra.mxu3 %vm344_vm14, %v3014_v42 }
 0x59f   :  { %3499 = vmatpush.msrb.mxu1 %v7990_v61  ;;  %3547 = vmatpush.msrb.mxu3 %v7995_v59 }
 0x5a1   :  { %3500 = vmatpush.msrb.mxu1 %v8012_v34  ;;  %3548 = vmatpush.msrb.mxu3 %v8017_v35 }
 0x5a2   :  { %v5381_v62 = vpop.eup %5380 }
 0x5a3   :  { %v3011_v51 = vmul.f32 %v5381_v62, %v3008_v49  ;;  %3501 = vmatpush.msrb.mxu1 %v8025_v12  ;;  %3549 = vmatpush.msrb.mxu3 %v8030_v56 }
 0x5a5   :  { %3013 = vst.msk [vmem:[#allocation3] sm:$0x1] %vm8780_vm2, %v3011_v51  ;;  %3502 = vmatpush.msrb.mxu1 %v8037_v43  ;;  %3550 = vmatpush.msrb.mxu3 %v8042_v4 }
 0x5a6   :  { %3350 = vmatmul.f32.vlgmr.msra.gmra.mxu1 %v8781_v0  ;;  %3392 = vmatmul.f32.vlgmr.msra.gmra.mxu3 %v8781_v0 }
 0x5a7   :  { %3665 = vmatpush.msra.mxu1 %v7990_v61  ;;  %3713 = vmatpush.msra.mxu3 %v7995_v59 }
 0x5a9   :  { %3666 = vmatpush.msra.mxu1 %v8012_v34  ;;  %3714 = vmatpush.msra.mxu3 %v8017_v35 }
 0x5ab   :  { %3667 = vmatpush.msra.mxu1 %v8025_v12  ;;  %3715 = vmatpush.msra.mxu3 %v8030_v56 }
 0x5ac   :  { %v3015_v47 = vld [vmem:[#allocation3] sm:$0xff] }
 0x5ad   :  { %4985 = vmatmul.msk.f32.vlgmr.msra.gmra.mxu0 %vm344_vm14, %v3015_v47  ;;  %5003 = vmatmul.msk.f32.vlgmr.msra.gmra.mxu2 %vm344_vm14, %v3015_v47 }
 0x5ae   :  { %3325 = vmatpush.msra.mxu0 %v8074_v55  ;;  %3367 = vmatpush.msra.mxu2 %v8079_v32 }
 0x5af   :  { %3668 = vmatpush.msra.mxu1 %v8037_v43  ;;  %3716 = vmatpush.msra.mxu3 %v8042_v4 }
 0x5b0   :  { %3326 = vmatpush.msra.mxu0 %v8088_v37  ;;  %3368 = vmatpush.msra.mxu2 %v8093_v57 }
 0x5b2   :  { %3327 = vmatpush.msra.mxu0 %v8100_v23  ;;  %3369 = vmatpush.msra.mxu2 %v8105_v24 }
 0x5b4   :  { %3328 = vmatpush.msra.mxu0 %v8114_v28  ;;  %3370 = vmatpush.msra.mxu2 %v8119_v33 }
 0x5b5   :  { %5022 = vmatmul.msk.f32.vlgmr.msrb.gmra.mxu0 %vm344_vm14, %v3015_v47  ;;  %5041 = vmatmul.msk.f32.vlgmr.msrb.gmra.mxu2 %vm344_vm14, %v3015_v47 }
 0x5b6   :  { %3475 = vmatpush.msrb.mxu0 %v8074_v55  ;;  %3523 = vmatpush.msrb.mxu2 %v8079_v32 }
 0x5b8   :  { %3476 = vmatpush.msrb.mxu0 %v8088_v37  ;;  %3524 = vmatpush.msrb.mxu2 %v8093_v57 }
 0x5ba   :  { %3477 = vmatpush.msrb.mxu0 %v8100_v23  ;;  %3525 = vmatpush.msrb.mxu2 %v8105_v24 }
 0x5bc   :  { %3478 = vmatpush.msrb.mxu0 %v8114_v28  ;;  %3526 = vmatpush.msrb.mxu2 %v8119_v33 }
 0x5bd   :  { %3329 = vmatmul.f32.vlgmr.msra.gmra.mxu0 %v8781_v0  ;;  %3371 = vmatmul.f32.vlgmr.msra.gmra.mxu2 %v8781_v0 }
 0x5be   :  { %3641 = vmatpush.msra.mxu0 %v8074_v55  ;;  %3689 = vmatpush.msra.mxu2 %v8079_v32 }
 0x5c0   :  { %3642 = vmatpush.msra.mxu0 %v8088_v37  ;;  %3690 = vmatpush.msra.mxu2 %v8093_v57 }
 0x5c2   :  { %3643 = vmatpush.msra.mxu0 %v8100_v23  ;;  %3691 = vmatpush.msra.mxu2 %v8105_v24 }
 0x5c4   :  { %3644 = vmatpush.msra.mxu0 %v8114_v28  ;;  %3692 = vmatpush.msra.mxu2 %v8119_v33 }
 0x613   :  { %v3079_v15 = vpop.f32.mrf.mxu1 }
 0x619   :  { %v3146_v36 = vpop.f32.mrf.mxu3 }
 0x61b   :  { %v3214_v52 = vpop.f32.mrf.mxu1 }
 0x621   :  { %v3282_v7 = vpop.f32.mrf.mxu3 }
 0x623   :  { %v3351_v60 = vpop.f32.mrf.mxu1 }
 0x629   :  { %v3393_v20 = vpop.f32.mrf.mxu3 }
 0x62a   :  { %v3053_v25 = vpop.f32.mrf.mxu0 }
 0x62b   :  { %v3080_v31 = vadd.f32 %v3079_v15, %v3053_v25 }
 0x62d   :  { %v8157_v39 = vadd.f32 %v5122_v30, %v3080_v31 }
 0x630   :  { %v3123_v21 = vpop.f32.mrf.mxu2 }
 0x631   :  { %v3147_v14 = vadd.f32 %v3146_v36, %v3123_v21 }
 0x632   :  { %v3191_v53 = vpop.f32.mrf.mxu0 }
 0x633   :  { %v8148_v63 = vadd.f32 %v5123_v13, %v3147_v14  ;;  %v3215_v27 = vadd.f32 %v3214_v52, %v3191_v53 }
 0x635   :  { %v3354_v3 = vadd.f32 %v3351_v60, %v8148_v63  ;;  %v8166_v8 = vadd.f32 %v5124_v38, %v3215_v27 }
 0x637   :  { %v5057_v17 = vmul.f32 -1.442695, %v3354_v3 }
 0x638   :  { %v3259_v45 = vpop.f32.mrf.mxu2 }
 0x639   :  { %5382 = vpow2.f32 %v5057_v17  ;;  %v3283_v40 = vadd.f32 %v3282_v7, %v3259_v45 }
 0x63a   :  { %v3330_v10 = vpop.f32.mrf.mxu0 }
 0x63b   :  { %v8159_v54 = vadd.f32 %v5125_v41, %v3283_v40  ;;  %v3333_v46 = vadd.f32 %v3330_v10, %v8157_v39 }
 0x63d   :  { %v5058_v48 = vmul.f32 -1.442695, %v3333_v46  ;;  %v3396_v2 = vadd.f32 %v3393_v20, %v8159_v54 }
 0x63f   :  { %v5383_v29 = vpop.eup %5382  ;;  %5384 = vpow2.f32 %v5058_v48  ;;  %v5059_v5 = vmul.f32 -1.442695, %v3396_v2 }
 0x640   :  { %v3400_v22 = vadd.f32 1.0, %v5383_v29  ;;  %v3372_v44 = vpop.f32.mrf.mxu2 }
 0x641   :  { %5386 = vpow2.f32 %v5059_v5  ;;  %v3375_v6 = vadd.f32 %v3372_v44, %v8166_v8 }
 0x642   :  { %5388 = vrcp.f32 %v3400_v22  ;;  %v3412_v51 = vand.u32 2147483648, %v3400_v22  ;;  %vm3406_vm9 = vweird.f32 %v3400_v22  ;;  %v3410_v15 = vand.u32 2147483647, %v3400_v22 }
 0x644   :  { %v3413_v21 = vor.u32 1.1754944e-38, %v3412_v51  ;;  %vm3411_vm11 = vcmp.eq.f32.partialorder %v3410_v15, 8.507059e+37 }
 0x645   :  { %v5385_v42 = vpop.eup %5384 }
 0x646   :  { %v3420_v1 = vadd.f32 1.0, %v5385_v42 }
 0x647   :  { %v5387_v16 = vpop.eup %5386 }
 0x648   :  { %v5389_v58 = vpop.eup %5388  ;;  %5390 = vrcp.f32 %v3420_v1  ;;  %v3442_v18 = vadd.f32 1.0, %v5387_v16  ;;  %v3432_v36 = vand.u32 2147483648, %v3420_v1  ;;  %v3430_v13 = vand.u32 2147483647, %v3420_v1 }
 0x649   :  { %v3402_v11 = vmul.f32 %v5389_v58, %v3400_v22  ;;  %vm3407_vm14 = vweird.f32 %v5389_v58  ;;  %vm3426_vm0 = vweird.f32 %v3420_v1 }
 0x64a   :  { %5392 = vrcp.f32 %v3442_v18  ;;  %vm3408_vm1 = vmor %vm3406_vm9, %vm3407_vm14  ;;  %v3433_v60 = vor.u32 1.1754944e-38, %v3432_v36  ;;  %vm3431_vm6 = vcmp.eq.f32.partialorder %v3430_v13, 8.507059e+37  ;;  %v3454_v20 = vand.u32 2147483648, %v3442_v18 }
 0x64b   :  { %v3403_v19 = vsub.f32 1.0, %v3402_v11  ;;  %5394 = vtanh.f32 %v3375_v6  ;;  %vm3448_vm3 = vweird.f32 %v3442_v18  ;;  %v3452_v46 = vand.u32 2147483647, %v3442_v18 }
 0x64c   :  { %v3455_v2 = vor.u32 1.1754944e-38, %v3454_v20 }
 0x64d   :  { %v3404_v50 = vmul.f32 %v5389_v58, %v3403_v19  ;;  %vm3453_vm15 = vcmp.eq.f32.partialorder %v3452_v46, 8.507059e+37 }
 0x64e   :  { %v5391_v9 = vpop.eup %5390 }
 0x64f   :  { %v3422_v26 = vmul.f32 %v5391_v9, %v3420_v1  ;;  %v3405_v62 = vadd.f32 %v5389_v58, %v3404_v50  ;;  %vm3427_vm5 = vweird.f32 %v5391_v9 }
 0x650   :  { %v5393_v49 = vpop.eup %5392  ;;  %vm3428_vm12 = vmor %vm3426_vm0, %vm3427_vm5 }
 0x651   :  { %v3423_v0 = vsub.f32 1.0, %v3422_v26  ;;  %v3444_v47 = vmul.f32 %v5393_v49, %v3442_v18  ;;  %v3409_v52 = vsel %vm3408_vm1, %v5389_v58, %v3405_v62  ;;  %v5395_v30 = vpop.eup %5394  ;;  %vm3449_vm10 = vweird.f32 %v5393_v49 }
 0x652   :  { %v3414_v53 = vsel %vm3411_vm11, %v3413_v21, %v3409_v52  ;;  %vm3450_vm4 = vmor %vm3448_vm3, %vm3449_vm10 }
 0x653   :  { %v3424_v25 = vmul.f32 %v5391_v9, %v3423_v0  ;;  %v3445_v7 = vsub.f32 1.0, %v3444_v47  ;;  %v3416_v41 = vmul.f32 0.0, %v3414_v53 }
 0x655   :  { %v3425_v14 = vadd.f32 %v5391_v9, %v3424_v25  ;;  %v3446_v3 = vmul.f32 %v5393_v49, %v3445_v7 }
 0x657   :  { %v3429_v31 = vsel %vm3428_vm12, %v5391_v9, %v3425_v14  ;;  %v3447_v10 = vadd.f32 %v5393_v49, %v3446_v3 }
 0x658   :  { %v3434_v17 = vsel %vm3431_vm6, %v3433_v60, %v3429_v31 }
 0x659   :  { %v3437_v45 = vmul.f32 %v5395_v30, %v3434_v17  ;;  %v3451_v48 = vsel %vm3450_vm4, %v5393_v49, %v3447_v10 }
 0x65a   :  { %v3456_v5 = vsel %vm3453_vm15, %v3455_v2, %v3451_v48 }
 0x65b   :  { %v8169_v40 = vadd.f32 %v3437_v45, %v3416_v41 }
 0x65d   :  { %5396 = vtanh.f32 %v8169_v40  ;;  %v3579_v48 = vrot.slane %v8169_v40, 7 }
 0x663   :  { %v5397_v29 = vpop.eup %5396 }
 0x664   :  { %v3459_v22 = vmul.f32 %v5397_v29, %v3456_v5 }
 0x666   :  { %5060 = vmatmul.msk.f32.vlgmr.msrb.gmra.mxu0 %vm3310_vm13, %v3459_v22  ;;  %5061 = vmatmul.msk.f32.vlgmr.msrb.gmra.mxu1 %vm3310_vm13, %v3459_v22 }
 0x667   :  { %5062 = vmatmul.msk.f32.vlgmr.msrb.gmra.mxu2 %vm3310_vm13, %v3459_v22  ;;  %5063 = vmatmul.msk.f32.vlgmr.msrb.gmra.mxu3 %vm3310_vm13, %v3459_v22 }
 0x668   :  { %3807 = vmatpush.msrb.mxu0 %v8074_v55  ;;  %3831 = vmatpush.msrb.mxu1 %v7990_v61 }
 0x669   :  { %3855 = vmatpush.msrb.mxu2 %v8079_v32  ;;  %3879 = vmatpush.msrb.mxu3 %v7995_v59 }
 0x66a   :  { %3808 = vmatpush.msrb.mxu0 %v8088_v37  ;;  %3832 = vmatpush.msrb.mxu1 %v8012_v34 }
 0x66b   :  { %3856 = vmatpush.msrb.mxu2 %v8093_v57  ;;  %3880 = vmatpush.msrb.mxu3 %v8017_v35 }
 0x66c   :  { %3809 = vmatpush.msrb.mxu0 %v8100_v23  ;;  %3833 = vmatpush.msrb.mxu1 %v8025_v12 }
 0x66d   :  { %3857 = vmatpush.msrb.mxu2 %v8105_v24  ;;  %3881 = vmatpush.msrb.mxu3 %v8030_v56 }
 0x66e   :  { %3810 = vmatpush.msrb.mxu0 %v8114_v28  ;;  %3834 = vmatpush.msrb.mxu1 %v8037_v43 }
 0x66f   :  { %3858 = vmatpush.msrb.mxu2 %v8119_v33  ;;  %3882 = vmatpush.msrb.mxu3 %v8042_v4 }
 0x6e3   :  { %v3480_v42 = vpop.f32.mrf.mxu0  ;;  %v3504_v1 = vpop.f32.mrf.mxu1 }
 0x6e4   :  { %v3484_v16 = vrot.slane %v3480_v42, 7  ;;  %v3508_v58 = vrot.slane %v3504_v1, 7 }
 0x6e6   :  { %v3486_v27 = vadd.f32 %v3484_v16, %v8157_v39  ;;  %v3510_v38 = vadd.f32 %v3508_v58, %v8148_v63 }
 0x6e8   :  { %v5065_v18 = vmul.f32 -1.442695, %v3486_v27  ;;  %v5064_v11 = vmul.f32 -1.442695, %v3510_v38 }
 0x6ea   :  { %5398 = vpow2.f32 %v5065_v18  ;;  %v3552_v19 = vpop.f32.mrf.mxu3  ;;  %v3528_v51 = vpop.f32.mrf.mxu2 }
 0x6eb   :  { %5400 = vpow2.f32 %v5064_v11  ;;  %v3556_v44 = vrot.slane %v3552_v19, 7  ;;  %v3532_v0 = vrot.slane %v3528_v51, 7 }
 0x6ed   :  { %v3558_v50 = vadd.f32 %v3556_v44, %v8159_v54  ;;  %v3534_v52 = vadd.f32 %v3532_v0, %v8166_v8 }
 0x6ef   :  { %v5066_v9 = vmul.f32 -1.442695, %v3558_v50 }
 0x6f0   :  { %v5399_v6 = vpop.eup %5398 }
 0x6f1   :  { %v5401_v26 = vpop.eup %5400  ;;  %v3585_v62 = vadd.f32 1.0, %v5399_v6  ;;  %5402 = vpow2.f32 %v5066_v9 }
 0x6f2   :  { %v3562_v49 = vadd.f32 1.0, %v5401_v26 }
 0x6f3   :  { %5404 = vrcp.f32 %v3585_v62  ;;  %v3597_v53 = vand.u32 2147483648, %v3585_v62  ;;  %v3595_v30 = vand.u32 2147483647, %v3585_v62  ;;  %vm3591_vm2 = vweird.f32 %v3585_v62 }
 0x6f4   :  { %5406 = vrcp.f32 %v3562_v49  ;;  %v3574_v60 = vand.u32 2147483648, %v3562_v49  ;;  %v3572_v17 = vand.u32 2147483647, %v3562_v49  ;;  %vm3568_vm14 = vweird.f32 %v3562_v49 }
 0x6f5   :  { %v3598_v20 = vor.u32 1.1754944e-38, %v3597_v53  ;;  %vm3596_vm5 = vcmp.eq.f32.partialorder %v3595_v30, 8.507059e+37 }
 0x6f6   :  { %v3575_v2 = vor.u32 1.1754944e-38, %v3574_v60  ;;  %vm3573_vm11 = vcmp.eq.f32.partialorder %v3572_v17, 8.507059e+37 }
 0x6f7   :  { %v5403_v47 = vpop.eup %5402 }
 0x6f8   :  { %v3607_v15 = vadd.f32 1.0, %v5403_v47 }
 0x6f9   :  { %v5405_v36 = vpop.eup %5404 }
 0x6fa   :  { %v5407_v25 = vpop.eup %5406  ;;  %v3587_v13 = vmul.f32 %v5405_v36, %v3585_v62  ;;  %5408 = vrcp.f32 %v3607_v15  ;;  %vm3592_vm7 = vweird.f32 %v5405_v36  ;;  %v3619_v40 = vand.u32 2147483648, %v3607_v15 }
 0x6fb   :  { %v3564_v21 = vmul.f32 %v5407_v25, %v3562_v49  ;;  %5410 = vtanh.f32 %v3534_v52  ;;  %vm3569_vm8 = vweird.f32 %v5407_v25  ;;  %vm3593_vm9 = vmor %vm3591_vm2, %vm3592_vm7  ;;  %vm3613_vm12 = vweird.f32 %v3607_v15 }
 0x6fc   :  { %v3588_v7 = vsub.f32 1.0, %v3587_v13  ;;  %vm3570_vm1 = vmor %vm3568_vm14, %vm3569_vm8  ;;  %v3617_v19 = vand.u32 2147483647, %v3607_v15  ;;  %v3620_v50 = vor.u32 1.1754944e-38, %v3619_v40 }
 0x6fd   :  { %v3565_v14 = vsub.f32 1.0, %v3564_v21 }
 0x6fe   :  { %v3589_v31 = vmul.f32 %v5405_v36, %v3588_v7  ;;  %vm3618_vm10 = vcmp.eq.f32.partialorder %v3617_v19, 8.507059e+37 }
 0x6ff   :  { %v3566_v3 = vmul.f32 %v5407_v25, %v3565_v14 }
 0x700   :  { %v5409_v41 = vpop.eup %5408  ;;  %v3590_v45 = vadd.f32 %v5405_v36, %v3589_v31 }
 0x701   :  { %v3567_v10 = vadd.f32 %v5407_v25, %v3566_v3  ;;  %v3609_v46 = vmul.f32 %v5409_v41, %v3607_v15  ;;  %v5411_v5 = vpop.eup %5410  ;;  %vm3614_vm0 = vweird.f32 %v5409_v41 }
 0x702   :  { %v3594_v29 = vsel %vm3593_vm9, %v5405_v36, %v3590_v45  ;;  %vm3615_vm6 = vmor %vm3613_vm12, %vm3614_vm0 }
 0x703   :  { %v3571_v22 = vsel %vm3570_vm1, %v5407_v25, %v3567_v10  ;;  %v3599_v42 = vsel %vm3596_vm5, %v3598_v20, %v3594_v29  ;;  %v3610_v1 = vsub.f32 1.0, %v3609_v46 }
 0x704   :  { %v3576_v16 = vsel %vm3573_vm11, %v3575_v2, %v3571_v22  ;;  %v3602_v58 = vmul.f32 %v5411_v5, %v3599_v42 }
 0x705   :  { %v3581_v27 = vmul.f32 %v3579_v48, %v3576_v16  ;;  %v3611_v38 = vmul.f32 %v5409_v41, %v3610_v1 }
 0x707   :  { %v8197_v18 = vadd.f32 %v3602_v58, %v3581_v27  ;;  %v3612_v11 = vadd.f32 %v5409_v41, %v3611_v38 }
 0x709   :  { %5412 = vtanh.f32 %v8197_v18  ;;  %v3616_v44 = vsel %vm3615_vm6, %v5409_v41, %v3612_v11 }
 0x70a   :  { %v3621_v6 = vsel %vm3618_vm10, %v3620_v50, %v3616_v44  ;;  %v3745_v50 = vrot.slane %v8197_v18, 7 }
 0x70f   :  { %v5413_v9 = vpop.eup %5412 }
 0x710   :  { %v3624_v26 = vmul.f32 %v5413_v9, %v3621_v6 }
 0x712   :  { %v3626_v62 = vrot.slane %v3624_v26, 1 }
 0x714   :  { %5067 = vmatmul.msk.f32.vlgmr.msra.gmra.mxu0 %vm3310_vm13, %v3626_v62  ;;  %5068 = vmatmul.msk.f32.vlgmr.msra.gmra.mxu1 %vm3310_vm13, %v3626_v62 }
 0x715   :  { %5069 = vmatmul.msk.f32.vlgmr.msra.gmra.mxu2 %vm3310_vm13, %v3626_v62  ;;  %5070 = vmatmul.msk.f32.vlgmr.msra.gmra.mxu3 %vm3310_vm13, %v3626_v62 }
 0x716   :  { %3973 = vmatpush.msra.mxu0 %v8074_v55  ;;  %3997 = vmatpush.msra.mxu1 %v7990_v61 }
 0x717   :  { %4021 = vmatpush.msra.mxu2 %v8079_v32  ;;  %4045 = vmatpush.msra.mxu3 %v7995_v59 }
 0x718   :  { %3974 = vmatpush.msra.mxu0 %v8088_v37  ;;  %3998 = vmatpush.msra.mxu1 %v8012_v34 }
 0x719   :  { %4022 = vmatpush.msra.mxu2 %v8093_v57  ;;  %4046 = vmatpush.msra.mxu3 %v8017_v35 }
 0x71a   :  { %3975 = vmatpush.msra.mxu0 %v8100_v23  ;;  %3999 = vmatpush.msra.mxu1 %v8025_v12 }
 0x71b   :  { %4023 = vmatpush.msra.mxu2 %v8105_v24  ;;  %4047 = vmatpush.msra.mxu3 %v8030_v56 }
 0x71c   :  { %3976 = vmatpush.msra.mxu0 %v8114_v28  ;;  %4000 = vmatpush.msra.mxu1 %v8037_v43 }
 0x71d   :  { %4024 = vmatpush.msra.mxu2 %v8119_v33  ;;  %4048 = vmatpush.msra.mxu3 %v8042_v4 }
 0x791   :  { %v3646_v49 = vpop.f32.mrf.mxu0  ;;  %v3670_v51 = vpop.f32.mrf.mxu1 }
 0x792   :  { %v3650_v0 = vrot.slane %v3646_v49, 6  ;;  %v3674_v47 = vrot.slane %v3670_v51, 6 }
 0x794   :  { %v3652_v15 = vadd.f32 %v3650_v0, %v8157_v39  ;;  %v3676_v36 = vadd.f32 %v3674_v47, %v8148_v63 }
 0x796   :  { %v5072_v52 = vmul.f32 -1.442695, %v3652_v15  ;;  %v5071_v25 = vmul.f32 -1.442695, %v3676_v36 }
 0x798   :  { %5414 = vpow2.f32 %v5072_v52  ;;  %v3718_v13 = vpop.f32.mrf.mxu3  ;;  %v3694_v3 = vpop.f32.mrf.mxu2 }
 0x799   :  { %5416 = vpow2.f32 %v5071_v25  ;;  %v3722_v21 = vrot.slane %v3718_v13, 6  ;;  %v3698_v17 = vrot.slane %v3694_v3, 6 }
 0x79b   :  { %v3724_v7 = vadd.f32 %v3722_v21, %v8159_v54  ;;  %v3700_v20 = vadd.f32 %v3698_v17, %v8166_v8 }
 0x79d   :  { %v5073_v14 = vmul.f32 -1.442695, %v3724_v7 }
 0x79e   :  { %v5415_v53 = vpop.eup %5414 }
 0x79f   :  { %v5417_v60 = vpop.eup %5416  ;;  %v3751_v31 = vadd.f32 1.0, %v5415_v53  ;;  %5418 = vpow2.f32 %v5073_v14 }
 0x7a0   :  { %v3728_v30 = vadd.f32 1.0, %v5417_v60 }
 0x7a1   :  { %5420 = vrcp.f32 %v3751_v31  ;;  %v3763_v22 = vand.u32 2147483648, %v3751_v31  ;;  %v3761_v16 = vand.u32 2147483647, %v3751_v31  ;;  %vm3757_vm15 = vweird.f32 %v3751_v31 }
 0x7a2   :  { %5422 = vrcp.f32 %v3728_v30  ;;  %v3740_v42 = vand.u32 2147483648, %v3728_v30  ;;  %v3738_v27 = vand.u32 2147483647, %v3728_v30  ;;  %vm3734_vm7 = vweird.f32 %v3728_v30 }
 0x7a3   :  { %v3764_v19 = vor.u32 1.1754944e-38, %v3763_v22  ;;  %vm3762_vm14 = vcmp.eq.f32.partialorder %v3761_v16, 8.507059e+37 }
 0x7a4   :  { %v3741_v9 = vor.u32 1.1754944e-38, %v3740_v42  ;;  %vm3739_vm9 = vcmp.eq.f32.partialorder %v3738_v27, 8.507059e+37 }
 0x7a5   :  { %v5419_v41 = vpop.eup %5418 }
 0x7a6   :  { %v3773_v45 = vadd.f32 1.0, %v5419_v41 }
 0x7a7   :  { %v5421_v10 = vpop.eup %5420 }
 0x7a8   :  { %v5423_v46 = vpop.eup %5422  ;;  %v3753_v48 = vmul.f32 %v5421_v10, %v3751_v31  ;;  %5424 = vrcp.f32 %v3773_v45  ;;  %vm3758_vm3 = vweird.f32 %v5421_v10  ;;  %v3785_v18 = vand.u32 2147483648, %v3773_v45 }
 0x7a9   :  { %v3730_v2 = vmul.f32 %v5423_v46, %v3728_v30  ;;  %5426 = vtanh.f32 %v3700_v20  ;;  %vm3735_vm4 = vweird.f32 %v5423_v46  ;;  %vm3759_vm8 = vmor %vm3757_vm15, %vm3758_vm3  ;;  %vm3779_vm5 = vweird.f32 %v3773_v45 }
 0x7aa   :  { %v3754_v29 = vsub.f32 1.0, %v3753_v48  ;;  %vm3736_vm2 = vmor %vm3734_vm7, %vm3735_vm4  ;;  %v3783_v13 = vand.u32 2147483647, %v3773_v45  ;;  %v3786_v7 = vor.u32 1.1754944e-38, %v3785_v18 }
 0x7ab   :  { %v3731_v5 = vsub.f32 1.0, %v3730_v2 }
 0x7ac   :  { %v3755_v1 = vmul.f32 %v5421_v10, %v3754_v29  ;;  %vm3784_vm0 = vcmp.eq.f32.partialorder %v3783_v13, 8.507059e+37 }
 0x7ad   :  { %v3732_v58 = vmul.f32 %v5423_v46, %v3731_v5 }
 0x7ae   :  { %v5425_v38 = vpop.eup %5424  ;;  %v3756_v11 = vadd.f32 %v5421_v10, %v3755_v1 }
 0x7af   :  { %v3733_v40 = vadd.f32 %v5423_v46, %v3732_v58  ;;  %v3775_v44 = vmul.f32 %v5425_v38, %v3773_v45  ;;  %v5427_v26 = vpop.eup %5426  ;;  %vm3780_vm1 = vweird.f32 %v5425_v38 }
 0x7b0   :  { %v3760_v6 = vsel %vm3759_vm8, %v5421_v10, %v3756_v11  ;;  %vm3781_vm11 = vmor %vm3779_vm5, %vm3780_vm1 }
 0x7b1   :  { %v3737_v62 = vsel %vm3736_vm2, %v5423_v46, %v3733_v40  ;;  %v3765_v49 = vsel %vm3762_vm14, %v3764_v19, %v3760_v6  ;;  %v3776_v51 = vsub.f32 1.0, %v3775_v44 }
 0x7b2   :  { %v3742_v0 = vsel %vm3739_vm9, %v3741_v9, %v3737_v62  ;;  %v3768_v47 = vmul.f32 %v5427_v26, %v3765_v49 }
 0x7b3   :  { %v3747_v15 = vmul.f32 %v3745_v50, %v3742_v0  ;;  %v3777_v36 = vmul.f32 %v5425_v38, %v3776_v51 }
 0x7b5   :  { %v8225_v52 = vadd.f32 %v3768_v47, %v3747_v15  ;;  %v3778_v25 = vadd.f32 %v5425_v38, %v3777_v36 }
 0x7b7   :  { %5428 = vtanh.f32 %v8225_v52  ;;  %v3782_v21 = vsel %vm3781_vm11, %v5425_v38, %v3778_v25 }
 0x7b8   :  { %v3787_v53 = vsel %vm3784_vm0, %v3786_v7, %v3782_v21  ;;  %v3911_v7 = vrot.slane %v8225_v52, 7 }
 0x7bd   :  { %v5429_v14 = vpop.eup %5428 }
 0x7be   :  { %v3790_v60 = vmul.f32 %v5429_v14, %v3787_v53 }
 0x7c0   :  { %v3792_v31 = vrot.slane %v3790_v60, 2 }
 0x7c2   :  { %5074 = vmatmul.msk.f32.vlgmr.msrb.gmra.mxu0 %vm3310_vm13, %v3792_v31  ;;  %5075 = vmatmul.msk.f32.vlgmr.msrb.gmra.mxu1 %vm3310_vm13, %v3792_v31 }
 0x7c3   :  { %5076 = vmatmul.msk.f32.vlgmr.msrb.gmra.mxu2 %vm3310_vm13, %v3792_v31  ;;  %5077 = vmatmul.msk.f32.vlgmr.msrb.gmra.mxu3 %vm3310_vm13, %v3792_v31 }
 0x7c4   :  { %4139 = vmatpush.msrb.mxu0 %v8074_v55  ;;  %4163 = vmatpush.msrb.mxu1 %v7990_v61 }
 0x7c5   :  { %4187 = vmatpush.msrb.mxu2 %v8079_v32  ;;  %4211 = vmatpush.msrb.mxu3 %v7995_v59 }
 0x7c6   :  { %4140 = vmatpush.msrb.mxu0 %v8088_v37  ;;  %4164 = vmatpush.msrb.mxu1 %v8012_v34 }
 0x7c7   :  { %4188 = vmatpush.msrb.mxu2 %v8093_v57  ;;  %4212 = vmatpush.msrb.mxu3 %v8017_v35 }
 0x7c8   :  { %4141 = vmatpush.msrb.mxu0 %v8100_v23  ;;  %4165 = vmatpush.msrb.mxu1 %v8025_v12 }
 0x7c9   :  { %4189 = vmatpush.msrb.mxu2 %v8105_v24  ;;  %4213 = vmatpush.msrb.mxu3 %v8030_v56 }
 0x7ca   :  { %4142 = vmatpush.msrb.mxu0 %v8114_v28  ;;  %4166 = vmatpush.msrb.mxu1 %v8037_v43 }
 0x7cb   :  { %4190 = vmatpush.msrb.mxu2 %v8119_v33  ;;  %4214 = vmatpush.msrb.mxu3 %v8042_v4 }
 0x83f   :  { %v3812_v30 = vpop.f32.mrf.mxu0  ;;  %v3836_v3 = vpop.f32.mrf.mxu1 }
 0x840   :  { %v3816_v17 = vrot.slane %v3812_v30, 5  ;;  %v3840_v41 = vrot.slane %v3836_v3, 5 }
 0x842   :  { %v3818_v45 = vadd.f32 %v3816_v17, %v8157_v39  ;;  %v3842_v10 = vadd.f32 %v3840_v41, %v8148_v63 }
 0x844   :  { %v5079_v20 = vmul.f32 -1.442695, %v3818_v45  ;;  %v5078_v46 = vmul.f32 -1.442695, %v3842_v10 }
 0x846   :  { %5430 = vpow2.f32 %v5079_v20  ;;  %v3884_v48 = vpop.f32.mrf.mxu3  ;;  %v3860_v58 = vpop.f32.mrf.mxu2 }
 0x847   :  { %5432 = vpow2.f32 %v5078_v46  ;;  %v3888_v2 = vrot.slane %v3884_v48, 5  ;;  %v3864_v27 = vrot.slane %v3860_v58, 5 }
 0x849   :  { %v3890_v29 = vadd.f32 %v3888_v2, %v8159_v54  ;;  %v3866_v19 = vadd.f32 %v3864_v27, %v8166_v8 }
 0x84b   :  { %v5080_v5 = vmul.f32 -1.442695, %v3890_v29 }
 0x84c   :  { %v5431_v22 = vpop.eup %5430 }
 0x84d   :  { %v5433_v42 = vpop.eup %5432  ;;  %v3917_v1 = vadd.f32 1.0, %v5431_v22  ;;  %5434 = vpow2.f32 %v5080_v5 }
 0x84e   :  { %v3894_v16 = vadd.f32 1.0, %v5433_v42 }
 0x84f   :  { %5436 = vrcp.f32 %v3917_v1  ;;  %v3929_v62 = vand.u32 2147483648, %v3917_v1  ;;  %v3927_v0 = vand.u32 2147483647, %v3917_v1  ;;  %vm3923_vm10 = vweird.f32 %v3917_v1 }
 0x850   :  { %5438 = vrcp.f32 %v3894_v16  ;;  %v3906_v49 = vand.u32 2147483648, %v3894_v16  ;;  %v3904_v15 = vand.u32 2147483647, %v3894_v16  ;;  %vm3900_vm3 = vweird.f32 %v3894_v16 }
 0x851   :  { %v3930_v13 = vor.u32 1.1754944e-38, %v3929_v62  ;;  %vm3928_vm7 = vcmp.eq.f32.partialorder %v3927_v0, 8.507059e+37 }
 0x852   :  { %v3907_v14 = vor.u32 1.1754944e-38, %v3906_v49  ;;  %vm3905_vm8 = vcmp.eq.f32.partialorder %v3904_v15, 8.507059e+37 }
 0x853   :  { %v5435_v38 = vpop.eup %5434 }
 0x854   :  { %v3939_v11 = vadd.f32 1.0, %v5435_v38 }
 0x855   :  { %v5437_v40 = vpop.eup %5436 }
 0x856   :  { %v5439_v44 = vpop.eup %5438  ;;  %v3919_v50 = vmul.f32 %v5437_v40, %v3917_v1  ;;  %5440 = vrcp.f32 %v3939_v11  ;;  %vm3924_vm12 = vweird.f32 %v5437_v40  ;;  %v3951_v52 = vand.u32 2147483648, %v3939_v11 }
 0x857   :  { %v3896_v9 = vmul.f32 %v5439_v44, %v3894_v16  ;;  %5442 = vtanh.f32 %v3866_v19  ;;  %vm3901_vm6 = vweird.f32 %v5439_v44  ;;  %vm3925_vm4 = vmor %vm3923_vm10, %vm3924_vm12  ;;  %vm3945_vm14 = vweird.f32 %v3939_v11 }
 0x858   :  { %v3920_v6 = vsub.f32 1.0, %v3919_v50  ;;  %vm3902_vm15 = vmor %vm3900_vm3, %vm3901_vm6  ;;  %v3949_v48 = vand.u32 2147483647, %v3939_v11  ;;  %v3952_v29 = vor.u32 1.1754944e-38, %v3951_v52 }
 0x859   :  { %v3897_v26 = vsub.f32 1.0, %v3896_v9 }
 0x85a   :  { %v3921_v51 = vmul.f32 %v5437_v40, %v3920_v6  ;;  %vm3950_vm1 = vcmp.eq.f32.partialorder %v3949_v48, 8.507059e+37 }
 0x85b   :  { %v3898_v47 = vmul.f32 %v5439_v44, %v3897_v26 }
 0x85c   :  { %v5441_v36 = vpop.eup %5440  ;;  %v3922_v25 = vadd.f32 %v5437_v40, %v3921_v51 }
 0x85d   :  { %v3899_v18 = vadd.f32 %v5439_v44, %v3898_v47  ;;  %v3941_v21 = vmul.f32 %v5441_v36, %v3939_v11  ;;  %v5443_v60 = vpop.eup %5442  ;;  %vm3946_vm2 = vweird.f32 %v5441_v36 }
 0x85e   :  { %v3926_v53 = vsel %vm3925_vm4, %v5437_v40, %v3922_v25  ;;  %vm3947_vm9 = vmor %vm3945_vm14, %vm3946_vm2 }
 0x85f   :  { %v3903_v31 = vsel %vm3902_vm15, %v5439_v44, %v3899_v18  ;;  %v3931_v30 = vsel %vm3928_vm7, %v3930_v13, %v3926_v53  ;;  %v3942_v3 = vsub.f32 1.0, %v3941_v21 }
 0x860   :  { %v3908_v17 = vsel %vm3905_vm8, %v3907_v14, %v3903_v31  ;;  %v3934_v41 = vmul.f32 %v5443_v60, %v3931_v30 }
 0x861   :  { %v3913_v45 = vmul.f32 %v3911_v7, %v3908_v17  ;;  %v3943_v10 = vmul.f32 %v5441_v36, %v3942_v3 }
 0x863   :  { %v8253_v20 = vadd.f32 %v3934_v41, %v3913_v45  ;;  %v3944_v46 = vadd.f32 %v5441_v36, %v3943_v10 }
 0x865   :  { %5444 = vtanh.f32 %v8253_v20  ;;  %v3948_v2 = vsel %vm3947_vm9, %v5441_v36, %v3944_v46  ;;  %v4077_v21 = vrot.slane %v8253_v20, 7 }
 0x866   :  { %v3953_v22 = vsel %vm3950_vm1, %v3952_v29, %v3948_v2 }
 0x86b   :  { %v5445_v5 = vpop.eup %5444 }
 0x86c   :  { %v3956_v42 = vmul.f32 %v5445_v5, %v3953_v22 }
 0x86e   :  { %v3958_v1 = vrot.slane %v3956_v42, 3 }
 0x870   :  { %5081 = vmatmul.msk.f32.vlgmr.msra.gmra.mxu0 %vm3310_vm13, %v3958_v1  ;;  %5082 = vmatmul.msk.f32.vlgmr.msra.gmra.mxu1 %vm3310_vm13, %v3958_v1 }
 0x871   :  { %5083 = vmatmul.msk.f32.vlgmr.msra.gmra.mxu2 %vm3310_vm13, %v3958_v1  ;;  %5084 = vmatmul.msk.f32.vlgmr.msra.gmra.mxu3 %vm3310_vm13, %v3958_v1  ;;  %v5626_v1 = vld [vmem:[%s8418_s9 + $0x18] sm:$0xff] }
 0x872   :  { %4305 = vmatpush.msra.mxu0 %v8074_v55  ;;  %4329 = vmatpush.msra.mxu1 %v7990_v61 }
 0x873   :  { %4353 = vmatpush.msra.mxu2 %v8079_v32  ;;  %4377 = vmatpush.msra.mxu3 %v7995_v59 }
 0x874   :  { %4306 = vmatpush.msra.mxu0 %v8088_v37  ;;  %4330 = vmatpush.msra.mxu1 %v8012_v34 }
 0x875   :  { %4354 = vmatpush.msra.mxu2 %v8093_v57  ;;  %4378 = vmatpush.msra.mxu3 %v8017_v35 }
 0x876   :  { %4307 = vmatpush.msra.mxu0 %v8100_v23  ;;  %4331 = vmatpush.msra.mxu1 %v8025_v12 }
 0x877   :  { %4355 = vmatpush.msra.mxu2 %v8105_v24  ;;  %4379 = vmatpush.msra.mxu3 %v8030_v56 }
 0x878   :  { %4308 = vmatpush.msra.mxu0 %v8114_v28  ;;  %4332 = vmatpush.msra.mxu1 %v8037_v43 }
 0x879   :  { %4356 = vmatpush.msra.mxu2 %v8119_v33  ;;  %4380 = vmatpush.msra.mxu3 %v8042_v4 }
 0x8ed   :  { %v3978_v61 = vpop.f32.mrf.mxu0  ;;  %v4002_v59 = vpop.f32.mrf.mxu1 }
 0x8ee   :  { %v3982_v34 = vrot.slane %v3978_v61, 4  ;;  %v4006_v35 = vrot.slane %v4002_v59, 4  ;;  %v5627_v61 = vld [vmem:[%s8418_s9 + $0x38] sm:$0xff] }
 0x8ef   :  { %v5628_v59 = vld [vmem:[%s8418_s9 + $0x58] sm:$0xff] }
 0x8f0   :  { %v3984_v55 = vadd.f32 %v3982_v34, %v8157_v39  ;;  %v4008_v12 = vadd.f32 %v4006_v35, %v8148_v63  ;;  %v5629_v34 = vld [vmem:[%s8418_s9 + $0x78] sm:$0xff]  ;;  %v5630_v35 = vld [vmem:[%s8418_s9 + $0x10] sm:$0xff] }
 0x8f2   :  { %v5086_v32 = vmul.f32 -1.442695, %v3984_v55  ;;  %v5085_v37 = vmul.f32 -1.442695, %v4008_v12  ;;  %v5631_v55 = vld [vmem:[%s8418_s9 + $0x30] sm:$0xff] }
 0x8f3   :  { %v5632_v12 = vld [vmem:[%s8418_s9 + $0x50] sm:$0xff] }
 0x8f4   :  { %5446 = vpow2.f32 %v5086_v32  ;;  %v4050_v56 = vpop.f32.mrf.mxu3  ;;  %v4026_v16 = vpop.f32.mrf.mxu2  ;;  %v5633_v32 = vld [vmem:[%s8418_s9 + $0x70] sm:$0xff] }
 0x8f5   :  { %5448 = vpow2.f32 %v5085_v37  ;;  %v4054_v57 = vrot.slane %v4050_v56, 4  ;;  %v4030_v58 = vrot.slane %v4026_v16, 4  ;;  %v5634_v37 = vld [vmem:[%s8418_s9 + $0x8] sm:$0xff] }
 0x8f6   :  { %v5635_v56 = vld [vmem:[%s8418_s9 + $0x28] sm:$0xff] }
 0x8f7   :  { %v4056_v43 = vadd.f32 %v4054_v57, %v8159_v54  ;;  %v4032_v40 = vadd.f32 %v4030_v58, %v8166_v8  ;;  %v5636_v57 = vld [vmem:[%s8418_s9 + $0x48] sm:$0xff] }
 0x8f9   :  { %v5087_v23 = vmul.f32 -1.442695, %v4056_v43  ;;  %v5637_v43 = vld [vmem:[%s8418_s9 + $0x68] sm:$0xff] }
 0x8fa   :  { %v5447_v24 = vpop.eup %5446 }
 0x8fb   :  { %v5449_v28 = vpop.eup %5448  ;;  %v4083_v4 = vadd.f32 1.0, %v5447_v24  ;;  %5450 = vpow2.f32 %v5087_v23  ;;  %v5638_v23 = vld [vmem:[%s8418_s9] sm:$0xff] }
 0x8fc   :  { %v4060_v33 = vadd.f32 1.0, %v5449_v28  ;;  %v5639_v24 = vld [vmem:[%s8418_s9 + $0x20] sm:$0xff] }
 0x8fd   :  { %5452 = vrcp.f32 %v4083_v4  ;;  %v4095_v26 = vand.u32 2147483648, %v4083_v4  ;;  %v4093_v51 = vand.u32 2147483647, %v4083_v4  ;;  %vm4089_vm0 = vweird.f32 %v4083_v4  ;;  %v5640_v28 = vld [vmem:[%s8418_s9 + $0x40] sm:$0xff] }
 0x8fe   :  { %5454 = vrcp.f32 %v4060_v33  ;;  %v4072_v62 = vand.u32 2147483648, %v4060_v33  ;;  %v4070_v47 = vand.u32 2147483647, %v4060_v33  ;;  %vm4066_vm12 = vweird.f32 %v4060_v33 }
 0x8ff   :  { %v4096_v18 = vor.u32 1.1754944e-38, %v4095_v26  ;;  %vm4094_vm3 = vcmp.eq.f32.partialorder %v4093_v51, 8.507059e+37 }
 0x900   :  { %v4073_v7 = vor.u32 1.1754944e-38, %v4072_v62  ;;  %vm4071_vm4 = vcmp.eq.f32.partialorder %v4070_v47, 8.507059e+37 }
 0x901   :  { %v5451_v27 = vpop.eup %5450 }
 0x902   :  { %v4105_v38 = vadd.f32 1.0, %v5451_v27 }
 0x903   :  { %v5453_v11 = vpop.eup %5452 }
 0x904   :  { %v5455_v19 = vpop.eup %5454  ;;  %v4085_v44 = vmul.f32 %v5453_v11, %v4083_v4  ;;  %5456 = vrcp.f32 %v4105_v38  ;;  %vm4090_vm5 = vweird.f32 %v5453_v11  ;;  %v4117_v20 = vand.u32 2147483648, %v4105_v38  ;;  %v5641_v4 = vld [vmem:[%s8418_s9 + $0x60] sm:$0xff] }
 0x905   :  { %v4062_v50 = vmul.f32 %v5455_v19, %v4060_v33  ;;  %5458 = vtanh.f32 %v4032_v40  ;;  %vm4067_vm11 = vweird.f32 %v5455_v19  ;;  %vm4091_vm6 = vmor %vm4089_vm0, %vm4090_vm5  ;;  %vm4111_vm7 = vweird.f32 %v4105_v38 }
 0x906   :  { %v4086_v9 = vsub.f32 1.0, %v4085_v44  ;;  %vm4068_vm10 = vmor %vm4066_vm12, %vm4067_vm11  ;;  %v4115_v52 = vand.u32 2147483647, %v4105_v38  ;;  %v4118_v2 = vor.u32 1.1754944e-38, %v4117_v20 }
 0x907   :  { %v4063_v6 = vsub.f32 1.0, %v4062_v50 }
 0x908   :  { %v4087_v49 = vmul.f32 %v5453_v11, %v4086_v9  ;;  %vm4116_vm2 = vcmp.eq.f32.partialorder %v4115_v52, 8.507059e+37 }
 0x909   :  { %v4064_v0 = vmul.f32 %v5455_v19, %v4063_v6 }
 0x90a   :  { %v5457_v15 = vpop.eup %5456  ;;  %v4088_v36 = vadd.f32 %v5453_v11, %v4087_v49 }
 0x90b   :  { %v4065_v25 = vadd.f32 %v5455_v19, %v4064_v0  ;;  %v4107_v13 = vmul.f32 %v5457_v15, %v4105_v38  ;;  %v5459_v53 = vpop.eup %5458  ;;  %vm4112_vm15 = vweird.f32 %v5457_v15 }
 0x90c   :  { %v4092_v14 = vsel %vm4091_vm6, %v5453_v11, %v4088_v36  ;;  %vm4113_vm8 = vmor %vm4111_vm7, %vm4112_vm15 }
 0x90d   :  { %v4069_v60 = vsel %vm4068_vm10, %v5455_v19, %v4065_v25  ;;  %v4097_v31 = vsel %vm4094_vm3, %v4096_v18, %v4092_v14  ;;  %v4108_v30 = vsub.f32 1.0, %v4107_v13 }
 0x90e   :  { %v4074_v3 = vsel %vm4071_vm4, %v4073_v7, %v4069_v60  ;;  %v4100_v17 = vmul.f32 %v5459_v53, %v4097_v31 }
 0x90f   :  { %v4079_v41 = vmul.f32 %v4077_v21, %v4074_v3  ;;  %v4109_v45 = vmul.f32 %v5457_v15, %v4108_v30 }
 0x911   :  { %v8281_v10 = vadd.f32 %v4100_v17, %v4079_v41  ;;  %v4110_v46 = vadd.f32 %v5457_v15, %v4109_v45 }
 0x913   :  { %5460 = vtanh.f32 %v8281_v10  ;;  %v4114_v48 = vsel %vm4113_vm8, %v5457_v15, %v4110_v46 }
 0x914   :  { %v4119_v5 = vsel %vm4116_vm2, %v4118_v2, %v4114_v48  ;;  %v4243_v2 = vrot.slane %v8281_v10, 7 }
 0x919   :  { %v5461_v29 = vpop.eup %5460 }
 0x91a   :  { %v4122_v22 = vmul.f32 %v5461_v29, %v4119_v5 }
 0x91c   :  { %v4124_v42 = vrot.slane %v4122_v22, 4 }
 0x91e   :  { %5088 = vmatmul.msk.f32.vlgmr.msrb.gmra.mxu0 %vm3310_vm13, %v4124_v42  ;;  %5089 = vmatmul.msk.f32.vlgmr.msrb.gmra.mxu1 %vm3310_vm13, %v4124_v42 }
 0x91f   :  { %5090 = vmatmul.msk.f32.vlgmr.msrb.gmra.mxu2 %vm3310_vm13, %v4124_v42  ;;  %5091 = vmatmul.msk.f32.vlgmr.msrb.gmra.mxu3 %vm3310_vm13, %v4124_v42 }
 0x920   :  { %4471 = vmatpush.msrb.mxu0 %v5626_v1  ;;  %4495 = vmatpush.msrb.mxu1 %v5627_v61 }
 0x921   :  { %4519 = vmatpush.msrb.mxu2 %v5628_v59  ;;  %4543 = vmatpush.msrb.mxu3 %v5629_v34 }
 0x922   :  { %4472 = vmatpush.msrb.mxu0 %v5630_v35  ;;  %4496 = vmatpush.msrb.mxu1 %v5631_v55 }
 0x923   :  { %4520 = vmatpush.msrb.mxu2 %v5632_v12  ;;  %4544 = vmatpush.msrb.mxu3 %v5633_v32 }
 0x924   :  { %4473 = vmatpush.msrb.mxu0 %v5634_v37  ;;  %4497 = vmatpush.msrb.mxu1 %v5635_v56 }
 0x925   :  { %4521 = vmatpush.msrb.mxu2 %v5636_v57  ;;  %4545 = vmatpush.msrb.mxu3 %v5637_v43 }
 0x926   :  { %4474 = vmatpush.msrb.mxu0 %v5638_v23  ;;  %4498 = vmatpush.msrb.mxu1 %v5639_v24 }
 0x927   :  { %4522 = vmatpush.msrb.mxu2 %v5640_v28  ;;  %4546 = vmatpush.msrb.mxu3 %v5641_v4 }
 0x99b   :  { %v4144_v33 = vpop.f32.mrf.mxu0  ;;  %v4168_v16 = vpop.f32.mrf.mxu1 }
 0x99c   :  { %v4148_v58 = vrot.slane %v4144_v33, 3  ;;  %v4172_v27 = vrot.slane %v4168_v16, 3 }
 0x99e   :  { %v4150_v38 = vadd.f32 %v4148_v58, %v8157_v39  ;;  %v4174_v11 = vadd.f32 %v4172_v27, %v8148_v63 }
 0x9a0   :  { %v5093_v40 = vmul.f32 -1.442695, %v4150_v38  ;;  %v5092_v19 = vmul.f32 -1.442695, %v4174_v11 }
 0x9a2   :  { %5462 = vpow2.f32 %v5093_v40  ;;  %v4216_v44 = vpop.f32.mrf.mxu3  ;;  %v4192_v0 = vpop.f32.mrf.mxu2 }
 0x9a3   :  { %5464 = vpow2.f32 %v5092_v19  ;;  %v4220_v50 = vrot.slane %v4216_v44, 3  ;;  %v4196_v47 = vrot.slane %v4192_v0, 3 }
 0x9a5   :  { %v4222_v9 = vadd.f32 %v4220_v50, %v8159_v54  ;;  %v4198_v18 = vadd.f32 %v4196_v47, %v8166_v8 }
 0x9a7   :  { %v5094_v6 = vmul.f32 -1.442695, %v4222_v9 }
 0x9a8   :  { %v5463_v26 = vpop.eup %5462 }
 0x9a9   :  { %v5465_v62 = vpop.eup %5464  ;;  %v4249_v49 = vadd.f32 1.0, %v5463_v26  ;;  %5466 = vpow2.f32 %v5094_v6 }
 0x9aa   :  { %v4226_v51 = vadd.f32 1.0, %v5465_v62 }
 0x9ab   :  { %5468 = vrcp.f32 %v4249_v49  ;;  %v4261_v60 = vand.u32 2147483648, %v4249_v49  ;;  %v4259_v3 = vand.u32 2147483647, %v4249_v49  ;;  %vm4255_vm1 = vweird.f32 %v4249_v49 }
 0x9ac   :  { %5470 = vrcp.f32 %v4226_v51  ;;  %v4238_v31 = vand.u32 2147483648, %v4226_v51  ;;  %v4236_v41 = vand.u32 2147483647, %v4226_v51  ;;  %vm4232_vm5 = vweird.f32 %v4226_v51 }
 0x9ad   :  { %v4262_v52 = vor.u32 1.1754944e-38, %v4261_v60  ;;  %vm4260_vm12 = vcmp.eq.f32.partialorder %v4259_v3, 8.507059e+37 }
 0x9ae   :  { %v4239_v29 = vor.u32 1.1754944e-38, %v4238_v31  ;;  %vm4237_vm6 = vcmp.eq.f32.partialorder %v4236_v41, 8.507059e+37 }
 0x9af   :  { %v5467_v15 = vpop.eup %5466 }
 0x9b0   :  { %v4271_v36 = vadd.f32 1.0, %v5467_v15 }
 0x9b1   :  { %v5469_v25 = vpop.eup %5468 }
 0x9b2   :  { %v5471_v13 = vpop.eup %5470  ;;  %v4251_v21 = vmul.f32 %v5469_v25, %v4249_v49  ;;  %5472 = vrcp.f32 %v4271_v36  ;;  %vm4256_vm14 = vweird.f32 %v5469_v25  ;;  %v4283_v10 = vand.u32 2147483648, %v4271_v36 }
 0x9b3   :  { %v4228_v7 = vmul.f32 %v5471_v13, %v4226_v51  ;;  %5474 = vtanh.f32 %v4198_v18  ;;  %vm4233_vm9 = vweird.f32 %v5471_v13  ;;  %vm4257_vm11 = vmor %vm4255_vm1, %vm4256_vm14  ;;  %vm4277_vm3 = vweird.f32 %v4271_v36 }
 0x9b4   :  { %v4252_v14 = vsub.f32 1.0, %v4251_v21  ;;  %vm4234_vm0 = vmor %vm4232_vm5, %vm4233_vm9  ;;  %v4281_v37 = vand.u32 2147483647, %v4271_v36  ;;  %v4284_v57 = vor.u32 1.1754944e-38, %v4283_v10 }
 0x9b5   :  { %v4229_v53 = vsub.f32 1.0, %v4228_v7 }
 0x9b6   :  { %v4253_v30 = vmul.f32 %v5469_v25, %v4252_v14  ;;  %vm4282_vm15 = vcmp.eq.f32.partialorder %v4281_v37, 8.507059e+37 }
 0x9b7   :  { %v4230_v17 = vmul.f32 %v5471_v13, %v4229_v53 }
 0x9b8   :  { %v5473_v45 = vpop.eup %5472  ;;  %v4254_v46 = vadd.f32 %v5469_v25, %v4253_v30 }
 0x9b9   :  { %v4231_v20 = vadd.f32 %v5471_v13, %v4230_v17  ;;  %v4273_v48 = vmul.f32 %v5473_v45, %v4271_v36  ;;  %v5475_v22 = vpop.eup %5474  ;;  %vm4278_vm10 = vweird.f32 %v5473_v45 }
 0x9ba   :  { %v4258_v5 = vsel %vm4257_vm11, %v5469_v25, %v4254_v46  ;;  %vm4279_vm4 = vmor %vm4277_vm3, %vm4278_vm10  ;;  %vm4627_vm3 = vcmask 64512  }
 0x9bb   :  { %v4235_v42 = vsel %vm4234_vm0, %v5471_v13, %v4231_v20  ;;  %v4263_v1 = vsel %vm4260_vm12, %v4262_v52, %v4258_v5  ;;  %v4274_v61 = vsub.f32 1.0, %v4273_v48 }
 0x9bc   :  { %v4240_v59 = vsel %vm4237_vm6, %v4239_v29, %v4235_v42  ;;  %v4266_v34 = vmul.f32 %v5475_v22, %v4263_v1 }
 0x9bd   :  { %v4245_v35 = vmul.f32 %v4243_v2, %v4240_v59  ;;  %v4275_v55 = vmul.f32 %v5473_v45, %v4274_v61 }
 0x9bf   :  { %v8341_v12 = vadd.f32 %v4266_v34, %v4245_v35  ;;  %v4276_v32 = vadd.f32 %v5473_v45, %v4275_v55 }
 0x9c1   :  { %5476 = vtanh.f32 %v8341_v12  ;;  %v4280_v56 = vsel %vm4279_vm4, %v5473_v45, %v4276_v32  ;;  %v4409_v48 = vrot.slane %v8341_v12, 7 }
 0x9c2   :  { %v4285_v23 = vsel %vm4282_vm15, %v4284_v57, %v4280_v56 }
 0x9c7   :  { %v5477_v43 = vpop.eup %5476 }
 0x9c8   :  { %v4288_v24 = vmul.f32 %v5477_v43, %v4285_v23 }
 0x9ca   :  { %v4290_v28 = vrot.slane %v4288_v24, 5 }
 0x9cc   :  { %5095 = vmatmul.msk.f32.vlgmr.msra.gmra.mxu0 %vm3310_vm13, %v4290_v28  ;;  %5096 = vmatmul.msk.f32.vlgmr.msra.gmra.mxu1 %vm3310_vm13, %v4290_v28 }
 0x9cd   :  { %5097 = vmatmul.msk.f32.vlgmr.msra.gmra.mxu2 %vm3310_vm13, %v4290_v28  ;;  %5098 = vmatmul.msk.f32.vlgmr.msra.gmra.mxu3 %vm3310_vm13, %v4290_v28 }
 0xa49   :  { %v4310_v4 = vpop.f32.mrf.mxu0  ;;  %v4334_v33 = vpop.f32.mrf.mxu1 }
 0xa4a   :  { %v4314_v16 = vrot.slane %v4310_v4, 2  ;;  %v4338_v58 = vrot.slane %v4334_v33, 2 }
 0xa4c   :  { %v4316_v27 = vadd.f32 %v4314_v16, %v8157_v39  ;;  %v4340_v38 = vadd.f32 %v4338_v58, %v8148_v63 }
 0xa4e   :  { %v5100_v11 = vmul.f32 -1.442695, %v4316_v27  ;;  %v5099_v40 = vmul.f32 -1.442695, %v4340_v38 }
 0xa50   :  { %5478 = vpow2.f32 %v5100_v11  ;;  %v4382_v19 = vpop.f32.mrf.mxu3  ;;  %v4358_v51 = vpop.f32.mrf.mxu2 }
 0xa51   :  { %5480 = vpow2.f32 %v5099_v40  ;;  %v4386_v44 = vrot.slane %v4382_v19, 2  ;;  %v4362_v0 = vrot.slane %v4358_v51, 2  ;;  %v4626_v40 = vld [vmem:[%s8422_s13] sm:$0xff]  ;;  %v4624_v19 = vld [vmem:[%s8421_s12 + $0x18] sm:$0xff] }
 0xa52   :  { %4646 = vmatpush.msra.mxu0 %v4626_v40  ;;  %4667 = vmatpush.msra.mxu1 %v4624_v19 }
 0xa53   :  { %v4388_v50 = vadd.f32 %v4386_v44, %v8159_v54  ;;  %v4364_v25 = vadd.f32 %v4362_v0, %v8166_v8  ;;  %v4623_v44 = vld [vmem:[%s8421_s12 + $0x10] sm:$0xff] }
 0xa54   :  { %4668 = vmatpush.msra.mxu1 %v4623_v44 }
 0xa55   :  { %v5101_v9 = vmul.f32 -1.442695, %v4388_v50 }
 0xa56   :  { %v5479_v6 = vpop.eup %5478 }
 0xa57   :  { %v5481_v26 = vpop.eup %5480  ;;  %v4415_v62 = vadd.f32 1.0, %v5479_v6  ;;  %5482 = vpow2.f32 %v5101_v9  ;;  %v4622_v9 = vld [vmem:[%s8421_s12 + $0x8] sm:$0xff] }
 0xa58   :  { %v4392_v49 = vadd.f32 1.0, %v5481_v26  ;;  %v4621_v26 = vld [vmem:[%s8421_s12] sm:$0xff]  ;;  %4669 = vmatpush.msra.mxu1 %v4622_v9 }
 0xa59   :  { %5484 = vrcp.f32 %v4415_v62  ;;  %v4427_v53 = vand.u32 2147483648, %v4415_v62  ;;  %v4425_v30 = vand.u32 2147483647, %v4415_v62  ;;  %vm4421_vm2 = vweird.f32 %v4415_v62 }
 0xa5a   :  { %5486 = vrcp.f32 %v4392_v49  ;;  %v4404_v60 = vand.u32 2147483648, %v4392_v49  ;;  %v4402_v17 = vand.u32 2147483647, %v4392_v49  ;;  %vm4398_vm14 = vweird.f32 %v4392_v49  ;;  %4670 = vmatpush.msra.mxu1 %v4621_v26 }
 0xa5b   :  { %v4428_v20 = vor.u32 1.1754944e-38, %v4427_v53  ;;  %vm4426_vm5 = vcmp.eq.f32.partialorder %v4425_v30, 8.507059e+37 }
 0xa5c   :  { %v4405_v2 = vor.u32 1.1754944e-38, %v4404_v60  ;;  %vm4403_vm11 = vcmp.eq.f32.partialorder %v4402_v17, 8.507059e+37 }
 0xa5d   :  { %v5483_v47 = vpop.eup %5482 }
 0xa5e   :  { %v4437_v15 = vadd.f32 1.0, %v5483_v47 }
 0xa5f   :  { %v5485_v36 = vpop.eup %5484 }
 0xa60   :  { %v5487_v18 = vpop.eup %5486  ;;  %v4417_v13 = vmul.f32 %v5485_v36, %v4415_v62  ;;  %5488 = vrcp.f32 %v4437_v15  ;;  %vm4422_vm7 = vweird.f32 %v5485_v36  ;;  %v4449_v12 = vand.u32 2147483648, %v4437_v15 }
 0xa61   :  { %v4394_v21 = vmul.f32 %v5487_v18, %v4392_v49  ;;  %5490 = vtanh.f32 %v4364_v25  ;;  %vm4399_vm8 = vweird.f32 %v5487_v18  ;;  %vm4423_vm9 = vmor %vm4421_vm2, %vm4422_vm7  ;;  %vm4443_vm12 = vweird.f32 %v4437_v15 }
 0xa62   :  { %v4418_v7 = vsub.f32 1.0, %v4417_v13  ;;  %vm4400_vm1 = vmor %vm4398_vm14, %vm4399_vm8  ;;  %v4447_v10 = vand.u32 2147483647, %v4437_v15  ;;  %v4450_v56 = vor.u32 1.1754944e-38, %v4449_v12 }
 0xa63   :  { %v4395_v14 = vsub.f32 1.0, %v4394_v21 }
 0xa64   :  { %v4419_v31 = vmul.f32 %v5485_v36, %v4418_v7  ;;  %vm4448_vm10 = vcmp.eq.f32.partialorder %v4447_v10, 8.507059e+37 }
 0xa65   :  { %v4396_v3 = vmul.f32 %v5487_v18, %v4395_v14 }
 0xa66   :  { %v5489_v41 = vpop.eup %5488  ;;  %v4420_v45 = vadd.f32 %v5485_v36, %v4419_v31 }
 0xa67   :  { %v4397_v46 = vadd.f32 %v5487_v18, %v4396_v3  ;;  %v4439_v52 = vmul.f32 %v5489_v41, %v4437_v15  ;;  %v5491_v5 = vpop.eup %5490  ;;  %vm4444_vm0 = vweird.f32 %v5489_v41 }
 0xa68   :  { %v4424_v29 = vsel %vm4423_vm9, %v5485_v36, %v4420_v45  ;;  %vm4445_vm6 = vmor %vm4443_vm12, %vm4444_vm0  ;;  %v4681_v36 = vld [vmem:[%s8424_s15 + $0x18] sm:$0xff] }
 0xa69   :  { %v4401_v22 = vsel %vm4400_vm1, %v5487_v18, %v4397_v46  ;;  %v4429_v42 = vsel %vm4426_vm5, %v4428_v20, %v4424_v29  ;;  %v4440_v1 = vsub.f32 1.0, %v4439_v52  ;;  %4698 = vmatpush.msra.mxu2 %v4681_v36 }
 0xa6a   :  { %v4406_v61 = vsel %vm4403_vm11, %v4405_v2, %v4401_v22  ;;  %v4432_v59 = vmul.f32 %v5491_v5, %v4429_v42 }
 0xa6b   :  { %v4411_v34 = vmul.f32 %v4409_v48, %v4406_v61  ;;  %v4441_v35 = vmul.f32 %v5489_v41, %v4440_v1 }
 0xa6d   :  { %v8353_v55 = vadd.f32 %v4432_v59, %v4411_v34  ;;  %v4442_v32 = vadd.f32 %v5489_v41, %v4441_v35 }
 0xa6f   :  { %5492 = vtanh.f32 %v8353_v55  ;;  %v4446_v37 = vsel %vm4445_vm6, %v5489_v41, %v4442_v32  ;;  %v4575_v29 = vrot.slane %v8353_v55, 7  ;;  %vm4706_vm6 = vcmask 73728  }
 0xa70   :  { %v4451_v43 = vsel %vm4448_vm10, %v4450_v56, %v4446_v37 }
 0xa75   :  { %v5493_v57 = vpop.eup %5492 }
 0xa76   :  { %v4454_v23 = vmul.f32 %v5493_v57, %v4451_v43 }
 0xa78   :  { %v4456_v24 = vrot.slane %v4454_v23, 6 }
 0xa7a   :  { %5102 = vmatmul.msk.f32.vlgmr.msrb.gmra.mxu0 %vm3310_vm13, %v4456_v24  ;;  %5103 = vmatmul.msk.f32.vlgmr.msrb.gmra.mxu1 %vm3310_vm13, %v4456_v24 }
 0xa7b   :  { %5104 = vmatmul.msk.f32.vlgmr.msrb.gmra.mxu2 %vm3310_vm13, %v4456_v24  ;;  %5105 = vmatmul.msk.f32.vlgmr.msrb.gmra.mxu3 %vm3310_vm13, %v4456_v24 }
 0xaf7   :  { %v4476_v28 = vpop.f32.mrf.mxu0  ;;  %v4500_v4 = vpop.f32.mrf.mxu1 }
 0xaf8   :  { %v4480_v33 = vrot.slane %v4476_v28, 1  ;;  %v4504_v16 = vrot.slane %v4500_v4, 1 }
 0xafa   :  { %v4482_v58 = vadd.f32 %v4480_v33, %v8157_v39  ;;  %v4506_v27 = vadd.f32 %v4504_v16, %v8148_v63  ;;  %v4625_v63 = vld [vmem:[%s8420_s11] sm:$0x1]  ;;  %v4680_v33 = vld [vmem:[%s8424_s15 + $0x10] sm:$0xff]  ;;  %v4679_v16 = vld [vmem:[%s8424_s15 + $0x8] sm:$0xff] }
 0xafb   :  { %5109 = vmatmul.msk.f32.vlgmr.msra.gmra.mxu0 %vm4627_vm3, %v4625_v63  ;;  %4699 = vmatpush.msra.mxu2 %v4680_v33 }
 0xafc   :  { %v5107_v38 = vmul.f32 -1.442695, %v4482_v58  ;;  %v5106_v11 = vmul.f32 -1.442695, %v4506_v27  ;;  %v4678_v58 = vld [vmem:[%s8424_s15] sm:$0xff] }
 0xafd   :  { %4700 = vmatpush.msra.mxu2 %v4679_v16 }
 0xafe   :  { %5494 = vpow2.f32 %v5107_v38  ;;  %v4548_v50 = vpop.f32.mrf.mxu3  ;;  %v4524_v15 = vpop.f32.mrf.mxu2 }
 0xaff   :  { %5496 = vpow2.f32 %v5106_v11  ;;  %v4552_v39 = vrot.slane %v4548_v50, 1  ;;  %4701 = vmatpush.msra.mxu2 %v4678_v58  ;;  %v4675_v11 = vld [vmem:[%s8423_s14] sm:$0x1]  ;;  %s5669_s14 = smov [#allocation4]  }
 0xb00   :  { %v4682_v50 = vld [vmem:[%s8425_s16] sm:$0x1]  ;;  %s4737_s15 = sshll.u32 %s5669_s14, 4  ;;  %s4738_s15 = int_to_ptr.vmem [resolvable:$true] %s4737_s15 }
 0xb01   :  { %v4554_v6 = vadd.f32 %v4552_v39, %v8159_v54  ;;  %v4528_v54 = vrot.slane %v4524_v15, 1 }
 0xb03   :  { %v5108_v62 = vmul.f32 -1.442695, %v4554_v6  ;;  %v4530_v21 = vadd.f32 %v4528_v54, %v8166_v8 }
 0xb04   :  { %v5495_v49 = vpop.eup %5494 }
 0xb05   :  { %v5497_v51 = vpop.eup %5496  ;;  %v4581_v0 = vadd.f32 1.0, %v5495_v49  ;;  %5498 = vpow2.f32 %v5108_v62 }
 0xb06   :  { %v4558_v47 = vadd.f32 1.0, %v5497_v51 }
 0xb07   :  { %5500 = vrcp.f32 %v4581_v0  ;;  %v4593_v30 = vand.u32 2147483648, %v4581_v0  ;;  %v4591_v41 = vand.u32 2147483647, %v4581_v0  ;;  %vm4587_vm7 = vweird.f32 %v4581_v0 }
 0xb08   :  { %5502 = vrcp.f32 %v4558_v47  ;;  %v4570_v3 = vand.u32 2147483648, %v4558_v47  ;;  %v4568_v46 = vand.u32 2147483647, %v4558_v47  ;;  %vm4564_vm8 = vweird.f32 %v4558_v47 }
 0xb09   :  { %v4594_v48 = vor.u32 1.1754944e-38, %v4593_v30  ;;  %vm4592_vm9 = vcmp.eq.f32.partialorder %v4591_v41, 8.507059e+37 }
 0xb0a   :  { %v4571_v5 = vor.u32 1.1754944e-38, %v4570_v3  ;;  %vm4569_vm1 = vcmp.eq.f32.partialorder %v4568_v46, 8.507059e+37 }
 0xb0b   :  { %v5499_v25 = vpop.eup %5498 }
 0xb0c   :  { %v4603_v18 = vadd.f32 1.0, %v5499_v25 }
 0xb0d   :  { %v5501_v13 = vpop.eup %5500 }
 0xb0e   :  { %v5503_v7 = vpop.eup %5502  ;;  %v4583_v14 = vmul.f32 %v5501_v13, %v4581_v0  ;;  %5504 = vrcp.f32 %v4603_v18  ;;  %vm4588_vm4 = vweird.f32 %v5501_v13  ;;  %v4615_v56 = vand.u32 2147483648, %v4603_v18 }
 0xb0f   :  { %v4560_v53 = vmul.f32 %v5503_v7, %v4558_v47  ;;  %5506 = vtanh.f32 %v4530_v21  ;;  %vm4565_vm15 = vweird.f32 %v5503_v7  ;;  %vm4589_vm2 = vmor %vm4587_vm7, %vm4588_vm4  ;;  %vm4609_vm11 = vweird.f32 %v4603_v18 }
 0xb10   :  { %v4584_v60 = vsub.f32 1.0, %v4583_v14  ;;  %vm4566_vm14 = vmor %vm4564_vm8, %vm4565_vm15  ;;  %v4613_v55 = vand.u32 2147483647, %v4603_v18  ;;  %v4616_v43 = vor.u32 1.1754944e-38, %v4615_v56 }
 0xb11   :  { %v4561_v31 = vsub.f32 1.0, %v4560_v53 }
 0xb12   :  { %v4585_v17 = vmul.f32 %v5501_v13, %v4584_v60  ;;  %vm4614_vm12 = vcmp.eq.f32.partialorder %v4613_v55, 8.507059e+37 }
 0xb13   :  { %v4562_v45 = vmul.f32 %v5503_v7, %v4561_v31 }
 0xb14   :  { %v5505_v20 = vpop.eup %5504  ;;  %v4586_v52 = vadd.f32 %v5501_v13, %v4585_v17 }
 0xb15   :  { %v4563_v8 = vadd.f32 %v5503_v7, %v4562_v45  ;;  %v4605_v2 = vmul.f32 %v5505_v20, %v4603_v18  ;;  %v5507_v42 = vpop.eup %5506  ;;  %vm4610_vm5 = vweird.f32 %v5505_v20 }
 0xb16   :  { %v4590_v22 = vsel %vm4589_vm2, %v5501_v13, %v4586_v52  ;;  %vm4611_vm0 = vmor %vm4609_vm11, %vm4610_vm5 }
 0xb17   :  { %v4567_v1 = vsel %vm4566_vm14, %v5503_v7, %v4563_v8  ;;  %v4595_v61 = vsel %vm4592_vm9, %v4594_v48, %v4590_v22  ;;  %v4606_v59 = vsub.f32 1.0, %v4605_v2 }
 0xb18   :  { %v4572_v34 = vsel %vm4569_vm1, %v4571_v5, %v4567_v1  ;;  %v4598_v35 = vmul.f32 %v5507_v42, %v4595_v61 }
 0xb19   :  { %v4577_v32 = vmul.f32 %v4575_v29, %v4572_v34  ;;  %v4607_v12 = vmul.f32 %v5505_v20, %v4606_v59 }
 0xb1b   :  { %v4599_v10 = vadd.f32 %v4598_v35, %v4577_v32  ;;  %v4608_v37 = vadd.f32 %v5505_v20, %v4607_v12 }
 0xb1d   :  { %5508 = vtanh.f32 %v4599_v10  ;;  %v4612_v57 = vsel %vm4611_vm0, %v5505_v20, %v4608_v37 }
 0xb1e   :  { %v4617_v24 = vsel %vm4614_vm12, %v4616_v43, %v4612_v57 }
 0xb23   :  { %v5509_v23 = vpop.eup %5508 }
 0xb24   :  { %v4620_v28 = vmul.f32 %v5509_v23, %v4617_v24 }
 0xb26   :  { %v4652_v4 = vrot.slane %v4620_v28, 7 }
 0xb28   :  { %5110 = vmatmul.msk.f32.vlgmr.msra.gmra.mxu1 %vm3310_vm13, %v4652_v4 }
 0xb78   :  { %v4648_v27 = vpop.f32.mrf.mxu0 }
 0xba5   :  { %v4672_v38 = vpop.f32.mrf.mxu1 }
 0xba6   :  { %v4673_v40 = vadd.f32 %v4672_v38, %v4648_v27 }
 0xba8   :  { %v4676_v19 = vadd.f32 %v4675_v11, %v4673_v40 }
 0xbaa   :  { %v4677_v44 = vmax.f32 %v4676_v19, 0.0 }
 0xbac   :  { %5111 = vmatmul.msk.f32.vlgmr.msra.gmra.mxu2 %vm3310_vm13, %v4677_v44 }
 0xc2f   :  { %v4703_v63 = vpop.f32.mrf.mxu2 }
 0xc30   :  { %v4704_v39 = vadd.f32 %v4703_v63, %v4682_v50 }
 0xc32   :  { %v4707_v9 = vsel %vm4706_vm6, %v4704_v39, -inf }
 0xc33   :  { %4708 = vmax.xlane.f32.xlu0 %v4707_v9 }
 0xca6   :  { %v4709_v6 = vpop.xlane.xlu0 %4708 }
 0xca7   :  { %v4710_v26 = vsub.f32 %v4704_v39, %v4709_v6 }
 0xca9   :  { %v4711_v62 = vmul.f32 1.442695, %v4710_v26 }
 0xcab   :  { %5510 = vpow2.f32 %v4711_v62 }
 0xcb1   :  { %v5511_v49 = vpop.eup %5510 }
 0xcb2   :  { %v4713_v51 = vsel %vm4706_vm6, %v5511_v49, 0.0 }
 0xcb3   :  { %4714 = vadd.xlane.f32.xlu0 %v4713_v51 }
 0xd26   :  { %v4715_v0 = vpop.xlane.xlu0 %4714 }
 0xd27   :  { %5512 = vrcp.f32 %v4715_v0  ;;  %v4727_v54 = vand.u32 2147483648, %v4715_v0  ;;  %v4725_v18 = vand.u32 2147483647, %v4715_v0  ;;  %vm4721_vm10 = vweird.f32 %v4715_v0 }
 0xd29   :  { %v4728_v21 = vor.u32 1.1754944e-38, %v4727_v54  ;;  %vm4726_vm4 = vcmp.eq.f32.partialorder %v4725_v18, 8.507059e+37 }
 0xd2d   :  { %v5513_v47 = vpop.eup %5512 }
 0xd2e   :  { %v4717_v15 = vmul.f32 %v5513_v47, %v4715_v0  ;;  %vm4722_vm13 = vweird.f32 %v5513_v47 }
 0xd2f   :  { %vm4723_vm3 = vmor %vm4721_vm10, %vm4722_vm13 }
 0xd30   :  { %v4718_v36 = vsub.f32 1.0, %v4717_v15 }
 0xd32   :  { %v4719_v25 = vmul.f32 %v5513_v47, %v4718_v36 }
 0xd34   :  { %v4720_v13 = vadd.f32 %v5513_v47, %v4719_v25 }
 0xd36   :  { %v4724_v7 = vsel %vm4723_vm3, %v5513_v47, %v4720_v13 }
 0xd37   :  { %v4729_v14 = vsel %vm4726_vm4, %v4728_v21, %v4724_v7 }
 0xd38   :  { %v4730_v53 = vmul.f32 %v5511_v49, %v4729_v14 }
 0xd3a   :  { %4731 = vst.msk [vmem:[#allocation4] sm:$0x1] %vm4706_vm6, %v4730_v53 }
 0xd3b   :  { %4742 = dma.vmem_to_hbm [thread:$0]  %s4738_s15, 16, %s4740_s8, [#allocation5]  }
 0xd3c   :  { %5666 = dma.done.wait [#allocation5], 16  }
 0xd3d   :  { %5667 = vsyncadd [#allocation5], 4294967280 }
 0xd3e   :  { %4747 = vsyncpa [#allocation5], 1 }

</bundles_post_ra>
